<compile_context>
chip_gen: v7x
topology: tpu7x:2x2x1
jax: 0.10.0
libtpu: 0.0.40
codegen_flags: <defaults>
</compile_context>

<pallas_src>
import functools
import math

import jax
import jax.numpy as jnp
from jax import lax
from jax.experimental import pallas as pl
from jax.experimental.pallas import tpu as pltpu


# ----------------------------------------------------------------------------
# Conv kernel: valid KHxKW conv for one sample, block-diagonal weight matmuls.
# ----------------------------------------------------------------------------
def _conv_kernel(x_ref, w_ref, b_ref, o_ref, *, KH, KW, Cin, Ho, Wo):
    """x_ref : (1, H, W*Cin)             f32  (lane = w*Cin + ci)
       w_ref : (KH*KW, Wo*Cin, Wo*Cout)  bf16 block-diagonal expanded weights
       b_ref : (1, Wo*Cout)              f32  bias row (tiled per wo)
       o_ref : (1, Ho, Wo*Cout)          f32  (lane = wo*Cout + co)
    """
    x = x_ref[0]                                             # (H, W*Cin)
    acc = jnp.zeros(o_ref.shape[1:], jnp.float32)            # (Ho, Wo*Cout)
    for kh in range(KH):
        for kw in range(KW):
            patch = x[kh:kh + Ho, kw * Cin:(kw + Wo) * Cin].astype(jnp.bfloat16)
            acc = acc + jnp.dot(patch, w_ref[kh * KW + kw],
                                preferred_element_type=jnp.float32)
    o_ref[0] = acc + b_ref[...]


def conv2d_valid(x2d, wbd, brow, *, KH, KW, Cin, Cout):
    """x2d: (B, H, W*Cin) f32 -> (B, Ho, Wo*Cout) f32."""
    B, H, WC = x2d.shape
    W = WC // Cin
    Ho, Wo = H - KH + 1, W - KW + 1
    W2 = Wo * Cout
    kernel = functools.partial(_conv_kernel, KH=KH, KW=KW, Cin=Cin, Ho=Ho, Wo=Wo)
    flops = 2 * B * KH * KW * Ho * (Wo * Cin) * W2
    bytes_accessed = (x2d.size * 4 + wbd.size * 2 + brow.size * 4
                      + B * Ho * W2 * 4)
    return pl.pallas_call(
        kernel,
        out_shape=jax.ShapeDtypeStruct((B, Ho, W2), jnp.float32),
        grid=(B,),
        in_specs=[
            pl.BlockSpec((1, H, WC), lambda b: (b, 0, 0)),
            pl.BlockSpec((KH * KW, Wo * Cin, W2), lambda b: (0, 0, 0)),  # resident
            pl.BlockSpec((1, W2), lambda b: (0, 0)),
        ],
        out_specs=pl.BlockSpec((1, Ho, W2), lambda b: (b, 0, 0)),
        compiler_params=pltpu.CompilerParams(
            dimension_semantics=("parallel",),
            vmem_limit_bytes=32 * 1024 * 1024),
        cost_estimate=pl.CostEstimate(flops=flops, transcendentals=0,
                                      bytes_accessed=bytes_accessed),
    )(x2d, wbd, brow)


# ----------------------------------------------------------------------------
# 2x2 / stride-2 max pool on the packed (B, Ho, Wo*Cout) conv output.
# ----------------------------------------------------------------------------
def _maxpool_kernel(x_ref, o_ref, *, Cout):
    x = x_ref[...]                                           # (TB, Hp, 2, W2)
    m = jnp.maximum(x[:, :, 0, :], x[:, :, 1, :])            # H-pool (TB, Hp, W2)
    W2c = o_ref.shape[-1]                                    # = W2 - Cout
    # candidate W-pool: lane j holds max over wo in {j//Cout, j//Cout + 1}
    o_ref[...] = jnp.maximum(m[:, :, :W2c], m[:, :, Cout:Cout + W2c])


def maxpool2x2(y, *, Cout):
    """y: (B, Ho, Wo*Cout) f32 -> (B, Ho//2, Wo//2, Cout) f32."""
    B, Ho, W2 = y.shape
    Hp, Wo = Ho // 2, W2 // Cout
    x4 = y.reshape(B, Hp, 2, W2)                             # contiguous (free)
    TB = math.gcd(B, 8)                                      # a few samples / step
    kernel = functools.partial(_maxpool_kernel, Cout=Cout)
    pooled = pl.pallas_call(
        kernel,
        out_shape=jax.ShapeDtypeStruct((B, Hp, W2 - Cout), jnp.float32),
        grid=(B // TB,),
        in_specs=[pl.BlockSpec((TB, Hp, 2, W2), lambda b: (b, 0, 0, 0))],
        out_specs=pl.BlockSpec((TB, Hp, W2 - Cout), lambda b: (b, 0, 0)),
        compiler_params=pltpu.CompilerParams(dimension_semantics=("parallel",)),
    )(x4)
    # Keep the Cout-blocks at even wo: those hold the true 2x2 maxima (tiny XLA slice).
    return pooled.reshape(B, Hp, Wo - 1, Cout)[:, :, ::2, :]  # (B, Hp, Wp, Cout)


# ----------------------------------------------------------------------------
# Fused FC stack: fc1 -> ReLU -> fc2 -> ReLU -> fc3 in one pallas_call.
# ----------------------------------------------------------------------------
def _fc_kernel(x_ref, w1_ref, b1_ref, w2_ref, b2_ref, w3_ref, b3_ref, o_ref):
    x = x_ref[...].astype(jnp.bfloat16)
    h = jnp.dot(x, w1_ref[...], preferred_element_type=jnp.float32) + b1_ref[...]
    h = jnp.maximum(h, 0.0).astype(jnp.bfloat16)
    h = jnp.dot(h, w2_ref[...], preferred_element_type=jnp.float32) + b2_ref[...]
    h = jnp.maximum(h, 0.0).astype(jnp.bfloat16)
    y = jnp.dot(h, w3_ref[...], preferred_element_type=jnp.float32) + b3_ref[...]
    o_ref[...] = y.astype(o_ref.dtype)


def fc_stack(x, w1, b1, w2, b2, w3, b3):
    B, K = x.shape
    N1, N2, N3 = w1.shape[1], w2.shape[1], w3.shape[1]
    TM = min(B, 512)                                         # row tile (TM==B for small B)
    grid = (pl.cdiv(B, TM),)
    flops = 2 * B * (K * N1 + N1 * N2 + N2 * N3)
    bytes_accessed = (x.size * 4 + (w1.size + w2.size + w3.size) * 2
                      + (N1 + N2 + N3) * 4 + B * N3 * 4)
    full2 = lambda m: (0, 0)
    return pl.pallas_call(
        _fc_kernel,
        out_shape=jax.ShapeDtypeStruct((B, N3), jnp.float32),
        grid=grid,
        in_specs=[
            pl.BlockSpec((TM, K), lambda m: (m, 0)),
            pl.BlockSpec(w1.shape, full2), pl.BlockSpec((1, N1), full2),
            pl.BlockSpec(w2.shape, full2), pl.BlockSpec((1, N2), full2),
            pl.BlockSpec(w3.shape, full2), pl.BlockSpec((1, N3), full2),
        ],
        out_specs=pl.BlockSpec((TM, N3), lambda m: (m, 0)),
        compiler_params=pltpu.CompilerParams(dimension_semantics=("parallel",)),
        cost_estimate=pl.CostEstimate(flops=flops, transcendentals=0,
                                      bytes_accessed=bytes_accessed),
    )(x, w1, b1, w2, b2, w3, b3)


# ----------------------------------------------------------------------------
# Parameters (deterministic synthetic init; shapes follow the PyTorch module)
# ----------------------------------------------------------------------------
def init_params(key):
    ks = jax.random.split(key, 10)

    def uniform(k, shape, fan_in):
        bound = 1.0 / jnp.sqrt(jnp.float32(fan_in))
        return jax.random.uniform(k, shape, jnp.float32, -bound, bound)

    return {
        "conv1_w": uniform(ks[0], (5, 5, 3, 16), 5 * 5 * 3),     # HWIO
        "conv1_b": uniform(ks[1], (16,), 5 * 5 * 3),
        "conv2_w": uniform(ks[2], (5, 5, 16, 32), 5 * 5 * 16),
        "conv2_b": uniform(ks[3], (32,), 5 * 5 * 16),
        "fc1_w": uniform(ks[4], (32 * 5 * 5, 120), 32 * 5 * 5),  # rows in torch (C,H,W) order
        "fc1_b": uniform(ks[5], (120,), 32 * 5 * 5),
        "fc2_w": uniform(ks[6], (120, 84), 120),
        "fc2_b": uniform(ks[7], (84,), 120),
        "fc3_w": uniform(ks[8], (84, 10), 84),
        "fc3_b": uniform(ks[9], (10,), 84),
    }


def _block_diag_weights(w_hwio, Wo):
    """Expand (KH,KW,Cin,Cout) into (KH*KW, Wo*Cin, Wo*Cout) block-diagonal bf16."""
    KH, KW, Cin, Cout = w_hwio.shape
    eye = jnp.eye(Wo, dtype=w_hwio.dtype)
    wk = w_hwio.reshape(KH * KW, Cin, Cout)
    wbd = jnp.einsum("uv,kic->kuivc", eye, wk)               # (K, Wo, Cin, Wo, Cout)
    return wbd.reshape(KH * KW, Wo * Cin, Wo * Cout).astype(jnp.bfloat16)


def prepare_params(p):
    """One-time repack of torch-layout params into kernel-friendly form."""
    # fc1 rows: torch (C,H,W) flatten order -> our (H,W,C) flatten order.
    fc1 = (p["fc1_w"].reshape(32, 5, 5, 120)
           .transpose(1, 2, 0, 3)
           .reshape(32 * 5 * 5, 120))
    return {
        "conv1_wbd": _block_diag_weights(p["conv1_w"], 28),
        "conv1_brow": jnp.tile(p["conv1_b"], 28).reshape(1, 28 * 16),
        "conv2_wbd": _block_diag_weights(p["conv2_w"], 10),
        "conv2_brow": jnp.tile(p["conv2_b"], 10).reshape(1, 10 * 32),
        "fc1_w": fc1.astype(jnp.bfloat16),
        "fc1_b": p["fc1_b"].reshape(1, 120),
        "fc2_w": p["fc2_w"].astype(jnp.bfloat16),
        "fc2_b": p["fc2_b"].reshape(1, 84),
        "fc3_w": p["fc3_w"].astype(jnp.bfloat16),
        "fc3_b": p["fc3_b"].reshape(1, 10),
    }


# ----------------------------------------------------------------------------
# Forward pass (mirrors Lenet5.forward)
# ----------------------------------------------------------------------------
def lenet5_forward(prep, x_nchw):
    B = x_nchw.shape[0]
    x = jnp.transpose(x_nchw, (0, 2, 3, 1))                  # NCHW -> NHWC (tiny, once)
    x = x.reshape(B, 32, 32 * 3)                             # (B, H, W*Cin)
    y = conv2d_valid(x, prep["conv1_wbd"], prep["conv1_brow"],
                     KH=5, KW=5, Cin=3, Cout=16)             # (B, 28, 28*16)
    p1 = maxpool2x2(y, Cout=16)                              # (B, 14, 14, 16)
    y = conv2d_valid(p1.reshape(B, 14, 14 * 16),
                     prep["conv2_wbd"], prep["conv2_brow"],
                     KH=5, KW=5, Cin=16, Cout=32)            # (B, 10, 10*32)
    p2 = maxpool2x2(y, Cout=32)                              # (B, 5, 5, 32)
    feats = p2.reshape(B, 5 * 5 * 32)                        # HWC flatten (matches permuted fc1)
    return fc_stack(feats, prep["fc1_w"], prep["fc1_b"],
                    prep["fc2_w"], prep["fc2_b"],
                    prep["fc3_w"], prep["fc3_b"])


# Pure-JAX reference (uses the original torch-layout params) for a sanity check.
def lenet5_reference(params, x_nchw):
    dn = ("NHWC", "HWIO", "NHWC")
    x = jnp.transpose(x_nchw, (0, 2, 3, 1))
    x = lax.conv_general_dilated(x, params["conv1_w"], (1, 1), "VALID",
                                 dimension_numbers=dn) + params["conv1_b"]
    x = lax.reduce_window(x, -jnp.inf, lax.max, (1, 2, 2, 1), (1, 2, 2, 1), "VALID")
    x = lax.conv_general_dilated(x, params["conv2_w"], (1, 1), "VALID",
                                 dimension_numbers=dn) + params["conv2_b"]
    x = lax.reduce_window(x, -jnp.inf, lax.max, (1, 2, 2, 1), (1, 2, 2, 1), "VALID")
    B = x.shape[0]
    x = jnp.transpose(x, (0, 3, 1, 2)).reshape(B, 32 * 5 * 5)   # torch .view order
    x = jnp.maximum(x @ params["fc1_w"] + params["fc1_b"], 0.0)
    x = jnp.maximum(x @ params["fc2_w"] + params["fc2_b"], 0.0)
    return x @ params["fc3_w"] + params["fc3_b"]


if __name__ == "__main__":
    key = jax.random.PRNGKey(0)
    pkey, xkey = jax.random.split(key)
    params = init_params(pkey)
    prep = prepare_params(params)
    # Module implies 32x32 RGB inputs (view to 32*5*5); use a small batch of 2.
    x = jax.random.normal(xkey, (2, 3, 32, 32), jnp.float32)

    logits = jax.jit(lenet5_forward)(prep, x)
    logits = jax.block_until_ready(logits)
    assert logits.shape == (2, 10), logits.shape

    ref = lenet5_reference(params, x)
    max_err = float(jnp.max(jnp.abs(logits - ref)))
    assert jnp.allclose(logits, ref, rtol=2e-2, atol=2e-2), max_err

    print("KERNEL_OK")
</pallas_src>

<mosaic_0001>
module attributes {stable_mosaic.version = 11 : i64} {
  func.func @_conv_kernel(%arg0: i32, %arg1: memref<1x32x96xf32, #tpu.memory_space<vmem>>, %arg2: memref<25x84x448xbf16, #tpu.memory_space<vmem>>, %arg3: memref<1x448xf32, #tpu.memory_space<vmem>>, %arg4: memref<1x28x448xf32, #tpu.memory_space<vmem>>) attributes {dimension_semantics = [#tpu.dimension_semantics<parallel>], iteration_bounds = array<i64: 2>, scalar_prefetch = 0 : i64, scratch_operands = 0 : i64, tpu.core_type = #tpu.core_type<tc>, window_params = [{transform_indices = @transform_0, window_bounds = array<i64: 1, 32, 96>}, {pipeline_mode = #tpu.pipeline_mode<synchronous>, transform_indices = @transform_1, window_bounds = array<i64: 25, 84, 448>}, {pipeline_mode = #tpu.pipeline_mode<synchronous>, transform_indices = @transform_2, window_bounds = array<i64: 1, 448>}, {transform_indices = @transform_3, window_bounds = array<i64: 1, 28, 448>}]} {
    %c0 = arith.constant 0 : index
    %c0_0 = arith.constant 0 : index
    %c0_1 = arith.constant 0 : index
    %0 = vector.load %arg1[%c0, %c0_0, %c0_1] : memref<1x32x96xf32, #tpu.memory_space<vmem>>, vector<1x32x96xf32>
    %1 = vector.shape_cast %0 : vector<1x32x96xf32> to vector<32x96xf32>
    %cst = arith.constant 0.000000e+00 : f32
    %2 = vector.broadcast %cst : f32 to vector<28x448xf32>
    %3 = vector.extract_strided_slice %1 {offsets = [0, 0], sizes = [28, 84], strides = [1, 1]} : vector<32x96xf32> to vector<28x84xf32>
    %4 = arith.truncf %3 : vector<28x84xf32> to vector<28x84xbf16>
    %c0_2 = arith.constant 0 : index
    %c0_3 = arith.constant 0 : index
    %c0_4 = arith.constant 0 : index
    %5 = vector.load %arg2[%c0_2, %c0_3, %c0_4] : memref<25x84x448xbf16, #tpu.memory_space<vmem>>, vector<1x84x448xbf16>
    %6 = vector.shape_cast %5 : vector<1x84x448xbf16> to vector<84x448xbf16>
    %cst_5 = arith.constant dense<0.000000e+00> : vector<28x448xf32>
    %7 = tpu.matmul %4, %6, %cst_5 {dimension_numbers = #tpu.dot_dimension_numbers<[1], [0], [0], [1], [0, 0, 1, 1], [], []>} : vector<28x84xbf16>, vector<84x448xbf16>, vector<28x448xf32> -> vector<28x448xf32>
    %8 = arith.addf %2, %7 : vector<28x448xf32>
    %9 = vector.extract_strided_slice %1 {offsets = [0, 3], sizes = [28, 84], strides = [1, 1]} : vector<32x96xf32> to vector<28x84xf32>
    %10 = arith.truncf %9 : vector<28x84xf32> to vector<28x84xbf16>
    %c1 = arith.constant 1 : index
    %c0_6 = arith.constant 0 : index
    %c0_7 = arith.constant 0 : index
    %11 = vector.load %arg2[%c1, %c0_6, %c0_7] : memref<25x84x448xbf16, #tpu.memory_space<vmem>>, vector<1x84x448xbf16>
    %12 = vector.shape_cast %11 : vector<1x84x448xbf16> to vector<84x448xbf16>
    %cst_8 = arith.constant dense<0.000000e+00> : vector<28x448xf32>
    %13 = tpu.matmul %10, %12, %cst_8 {dimension_numbers = #tpu.dot_dimension_numbers<[1], [0], [0], [1], [0, 0, 1, 1], [], []>} : vector<28x84xbf16>, vector<84x448xbf16>, vector<28x448xf32> -> vector<28x448xf32>
    %14 = arith.addf %8, %13 : vector<28x448xf32>
    %15 = vector.extract_strided_slice %1 {offsets = [0, 6], sizes = [28, 84], strides = [1, 1]} : vector<32x96xf32> to vector<28x84xf32>
    %16 = arith.truncf %15 : vector<28x84xf32> to vector<28x84xbf16>
    %c2 = arith.constant 2 : index
    %c0_9 = arith.constant 0 : index
    %c0_10 = arith.constant 0 : index
    %17 = vector.load %arg2[%c2, %c0_9, %c0_10] : memref<25x84x448xbf16, #tpu.memory_space<vmem>>, vector<1x84x448xbf16>
    %18 = vector.shape_cast %17 : vector<1x84x448xbf16> to vector<84x448xbf16>
    %cst_11 = arith.constant dense<0.000000e+00> : vector<28x448xf32>
    %19 = tpu.matmul %16, %18, %cst_11 {dimension_numbers = #tpu.dot_dimension_numbers<[1], [0], [0], [1], [0, 0, 1, 1], [], []>} : vector<28x84xbf16>, vector<84x448xbf16>, vector<28x448xf32> -> vector<28x448xf32>
    %20 = arith.addf %14, %19 : vector<28x448xf32>
    %21 = vector.extract_strided_slice %1 {offsets = [0, 9], sizes = [28, 84], strides = [1, 1]} : vector<32x96xf32> to vector<28x84xf32>
    %22 = arith.truncf %21 : vector<28x84xf32> to vector<28x84xbf16>
    %c3 = arith.constant 3 : index
    %c0_12 = arith.constant 0 : index
    %c0_13 = arith.constant 0 : index
    %23 = vector.load %arg2[%c3, %c0_12, %c0_13] : memref<25x84x448xbf16, #tpu.memory_space<vmem>>, vector<1x84x448xbf16>
    %24 = vector.shape_cast %23 : vector<1x84x448xbf16> to vector<84x448xbf16>
    %cst_14 = arith.constant dense<0.000000e+00> : vector<28x448xf32>
    %25 = tpu.matmul %22, %24, %cst_14 {dimension_numbers = #tpu.dot_dimension_numbers<[1], [0], [0], [1], [0, 0, 1, 1], [], []>} : vector<28x84xbf16>, vector<84x448xbf16>, vector<28x448xf32> -> vector<28x448xf32>
    %26 = arith.addf %20, %25 : vector<28x448xf32>
    %27 = vector.extract_strided_slice %1 {offsets = [0, 12], sizes = [28, 84], strides = [1, 1]} : vector<32x96xf32> to vector<28x84xf32>
    %28 = arith.truncf %27 : vector<28x84xf32> to vector<28x84xbf16>
    %c4 = arith.constant 4 : index
    %c0_15 = arith.constant 0 : index
    %c0_16 = arith.constant 0 : index
    %29 = vector.load %arg2[%c4, %c0_15, %c0_16] : memref<25x84x448xbf16, #tpu.memory_space<vmem>>, vector<1x84x448xbf16>
    %30 = vector.shape_cast %29 : vector<1x84x448xbf16> to vector<84x448xbf16>
    %cst_17 = arith.constant dense<0.000000e+00> : vector<28x448xf32>
    %31 = tpu.matmul %28, %30, %cst_17 {dimension_numbers = #tpu.dot_dimension_numbers<[1], [0], [0], [1], [0, 0, 1, 1], [], []>} : vector<28x84xbf16>, vector<84x448xbf16>, vector<28x448xf32> -> vector<28x448xf32>
    %32 = arith.addf %26, %31 : vector<28x448xf32>
    %33 = vector.extract_strided_slice %1 {offsets = [1, 0], sizes = [28, 84], strides = [1, 1]} : vector<32x96xf32> to vector<28x84xf32>
    %34 = arith.truncf %33 : vector<28x84xf32> to vector<28x84xbf16>
    %c5 = arith.constant 5 : index
    %c0_18 = arith.constant 0 : index
    %c0_19 = arith.constant 0 : index
    %35 = vector.load %arg2[%c5, %c0_18, %c0_19] : memref<25x84x448xbf16, #tpu.memory_space<vmem>>, vector<1x84x448xbf16>
    %36 = vector.shape_cast %35 : vector<1x84x448xbf16> to vector<84x448xbf16>
    %cst_20 = arith.constant dense<0.000000e+00> : vector<28x448xf32>
    %37 = tpu.matmul %34, %36, %cst_20 {dimension_numbers = #tpu.dot_dimension_numbers<[1], [0], [0], [1], [0, 0, 1, 1], [], []>} : vector<28x84xbf16>, vector<84x448xbf16>, vector<28x448xf32> -> vector<28x448xf32>
    %38 = arith.addf %32, %37 : vector<28x448xf32>
    %39 = vector.extract_strided_slice %1 {offsets = [1, 3], sizes = [28, 84], strides = [1, 1]} : vector<32x96xf32> to vector<28x84xf32>
    %40 = arith.truncf %39 : vector<28x84xf32> to vector<28x84xbf16>
    %c6 = arith.constant 6 : index
    %c0_21 = arith.constant 0 : index
    %c0_22 = arith.constant 0 : index
    %41 = vector.load %arg2[%c6, %c0_21, %c0_22] : memref<25x84x448xbf16, #tpu.memory_space<vmem>>, vector<1x84x448xbf16>
    %42 = vector.shape_cast %41 : vector<1x84x448xbf16> to vector<84x448xbf16>
    %cst_23 = arith.constant dense<0.000000e+00> : vector<28x448xf32>
    %43 = tpu.matmul %40, %42, %cst_23 {dimension_numbers = #tpu.dot_dimension_numbers<[1], [0], [0], [1], [0, 0, 1, 1], [], []>} : vector<28x84xbf16>, vector<84x448xbf16>, vector<28x448xf32> -> vector<28x448xf32>
    %44 = arith.addf %38, %43 : vector<28x448xf32>
    %45 = vector.extract_strided_slice %1 {offsets = [1, 6], sizes = [28, 84], strides = [1, 1]} : vector<32x96xf32> to vector<28x84xf32>
    %46 = arith.truncf %45 : vector<28x84xf32> to vector<28x84xbf16>
    %c7 = arith.constant 7 : index
    %c0_24 = arith.constant 0 : index
    %c0_25 = arith.constant 0 : index
    %47 = vector.load %arg2[%c7, %c0_24, %c0_25] : memref<25x84x448xbf16, #tpu.memory_space<vmem>>, vector<1x84x448xbf16>
    %48 = vector.shape_cast %47 : vector<1x84x448xbf16> to vector<84x448xbf16>
    %cst_26 = arith.constant dense<0.000000e+00> : vector<28x448xf32>
    %49 = tpu.matmul %46, %48, %cst_26 {dimension_numbers = #tpu.dot_dimension_numbers<[1], [0], [0], [1], [0, 0, 1, 1], [], []>} : vector<28x84xbf16>, vector<84x448xbf16>, vector<28x448xf32> -> vector<28x448xf32>
    %50 = arith.addf %44, %49 : vector<28x448xf32>
    %51 = vector.extract_strided_slice %1 {offsets = [1, 9], sizes = [28, 84], strides = [1, 1]} : vector<32x96xf32> to vector<28x84xf32>
    %52 = arith.truncf %51 : vector<28x84xf32> to vector<28x84xbf16>
    %c8 = arith.constant 8 : index
    %c0_27 = arith.constant 0 : index
    %c0_28 = arith.constant 0 : index
    %53 = vector.load %arg2[%c8, %c0_27, %c0_28] : memref<25x84x448xbf16, #tpu.memory_space<vmem>>, vector<1x84x448xbf16>
    %54 = vector.shape_cast %53 : vector<1x84x448xbf16> to vector<84x448xbf16>
    %cst_29 = arith.constant dense<0.000000e+00> : vector<28x448xf32>
    %55 = tpu.matmul %52, %54, %cst_29 {dimension_numbers = #tpu.dot_dimension_numbers<[1], [0], [0], [1], [0, 0, 1, 1], [], []>} : vector<28x84xbf16>, vector<84x448xbf16>, vector<28x448xf32> -> vector<28x448xf32>
    %56 = arith.addf %50, %55 : vector<28x448xf32>
    %57 = vector.extract_strided_slice %1 {offsets = [1, 12], sizes = [28, 84], strides = [1, 1]} : vector<32x96xf32> to vector<28x84xf32>
    %58 = arith.truncf %57 : vector<28x84xf32> to vector<28x84xbf16>
    %c9 = arith.constant 9 : index
    %c0_30 = arith.constant 0 : index
    %c0_31 = arith.constant 0 : index
    %59 = vector.load %arg2[%c9, %c0_30, %c0_31] : memref<25x84x448xbf16, #tpu.memory_space<vmem>>, vector<1x84x448xbf16>
    %60 = vector.shape_cast %59 : vector<1x84x448xbf16> to vector<84x448xbf16>
    %cst_32 = arith.constant dense<0.000000e+00> : vector<28x448xf32>
    %61 = tpu.matmul %58, %60, %cst_32 {dimension_numbers = #tpu.dot_dimension_numbers<[1], [0], [0], [1], [0, 0, 1, 1], [], []>} : vector<28x84xbf16>, vector<84x448xbf16>, vector<28x448xf32> -> vector<28x448xf32>
    %62 = arith.addf %56, %61 : vector<28x448xf32>
    %63 = vector.extract_strided_slice %1 {offsets = [2, 0], sizes = [28, 84], strides = [1, 1]} : vector<32x96xf32> to vector<28x84xf32>
    %64 = arith.truncf %63 : vector<28x84xf32> to vector<28x84xbf16>
    %c10 = arith.constant 10 : index
    %c0_33 = arith.constant 0 : index
    %c0_34 = arith.constant 0 : index
    %65 = vector.load %arg2[%c10, %c0_33, %c0_34] : memref<25x84x448xbf16, #tpu.memory_space<vmem>>, vector<1x84x448xbf16>
    %66 = vector.shape_cast %65 : vector<1x84x448xbf16> to vector<84x448xbf16>
    %cst_35 = arith.constant dense<0.000000e+00> : vector<28x448xf32>
    %67 = tpu.matmul %64, %66, %cst_35 {dimension_numbers = #tpu.dot_dimension_numbers<[1], [0], [0], [1], [0, 0, 1, 1], [], []>} : vector<28x84xbf16>, vector<84x448xbf16>, vector<28x448xf32> -> vector<28x448xf32>
    %68 = arith.addf %62, %67 : vector<28x448xf32>
    %69 = vector.extract_strided_slice %1 {offsets = [2, 3], sizes = [28, 84], strides = [1, 1]} : vector<32x96xf32> to vector<28x84xf32>
    %70 = arith.truncf %69 : vector<28x84xf32> to vector<28x84xbf16>
    %c11 = arith.constant 11 : index
    %c0_36 = arith.constant 0 : index
    %c0_37 = arith.constant 0 : index
    %71 = vector.load %arg2[%c11, %c0_36, %c0_37] : memref<25x84x448xbf16, #tpu.memory_space<vmem>>, vector<1x84x448xbf16>
    %72 = vector.shape_cast %71 : vector<1x84x448xbf16> to vector<84x448xbf16>
    %cst_38 = arith.constant dense<0.000000e+00> : vector<28x448xf32>
    %73 = tpu.matmul %70, %72, %cst_38 {dimension_numbers = #tpu.dot_dimension_numbers<[1], [0], [0], [1], [0, 0, 1, 1], [], []>} : vector<28x84xbf16>, vector<84x448xbf16>, vector<28x448xf32> -> vector<28x448xf32>
    %74 = arith.addf %68, %73 : vector<28x448xf32>
    %75 = vector.extract_strided_slice %1 {offsets = [2, 6], sizes = [28, 84], strides = [1, 1]} : vector<32x96xf32> to vector<28x84xf32>
    %76 = arith.truncf %75 : vector<28x84xf32> to vector<28x84xbf16>
    %c12 = arith.constant 12 : index
    %c0_39 = arith.constant 0 : index
    %c0_40 = arith.constant 0 : index
    %77 = vector.load %arg2[%c12, %c0_39, %c0_40] : memref<25x84x448xbf16, #tpu.memory_space<vmem>>, vector<1x84x448xbf16>
    %78 = vector.shape_cast %77 : vector<1x84x448xbf16> to vector<84x448xbf16>
    %cst_41 = arith.constant dense<0.000000e+00> : vector<28x448xf32>
    %79 = tpu.matmul %76, %78, %cst_41 {dimension_numbers = #tpu.dot_dimension_numbers<[1], [0], [0], [1], [0, 0, 1, 1], [], []>} : vector<28x84xbf16>, vector<84x448xbf16>, vector<28x448xf32> -> vector<28x448xf32>
    %80 = arith.addf %74, %79 : vector<28x448xf32>
    %81 = vector.extract_strided_slice %1 {offsets = [2, 9], sizes = [28, 84], strides = [1, 1]} : vector<32x96xf32> to vector<28x84xf32>
    %82 = arith.truncf %81 : vector<28x84xf32> to vector<28x84xbf16>
    %c13 = arith.constant 13 : index
    %c0_42 = arith.constant 0 : index
    %c0_43 = arith.constant 0 : index
    %83 = vector.load %arg2[%c13, %c0_42, %c0_43] : memref<25x84x448xbf16, #tpu.memory_space<vmem>>, vector<1x84x448xbf16>
    %84 = vector.shape_cast %83 : vector<1x84x448xbf16> to vector<84x448xbf16>
    %cst_44 = arith.constant dense<0.000000e+00> : vector<28x448xf32>
    %85 = tpu.matmul %82, %84, %cst_44 {dimension_numbers = #tpu.dot_dimension_numbers<[1], [0], [0], [1], [0, 0, 1, 1], [], []>} : vector<28x84xbf16>, vector<84x448xbf16>, vector<28x448xf32> -> vector<28x448xf32>
    %86 = arith.addf %80, %85 : vector<28x448xf32>
    %87 = vector.extract_strided_slice %1 {offsets = [2, 12], sizes = [28, 84], strides = [1, 1]} : vector<32x96xf32> to vector<28x84xf32>
    %88 = arith.truncf %87 : vector<28x84xf32> to vector<28x84xbf16>
    %c14 = arith.constant 14 : index
    %c0_45 = arith.constant 0 : index
    %c0_46 = arith.constant 0 : index
    %89 = vector.load %arg2[%c14, %c0_45, %c0_46] : memref<25x84x448xbf16, #tpu.memory_space<vmem>>, vector<1x84x448xbf16>
    %90 = vector.shape_cast %89 : vector<1x84x448xbf16> to vector<84x448xbf16>
    %cst_47 = arith.constant dense<0.000000e+00> : vector<28x448xf32>
    %91 = tpu.matmul %88, %90, %cst_47 {dimension_numbers = #tpu.dot_dimension_numbers<[1], [0], [0], [1], [0, 0, 1, 1], [], []>} : vector<28x84xbf16>, vector<84x448xbf16>, vector<28x448xf32> -> vector<28x448xf32>
    %92 = arith.addf %86, %91 : vector<28x448xf32>
    %93 = vector.extract_strided_slice %1 {offsets = [3, 0], sizes = [28, 84], strides = [1, 1]} : vector<32x96xf32> to vector<28x84xf32>
    %94 = arith.truncf %93 : vector<28x84xf32> to vector<28x84xbf16>
    %c15 = arith.constant 15 : index
    %c0_48 = arith.constant 0 : index
    %c0_49 = arith.constant 0 : index
    %95 = vector.load %arg2[%c15, %c0_48, %c0_49] : memref<25x84x448xbf16, #tpu.memory_space<vmem>>, vector<1x84x448xbf16>
    %96 = vector.shape_cast %95 : vector<1x84x448xbf16> to vector<84x448xbf16>
    %cst_50 = arith.constant dense<0.000000e+00> : vector<28x448xf32>
    %97 = tpu.matmul %94, %96, %cst_50 {dimension_numbers = #tpu.dot_dimension_numbers<[1], [0], [0], [1], [0, 0, 1, 1], [], []>} : vector<28x84xbf16>, vector<84x448xbf16>, vector<28x448xf32> -> vector<28x448xf32>
    %98 = arith.addf %92, %97 : vector<28x448xf32>
    %99 = vector.extract_strided_slice %1 {offsets = [3, 3], sizes = [28, 84], strides = [1, 1]} : vector<32x96xf32> to vector<28x84xf32>
    %100 = arith.truncf %99 : vector<28x84xf32> to vector<28x84xbf16>
    %c16 = arith.constant 16 : index
    %c0_51 = arith.constant 0 : index
    %c0_52 = arith.constant 0 : index
    %101 = vector.load %arg2[%c16, %c0_51, %c0_52] : memref<25x84x448xbf16, #tpu.memory_space<vmem>>, vector<1x84x448xbf16>
    %102 = vector.shape_cast %101 : vector<1x84x448xbf16> to vector<84x448xbf16>
    %cst_53 = arith.constant dense<0.000000e+00> : vector<28x448xf32>
    %103 = tpu.matmul %100, %102, %cst_53 {dimension_numbers = #tpu.dot_dimension_numbers<[1], [0], [0], [1], [0, 0, 1, 1], [], []>} : vector<28x84xbf16>, vector<84x448xbf16>, vector<28x448xf32> -> vector<28x448xf32>
    %104 = arith.addf %98, %103 : vector<28x448xf32>
    %105 = vector.extract_strided_slice %1 {offsets = [3, 6], sizes = [28, 84], strides = [1, 1]} : vector<32x96xf32> to vector<28x84xf32>
    %106 = arith.truncf %105 : vector<28x84xf32> to vector<28x84xbf16>
    %c17 = arith.constant 17 : index
    %c0_54 = arith.constant 0 : index
    %c0_55 = arith.constant 0 : index
    %107 = vector.load %arg2[%c17, %c0_54, %c0_55] : memref<25x84x448xbf16, #tpu.memory_space<vmem>>, vector<1x84x448xbf16>
    %108 = vector.shape_cast %107 : vector<1x84x448xbf16> to vector<84x448xbf16>
    %cst_56 = arith.constant dense<0.000000e+00> : vector<28x448xf32>
    %109 = tpu.matmul %106, %108, %cst_56 {dimension_numbers = #tpu.dot_dimension_numbers<[1], [0], [0], [1], [0, 0, 1, 1], [], []>} : vector<28x84xbf16>, vector<84x448xbf16>, vector<28x448xf32> -> vector<28x448xf32>
    %110 = arith.addf %104, %109 : vector<28x448xf32>
    %111 = vector.extract_strided_slice %1 {offsets = [3, 9], sizes = [28, 84], strides = [1, 1]} : vector<32x96xf32> to vector<28x84xf32>
    %112 = arith.truncf %111 : vector<28x84xf32> to vector<28x84xbf16>
    %c18 = arith.constant 18 : index
    %c0_57 = arith.constant 0 : index
    %c0_58 = arith.constant 0 : index
    %113 = vector.load %arg2[%c18, %c0_57, %c0_58] : memref<25x84x448xbf16, #tpu.memory_space<vmem>>, vector<1x84x448xbf16>
    %114 = vector.shape_cast %113 : vector<1x84x448xbf16> to vector<84x448xbf16>
    %cst_59 = arith.constant dense<0.000000e+00> : vector<28x448xf32>
    %115 = tpu.matmul %112, %114, %cst_59 {dimension_numbers = #tpu.dot_dimension_numbers<[1], [0], [0], [1], [0, 0, 1, 1], [], []>} : vector<28x84xbf16>, vector<84x448xbf16>, vector<28x448xf32> -> vector<28x448xf32>
    %116 = arith.addf %110, %115 : vector<28x448xf32>
    %117 = vector.extract_strided_slice %1 {offsets = [3, 12], sizes = [28, 84], strides = [1, 1]} : vector<32x96xf32> to vector<28x84xf32>
    %118 = arith.truncf %117 : vector<28x84xf32> to vector<28x84xbf16>
    %c19 = arith.constant 19 : index
    %c0_60 = arith.constant 0 : index
    %c0_61 = arith.constant 0 : index
    %119 = vector.load %arg2[%c19, %c0_60, %c0_61] : memref<25x84x448xbf16, #tpu.memory_space<vmem>>, vector<1x84x448xbf16>
    %120 = vector.shape_cast %119 : vector<1x84x448xbf16> to vector<84x448xbf16>
    %cst_62 = arith.constant dense<0.000000e+00> : vector<28x448xf32>
    %121 = tpu.matmul %118, %120, %cst_62 {dimension_numbers = #tpu.dot_dimension_numbers<[1], [0], [0], [1], [0, 0, 1, 1], [], []>} : vector<28x84xbf16>, vector<84x448xbf16>, vector<28x448xf32> -> vector<28x448xf32>
    %122 = arith.addf %116, %121 : vector<28x448xf32>
    %123 = vector.extract_strided_slice %1 {offsets = [4, 0], sizes = [28, 84], strides = [1, 1]} : vector<32x96xf32> to vector<28x84xf32>
    %124 = arith.truncf %123 : vector<28x84xf32> to vector<28x84xbf16>
    %c20 = arith.constant 20 : index
    %c0_63 = arith.constant 0 : index
    %c0_64 = arith.constant 0 : index
    %125 = vector.load %arg2[%c20, %c0_63, %c0_64] : memref<25x84x448xbf16, #tpu.memory_space<vmem>>, vector<1x84x448xbf16>
    %126 = vector.shape_cast %125 : vector<1x84x448xbf16> to vector<84x448xbf16>
    %cst_65 = arith.constant dense<0.000000e+00> : vector<28x448xf32>
    %127 = tpu.matmul %124, %126, %cst_65 {dimension_numbers = #tpu.dot_dimension_numbers<[1], [0], [0], [1], [0, 0, 1, 1], [], []>} : vector<28x84xbf16>, vector<84x448xbf16>, vector<28x448xf32> -> vector<28x448xf32>
    %128 = arith.addf %122, %127 : vector<28x448xf32>
    %129 = vector.extract_strided_slice %1 {offsets = [4, 3], sizes = [28, 84], strides = [1, 1]} : vector<32x96xf32> to vector<28x84xf32>
    %130 = arith.truncf %129 : vector<28x84xf32> to vector<28x84xbf16>
    %c21 = arith.constant 21 : index
    %c0_66 = arith.constant 0 : index
    %c0_67 = arith.constant 0 : index
    %131 = vector.load %arg2[%c21, %c0_66, %c0_67] : memref<25x84x448xbf16, #tpu.memory_space<vmem>>, vector<1x84x448xbf16>
    %132 = vector.shape_cast %131 : vector<1x84x448xbf16> to vector<84x448xbf16>
    %cst_68 = arith.constant dense<0.000000e+00> : vector<28x448xf32>
    %133 = tpu.matmul %130, %132, %cst_68 {dimension_numbers = #tpu.dot_dimension_numbers<[1], [0], [0], [1], [0, 0, 1, 1], [], []>} : vector<28x84xbf16>, vector<84x448xbf16>, vector<28x448xf32> -> vector<28x448xf32>
    %134 = arith.addf %128, %133 : vector<28x448xf32>
    %135 = vector.extract_strided_slice %1 {offsets = [4, 6], sizes = [28, 84], strides = [1, 1]} : vector<32x96xf32> to vector<28x84xf32>
    %136 = arith.truncf %135 : vector<28x84xf32> to vector<28x84xbf16>
    %c22 = arith.constant 22 : index
    %c0_69 = arith.constant 0 : index
    %c0_70 = arith.constant 0 : index
    %137 = vector.load %arg2[%c22, %c0_69, %c0_70] : memref<25x84x448xbf16, #tpu.memory_space<vmem>>, vector<1x84x448xbf16>
    %138 = vector.shape_cast %137 : vector<1x84x448xbf16> to vector<84x448xbf16>
    %cst_71 = arith.constant dense<0.000000e+00> : vector<28x448xf32>
    %139 = tpu.matmul %136, %138, %cst_71 {dimension_numbers = #tpu.dot_dimension_numbers<[1], [0], [0], [1], [0, 0, 1, 1], [], []>} : vector<28x84xbf16>, vector<84x448xbf16>, vector<28x448xf32> -> vector<28x448xf32>
    %140 = arith.addf %134, %139 : vector<28x448xf32>
    %141 = vector.extract_strided_slice %1 {offsets = [4, 9], sizes = [28, 84], strides = [1, 1]} : vector<32x96xf32> to vector<28x84xf32>
    %142 = arith.truncf %141 : vector<28x84xf32> to vector<28x84xbf16>
    %c23 = arith.constant 23 : index
    %c0_72 = arith.constant 0 : index
    %c0_73 = arith.constant 0 : index
    %143 = vector.load %arg2[%c23, %c0_72, %c0_73] : memref<25x84x448xbf16, #tpu.memory_space<vmem>>, vector<1x84x448xbf16>
    %144 = vector.shape_cast %143 : vector<1x84x448xbf16> to vector<84x448xbf16>
    %cst_74 = arith.constant dense<0.000000e+00> : vector<28x448xf32>
    %145 = tpu.matmul %142, %144, %cst_74 {dimension_numbers = #tpu.dot_dimension_numbers<[1], [0], [0], [1], [0, 0, 1, 1], [], []>} : vector<28x84xbf16>, vector<84x448xbf16>, vector<28x448xf32> -> vector<28x448xf32>
    %146 = arith.addf %140, %145 : vector<28x448xf32>
    %147 = vector.extract_strided_slice %1 {offsets = [4, 12], sizes = [28, 84], strides = [1, 1]} : vector<32x96xf32> to vector<28x84xf32>
    %148 = arith.truncf %147 : vector<28x84xf32> to vector<28x84xbf16>
    %c24 = arith.constant 24 : index
    %c0_75 = arith.constant 0 : index
    %c0_76 = arith.constant 0 : index
    %149 = vector.load %arg2[%c24, %c0_75, %c0_76] : memref<25x84x448xbf16, #tpu.memory_space<vmem>>, vector<1x84x448xbf16>
    %150 = vector.shape_cast %149 : vector<1x84x448xbf16> to vector<84x448xbf16>
    %cst_77 = arith.constant dense<0.000000e+00> : vector<28x448xf32>
    %151 = tpu.matmul %148, %150, %cst_77 {dimension_numbers = #tpu.dot_dimension_numbers<[1], [0], [0], [1], [0, 0, 1, 1], [], []>} : vector<28x84xbf16>, vector<84x448xbf16>, vector<28x448xf32> -> vector<28x448xf32>
    %152 = arith.addf %146, %151 : vector<28x448xf32>
    %c0_78 = arith.constant 0 : index
    %c0_79 = arith.constant 0 : index
    %153 = vector.load %arg3[%c0_78, %c0_79] : memref<1x448xf32, #tpu.memory_space<vmem>>, vector<1x448xf32>
    %154 = vector.broadcast %153 : vector<1x448xf32> to vector<28x448xf32>
    %155 = arith.addf %152, %154 : vector<28x448xf32>
    %c0_80 = arith.constant 0 : index
    %c0_81 = arith.constant 0 : index
    %c0_82 = arith.constant 0 : index
    %156 = vector.load %arg4[%c0_80, %c0_81, %c0_82] : memref<1x28x448xf32, #tpu.memory_space<vmem>>, vector<1x28x448xf32>
    %157 = vector.shape_cast %156 : vector<1x28x448xf32> to vector<28x448xf32>
    %158 = vector.shape_cast %155 : vector<28x448xf32> to vector<1x28x448xf32>
    tpu.vector_store %arg4[%c0_80, %c0_81, %c0_82], %158 {strides = array<i32>} : memref<1x28x448xf32, #tpu.memory_space<vmem>>, vector<1x28x448xf32>,
    return
  }
  func.func @transform_0(%arg0: i32) -> (i32, i32, i32) {
    %c0_i32 = arith.constant 0 : i32
    %c0_i32_0 = arith.constant 0 : i32
    %c0_i32_1 = arith.constant 0 : i32
    return %arg0, %c0_i32, %c0_i32_0 : i32, i32, i32
  }
  func.func @transform_1(%arg0: i32) -> (i32, i32, i32) {
    %c0_i32 = arith.constant 0 : i32
    %c0_i32_0 = arith.constant 0 : i32
    %c0_i32_1 = arith.constant 0 : i32
    %c0_i32_2 = arith.constant 0 : i32
    return %c0_i32, %c0_i32_0, %c0_i32_1 : i32, i32, i32
  }
  func.func @transform_2(%arg0: i32) -> (i32, i32) {
    %c0_i32 = arith.constant 0 : i32
    %c0_i32_0 = arith.constant 0 : i32
    %c0_i32_1 = arith.constant 0 : i32
    return %c0_i32, %c0_i32_0 : i32, i32
  }
  func.func @transform_3(%arg0: i32) -> (i32, i32, i32) {
    %c0_i32 = arith.constant 0 : i32
    %c0_i32_0 = arith.constant 0 : i32
    %c0_i32_1 = arith.constant 0 : i32
    return %arg0, %c0_i32, %c0_i32_0 : i32, i32, i32
  }
}

module attributes {stable_mosaic.version = 11 : i64} {
  func.func @_maxpool_kernel(%arg0: i32, %arg1: memref<2x14x2x448xf32, #tpu.memory_space<vmem>>, %arg2: memref<2x14x432xf32, #tpu.memory_space<vmem>>) attributes {dimension_semantics = [#tpu.dimension_semantics<parallel>], iteration_bounds = array<i64: 1>, scalar_prefetch = 0 : i64, scratch_operands = 0 : i64, tpu.core_type = #tpu.core_type<tc>, window_params = [{transform_indices = @transform_0, window_bounds = array<i64: 2, 14, 2, 448>}, {transform_indices = @transform_1, window_bounds = array<i64: 2, 14, 432>}]} {
    %c0 = arith.constant 0 : index
    %c0_0 = arith.constant 0 : index
    %c0_1 = arith.constant 0 : index
    %c0_2 = arith.constant 0 : index
    %0 = vector.load %arg1[%c0, %c0_0, %c0_1, %c0_2] : memref<2x14x2x448xf32, #tpu.memory_space<vmem>>, vector<2x14x2x448xf32>
    %1 = vector.extract_strided_slice %0 {offsets = [0, 0, 0, 0], sizes = [2, 14, 1, 448], strides = [1, 1, 1, 1]} : vector<2x14x2x448xf32> to vector<2x14x1x448xf32>
    %2 = vector.shape_cast %1 : vector<2x14x1x448xf32> to vector<2x14x448xf32>
    %3 = vector.extract_strided_slice %0 {offsets = [0, 0, 1, 0], sizes = [2, 14, 1, 448], strides = [1, 1, 1, 1]} : vector<2x14x2x448xf32> to vector<2x14x1x448xf32>
    %4 = vector.shape_cast %3 : vector<2x14x1x448xf32> to vector<2x14x448xf32>
    %5 = arith.maximumf %2, %4 : vector<2x14x448xf32>
    %6 = vector.extract_strided_slice %5 {offsets = [0, 0, 0], sizes = [2, 14, 432], strides = [1, 1, 1]} : vector<2x14x448xf32> to vector<2x14x432xf32>
    %7 = vector.extract_strided_slice %5 {offsets = [0, 0, 16], sizes = [2, 14, 432], strides = [1, 1, 1]} : vector<2x14x448xf32> to vector<2x14x432xf32>
    %8 = arith.maximumf %6, %7 : vector<2x14x432xf32>
    %c0_3 = arith.constant 0 : index
    %c0_4 = arith.constant 0 : index
    %c0_5 = arith.constant 0 : index
    %9 = vector.load %arg2[%c0_3, %c0_4, %c0_5] : memref<2x14x432xf32, #tpu.memory_space<vmem>>, vector<2x14x432xf32>
    tpu.vector_store %arg2[%c0_3, %c0_4, %c0_5], %8 {strides = array<i32>} : memref<2x14x432xf32, #tpu.memory_space<vmem>>, vector<2x14x432xf32>,
    return
  }
  func.func @transform_0(%arg0: i32) -> (i32, i32, i32, i32) {
    %c0_i32 = arith.constant 0 : i32
    %c0_i32_0 = arith.constant 0 : i32
    %c0_i32_1 = arith.constant 0 : i32
    %c0_i32_2 = arith.constant 0 : i32
    return %arg0, %c0_i32, %c0_i32_0, %c0_i32_1 : i32, i32, i32, i32
  }
  func.func @transform_1(%arg0: i32) -> (i32, i32, i32) {
    %c0_i32 = arith.constant 0 : i32
    %c0_i32_0 = arith.constant 0 : i32
    %c0_i32_1 = arith.constant 0 : i32
    return %arg0, %c0_i32, %c0_i32_0 : i32, i32, i32
  }
}

module attributes {stable_mosaic.version = 11 : i64} {
  func.func @_conv_kernel(%arg0: i32, %arg1: memref<1x14x224xf32, #tpu.memory_space<vmem>>, %arg2: memref<25x160x320xbf16, #tpu.memory_space<vmem>>, %arg3: memref<1x320xf32, #tpu.memory_space<vmem>>, %arg4: memref<1x10x320xf32, #tpu.memory_space<vmem>>) attributes {dimension_semantics = [#tpu.dimension_semantics<parallel>], iteration_bounds = array<i64: 2>, scalar_prefetch = 0 : i64, scratch_operands = 0 : i64, tpu.core_type = #tpu.core_type<tc>, window_params = [{transform_indices = @transform_0, window_bounds = array<i64: 1, 14, 224>}, {pipeline_mode = #tpu.pipeline_mode<synchronous>, transform_indices = @transform_1, window_bounds = array<i64: 25, 160, 320>}, {pipeline_mode = #tpu.pipeline_mode<synchronous>, transform_indices = @transform_2, window_bounds = array<i64: 1, 320>}, {transform_indices = @transform_3, window_bounds = array<i64: 1, 10, 320>}]} {
    %c0 = arith.constant 0 : index
    %c0_0 = arith.constant 0 : index
    %c0_1 = arith.constant 0 : index
    %0 = vector.load %arg1[%c0, %c0_0, %c0_1] : memref<1x14x224xf32, #tpu.memory_space<vmem>>, vector<1x14x224xf32>
    %1 = vector.shape_cast %0 : vector<1x14x224xf32> to vector<14x224xf32>
    %cst = arith.constant 0.000000e+00 : f32
    %2 = vector.broadcast %cst : f32 to vector<10x320xf32>
    %3 = vector.extract_strided_slice %1 {offsets = [0, 0], sizes = [10, 160], strides = [1, 1]} : vector<14x224xf32> to vector<10x160xf32>
    %4 = arith.truncf %3 : vector<10x160xf32> to vector<10x160xbf16>
    %c0_2 = arith.constant 0 : index
    %c0_3 = arith.constant 0 : index
    %c0_4 = arith.constant 0 : index
    %5 = vector.load %arg2[%c0_2, %c0_3, %c0_4] : memref<25x160x320xbf16, #tpu.memory_space<vmem>>, vector<1x160x320xbf16>
    %6 = vector.shape_cast %5 : vector<1x160x320xbf16> to vector<160x320xbf16>
    %cst_5 = arith.constant dense<0.000000e+00> : vector<10x320xf32>
    %7 = tpu.matmul %4, %6, %cst_5 {dimension_numbers = #tpu.dot_dimension_numbers<[1], [0], [0], [1], [0, 0, 1, 1], [], []>} : vector<10x160xbf16>, vector<160x320xbf16>, vector<10x320xf32> -> vector<10x320xf32>
    %8 = arith.addf %2, %7 : vector<10x320xf32>
    %9 = vector.extract_strided_slice %1 {offsets = [0, 16], sizes = [10, 160], strides = [1, 1]} : vector<14x224xf32> to vector<10x160xf32>
    %10 = arith.truncf %9 : vector<10x160xf32> to vector<10x160xbf16>
    %c1 = arith.constant 1 : index
    %c0_6 = arith.constant 0 : index
    %c0_7 = arith.constant 0 : index
    %11 = vector.load %arg2[%c1, %c0_6, %c0_7] : memref<25x160x320xbf16, #tpu.memory_space<vmem>>, vector<1x160x320xbf16>
    %12 = vector.shape_cast %11 : vector<1x160x320xbf16> to vector<160x320xbf16>
    %cst_8 = arith.constant dense<0.000000e+00> : vector<10x320xf32>
    %13 = tpu.matmul %10, %12, %cst_8 {dimension_numbers = #tpu.dot_dimension_numbers<[1], [0], [0], [1], [0, 0, 1, 1], [], []>} : vector<10x160xbf16>, vector<160x320xbf16>, vector<10x320xf32> -> vector<10x320xf32>
    %14 = arith.addf %8, %13 : vector<10x320xf32>
    %15 = vector.extract_strided_slice %1 {offsets = [0, 32], sizes = [10, 160], strides = [1, 1]} : vector<14x224xf32> to vector<10x160xf32>
    %16 = arith.truncf %15 : vector<10x160xf32> to vector<10x160xbf16>
    %c2 = arith.constant 2 : index
    %c0_9 = arith.constant 0 : index
    %c0_10 = arith.constant 0 : index
    %17 = vector.load %arg2[%c2, %c0_9, %c0_10] : memref<25x160x320xbf16, #tpu.memory_space<vmem>>, vector<1x160x320xbf16>
    %18 = vector.shape_cast %17 : vector<1x160x320xbf16> to vector<160x320xbf16>
    %cst_11 = arith.constant dense<0.000000e+00> : vector<10x320xf32>
    %19 = tpu.matmul %16, %18, %cst_11 {dimension_numbers = #tpu.dot_dimension_numbers<[1], [0], [0], [1], [0, 0, 1, 1], [], []>} : vector<10x160xbf16>, vector<160x320xbf16>, vector<10x320xf32> -> vector<10x320xf32>
    %20 = arith.addf %14, %19 : vector<10x320xf32>
    %21 = vector.extract_strided_slice %1 {offsets = [0, 48], sizes = [10, 160], strides = [1, 1]} : vector<14x224xf32> to vector<10x160xf32>
    %22 = arith.truncf %21 : vector<10x160xf32> to vector<10x160xbf16>
    %c3 = arith.constant 3 : index
    %c0_12 = arith.constant 0 : index
    %c0_13 = arith.constant 0 : index
    %23 = vector.load %arg2[%c3, %c0_12, %c0_13] : memref<25x160x320xbf16, #tpu.memory_space<vmem>>, vector<1x160x320xbf16>
    %24 = vector.shape_cast %23 : vector<1x160x320xbf16> to vector<160x320xbf16>
    %cst_14 = arith.constant dense<0.000000e+00> : vector<10x320xf32>
    %25 = tpu.matmul %22, %24, %cst_14 {dimension_numbers = #tpu.dot_dimension_numbers<[1], [0], [0], [1], [0, 0, 1, 1], [], []>} : vector<10x160xbf16>, vector<160x320xbf16>, vector<10x320xf32> -> vector<10x320xf32>
    %26 = arith.addf %20, %25 : vector<10x320xf32>
    %27 = vector.extract_strided_slice %1 {offsets = [0, 64], sizes = [10, 160], strides = [1, 1]} : vector<14x224xf32> to vector<10x160xf32>
    %28 = arith.truncf %27 : vector<10x160xf32> to vector<10x160xbf16>
    %c4 = arith.constant 4 : index
    %c0_15 = arith.constant 0 : index
    %c0_16 = arith.constant 0 : index
    %29 = vector.load %arg2[%c4, %c0_15, %c0_16] : memref<25x160x320xbf16, #tpu.memory_space<vmem>>, vector<1x160x320xbf16>
    %30 = vector.shape_cast %29 : vector<1x160x320xbf16> to vector<160x320xbf16>
    %cst_17 = arith.constant dense<0.000000e+00> : vector<10x320xf32>
    %31 = tpu.matmul %28, %30, %cst_17 {dimension_numbers = #tpu.dot_dimension_numbers<[1], [0], [0], [1], [0, 0, 1, 1], [], []>} : vector<10x160xbf16>, vector<160x320xbf16>, vector<10x320xf32> -> vector<10x320xf32>
    %32 = arith.addf %26, %31 : vector<10x320xf32>
    %33 = vector.extract_strided_slice %1 {offsets = [1, 0], sizes = [10, 160], strides = [1, 1]} : vector<14x224xf32> to vector<10x160xf32>
    %34 = arith.truncf %33 : vector<10x160xf32> to vector<10x160xbf16>
    %c5 = arith.constant 5 : index
    %c0_18 = arith.constant 0 : index
    %c0_19 = arith.constant 0 : index
    %35 = vector.load %arg2[%c5, %c0_18, %c0_19] : memref<25x160x320xbf16, #tpu.memory_space<vmem>>, vector<1x160x320xbf16>
    %36 = vector.shape_cast %35 : vector<1x160x320xbf16> to vector<160x320xbf16>
    %cst_20 = arith.constant dense<0.000000e+00> : vector<10x320xf32>
    %37 = tpu.matmul %34, %36, %cst_20 {dimension_numbers = #tpu.dot_dimension_numbers<[1], [0], [0], [1], [0, 0, 1, 1], [], []>} : vector<10x160xbf16>, vector<160x320xbf16>, vector<10x320xf32> -> vector<10x320xf32>
    %38 = arith.addf %32, %37 : vector<10x320xf32>
    %39 = vector.extract_strided_slice %1 {offsets = [1, 16], sizes = [10, 160], strides = [1, 1]} : vector<14x224xf32> to vector<10x160xf32>
    %40 = arith.truncf %39 : vector<10x160xf32> to vector<10x160xbf16>
    %c6 = arith.constant 6 : index
    %c0_21 = arith.constant 0 : index
    %c0_22 = arith.constant 0 : index
    %41 = vector.load %arg2[%c6, %c0_21, %c0_22] : memref<25x160x320xbf16, #tpu.memory_space<vmem>>, vector<1x160x320xbf16>
    %42 = vector.shape_cast %41 : vector<1x160x320xbf16> to vector<160x320xbf16>
    %cst_23 = arith.constant dense<0.000000e+00> : vector<10x320xf32>
    %43 = tpu.matmul %40, %42, %cst_23 {dimension_numbers = #tpu.dot_dimension_numbers<[1], [0], [0], [1], [0, 0, 1, 1], [], []>} : vector<10x160xbf16>, vector<160x320xbf16>, vector<10x320xf32> -> vector<10x320xf32>
    %44 = arith.addf %38, %43 : vector<10x320xf32>
    %45 = vector.extract_strided_slice %1 {offsets = [1, 32], sizes = [10, 160], strides = [1, 1]} : vector<14x224xf32> to vector<10x160xf32>
    %46 = arith.truncf %45 : vector<10x160xf32> to vector<10x160xbf16>
    %c7 = arith.constant 7 : index
    %c0_24 = arith.constant 0 : index
    %c0_25 = arith.constant 0 : index
    %47 = vector.load %arg2[%c7, %c0_24, %c0_25] : memref<25x160x320xbf16, #tpu.memory_space<vmem>>, vector<1x160x320xbf16>
    %48 = vector.shape_cast %47 : vector<1x160x320xbf16> to vector<160x320xbf16>
    %cst_26 = arith.constant dense<0.000000e+00> : vector<10x320xf32>
    %49 = tpu.matmul %46, %48, %cst_26 {dimension_numbers = #tpu.dot_dimension_numbers<[1], [0], [0], [1], [0, 0, 1, 1], [], []>} : vector<10x160xbf16>, vector<160x320xbf16>, vector<10x320xf32> -> vector<10x320xf32>
    %50 = arith.addf %44, %49 : vector<10x320xf32>
    %51 = vector.extract_strided_slice %1 {offsets = [1, 48], sizes = [10, 160], strides = [1, 1]} : vector<14x224xf32> to vector<10x160xf32>
    %52 = arith.truncf %51 : vector<10x160xf32> to vector<10x160xbf16>
    %c8 = arith.constant 8 : index
    %c0_27 = arith.constant 0 : index
    %c0_28 = arith.constant 0 : index
    %53 = vector.load %arg2[%c8, %c0_27, %c0_28] : memref<25x160x320xbf16, #tpu.memory_space<vmem>>, vector<1x160x320xbf16>
    %54 = vector.shape_cast %53 : vector<1x160x320xbf16> to vector<160x320xbf16>
    %cst_29 = arith.constant dense<0.000000e+00> : vector<10x320xf32>
    %55 = tpu.matmul %52, %54, %cst_29 {dimension_numbers = #tpu.dot_dimension_numbers<[1], [0], [0], [1], [0, 0, 1, 1], [], []>} : vector<10x160xbf16>, vector<160x320xbf16>, vector<10x320xf32> -> vector<10x320xf32>
    %56 = arith.addf %50, %55 : vector<10x320xf32>
    %57 = vector.extract_strided_slice %1 {offsets = [1, 64], sizes = [10, 160], strides = [1, 1]} : vector<14x224xf32> to vector<10x160xf32>
    %58 = arith.truncf %57 : vector<10x160xf32> to vector<10x160xbf16>
    %c9 = arith.constant 9 : index
    %c0_30 = arith.constant 0 : index
    %c0_31 = arith.constant 0 : index
    %59 = vector.load %arg2[%c9, %c0_30, %c0_31] : memref<25x160x320xbf16, #tpu.memory_space<vmem>>, vector<1x160x320xbf16>
    %60 = vector.shape_cast %59 : vector<1x160x320xbf16> to vector<160x320xbf16>
    %cst_32 = arith.constant dense<0.000000e+00> : vector<10x320xf32>
    %61 = tpu.matmul %58, %60, %cst_32 {dimension_numbers = #tpu.dot_dimension_numbers<[1], [0], [0], [1], [0, 0, 1, 1], [], []>} : vector<10x160xbf16>, vector<160x320xbf16>, vector<10x320xf32> -> vector<10x320xf32>
    %62 = arith.addf %56, %61 : vector<10x320xf32>
    %63 = vector.extract_strided_slice %1 {offsets = [2, 0], sizes = [10, 160], strides = [1, 1]} : vector<14x224xf32> to vector<10x160xf32>
    %64 = arith.truncf %63 : vector<10x160xf32> to vector<10x160xbf16>
    %c10 = arith.constant 10 : index
    %c0_33 = arith.constant 0 : index
    %c0_34 = arith.constant 0 : index
    %65 = vector.load %arg2[%c10, %c0_33, %c0_34] : memref<25x160x320xbf16, #tpu.memory_space<vmem>>, vector<1x160x320xbf16>
    %66 = vector.shape_cast %65 : vector<1x160x320xbf16> to vector<160x320xbf16>
    %cst_35 = arith.constant dense<0.000000e+00> : vector<10x320xf32>
    %67 = tpu.matmul %64, %66, %cst_35 {dimension_numbers = #tpu.dot_dimension_numbers<[1], [0], [0], [1], [0, 0, 1, 1], [], []>} : vector<10x160xbf16>, vector<160x320xbf16>, vector<10x320xf32> -> vector<10x320xf32>
    %68 = arith.addf %62, %67 : vector<10x320xf32>
    %69 = vector.extract_strided_slice %1 {offsets = [2, 16], sizes = [10, 160], strides = [1, 1]} : vector<14x224xf32> to vector<10x160xf32>
    %70 = arith.truncf %69 : vector<10x160xf32> to vector<10x160xbf16>
    %c11 = arith.constant 11 : index
    %c0_36 = arith.constant 0 : index
    %c0_37 = arith.constant 0 : index
    %71 = vector.load %arg2[%c11, %c0_36, %c0_37] : memref<25x160x320xbf16, #tpu.memory_space<vmem>>, vector<1x160x320xbf16>
    %72 = vector.shape_cast %71 : vector<1x160x320xbf16> to vector<160x320xbf16>
    %cst_38 = arith.constant dense<0.000000e+00> : vector<10x320xf32>
    %73 = tpu.matmul %70, %72, %cst_38 {dimension_numbers = #tpu.dot_dimension_numbers<[1], [0], [0], [1], [0, 0, 1, 1], [], []>} : vector<10x160xbf16>, vector<160x320xbf16>, vector<10x320xf32> -> vector<10x320xf32>
    %74 = arith.addf %68, %73 : vector<10x320xf32>
    %75 = vector.extract_strided_slice %1 {offsets = [2, 32], sizes = [10, 160], strides = [1, 1]} : vector<14x224xf32> to vector<10x160xf32>
    %76 = arith.truncf %75 : vector<10x160xf32> to vector<10x160xbf16>
    %c12 = arith.constant 12 : index
    %c0_39 = arith.constant 0 : index
    %c0_40 = arith.constant 0 : index
    %77 = vector.load %arg2[%c12, %c0_39, %c0_40] : memref<25x160x320xbf16, #tpu.memory_space<vmem>>, vector<1x160x320xbf16>
    %78 = vector.shape_cast %77 : vector<1x160x320xbf16> to vector<160x320xbf16>
    %cst_41 = arith.constant dense<0.000000e+00> : vector<10x320xf32>
    %79 = tpu.matmul %76, %78, %cst_41 {dimension_numbers = #tpu.dot_dimension_numbers<[1], [0], [0], [1], [0, 0, 1, 1], [], []>} : vector<10x160xbf16>, vector<160x320xbf16>, vector<10x320xf32> -> vector<10x320xf32>
    %80 = arith.addf %74, %79 : vector<10x320xf32>
    %81 = vector.extract_strided_slice %1 {offsets = [2, 48], sizes = [10, 160], strides = [1, 1]} : vector<14x224xf32> to vector<10x160xf32>
    %82 = arith.truncf %81 : vector<10x160xf32> to vector<10x160xbf16>
    %c13 = arith.constant 13 : index
    %c0_42 = arith.constant 0 : index
    %c0_43 = arith.constant 0 : index
    %83 = vector.load %arg2[%c13, %c0_42, %c0_43] : memref<25x160x320xbf16, #tpu.memory_space<vmem>>, vector<1x160x320xbf16>
    %84 = vector.shape_cast %83 : vector<1x160x320xbf16> to vector<160x320xbf16>
    %cst_44 = arith.constant dense<0.000000e+00> : vector<10x320xf32>
    %85 = tpu.matmul %82, %84, %cst_44 {dimension_numbers = #tpu.dot_dimension_numbers<[1], [0], [0], [1], [0, 0, 1, 1], [], []>} : vector<10x160xbf16>, vector<160x320xbf16>, vector<10x320xf32> -> vector<10x320xf32>
    %86 = arith.addf %80, %85 : vector<10x320xf32>
    %87 = vector.extract_strided_slice %1 {offsets = [2, 64], sizes = [10, 160], strides = [1, 1]} : vector<14x224xf32> to vector<10x160xf32>
    %88 = arith.truncf %87 : vector<10x160xf32> to vector<10x160xbf16>
    %c14 = arith.constant 14 : index
    %c0_45 = arith.constant 0 : index
    %c0_46 = arith.constant 0 : index
    %89 = vector.load %arg2[%c14, %c0_45, %c0_46] : memref<25x160x320xbf16, #tpu.memory_space<vmem>>, vector<1x160x320xbf16>
    %90 = vector.shape_cast %89 : vector<1x160x320xbf16> to vector<160x320xbf16>
    %cst_47 = arith.constant dense<0.000000e+00> : vector<10x320xf32>
    %91 = tpu.matmul %88, %90, %cst_47 {dimension_numbers = #tpu.dot_dimension_numbers<[1], [0], [0], [1], [0, 0, 1, 1], [], []>} : vector<10x160xbf16>, vector<160x320xbf16>, vector<10x320xf32> -> vector<10x320xf32>
    %92 = arith.addf %86, %91 : vector<10x320xf32>
    %93 = vector.extract_strided_slice %1 {offsets = [3, 0], sizes = [10, 160], strides = [1, 1]} : vector<14x224xf32> to vector<10x160xf32>
    %94 = arith.truncf %93 : vector<10x160xf32> to vector<10x160xbf16>
    %c15 = arith.constant 15 : index
    %c0_48 = arith.constant 0 : index
    %c0_49 = arith.constant 0 : index
    %95 = vector.load %arg2[%c15, %c0_48, %c0_49] : memref<25x160x320xbf16, #tpu.memory_space<vmem>>, vector<1x160x320xbf16>
    %96 = vector.shape_cast %95 : vector<1x160x320xbf16> to vector<160x320xbf16>
    %cst_50 = arith.constant dense<0.000000e+00> : vector<10x320xf32>
    %97 = tpu.matmul %94, %96, %cst_50 {dimension_numbers = #tpu.dot_dimension_numbers<[1], [0], [0], [1], [0, 0, 1, 1], [], []>} : vector<10x160xbf16>, vector<160x320xbf16>, vector<10x320xf32> -> vector<10x320xf32>
    %98 = arith.addf %92, %97 : vector<10x320xf32>
    %99 = vector.extract_strided_slice %1 {offsets = [3, 16], sizes = [10, 160], strides = [1, 1]} : vector<14x224xf32> to vector<10x160xf32>
    %100 = arith.truncf %99 : vector<10x160xf32> to vector<10x160xbf16>
    %c16 = arith.constant 16 : index
    %c0_51 = arith.constant 0 : index
    %c0_52 = arith.constant 0 : index
    %101 = vector.load %arg2[%c16, %c0_51, %c0_52] : memref<25x160x320xbf16, #tpu.memory_space<vmem>>, vector<1x160x320xbf16>
    %102 = vector.shape_cast %101 : vector<1x160x320xbf16> to vector<160x320xbf16>
    %cst_53 = arith.constant dense<0.000000e+00> : vector<10x320xf32>
    %103 = tpu.matmul %100, %102, %cst_53 {dimension_numbers = #tpu.dot_dimension_numbers<[1], [0], [0], [1], [0, 0, 1, 1], [], []>} : vector<10x160xbf16>, vector<160x320xbf16>, vector<10x320xf32> -> vector<10x320xf32>
    %104 = arith.addf %98, %103 : vector<10x320xf32>
    %105 = vector.extract_strided_slice %1 {offsets = [3, 32], sizes = [10, 160], strides = [1, 1]} : vector<14x224xf32> to vector<10x160xf32>
    %106 = arith.truncf %105 : vector<10x160xf32> to vector<10x160xbf16>
    %c17 = arith.constant 17 : index
    %c0_54 = arith.constant 0 : index
    %c0_55 = arith.constant 0 : index
    %107 = vector.load %arg2[%c17, %c0_54, %c0_55] : memref<25x160x320xbf16, #tpu.memory_space<vmem>>, vector<1x160x320xbf16>
    %108 = vector.shape_cast %107 : vector<1x160x320xbf16> to vector<160x320xbf16>
    %cst_56 = arith.constant dense<0.000000e+00> : vector<10x320xf32>
    %109 = tpu.matmul %106, %108, %cst_56 {dimension_numbers = #tpu.dot_dimension_numbers<[1], [0], [0], [1], [0, 0, 1, 1], [], []>} : vector<10x160xbf16>, vector<160x320xbf16>, vector<10x320xf32> -> vector<10x320xf32>
    %110 = arith.addf %104, %109 : vector<10x320xf32>
    %111 = vector.extract_strided_slice %1 {offsets = [3, 48], sizes = [10, 160], strides = [1, 1]} : vector<14x224xf32> to vector<10x160xf32>
    %112 = arith.truncf %111 : vector<10x160xf32> to vector<10x160xbf16>
    %c18 = arith.constant 18 : index
    %c0_57 = arith.constant 0 : index
    %c0_58 = arith.constant 0 : index
    %113 = vector.load %arg2[%c18, %c0_57, %c0_58] : memref<25x160x320xbf16, #tpu.memory_space<vmem>>, vector<1x160x320xbf16>
    %114 = vector.shape_cast %113 : vector<1x160x320xbf16> to vector<160x320xbf16>
    %cst_59 = arith.constant dense<0.000000e+00> : vector<10x320xf32>
    %115 = tpu.matmul %112, %114, %cst_59 {dimension_numbers = #tpu.dot_dimension_numbers<[1], [0], [0], [1], [0, 0, 1, 1], [], []>} : vector<10x160xbf16>, vector<160x320xbf16>, vector<10x320xf32> -> vector<10x320xf32>
    %116 = arith.addf %110, %115 : vector<10x320xf32>
    %117 = vector.extract_strided_slice %1 {offsets = [3, 64], sizes = [10, 160], strides = [1, 1]} : vector<14x224xf32> to vector<10x160xf32>
    %118 = arith.truncf %117 : vector<10x160xf32> to vector<10x160xbf16>
    %c19 = arith.constant 19 : index
    %c0_60 = arith.constant 0 : index
    %c0_61 = arith.constant 0 : index
    %119 = vector.load %arg2[%c19, %c0_60, %c0_61] : memref<25x160x320xbf16, #tpu.memory_space<vmem>>, vector<1x160x320xbf16>
    %120 = vector.shape_cast %119 : vector<1x160x320xbf16> to vector<160x320xbf16>
    %cst_62 = arith.constant dense<0.000000e+00> : vector<10x320xf32>
    %121 = tpu.matmul %118, %120, %cst_62 {dimension_numbers = #tpu.dot_dimension_numbers<[1], [0], [0], [1], [0, 0, 1, 1], [], []>} : vector<10x160xbf16>, vector<160x320xbf16>, vector<10x320xf32> -> vector<10x320xf32>
    %122 = arith.addf %116, %121 : vector<10x320xf32>
    %123 = vector.extract_strided_slice %1 {offsets = [4, 0], sizes = [10, 160], strides = [1, 1]} : vector<14x224xf32> to vector<10x160xf32>
    %124 = arith.truncf %123 : vector<10x160xf32> to vector<10x160xbf16>
    %c20 = arith.constant 20 : index
    %c0_63 = arith.constant 0 : index
    %c0_64 = arith.constant 0 : index
    %125 = vector.load %arg2[%c20, %c0_63, %c0_64] : memref<25x160x320xbf16, #tpu.memory_space<vmem>>, vector<1x160x320xbf16>
    %126 = vector.shape_cast %125 : vector<1x160x320xbf16> to vector<160x320xbf16>
    %cst_65 = arith.constant dense<0.000000e+00> : vector<10x320xf32>
    %127 = tpu.matmul %124, %126, %cst_65 {dimension_numbers = #tpu.dot_dimension_numbers<[1], [0], [0], [1], [0, 0, 1, 1], [], []>} : vector<10x160xbf16>, vector<160x320xbf16>, vector<10x320xf32> -> vector<10x320xf32>
    %128 = arith.addf %122, %127 : vector<10x320xf32>
    %129 = vector.extract_strided_slice %1 {offsets = [4, 16], sizes = [10, 160], strides = [1, 1]} : vector<14x224xf32> to vector<10x160xf32>
    %130 = arith.truncf %129 : vector<10x160xf32> to vector<10x160xbf16>
    %c21 = arith.constant 21 : index
    %c0_66 = arith.constant 0 : index
    %c0_67 = arith.constant 0 : index
    %131 = vector.load %arg2[%c21, %c0_66, %c0_67] : memref<25x160x320xbf16, #tpu.memory_space<vmem>>, vector<1x160x320xbf16>
    %132 = vector.shape_cast %131 : vector<1x160x320xbf16> to vector<160x320xbf16>
    %cst_68 = arith.constant dense<0.000000e+00> : vector<10x320xf32>
    %133 = tpu.matmul %130, %132, %cst_68 {dimension_numbers = #tpu.dot_dimension_numbers<[1], [0], [0], [1], [0, 0, 1, 1], [], []>} : vector<10x160xbf16>, vector<160x320xbf16>, vector<10x320xf32> -> vector<10x320xf32>
    %134 = arith.addf %128, %133 : vector<10x320xf32>
    %135 = vector.extract_strided_slice %1 {offsets = [4, 32], sizes = [10, 160], strides = [1, 1]} : vector<14x224xf32> to vector<10x160xf32>
    %136 = arith.truncf %135 : vector<10x160xf32> to vector<10x160xbf16>
    %c22 = arith.constant 22 : index
    %c0_69 = arith.constant 0 : index
    %c0_70 = arith.constant 0 : index
    %137 = vector.load %arg2[%c22, %c0_69, %c0_70] : memref<25x160x320xbf16, #tpu.memory_space<vmem>>, vector<1x160x320xbf16>
    %138 = vector.shape_cast %137 : vector<1x160x320xbf16> to vector<160x320xbf16>
    %cst_71 = arith.constant dense<0.000000e+00> : vector<10x320xf32>
    %139 = tpu.matmul %136, %138, %cst_71 {dimension_numbers = #tpu.dot_dimension_numbers<[1], [0], [0], [1], [0, 0, 1, 1], [], []>} : vector<10x160xbf16>, vector<160x320xbf16>, vector<10x320xf32> -> vector<10x320xf32>
    %140 = arith.addf %134, %139 : vector<10x320xf32>
    %141 = vector.extract_strided_slice %1 {offsets = [4, 48], sizes = [10, 160], strides = [1, 1]} : vector<14x224xf32> to vector<10x160xf32>
    %142 = arith.truncf %141 : vector<10x160xf32> to vector<10x160xbf16>
    %c23 = arith.constant 23 : index
    %c0_72 = arith.constant 0 : index
    %c0_73 = arith.constant 0 : index
    %143 = vector.load %arg2[%c23, %c0_72, %c0_73] : memref<25x160x320xbf16, #tpu.memory_space<vmem>>, vector<1x160x320xbf16>
    %144 = vector.shape_cast %143 : vector<1x160x320xbf16> to vector<160x320xbf16>
    %cst_74 = arith.constant dense<0.000000e+00> : vector<10x320xf32>
    %145 = tpu.matmul %142, %144, %cst_74 {dimension_numbers = #tpu.dot_dimension_numbers<[1], [0], [0], [1], [0, 0, 1, 1], [], []>} : vector<10x160xbf16>, vector<160x320xbf16>, vector<10x320xf32> -> vector<10x320xf32>
    %146 = arith.addf %140, %145 : vector<10x320xf32>
    %147 = vector.extract_strided_slice %1 {offsets = [4, 64], sizes = [10, 160], strides = [1, 1]} : vector<14x224xf32> to vector<10x160xf32>
    %148 = arith.truncf %147 : vector<10x160xf32> to vector<10x160xbf16>
    %c24 = arith.constant 24 : index
    %c0_75 = arith.constant 0 : index
    %c0_76 = arith.constant 0 : index
    %149 = vector.load %arg2[%c24, %c0_75, %c0_76] : memref<25x160x320xbf16, #tpu.memory_space<vmem>>, vector<1x160x320xbf16>
    %150 = vector.shape_cast %149 : vector<1x160x320xbf16> to vector<160x320xbf16>
    %cst_77 = arith.constant dense<0.000000e+00> : vector<10x320xf32>
    %151 = tpu.matmul %148, %150, %cst_77 {dimension_numbers = #tpu.dot_dimension_numbers<[1], [0], [0], [1], [0, 0, 1, 1], [], []>} : vector<10x160xbf16>, vector<160x320xbf16>, vector<10x320xf32> -> vector<10x320xf32>
    %152 = arith.addf %146, %151 : vector<10x320xf32>
    %c0_78 = arith.constant 0 : index
    %c0_79 = arith.constant 0 : index
    %153 = vector.load %arg3[%c0_78, %c0_79] : memref<1x320xf32, #tpu.memory_space<vmem>>, vector<1x320xf32>
    %154 = vector.broadcast %153 : vector<1x320xf32> to vector<10x320xf32>
    %155 = arith.addf %152, %154 : vector<10x320xf32>
    %c0_80 = arith.constant 0 : index
    %c0_81 = arith.constant 0 : index
    %c0_82 = arith.constant 0 : index
    %156 = vector.load %arg4[%c0_80, %c0_81, %c0_82] : memref<1x10x320xf32, #tpu.memory_space<vmem>>, vector<1x10x320xf32>
    %157 = vector.shape_cast %156 : vector<1x10x320xf32> to vector<10x320xf32>
    %158 = vector.shape_cast %155 : vector<10x320xf32> to vector<1x10x320xf32>
    tpu.vector_store %arg4[%c0_80, %c0_81, %c0_82], %158 {strides = array<i32>} : memref<1x10x320xf32, #tpu.memory_space<vmem>>, vector<1x10x320xf32>,
    return
  }
  func.func @transform_0(%arg0: i32) -> (i32, i32, i32) {
    %c0_i32 = arith.constant 0 : i32
    %c0_i32_0 = arith.constant 0 : i32
    %c0_i32_1 = arith.constant 0 : i32
    return %arg0, %c0_i32, %c0_i32_0 : i32, i32, i32
  }
  func.func @transform_1(%arg0: i32) -> (i32, i32, i32) {
    %c0_i32 = arith.constant 0 : i32
    %c0_i32_0 = arith.constant 0 : i32
    %c0_i32_1 = arith.constant 0 : i32
    %c0_i32_2 = arith.constant 0 : i32
    return %c0_i32, %c0_i32_0, %c0_i32_1 : i32, i32, i32
  }
  func.func @transform_2(%arg0: i32) -> (i32, i32) {
    %c0_i32 = arith.constant 0 : i32
    %c0_i32_0 = arith.constant 0 : i32
    %c0_i32_1 = arith.constant 0 : i32
    return %c0_i32, %c0_i32_0 : i32, i32
  }
  func.func @transform_3(%arg0: i32) -> (i32, i32, i32) {
    %c0_i32 = arith.constant 0 : i32
    %c0_i32_0 = arith.constant 0 : i32
    %c0_i32_1 = arith.constant 0 : i32
    return %arg0, %c0_i32, %c0_i32_0 : i32, i32, i32
  }
}

module attributes {stable_mosaic.version = 11 : i64} {
  func.func @_maxpool_kernel(%arg0: i32, %arg1: memref<2x5x2x320xf32, #tpu.memory_space<vmem>>, %arg2: memref<2x5x288xf32, #tpu.memory_space<vmem>>) attributes {dimension_semantics = [#tpu.dimension_semantics<parallel>], iteration_bounds = array<i64: 1>, scalar_prefetch = 0 : i64, scratch_operands = 0 : i64, tpu.core_type = #tpu.core_type<tc>, window_params = [{transform_indices = @transform_0, window_bounds = array<i64: 2, 5, 2, 320>}, {transform_indices = @transform_1, window_bounds = array<i64: 2, 5, 288>}]} {
    %c0 = arith.constant 0 : index
    %c0_0 = arith.constant 0 : index
    %c0_1 = arith.constant 0 : index
    %c0_2 = arith.constant 0 : index
    %0 = vector.load %arg1[%c0, %c0_0, %c0_1, %c0_2] : memref<2x5x2x320xf32, #tpu.memory_space<vmem>>, vector<2x5x2x320xf32>
    %1 = vector.extract_strided_slice %0 {offsets = [0, 0, 0, 0], sizes = [2, 5, 1, 320], strides = [1, 1, 1, 1]} : vector<2x5x2x320xf32> to vector<2x5x1x320xf32>
    %2 = vector.shape_cast %1 : vector<2x5x1x320xf32> to vector<2x5x320xf32>
    %3 = vector.extract_strided_slice %0 {offsets = [0, 0, 1, 0], sizes = [2, 5, 1, 320], strides = [1, 1, 1, 1]} : vector<2x5x2x320xf32> to vector<2x5x1x320xf32>
    %4 = vector.shape_cast %3 : vector<2x5x1x320xf32> to vector<2x5x320xf32>
    %5 = arith.maximumf %2, %4 : vector<2x5x320xf32>
    %6 = vector.extract_strided_slice %5 {offsets = [0, 0, 0], sizes = [2, 5, 288], strides = [1, 1, 1]} : vector<2x5x320xf32> to vector<2x5x288xf32>
    %7 = vector.extract_strided_slice %5 {offsets = [0, 0, 32], sizes = [2, 5, 288], strides = [1, 1, 1]} : vector<2x5x320xf32> to vector<2x5x288xf32>
    %8 = arith.maximumf %6, %7 : vector<2x5x288xf32>
    %c0_3 = arith.constant 0 : index
    %c0_4 = arith.constant 0 : index
    %c0_5 = arith.constant 0 : index
    %9 = vector.load %arg2[%c0_3, %c0_4, %c0_5] : memref<2x5x288xf32, #tpu.memory_space<vmem>>, vector<2x5x288xf32>
    tpu.vector_store %arg2[%c0_3, %c0_4, %c0_5], %8 {strides = array<i32>} : memref<2x5x288xf32, #tpu.memory_space<vmem>>, vector<2x5x288xf32>,
    return
  }
  func.func @transform_0(%arg0: i32) -> (i32, i32, i32, i32) {
    %c0_i32 = arith.constant 0 : i32
    %c0_i32_0 = arith.constant 0 : i32
    %c0_i32_1 = arith.constant 0 : i32
    %c0_i32_2 = arith.constant 0 : i32
    return %arg0, %c0_i32, %c0_i32_0, %c0_i32_1 : i32, i32, i32, i32
  }
  func.func @transform_1(%arg0: i32) -> (i32, i32, i32) {
    %c0_i32 = arith.constant 0 : i32
    %c0_i32_0 = arith.constant 0 : i32
    %c0_i32_1 = arith.constant 0 : i32
    return %arg0, %c0_i32, %c0_i32_0 : i32, i32, i32
  }
}

module attributes {stable_mosaic.version = 11 : i64} {
  func.func @_fc_kernel(%arg0: i32, %arg1: memref<2x800xf32, #tpu.memory_space<vmem>>, %arg2: memref<800x120xbf16, #tpu.memory_space<vmem>>, %arg3: memref<1x120xf32, #tpu.memory_space<vmem>>, %arg4: memref<120x84xbf16, #tpu.memory_space<vmem>>, %arg5: memref<1x84xf32, #tpu.memory_space<vmem>>, %arg6: memref<84x10xbf16, #tpu.memory_space<vmem>>, %arg7: memref<1x10xf32, #tpu.memory_space<vmem>>, %arg8: memref<2x10xf32, #tpu.memory_space<vmem>>) attributes {dimension_semantics = [#tpu.dimension_semantics<parallel>], iteration_bounds = array<i64: 1>, scalar_prefetch = 0 : i64, scratch_operands = 0 : i64, tpu.core_type = #tpu.core_type<tc>, window_params = [{transform_indices = @transform_0, window_bounds = array<i64: 2, 800>}, {pipeline_mode = #tpu.pipeline_mode<synchronous>, transform_indices = @transform_1, window_bounds = array<i64: 800, 120>}, {pipeline_mode = #tpu.pipeline_mode<synchronous>, transform_indices = @transform_2, window_bounds = array<i64: 1, 120>}, {pipeline_mode = #tpu.pipeline_mode<synchronous>, transform_indices = @transform_3, window_bounds = array<i64: 120, 84>}, {pipeline_mode = #tpu.pipeline_mode<synchronous>, transform_indices = @transform_4, window_bounds = array<i64: 1, 84>}, {pipeline_mode = #tpu.pipeline_mode<synchronous>, transform_indices = @transform_5, window_bounds = array<i64: 84, 10>}, {pipeline_mode = #tpu.pipeline_mode<synchronous>, transform_indices = @transform_6, window_bounds = array<i64: 1, 10>}, {transform_indices = @transform_7, window_bounds = array<i64: 2, 10>}]} {
    %c0 = arith.constant 0 : index
    %c0_0 = arith.constant 0 : index
    %0 = vector.load %arg1[%c0, %c0_0] : memref<2x800xf32, #tpu.memory_space<vmem>>, vector<2x800xf32>
    %1 = arith.truncf %0 : vector<2x800xf32> to vector<2x800xbf16>
    %c0_1 = arith.constant 0 : index
    %c0_2 = arith.constant 0 : index
    %2 = vector.load %arg2[%c0_1, %c0_2] : memref<800x120xbf16, #tpu.memory_space<vmem>>, vector<800x120xbf16>
    %cst = arith.constant dense<0.000000e+00> : vector<2x120xf32>
    %3 = tpu.matmul %1, %2, %cst {dimension_numbers = #tpu.dot_dimension_numbers<[1], [0], [0], [1], [0, 0, 1, 1], [], []>} : vector<2x800xbf16>, vector<800x120xbf16>, vector<2x120xf32> -> vector<2x120xf32>
    %c0_3 = arith.constant 0 : index
    %c0_4 = arith.constant 0 : index
    %4 = vector.load %arg3[%c0_3, %c0_4] : memref<1x120xf32, #tpu.memory_space<vmem>>, vector<1x120xf32>
    %5 = vector.broadcast %4 : vector<1x120xf32> to vector<2x120xf32>
    %6 = arith.addf %3, %5 : vector<2x120xf32>
    %cst_5 = arith.constant 0.000000e+00 : f32
    %7 = vector.broadcast %cst_5 : f32 to vector<2x120xf32>
    %8 = arith.maximumf %6, %7 : vector<2x120xf32>
    %9 = arith.truncf %8 : vector<2x120xf32> to vector<2x120xbf16>
    %c0_6 = arith.constant 0 : index
    %c0_7 = arith.constant 0 : index
    %10 = vector.load %arg4[%c0_6, %c0_7] : memref<120x84xbf16, #tpu.memory_space<vmem>>, vector<120x84xbf16>
    %cst_8 = arith.constant dense<0.000000e+00> : vector<2x84xf32>
    %11 = tpu.matmul %9, %10, %cst_8 {dimension_numbers = #tpu.dot_dimension_numbers<[1], [0], [0], [1], [0, 0, 1, 1], [], []>} : vector<2x120xbf16>, vector<120x84xbf16>, vector<2x84xf32> -> vector<2x84xf32>
    %c0_9 = arith.constant 0 : index
    %c0_10 = arith.constant 0 : index
    %12 = vector.load %arg5[%c0_9, %c0_10] : memref<1x84xf32, #tpu.memory_space<vmem>>, vector<1x84xf32>
    %13 = vector.broadcast %12 : vector<1x84xf32> to vector<2x84xf32>
    %14 = arith.addf %11, %13 : vector<2x84xf32>
    %cst_11 = arith.constant 0.000000e+00 : f32
    %15 = vector.broadcast %cst_11 : f32 to vector<2x84xf32>
    %16 = arith.maximumf %14, %15 : vector<2x84xf32>
    %17 = arith.truncf %16 : vector<2x84xf32> to vector<2x84xbf16>
    %c0_12 = arith.constant 0 : index
    %c0_13 = arith.constant 0 : index
    %18 = vector.load %arg6[%c0_12, %c0_13] : memref<84x10xbf16, #tpu.memory_space<vmem>>, vector<84x10xbf16>
    %cst_14 = arith.constant dense<0.000000e+00> : vector<2x10xf32>
    %19 = tpu.matmul %17, %18, %cst_14 {dimension_numbers = #tpu.dot_dimension_numbers<[1], [0], [0], [1], [0, 0, 1, 1], [], []>} : vector<2x84xbf16>, vector<84x10xbf16>, vector<2x10xf32> -> vector<2x10xf32>
    %c0_15 = arith.constant 0 : index
    %c0_16 = arith.constant 0 : index
    %20 = vector.load %arg7[%c0_15, %c0_16] : memref<1x10xf32, #tpu.memory_space<vmem>>, vector<1x10xf32>
    %21 = vector.broadcast %20 : vector<1x10xf32> to vector<2x10xf32>
    %22 = arith.addf %19, %21 : vector<2x10xf32>
    %c0_17 = arith.constant 0 : index
    %c0_18 = arith.constant 0 : index
    %23 = vector.load %arg8[%c0_17, %c0_18] : memref<2x10xf32, #tpu.memory_space<vmem>>, vector<2x10xf32>
    tpu.vector_store %arg8[%c0_17, %c0_18], %22 {strides = array<i32>} : memref<2x10xf32, #tpu.memory_space<vmem>>, vector<2x10xf32>,
    return
  }
  func.func @transform_0(%arg0: i32) -> (i32, i32) {
    %c0_i32 = arith.constant 0 : i32
    %c0_i32_0 = arith.constant 0 : i32
    return %arg0, %c0_i32 : i32, i32
  }
  func.func @transform_1(%arg0: i32) -> (i32, i32) {
    %c0_i32 = arith.constant 0 : i32
    %c0_i32_0 = arith.constant 0 : i32
    %c0_i32_1 = arith.constant 0 : i32
    return %c0_i32, %c0_i32_0 : i32, i32
  }
  func.func @transform_2(%arg0: i32) -> (i32, i32) {
    %c0_i32 = arith.constant 0 : i32
    %c0_i32_0 = arith.constant 0 : i32
    %c0_i32_1 = arith.constant 0 : i32
    return %c0_i32, %c0_i32_0 : i32, i32
  }
  func.func @transform_3(%arg0: i32) -> (i32, i32) {
    %c0_i32 = arith.constant 0 : i32
    %c0_i32_0 = arith.constant 0 : i32
    %c0_i32_1 = arith.constant 0 : i32
    return %c0_i32, %c0_i32_0 : i32, i32
  }
  func.func @transform_4(%arg0: i32) -> (i32, i32) {
    %c0_i32 = arith.constant 0 : i32
    %c0_i32_0 = arith.constant 0 : i32
    %c0_i32_1 = arith.constant 0 : i32
    return %c0_i32, %c0_i32_0 : i32, i32
  }
  func.func @transform_5(%arg0: i32) -> (i32, i32) {
    %c0_i32 = arith.constant 0 : i32
    %c0_i32_0 = arith.constant 0 : i32
    %c0_i32_1 = arith.constant 0 : i32
    return %c0_i32, %c0_i32_0 : i32, i32
  }
  func.func @transform_6(%arg0: i32) -> (i32, i32) {
    %c0_i32 = arith.constant 0 : i32
    %c0_i32_0 = arith.constant 0 : i32
    %c0_i32_1 = arith.constant 0 : i32
    return %c0_i32, %c0_i32_0 : i32, i32
  }
  func.func @transform_7(%arg0: i32) -> (i32, i32) {
    %c0_i32 = arith.constant 0 : i32
    %c0_i32_0 = arith.constant 0 : i32
    return %arg0, %c0_i32 : i32, i32
  }
}

</mosaic_0001>

<bundles_post_ra>
// kernel: lenet5_forward.6
= control target key start
LH: loop header
LB: loop body
LE: loop exit
PB: predicated region body
PF: predicated region fallthrough
CT: control target
= control target key end

     0   :  { %s1019_s18 = smov 112   ;;  %vm288_vm0 = vcmask 916480   ;;  %vm849_vm1 = vcmask 1041409   ;;  %vm851_vm2 = vcmask 1042434   ;;  %vm853_vm3 = vcmask 1043459   ;;  %s1618_s0 = inlined_call_operand.vmem [shape: f32[2,14,2,448], index: 0, kind: input, shape index: {}]   ;;  %s1619_s1 = inlined_call_operand.vmem [shape: f32[2,14,432], index: 1, kind: output, shape index: {}]  }
   0x1   :  { %v22_v0 = vld [vmem:[%s1618_s0 + $0x70] sm:$0xff]  ;;  %v8_v1 = vld [vmem:[%s1618_s0] sm:$0xff]  ;;  %v23_v2 = vld [vmem:[%s1618_s0 + $0x78] sm:$0xff]  ;;  %vm855_vm4 = vcmask 1044484   ;;  %vm857_vm5 = vcmask 1045509   ;;  %vm859_vm6 = vcmask 1046534  }
   0x2   :  { %v1004_v3 = vrot.slane %v22_v0, 9  ;;  %v990_v4 = vrot.slane %v8_v1, 9  ;;  %v1005_v5 = vrot.slane %v23_v2, 9  ;;  %v9_v6 = vld [vmem:[%s1618_s0 + $0x8] sm:$0xff]  ;;  %v24_v8 = vld [vmem:[%s1618_s0 + $0x80] sm:$0xff]  ;;  %v10_v9 = vld [vmem:[%s1618_s0 + $0x10] sm:$0xff] }
   0x3   :  { %v991_v7 = vrot.slane %v9_v6, 9  ;;  %v1006_v14 = vrot.slane %v24_v8, 9  ;;  %v992_v15 = vrot.slane %v10_v9, 9  ;;  %v16_v16 = vld [vmem:[%s1618_s0 + $0x40] sm:$0xff]  ;;  %v11_v17 = vld [vmem:[%s1618_s0 + $0x18] sm:$0xff]  ;;  %v25_v22 = vld [vmem:[%s1618_s0 + $0x88] sm:$0xff] }
   0x4   :  { %v1048_v10 = vmax.f32 %v22_v0, %v1004_v3  ;;  %v1050_v11 = vmax.f32 %v8_v1, %v990_v4  ;;  %v1056_v12 = vmax.f32 %v23_v2, %v1005_v5  ;;  %v998_v20 = vrot.slane %v16_v16, 9  ;;  %v17_v23 = vld [vmem:[%s1618_s0 + $0x48] sm:$0xff]  ;;  %v31_v28 = vld [vmem:[%s1618_s0 + $0xb8] sm:$0xff]  ;;  %v30_v29 = vld [vmem:[%s1618_s0 + $0xb0] sm:$0xff] }
   0x5   :  { %v1058_v13 = vmax.f32 %v9_v6, %v991_v7  ;;  %v1070_v18 = vmax.f32 %v24_v8, %v1006_v14  ;;  %v1072_v19 = vmax.f32 %v10_v9, %v992_v15  ;;  %v993_v21 = vrot.slane %v11_v17, 9  ;;  %v18_v34 = vld [vmem:[%s1618_s0 + $0x50] sm:$0xff]  ;;  %v12_v35 = vld [vmem:[%s1618_s0 + $0x20] sm:$0xff]  ;;  %v19_v46 = vld [vmem:[%s1618_s0 + $0x58] sm:$0xff] }
   0x6   :  { %232 = vrot.lane.b32.xlu1 %v1048_v10, %s1019_s18  ;;  %204 = vrot.lane.b32.xlu0 %v1050_v11, %s1019_s18  ;;  %v1084_v24 = vmax.f32 %v16_v16, %v998_v20  ;;  %v1007_v26 = vrot.slane %v25_v22, 9  ;;  %v999_v27 = vrot.slane %v17_v23, 9  ;;  %v1013_v32 = vrot.slane %v31_v28, 9  ;;  %v32_v40 = vld [vmem:[%s1618_s0 + $0xc0] sm:$0xff]  ;;  %v26_v41 = vld [vmem:[%s1618_s0 + $0x90] sm:$0xff] }
   0x7   :  { %v1086_v25 = vmax.f32 %v11_v17, %v993_v21  ;;  %v1012_v33 = vrot.slane %v30_v29, 9  ;;  %v1000_v38 = vrot.slane %v18_v34, 9  ;;  %v994_v39 = vrot.slane %v12_v35, 9  ;;  %v13_v47 = vld [vmem:[%s1618_s0 + $0x28] sm:$0xff]  ;;  %v27_v53 = vld [vmem:[%s1618_s0 + $0x98] sm:$0xff]  ;;  %v20_v58 = vld [vmem:[%s1618_s0 + $0x60] sm:$0xff] }
   0x8   :  { %v1098_v30 = vmax.f32 %v25_v22, %v1007_v26  ;;  %v1100_v31 = vmax.f32 %v17_v23, %v999_v27  ;;  %v1112_v36 = vmax.f32 %v31_v28, %v1013_v32  ;;  %v1014_v44 = vrot.slane %v32_v40, 9  ;;  %v33_v52 = vld [vmem:[%s1618_s0 + $0xc8] sm:$0xff]  ;;  %v14_v59 = vld [vmem:[%s1618_s0 + $0x30] sm:$0xff]  ;;  %v28_v1 = vld [vmem:[%s1618_s0 + $0xa0] sm:$0xff] }
   0x9   :  { %v1114_v37 = vmax.f32 %v30_v29, %v1012_v33  ;;  %v1126_v42 = vmax.f32 %v18_v34, %v1000_v38  ;;  %v1128_v43 = vmax.f32 %v12_v35, %v994_v39  ;;  %v1008_v45 = vrot.slane %v26_v41, 9  ;;  %v34_v0 = vld [vmem:[%s1618_s0 + $0xd0] sm:$0xff]  ;;  %v21_v6 = vld [vmem:[%s1618_s0 + $0x68] sm:$0xff]  ;;  %v15_v7 = vld [vmem:[%s1618_s0 + $0x38] sm:$0xff] }
   0xa   :  { %234 = vrot.lane.b32.xlu1 %v1056_v12, %s1019_s18  ;;  %206 = vrot.lane.b32.xlu0 %v1058_v13, %s1019_s18  ;;  %v1140_v48 = vmax.f32 %v32_v40, %v1014_v44  ;;  %v1001_v50 = vrot.slane %v19_v46, 9  ;;  %v995_v51 = vrot.slane %v13_v47, 9  ;;  %v1015_v56 = vrot.slane %v33_v52, 9  ;;  %v35_v16 = vld [vmem:[%s1618_s0 + $0xd8] sm:$0xff]  ;;  %v29_v17 = vld [vmem:[%s1618_s0 + $0xa8] sm:$0xff] }
   0xb   :  { %v1142_v49 = vmax.f32 %v26_v41, %v1008_v45  ;;  %v1009_v57 = vrot.slane %v27_v53, 9  ;;  %v1002_v62 = vrot.slane %v20_v58, 9  ;;  %v996_v63 = vrot.slane %v14_v59, 9 }
   0xc   :  { %v1154_v54 = vmax.f32 %v19_v46, %v1001_v50  ;;  %v1156_v55 = vmax.f32 %v13_v47, %v995_v51  ;;  %v1168_v60 = vmax.f32 %v33_v52, %v1015_v56  ;;  %v1016_v4 = vrot.slane %v34_v0, 9 }
   0xd   :  { %v1170_v61 = vmax.f32 %v27_v53, %v1009_v57  ;;  %v1182_v2 = vmax.f32 %v20_v58, %v1002_v62  ;;  %v1184_v3 = vmax.f32 %v14_v59, %v996_v63  ;;  %v1010_v5 = vrot.slane %v28_v1, 9 }
   0xe   :  { %236 = vrot.lane.b32.xlu1 %v1070_v18, %s1019_s18  ;;  %208 = vrot.lane.b32.xlu0 %v1072_v19, %s1019_s18  ;;  %v1196_v8 = vmax.f32 %v34_v0, %v1016_v4  ;;  %v1003_v14 = vrot.slane %v21_v6, 9  ;;  %v997_v15 = vrot.slane %v15_v7, 9  ;;  %v1017_v22 = vrot.slane %v35_v16, 9 }
   0xf   :  { %v1198_v9 = vmax.f32 %v28_v1, %v1010_v5  ;;  %v1011_v23 = vrot.slane %v29_v17, 9  ;;  %v401_v28 = vlaneseq  ;;  %vm976_vm7 = vcmask 390144  }
  0x10   :  { %v1210_v20 = vmax.f32 %v21_v6, %v1003_v14  ;;  %v1212_v21 = vmax.f32 %v15_v7, %v997_v15  ;;  %v1218_v26 = vmax.f32 %v35_v16, %v1017_v22  ;;  %vm861_vm8 = vcmask 1047559  }
  0x11   :  { %v1220_v27 = vmax.f32 %v29_v17, %v1011_v23  ;;  %v402_v35 = vshrl.u32 %v401_v28, 7  ;;  %vm971_vm9 = vcmask 392192  }
  0x12   :  { %220 = vrot.lane.b32.xlu1 %v1084_v24, %s1019_s18  ;;  %210 = vrot.lane.b32.xlu0 %v1086_v25, %s1019_s18 }
  0x13   :  { %v1228_v46 = vsub.s32 0, %v402_v35  ;;  %v1230_v47 = vsub.s32 2, %v402_v35  ;;  %v1235_v57 = vsub.s32 4, %v402_v35  ;;  %v1237_v58 = vsub.s32 6, %v402_v35 }
  0x16   :  { %238 = vrot.lane.b32.xlu1 %v1098_v30, %s1019_s18  ;;  %222 = vrot.lane.b32.xlu0 %v1100_v31, %s1019_s18 }
  0x1a   :  { %250 = vrot.lane.b32.xlu1 %v1112_v36, %s1019_s18  ;;  %248 = vrot.lane.b32.xlu0 %v1114_v37, %s1019_s18 }
  0x1e   :  { %224 = vrot.lane.b32.xlu1 %v1126_v42, %s1019_s18  ;;  %212 = vrot.lane.b32.xlu0 %v1128_v43, %s1019_s18 }
  0x22   :  { %252 = vrot.lane.b32.xlu1 %v1140_v48, %s1019_s18  ;;  %240 = vrot.lane.b32.xlu0 %v1142_v49, %s1019_s18 }
  0x26   :  { %226 = vrot.lane.b32.xlu1 %v1154_v54, %s1019_s18  ;;  %214 = vrot.lane.b32.xlu0 %v1156_v55, %s1019_s18 }
  0x2a   :  { %254 = vrot.lane.b32.xlu1 %v1168_v60, %s1019_s18  ;;  %242 = vrot.lane.b32.xlu0 %v1170_v61, %s1019_s18 }
  0x2e   :  { %228 = vrot.lane.b32.xlu1 %v1182_v2, %s1019_s18  ;;  %216 = vrot.lane.b32.xlu0 %v1184_v3, %s1019_s18 }
  0x32   :  { %256 = vrot.lane.b32.xlu1 %v1196_v8, %s1019_s18  ;;  %244 = vrot.lane.b32.xlu0 %v1198_v9, %s1019_s18 }
  0x36   :  { %230 = vrot.lane.b32.xlu1 %v1210_v20, %s1019_s18  ;;  %218 = vrot.lane.b32.xlu0 %v1212_v21, %s1019_s18 }
  0x3a   :  { %258 = vrot.lane.b32.xlu1 %v1218_v26, %s1019_s18  ;;  %246 = vrot.lane.b32.xlu0 %v1220_v27, %s1019_s18 }
  0x78   :  { %v233_v29 = vpop.permute.xlu1 %232  ;;  %v205_v32 = vpop.permute.xlu0 %204 }
  0x79   :  { %v274_v33 = vrot.slane %v233_v29, 2  ;;  %v260_v34 = vrot.slane %v205_v32, 2 }
  0x7b   :  { %v303_v40 = vsel %vm288_vm0, %v233_v29, %v274_v33  ;;  %v289_v45 = vsel %vm288_vm0, %v205_v32, %v260_v34 }
  0x7c   :  { %v235_v38 = vpop.permute.xlu1 %234  ;;  %v207_v39 = vpop.permute.xlu0 %206  ;;  %v359_v50 = vmax.f32 %v1048_v10, %v303_v40  ;;  %v345_v59 = vmax.f32 %v1050_v11, %v289_v45 }
  0x7d   :  { %v275_v41 = vrot.slane %v235_v38, 2  ;;  %v261_v44 = vrot.slane %v207_v39, 2 }
  0x7e   :  { %v628_v10 = vrot.slane %v359_v50, %v1228_v46  ;;  %v632_v4 = vrot.slane %v359_v50, %v1230_v47  ;;  %v636_v7 = vrot.slane %v359_v50, %v1235_v57  ;;  %v640_v14 = vrot.slane %v359_v50, %v1237_v58 }
  0x7f   :  { %v304_v51 = vsel %vm288_vm0, %v235_v38, %v275_v41  ;;  %v290_v52 = vsel %vm288_vm0, %v207_v39, %v261_v44  ;;  %v404_v15 = vrot.slane %v345_v59, %v1228_v46  ;;  %v408_v11 = vrot.slane %v345_v59, %v1230_v47 }
  0x80   :  { %v237_v53 = vpop.permute.xlu1 %236  ;;  %v209_v56 = vpop.permute.xlu0 %208  ;;  %v360_v62 = vmax.f32 %v1056_v12, %v304_v51  ;;  %v346_v63 = vmax.f32 %v1058_v13, %v290_v52  ;;  %v412_v32 = vrot.slane %v345_v59, %v1235_v57  ;;  %v416_v33 = vrot.slane %v345_v59, %v1237_v58 }
  0x81   :  { %v276_v0 = vrot.slane %v237_v53, 2  ;;  %v262_v1 = vrot.slane %v209_v56, 2 }
  0x82   :  { %v644_v12 = vrot.slane %v360_v62, %v1228_v46  ;;  %v648_v13 = vrot.slane %v360_v62, %v1230_v47  ;;  %v652_v16 = vrot.slane %v360_v62, %v1235_v57  ;;  %v656_v17 = vrot.slane %v360_v62, %v1237_v58 }
  0x83   :  { %v420_v22 = vrot.slane %v346_v63, %v1228_v46  ;;  %v305_v23 = vsel %vm288_vm0, %v237_v53, %v276_v0  ;;  %v291_v28 = vsel %vm288_vm0, %v209_v56, %v262_v1  ;;  %v424_v40 = vrot.slane %v346_v63, %v1230_v47 }
  0x84   :  { %v221_v5 = vpop.permute.xlu1 %220  ;;  %v211_v6 = vpop.permute.xlu0 %210  ;;  %v361_v34 = vmax.f32 %v1070_v18, %v305_v23  ;;  %v428_v41 = vrot.slane %v346_v63, %v1235_v57  ;;  %v432_v44 = vrot.slane %v346_v63, %v1237_v58  ;;  %v347_v45 = vmax.f32 %v1072_v19, %v291_v28 }
  0x85   :  { %v268_v29 = vrot.slane %v221_v5, 2  ;;  %v263_v35 = vrot.slane %v211_v6, 2  ;;  %v904_v50 = vsel %vm849_vm1, %v644_v12, %v628_v10  ;;  %v911_v51 = vsel %vm849_vm1, %v648_v13, %v632_v4 }
  0x86   :  { %v918_v52 = vsel %vm849_vm1, %v652_v16, %v636_v7  ;;  %v925_v18 = vsel %vm849_vm1, %v656_v17, %v640_v14  ;;  %v850_v56 = vsel %vm849_vm1, %v420_v22, %v404_v15  ;;  %v660_v0 = vrot.slane %v361_v34, %v1228_v46 }
  0x87   :  { %v297_v59 = vsel %vm288_vm0, %v221_v5, %v268_v29  ;;  %v664_v63 = vrot.slane %v361_v34, %v1230_v47  ;;  %v668_v19 = vrot.slane %v361_v34, %v1235_v57  ;;  %v292_v1 = vsel %vm288_vm0, %v211_v6, %v263_v35 }
  0x88   :  { %v239_v38 = vpop.permute.xlu1 %238  ;;  %v223_v39 = vpop.permute.xlu0 %222  ;;  %v672_v7 = vrot.slane %v361_v34, %v1237_v58  ;;  %v436_v14 = vrot.slane %v347_v45, %v1228_v46  ;;  %v440_v15 = vrot.slane %v347_v45, %v1230_v47  ;;  %v444_v5 = vrot.slane %v347_v45, %v1235_v57 }
  0x89   :  { %v277_v53 = vrot.slane %v239_v38, 2  ;;  %v269_v62 = vrot.slane %v223_v39, 2  ;;  %v863_v12 = vsel %vm849_vm1, %v424_v40, %v408_v11  ;;  %v870_v13 = vsel %vm849_vm1, %v428_v41, %v412_v32 }
  0x8a   :  { %v448_v16 = vrot.slane %v347_v45, %v1237_v58  ;;  %v877_v6 = vsel %vm849_vm1, %v432_v44, %v416_v33  ;;  %v1282_v22 = vmax.f32 %v1084_v24, %v297_v59  ;;  %v348_v23 = vmax.f32 %v1086_v25, %v292_v1 }
  0x8b   :  { %v306_v17 = vsel %vm288_vm0, %v239_v38, %v277_v53  ;;  %v298_v28 = vsel %vm288_vm0, %v223_v39, %v269_v62  ;;  %v905_v29 = vsel %vm851_vm2, %v660_v0, %v904_v50  ;;  %v912_v34 = vsel %vm851_vm2, %v664_v63, %v911_v51 }
  0x8c   :  { %v251_v10 = vpop.permute.xlu1 %250  ;;  %v249_v4 = vpop.permute.xlu0 %248  ;;  %v919_v11 = vsel %vm851_vm2, %v668_v19, %v918_v52  ;;  %v362_v32 = vmax.f32 %v1098_v30, %v306_v17  ;;  %v926_v38 = vsel %vm851_vm2, %v672_v7, %v925_v18  ;;  %v852_v33 = vsel %vm851_vm2, %v436_v14, %v850_v56 }
  0x8d   :  { %v864_v24 = vsel %vm851_vm2, %v440_v15, %v863_v12  ;;  %v871_v25 = vsel %vm851_vm2, %v444_v5, %v870_v13  ;;  %v878_v39 = vsel %vm851_vm2, %v448_v16, %v877_v6  ;;  %v354_v41 = vmax.f32 %v1100_v31, %v298_v28 }
  0x8e   :  { %v283_v44 = vrot.slane %v251_v10, 2  ;;  %v282_v45 = vrot.slane %v249_v4, 2  ;;  %v532_v50 = vrot.slane %v1282_v22, %v1228_v46  ;;  %v452_v30 = vrot.slane %v348_v23, %v1228_v46 }
  0x8f   :  { %v456_v51 = vrot.slane %v348_v23, %v1230_v47  ;;  %v460_v52 = vrot.slane %v348_v23, %v1235_v57  ;;  %v536_v53 = vrot.slane %v1282_v22, %v1230_v47  ;;  %v540_v18 = vrot.slane %v1282_v22, %v1235_v57 }
  0x90   :  { %v225_v35 = vpop.permute.xlu1 %224  ;;  %v213_v40 = vpop.permute.xlu0 %212  ;;  %v464_v56 = vrot.slane %v348_v23, %v1237_v58  ;;  %v676_v31 = vrot.slane %v362_v32, %v1228_v46  ;;  %v544_v0 = vrot.slane %v1282_v22, %v1237_v58  ;;  %v680_v63 = vrot.slane %v362_v32, %v1230_v47 }
  0x91   :  { %v684_v19 = vrot.slane %v362_v32, %v1235_v57  ;;  %v688_v1 = vrot.slane %v362_v32, %v1237_v58  ;;  %v548_v7 = vrot.slane %v354_v41, %v1228_v46  ;;  %v312_v14 = vsel %vm288_vm0, %v251_v10, %v283_v44 }
  0x92   :  { %v311_v15 = vsel %vm288_vm0, %v249_v4, %v282_v45  ;;  %v270_v5 = vrot.slane %v225_v35, 2  ;;  %v1316_v12 = vsel %vm853_vm3, %v452_v30, %v852_v33  ;;  %v1319_v13 = vsel %vm853_vm3, %v456_v51, %v864_v24 }
  0x93   :  { %v1322_v16 = vsel %vm853_vm3, %v460_v52, %v871_v25  ;;  %v264_v17 = vrot.slane %v213_v40, 2  ;;  %v1325_v6 = vsel %vm853_vm3, %v464_v56, %v878_v39  ;;  %v1328_v22 = vsel %vm853_vm3, %v676_v31, %v905_v29 }
  0x94   :  { %v253_v59 = vpop.permute.xlu1 %252  ;;  %v241_v62 = vpop.permute.xlu0 %240  ;;  %v368_v10 = vmax.f32 %v1112_v36, %v312_v14  ;;  %v299_v4 = vsel %vm288_vm0, %v225_v35, %v270_v5  ;;  %v1333_v32 = vsel %vm853_vm3, %v680_v63, %v912_v34  ;;  %v1336_v33 = vsel %vm853_vm3, %v684_v19, %v919_v11 }
  0x95   :  { %v1339_v24 = vsel %vm853_vm3, %v688_v1, %v926_v38  ;;  %v367_v25 = vmax.f32 %v1114_v37, %v311_v15  ;;  %v552_v29 = vrot.slane %v354_v41, %v1230_v47  ;;  %v556_v39 = vrot.slane %v354_v41, %v1235_v57 }
  0x96   :  { %v560_v36 = vrot.slane %v354_v41, %v1237_v58  ;;  %v884_v35 = vsel %vm849_vm1, %v548_v7, %v532_v50  ;;  %v355_v44 = vmax.f32 %v1126_v42, %v299_v4  ;;  %v293_v34 = vsel %vm288_vm0, %v213_v40, %v264_v17 }
  0x97   :  { %v284_v11 = vrot.slane %v253_v59, 2  ;;  %v278_v45 = vrot.slane %v241_v62, 2  ;;  %v772_v38 = vrot.slane %v368_v10, %v1228_v46  ;;  %v776_v30 = vrot.slane %v368_v10, %v1230_v47 }
  0x98   :  { %v227_v23 = vpop.permute.xlu1 %226  ;;  %v215_v28 = vpop.permute.xlu0 %214  ;;  %v780_v37 = vrot.slane %v368_v10, %v1235_v57  ;;  %v784_v51 = vrot.slane %v368_v10, %v1237_v58  ;;  %v756_v52 = vrot.slane %v367_v25, %v1228_v46  ;;  %v760_v41 = vrot.slane %v367_v25, %v1230_v47 }
  0x99   :  { %v764_v50 = vrot.slane %v367_v25, %v1235_v57  ;;  %v768_v42 = vrot.slane %v367_v25, %v1237_v58  ;;  %v889_v31 = vsel %vm849_vm1, %v552_v29, %v536_v53  ;;  %v894_v63 = vsel %vm849_vm1, %v556_v39, %v540_v18 }
  0x9a   :  { %v899_v19 = vsel %vm849_vm1, %v560_v36, %v544_v0  ;;  %v349_v1 = vmax.f32 %v1128_v43, %v293_v34  ;;  %v564_v7 = vrot.slane %v355_v44, %v1228_v46  ;;  %v568_v14 = vrot.slane %v355_v44, %v1230_v47 }
  0x9b   :  { %v572_v15 = vrot.slane %v355_v44, %v1235_v57  ;;  %v576_v5 = vrot.slane %v355_v44, %v1237_v58  ;;  %v313_v17 = vsel %vm288_vm0, %v253_v59, %v284_v11  ;;  %v307_v10 = vsel %vm288_vm0, %v241_v62, %v278_v45 }
  0x9c   :  { %v1356_v56 = vpop.permute.xlu1 %254  ;;  %v1358_v40 = vpop.permute.xlu0 %242  ;;  %v271_v4 = vrot.slane %v227_v23, 2  ;;  %v265_v53 = vrot.slane %v215_v28, 2  ;;  %v932_v18 = vsel %vm849_vm1, %v772_v38, %v756_v52  ;;  %v937_v0 = vsel %vm849_vm1, %v776_v30, %v760_v41 }
  0x9d   :  { %v942_v43 = vsel %vm849_vm1, %v780_v37, %v764_v50  ;;  %v947_v25 = vsel %vm849_vm1, %v784_v51, %v768_v42  ;;  %v468_v29 = vrot.slane %v349_v1, %v1228_v46  ;;  %v472_v39 = vrot.slane %v349_v1, %v1230_v47 }
  0x9e   :  { %v369_v36 = vmax.f32 %v1140_v48, %v313_v17  ;;  %v363_v59 = vmax.f32 %v1142_v49, %v307_v10  ;;  %v885_v62 = vsel %vm851_vm2, %v564_v7, %v884_v35  ;;  %v476_v44 = vrot.slane %v349_v1, %v1235_v57 }
  0x9f   :  { %v480_v34 = vrot.slane %v349_v1, %v1237_v58  ;;  %v300_v11 = vsel %vm288_vm0, %v227_v23, %v271_v4  ;;  %v890_v30 = vsel %vm851_vm2, %v568_v14, %v889_v31  ;;  %v895_v37 = vsel %vm851_vm2, %v572_v15, %v894_v63 }
  0xa0   :  { %v229_v45 = vpop.permute.xlu1 %228  ;;  %v217_v38 = vpop.permute.xlu0 %216  ;;  %v900_v51 = vsel %vm851_vm2, %v576_v5, %v899_v19  ;;  %v294_v48 = vsel %vm288_vm0, %v215_v28, %v265_v53  ;;  %v788_v49 = vrot.slane %v369_v36, %v1228_v46  ;;  %v792_v35 = vrot.slane %v369_v36, %v1230_v47 }
  0xa1   :  { %v796_v52 = vrot.slane %v369_v36, %v1235_v57  ;;  %v800_v41 = vrot.slane %v369_v36, %v1237_v58  ;;  %v856_v23 = vsel %vm855_vm4, %v468_v29, %v1316_v12  ;;  %v866_v50 = vsel %vm855_vm4, %v472_v39, %v1319_v13 }
  0xa2   :  { %v692_v42 = vrot.slane %v363_v59, %v1228_v46  ;;  %v356_v31 = vmax.f32 %v1154_v54, %v300_v11  ;;  %v873_v28 = vsel %vm855_vm4, %v476_v44, %v1322_v16  ;;  %v880_v63 = vsel %vm855_vm4, %v480_v34, %v1325_v6 }
  0xa3   :  { %v696_v19 = vrot.slane %v363_v59, %v1230_v47  ;;  %v350_v1 = vmax.f32 %v1156_v55, %v294_v48  ;;  %v700_v7 = vrot.slane %v363_v59, %v1235_v57  ;;  %v704_v12 = vrot.slane %v363_v59, %v1237_v58 }
  0xa4   :  { %v285_v13 = vrot.slane %v1356_v56, 2  ;;  %v279_v14 = vrot.slane %v1358_v40, 2  ;;  %v933_v54 = vsel %vm851_vm2, %v788_v49, %v932_v18  ;;  %v938_v15 = vsel %vm851_vm2, %v792_v35, %v937_v0  ;;  %v257_v5 = vpop.permute.xlu1 %256  ;;  %v245_v17 = vpop.permute.xlu0 %244 }
  0xa5   :  { %v943_v16 = vsel %vm851_vm2, %v796_v52, %v942_v43  ;;  %v948_v6 = vsel %vm851_vm2, %v800_v41, %v947_v25  ;;  %v907_v55 = vsel %vm855_vm4, %v692_v42, %v1328_v22  ;;  %v580_v10 = vrot.slane %v356_v31, %v1228_v46 }
  0xa6   :  { %v584_v4 = vrot.slane %v356_v31, %v1230_v47  ;;  %v588_v53 = vrot.slane %v356_v31, %v1235_v57  ;;  %v914_v18 = vsel %vm855_vm4, %v696_v19, %v1333_v32  ;;  %v592_v0 = vrot.slane %v356_v31, %v1237_v58 }
  0xa7   :  { %v484_v43 = vrot.slane %v350_v1, %v1228_v46  ;;  %v488_v25 = vrot.slane %v350_v1, %v1230_v47  ;;  %v314_v29 = vsel %vm288_vm0, %v1356_v56, %v285_v13  ;;  %v308_v22 = vsel %vm288_vm0, %v1358_v40, %v279_v14 }
  0xa8   :  { %v272_v39 = vrot.slane %v229_v45, 2  ;;  %v266_v36 = vrot.slane %v217_v38, 2  ;;  %v921_v59 = vsel %vm855_vm4, %v700_v7, %v1336_v33  ;;  %v928_v32 = vsel %vm855_vm4, %v704_v12, %v1339_v24  ;;  %v231_v52 = vpop.permute.xlu1 %230  ;;  %v219_v41 = vpop.permute.xlu0 %218 }
  0xa9   :  { %v492_v44 = vrot.slane %v350_v1, %v1235_v57  ;;  %v370_v34 = vmax.f32 %v1168_v60, %v314_v29  ;;  %v886_v11 = vsel %vm853_vm3, %v580_v10, %v885_v62  ;;  %v891_v48 = vsel %vm853_vm3, %v584_v4, %v890_v30 }
  0xaa   :  { %v896_v56 = vsel %vm853_vm3, %v588_v53, %v895_v37  ;;  %v496_v40 = vrot.slane %v350_v1, %v1237_v58  ;;  %v901_v49 = vsel %vm853_vm3, %v592_v0, %v900_v51  ;;  %v858_v35 = vsel %vm857_vm5, %v484_v43, %v856_v23 }
  0xab   :  { %v867_v33 = vsel %vm857_vm5, %v488_v25, %v866_v50  ;;  %v364_v24 = vmax.f32 %v1170_v61, %v308_v22  ;;  %v804_v60 = vrot.slane %v370_v34, %v1228_v46  ;;  %v808_v62 = vrot.slane %v370_v34, %v1230_v47 }
  0xac   :  { %v301_v30 = vsel %vm288_vm0, %v229_v45, %v272_v39  ;;  %v295_v37 = vsel %vm288_vm0, %v217_v38, %v266_v36  ;;  %v812_v42 = vrot.slane %v370_v34, %v1235_v57  ;;  %v816_v51 = vrot.slane %v370_v34, %v1237_v58 }
  0xad   :  { %v286_v23 = vrot.slane %v257_v5, 2  ;;  %v280_v31 = vrot.slane %v245_v17, 2  ;;  %v874_v50 = vsel %vm857_vm5, %v492_v44, %v873_v28  ;;  %v881_v61 = vsel %vm857_vm5, %v496_v40, %v880_v63 }
  0xae   :  { %v273_v19 = vrot.slane %v231_v52, 2  ;;  %v267_v1 = vrot.slane %v219_v41, 2  ;;  %v708_v7 = vrot.slane %v364_v24, %v1228_v46  ;;  %v712_v12 = vrot.slane %v364_v24, %v1230_v47 }
  0xaf   :  { %v357_v45 = vmax.f32 %v1182_v2, %v301_v30  ;;  %v351_v38 = vmax.f32 %v1184_v3, %v295_v37  ;;  %v1451_v13 = vsel %vm853_vm3, %v804_v60, %v933_v54  ;;  %v1454_v14 = vsel %vm853_vm3, %v808_v62, %v938_v15  ;;  %v259_v60 = vpop.permute.xlu1 %258 }
  0xb0   :  { %v716_v28 = vrot.slane %v364_v24, %v1235_v57  ;;  %v720_v63 = vrot.slane %v364_v24, %v1237_v58  ;;  %v1459_v10 = vsel %vm853_vm3, %v812_v42, %v943_v16  ;;  %v1462_v4 = vsel %vm853_vm3, %v816_v51, %v948_v6 }
  0xb1   :  { %v315_v2 = vsel %vm288_vm0, %v257_v5, %v286_v23  ;;  %v309_v3 = vsel %vm288_vm0, %v245_v17, %v280_v31  ;;  %v596_v54 = vrot.slane %v357_v45, %v1228_v46  ;;  %v600_v53 = vrot.slane %v357_v45, %v1230_v47 }
  0xb2   :  { %v604_v15 = vrot.slane %v357_v45, %v1235_v57  ;;  %v608_v0 = vrot.slane %v357_v45, %v1237_v58  ;;  %v500_v43 = vrot.slane %v351_v38, %v1228_v46  ;;  %v504_v16 = vrot.slane %v351_v38, %v1230_v47 }
  0xb3   :  { %v508_v25 = vrot.slane %v351_v38, %v1235_v57  ;;  %v512_v6 = vrot.slane %v351_v38, %v1237_v58  ;;  %v1475_v5 = vsel %vm857_vm5, %v708_v7, %v907_v55  ;;  %v1478_v17 = vsel %vm857_vm5, %v712_v12, %v914_v18 }
  0xb4   :  { %v1481_v29 = vsel %vm857_vm5, %v716_v28, %v921_v59  ;;  %v371_v22 = vmax.f32 %v1196_v8, %v315_v2  ;;  %v1485_v39 = vsel %vm857_vm5, %v720_v63, %v928_v32  ;;  %v1488_v36 = vmax.f32 %v1198_v9, %v309_v3 }
  0xb5   :  { %v302_v44 = vsel %vm288_vm0, %v231_v52, %v273_v19  ;;  %v296_v55 = vsel %vm288_vm0, %v219_v41, %v267_v1  ;;  %v887_v34 = vsel %vm855_vm4, %v596_v54, %v886_v11  ;;  %v892_v18 = vsel %vm855_vm4, %v600_v53, %v891_v48  ;;  %v247_v52 = vpop.permute.xlu0 %246 }
  0xb6   :  { %v897_v59 = vsel %vm855_vm4, %v604_v15, %v896_v56  ;;  %v902_v40 = vsel %vm855_vm4, %v608_v0, %v901_v49  ;;  %v860_v8 = vsel %vm859_vm6, %v500_v43, %v858_v35  ;;  %v868_v32 = vsel %vm859_vm6, %v504_v16, %v867_v33 }
  0xb7   :  { %v875_v24 = vsel %vm859_vm6, %v508_v25, %v874_v50  ;;  %v882_v9 = vsel %vm859_vm6, %v512_v6, %v881_v61  ;;  %v820_v41 = vrot.slane %v371_v22, %v1228_v46  ;;  %v824_v11 = vrot.slane %v371_v22, %v1230_v47 }
  0xb8   :  { %v828_v48 = vrot.slane %v371_v22, %v1235_v57  ;;  %v832_v56 = vrot.slane %v371_v22, %v1237_v58  ;;  %v724_v49 = vrot.slane %v1488_v36, %v1228_v46  ;;  %v728_v35 = vrot.slane %v1488_v36, %v1230_v47 }
  0xb9   :  { %v358_v33 = vmax.f32 %v1210_v20, %v302_v44  ;;  %v352_v62 = vmax.f32 %v1212_v21, %v296_v55  ;;  %v732_v30 = vrot.slane %v1488_v36, %v1235_v57  ;;  %v736_v37 = vrot.slane %v1488_v36, %v1237_v58 }
  0xba   :  { %v287_v42 = vrot.slane %v259_v60, 2  ;;  %v281_v51 = vrot.slane %v247_v52, 2  ;;  %v935_v54 = vsel %vm855_vm4, %v820_v41, %v1451_v13  ;;  %v940_v53 = vsel %vm855_vm4, %v824_v11, %v1454_v14 }
  0xbb   :  { %v612_v23 = vrot.slane %v358_v33, %v1228_v46  ;;  %v616_v31 = vrot.slane %v358_v33, %v1230_v47  ;;  %v620_v50 = vrot.slane %v358_v33, %v1235_v57  ;;  %v624_v61 = vrot.slane %v358_v33, %v1237_v58 }
  0xbc   :  { %v516_v20 = vrot.slane %v352_v62, %v1228_v46  ;;  %v520_v21 = vrot.slane %v352_v62, %v1230_v47  ;;  %v524_v19 = vrot.slane %v352_v62, %v1235_v57  ;;  %v528_v1 = vrot.slane %v352_v62, %v1237_v58 }
  0xbd   :  { %v888_v7 = vsel %vm857_vm5, %v612_v23, %v887_v34  ;;  %v893_v12 = vsel %vm857_vm5, %v616_v31, %v892_v18  ;;  %v898_v45 = vsel %vm857_vm5, %v620_v50, %v897_v59  ;;  %v903_v38 = vsel %vm857_vm5, %v624_v61, %v902_v40 }
  0xbe   :  { %973 = vst [vmem:[%s1619_s1 + $0x20] sm:$0x3f] %v888_v7  ;;  %974 = vst [vmem:[%s1619_s1 + $0x28] sm:$0x3f] %v893_v12  ;;  %v862_v28 = vsel %vm861_vm8, %v516_v20, %v860_v8  ;;  %v869_v63 = vsel %vm861_vm8, %v520_v21, %v868_v32  ;;  %v876_v2 = vsel %vm861_vm8, %v524_v19, %v875_v24 }
  0xbf   :  { %975 = vst [vmem:[%s1619_s1 + $0x30] sm:$0x3f] %v898_v45  ;;  %977 = vst.msk [vmem:[%s1619_s1 + $0x38] sm:$0x3f] %vm976_vm7, %v903_v38  ;;  %v883_v3 = vsel %vm861_vm8, %v528_v1, %v882_v9  ;;  %v316_v13 = vsel %vm288_vm0, %v259_v60, %v287_v42  ;;  %v310_v14 = vsel %vm288_vm0, %v247_v52, %v281_v51 }
  0xc0   :  { %968 = vst [vmem:[%s1619_s1] sm:$0xff] %v862_v28  ;;  %969 = vst [vmem:[%s1619_s1 + $0x8] sm:$0xff] %v869_v63  ;;  %v945_v15 = vsel %vm855_vm4, %v828_v48, %v1459_v10  ;;  %v950_v0 = vsel %vm855_vm4, %v832_v56, %v1462_v4  ;;  %v372_v43 = vmax.f32 %v1218_v26, %v316_v13 }
  0xc1   :  { %970 = vst [vmem:[%s1619_s1 + $0x10] sm:$0xff] %v876_v2  ;;  %972 = vst.msk [vmem:[%s1619_s1 + $0x18] sm:$0xff] %vm971_vm9, %v883_v3  ;;  %v366_v16 = vmax.f32 %v1220_v27, %v310_v14  ;;  %v909_v25 = vsel %vm859_vm6, %v724_v49, %v1475_v5  ;;  %v916_v6 = vsel %vm859_vm6, %v728_v35, %v1478_v17 }
  0xc2   :  { %v923_v22 = vsel %vm859_vm6, %v732_v30, %v1481_v29  ;;  %v930_v36 = vsel %vm859_vm6, %v736_v37, %v1485_v39  ;;  %v836_v10 = vrot.slane %v372_v43, %v1228_v46  ;;  %v840_v4 = vrot.slane %v372_v43, %v1230_v47 }
  0xc3   :  { %v844_v26 = vrot.slane %v372_v43, %v1235_v57  ;;  %v848_v27 = vrot.slane %v372_v43, %v1237_v58  ;;  %v740_v44 = vrot.slane %v366_v16, %v1228_v46  ;;  %v744_v5 = vrot.slane %v366_v16, %v1230_v47 }
  0xc4   :  { %v748_v17 = vrot.slane %v366_v16, %v1235_v57  ;;  %v752_v55 = vrot.slane %v366_v16, %v1237_v58  ;;  %v936_v29 = vsel %vm857_vm5, %v836_v10, %v935_v54  ;;  %v941_v39 = vsel %vm857_vm5, %v840_v4, %v940_v53 }
  0xc5   :  { %v946_v34 = vsel %vm857_vm5, %v844_v26, %v945_v15  ;;  %v951_v18 = vsel %vm857_vm5, %v848_v27, %v950_v0  ;;  %982 = vst [vmem:[%s1619_s1 + $0x60] sm:$0x3f] %v936_v29  ;;  %983 = vst [vmem:[%s1619_s1 + $0x68] sm:$0x3f] %v941_v39  ;;  %v910_v46 = vsel %vm861_vm8, %v740_v44, %v909_v25 }
  0xc6   :  { %984 = vst [vmem:[%s1619_s1 + $0x70] sm:$0x3f] %v946_v34  ;;  %985 = vst.msk [vmem:[%s1619_s1 + $0x78] sm:$0x3f] %vm976_vm7, %v951_v18  ;;  %v917_v47 = vsel %vm861_vm8, %v744_v5, %v916_v6  ;;  %v924_v57 = vsel %vm861_vm8, %v748_v17, %v923_v22  ;;  %v931_v58 = vsel %vm861_vm8, %v752_v55, %v930_v36 }
  0xc7   :  { %978 = vst [vmem:[%s1619_s1 + $0x40] sm:$0xff] %v910_v46  ;;  %979 = vst [vmem:[%s1619_s1 + $0x48] sm:$0xff] %v917_v47 }
  0xc8   :  { %980 = vst [vmem:[%s1619_s1 + $0x50] sm:$0xff] %v924_v57  ;;  %981 = vst.msk [vmem:[%s1619_s1 + $0x58] sm:$0xff] %vm971_vm9, %v931_v58 }

// kernel: lenet5_forward.8
= control target key start
LH: loop header
LB: loop body
LE: loop exit
PB: predicated region body
PF: predicated region fallthrough
CT: control target
= control target key end

     0   :  { %s325_s18 = smov 96   ;;  %v149_v30 = vlaneseq  ;;  %vm108_vm0 = vcmask 785408   ;;  %vm269_vm1 = vcmask 1041409   ;;  %vm271_vm2 = vcmask 1042434   ;;  %s472_s0 = inlined_call_operand.vmem [shape: f32[2,5,2,320], index: 0, kind: input, shape index: {}]   ;;  %s473_s1 = inlined_call_operand.vmem [shape: f32[2,5,288], index: 1, kind: output, shape index: {}]  }
   0x1   :  { %v13_v0 = vld [vmem:[%s472_s0 + $0x1e] sm:$0x3f]  ;;  %v14_v2 = vld [vmem:[%s472_s0 + $0x24] sm:$0x3f]  ;;  %v15_v8 = vld [vmem:[%s472_s0 + $0x2a] sm:$0x3f] }
   0x2   :  { %v8_v1 = vld [vmem:[%s472_s0] sm:$0x3f]  ;;  %v319_v3 = vrot.slane %v13_v0, 9  ;;  %v320_v5 = vrot.slane %v14_v2, 9  ;;  %v9_v6 = vld [vmem:[%s472_s0 + $0x6] sm:$0x3f] }
   0x3   :  { %v314_v4 = vrot.slane %v8_v1, 9  ;;  %v315_v7 = vrot.slane %v9_v6, 9  ;;  %v10_v9 = vld [vmem:[%s472_s0 + $0xc] sm:$0x3f]  ;;  %v321_v14 = vrot.slane %v15_v8, 9  ;;  %v150_v34 = vshrl.u32 %v149_v30, 7 }
   0x4   :  { %v63_v10 = vmax.f32 %v13_v0, %v319_v3  ;;  %v64_v12 = vmax.f32 %v14_v2, %v320_v5  ;;  %v316_v15 = vrot.slane %v10_v9, 9  ;;  %v16_v16 = vld [vmem:[%s472_s0 + $0x30] sm:$0x3f]  ;;  %v17_v22 = vld [vmem:[%s472_s0 + $0x36] sm:$0x3f]  ;;  %vm273_vm3 = vcmask 1043459  }
   0x5   :  { %v58_v11 = vmax.f32 %v8_v1, %v314_v4  ;;  %v59_v13 = vmax.f32 %v9_v6, %v315_v7  ;;  %v11_v17 = vld [vmem:[%s472_s0 + $0x12] sm:$0x3f]  ;;  %v65_v18 = vmax.f32 %v15_v8, %v321_v14  ;;  %v322_v20 = vrot.slane %v16_v16, 9  ;;  %v12_v23 = vld [vmem:[%s472_s0 + $0x18] sm:$0x3f] }
   0x6   :  { %88 = vrot.lane.b32.xlu1 %v63_v10, %s325_s18  ;;  %v60_v19 = vmax.f32 %v10_v9, %v316_v15  ;;  %v317_v21 = vrot.slane %v11_v17, 9  ;;  %v323_v26 = vrot.slane %v17_v22, 9  ;;  %v318_v27 = vrot.slane %v12_v23, 9 }
   0x7   :  { %78 = vrot.lane.b32.xlu0 %v58_v11, %s325_s18  ;;  %v366_v24 = vmax.f32 %v16_v16, %v322_v20  ;;  %v379_v41 = vsub.s32 0, %v150_v34  ;;  %v384_v45 = vsub.s32 2, %v150_v34  ;;  %v386_v51 = vsub.s32 4, %v150_v34 }
   0x8   :  { %v368_v25 = vmax.f32 %v11_v17, %v317_v21  ;;  %v372_v28 = vmax.f32 %v17_v22, %v323_v26  ;;  %v374_v29 = vmax.f32 %v12_v23, %v318_v27  ;;  %vm275_vm4 = vcmask 1044484  }
   0x9   :  { %vm305_vm5 = vcmask 258048  }
   0xa   :  { %90 = vrot.lane.b32.xlu1 %v64_v12, %s325_s18 }
   0xb   :  { %80 = vrot.lane.b32.xlu0 %v59_v13, %s325_s18 }
   0xe   :  { %92 = vrot.lane.b32.xlu1 %v65_v18, %s325_s18 }
   0xf   :  { %82 = vrot.lane.b32.xlu0 %v60_v19, %s325_s18 }
  0x12   :  { %94 = vrot.lane.b32.xlu1 %v366_v24, %s325_s18 }
  0x13   :  { %84 = vrot.lane.b32.xlu0 %v368_v25, %s325_s18 }
  0x16   :  { %96 = vrot.lane.b32.xlu1 %v372_v28, %s325_s18 }
  0x17   :  { %86 = vrot.lane.b32.xlu0 %v374_v29, %s325_s18 }
  0x78   :  { %v89_v31 = vpop.permute.xlu1 %88 }
  0x79   :  { %v79_v32 = vpop.permute.xlu0 %78  ;;  %v103_v33 = vrot.slane %v89_v31, 2 }
  0x7a   :  { %v98_v35 = vrot.slane %v79_v32, 2 }
  0x7b   :  { %v114_v38 = vsel %vm108_vm0, %v89_v31, %v103_v33 }
  0x7c   :  { %v91_v36 = vpop.permute.xlu1 %90  ;;  %v109_v42 = vsel %vm108_vm0, %v79_v32, %v98_v35  ;;  %v134_v46 = vmax.f32 %v63_v10, %v114_v38 }
  0x7d   :  { %v81_v37 = vpop.permute.xlu0 %80  ;;  %v104_v39 = vrot.slane %v91_v36, 2  ;;  %v129_v54 = vmax.f32 %v58_v11, %v109_v42 }
  0x7e   :  { %v99_v40 = vrot.slane %v81_v37, 2  ;;  %v212_v59 = vrot.slane %v134_v46, %v379_v41  ;;  %v216_v60 = vrot.slane %v134_v46, %v384_v45  ;;  %v220_v1 = vrot.slane %v134_v46, %v386_v51 }
  0x7f   :  { %v115_v43 = vsel %vm108_vm0, %v91_v36, %v104_v39  ;;  %v152_v5 = vrot.slane %v129_v54, %v379_v41  ;;  %v156_v9 = vrot.slane %v129_v54, %v384_v45  ;;  %v160_v10 = vrot.slane %v129_v54, %v386_v51 }
  0x80   :  { %v110_v44 = vsel %vm108_vm0, %v81_v37, %v99_v40  ;;  %v135_v47 = vmax.f32 %v64_v12, %v115_v43  ;;  %v93_v49 = vpop.permute.xlu1 %92 }
  0x81   :  { %v130_v48 = vmax.f32 %v59_v13, %v110_v44  ;;  %v83_v50 = vpop.permute.xlu0 %82  ;;  %v105_v52 = vrot.slane %v93_v49, 2 }
  0x82   :  { %v100_v53 = vrot.slane %v83_v50, 2  ;;  %v224_v55 = vrot.slane %v135_v47, %v379_v41  ;;  %v228_v56 = vrot.slane %v135_v47, %v384_v45  ;;  %v232_v61 = vrot.slane %v135_v47, %v386_v51 }
  0x83   :  { %v116_v57 = vsel %vm108_vm0, %v93_v49, %v105_v52  ;;  %v164_v62 = vrot.slane %v130_v48, %v379_v41  ;;  %v168_v2 = vrot.slane %v130_v48, %v384_v45  ;;  %v172_v3 = vrot.slane %v130_v48, %v386_v51 }
  0x84   :  { %v111_v58 = vsel %vm108_vm0, %v83_v50, %v100_v53  ;;  %v95_v63 = vpop.permute.xlu1 %94  ;;  %v136_v4 = vmax.f32 %v65_v18, %v116_v57  ;;  %v285_v11 = vsel %vm269_vm1, %v224_v55, %v212_v59  ;;  %v289_v12 = vsel %vm269_vm1, %v228_v56, %v216_v60 }
  0x85   :  { %v85_v0 = vpop.permute.xlu0 %84  ;;  %v131_v6 = vmax.f32 %v60_v19, %v111_v58  ;;  %v106_v7 = vrot.slane %v95_v63, 2  ;;  %v293_v13 = vsel %vm269_vm1, %v232_v61, %v220_v1  ;;  %v270_v14 = vsel %vm269_vm1, %v164_v62, %v152_v5 }
  0x86   :  { %v101_v8 = vrot.slane %v85_v0, 2  ;;  %v277_v19 = vsel %vm269_vm1, %v168_v2, %v156_v9  ;;  %v281_v20 = vsel %vm269_vm1, %v172_v3, %v160_v10  ;;  %v236_v21 = vrot.slane %v136_v4, %v379_v41 }
  0x87   :  { %v117_v15 = vsel %vm108_vm0, %v95_v63, %v106_v7  ;;  %v240_v22 = vrot.slane %v136_v4, %v384_v45  ;;  %v244_v23 = vrot.slane %v136_v4, %v386_v51  ;;  %v176_v26 = vrot.slane %v131_v6, %v379_v41 }
  0x88   :  { %v112_v16 = vsel %vm108_vm0, %v85_v0, %v101_v8  ;;  %v97_v17 = vpop.permute.xlu1 %96  ;;  %v137_v27 = vmax.f32 %v366_v24, %v117_v15  ;;  %v180_v31 = vrot.slane %v131_v6, %v384_v45  ;;  %v184_v32 = vrot.slane %v131_v6, %v386_v51 }
  0x89   :  { %v87_v18 = vpop.permute.xlu0 %86  ;;  %v132_v30 = vmax.f32 %v368_v25, %v112_v16  ;;  %v107_v33 = vrot.slane %v97_v17, 2  ;;  %v286_v39 = vsel %vm271_vm2, %v236_v21, %v285_v11  ;;  %v290_v24 = vsel %vm271_vm2, %v240_v22, %v289_v12 }
  0x8a   :  { %v102_v34 = vrot.slane %v87_v18, 2  ;;  %v248_v35 = vrot.slane %v137_v27, %v379_v41  ;;  %v252_v36 = vrot.slane %v137_v27, %v384_v45  ;;  %v256_v37 = vrot.slane %v137_v27, %v386_v51 }
  0x8b   :  { %v188_v38 = vrot.slane %v132_v30, %v379_v41  ;;  %v118_v25 = vsel %vm108_vm0, %v97_v17, %v107_v33  ;;  %v294_v42 = vsel %vm271_vm2, %v244_v23, %v293_v13  ;;  %v272_v43 = vsel %vm271_vm2, %v176_v26, %v270_v14 }
  0x8c   :  { %v113_v40 = vsel %vm108_vm0, %v87_v18, %v102_v34  ;;  %v192_v44 = vrot.slane %v132_v30, %v384_v45  ;;  %v196_v46 = vrot.slane %v132_v30, %v386_v51  ;;  %v278_v47 = vsel %vm271_vm2, %v180_v31, %v277_v19 }
  0x8d   :  { %v282_v48 = vsel %vm271_vm2, %v184_v32, %v281_v20  ;;  %v138_v49 = vmax.f32 %v372_v28, %v118_v25  ;;  %v133_v50 = vmax.f32 %v374_v29, %v113_v40  ;;  %v287_v52 = vsel %vm273_vm3, %v248_v35, %v286_v39 }
  0x8e   :  { %v291_v53 = vsel %vm273_vm3, %v252_v36, %v290_v24  ;;  %v295_v54 = vsel %vm273_vm3, %v256_v37, %v294_v42  ;;  %v274_v55 = vsel %vm273_vm3, %v188_v38, %v272_v43  ;;  %v279_v28 = vsel %vm273_vm3, %v192_v44, %v278_v47 }
  0x8f   :  { %v260_v56 = vrot.slane %v138_v49, %v379_v41  ;;  %v264_v57 = vrot.slane %v138_v49, %v384_v45  ;;  %v268_v58 = vrot.slane %v138_v49, %v386_v51  ;;  %v200_v59 = vrot.slane %v133_v50, %v379_v41 }
  0x90   :  { %v283_v29 = vsel %vm273_vm3, %v196_v46, %v282_v48  ;;  %v204_v60 = vrot.slane %v133_v50, %v384_v45  ;;  %v208_v61 = vrot.slane %v133_v50, %v386_v51 }
  0x91   :  { %v288_v62 = vsel %vm275_vm4, %v260_v56, %v287_v52  ;;  %v292_v63 = vsel %vm275_vm4, %v264_v57, %v291_v53  ;;  %v296_v0 = vsel %vm275_vm4, %v268_v58, %v295_v54  ;;  %v276_v1 = vsel %vm275_vm4, %v200_v59, %v274_v55 }
  0x92   :  { %307 = vst [vmem:[%s473_s1 + $0x18] sm:$0x1f] %v288_v62  ;;  %308 = vst [vmem:[%s473_s1 + $0x20] sm:$0x1f] %v292_v63  ;;  %v280_v41 = vsel %vm275_vm4, %v204_v60, %v279_v28  ;;  %v284_v45 = vsel %vm275_vm4, %v208_v61, %v283_v29 }
  0x93   :  { %309 = vst.msk [vmem:[%s473_s1 + $0x28] sm:$0x1f] %vm305_vm5, %v296_v0  ;;  %303 = vst [vmem:[%s473_s1] sm:$0x1f] %v276_v1 }
  0x94   :  { %304 = vst [vmem:[%s473_s1 + $0x8] sm:$0x1f] %v280_v41  ;;  %306 = vst.msk [vmem:[%s473_s1 + $0x10] sm:$0x1f] %vm305_vm5, %v284_v45 }

// kernel: lenet5_forward.9
= control target key start
LH: loop header
LB: loop body
LE: loop exit
PB: predicated region body
PF: predicated region fallthrough
CT: control target
= control target key end

     0   :  { %v36_v27 = vlaneseq  ;;  %v1177_v35 = vmov 1983009808   ;;  %v1178_v40 = vmov 0.0   ;;  %vm1179_vm0 = vmmov 0   ;;  %s1462_s0 = inlined_call_operand.vmem [shape: f32[2,800], index: 0, kind: input, shape index: {}]   ;;  %s1463_s1 = inlined_call_operand.vmem [shape: bf16[800,120], index: 1, kind: input, shape index: {}]   ;;  %s1464_s2 = inlined_call_operand.vmem [shape: f32[1,120], index: 2, kind: input, shape index: {}]   ;;  %s1465_s3 = inlined_call_operand.vmem [shape: bf16[120,84], index: 3, kind: input, shape index: {}]   ;;  %s1466_s4 = inlined_call_operand.vmem [shape: f32[1,84], index: 4, kind: input, shape index: {}]   ;;  %s1467_s5 = inlined_call_operand.vmem [shape: bf16[84,10], index: 5, kind: input, shape index: {}]   ;;  %s1468_s6 = inlined_call_operand.vmem [shape: f32[1,10], index: 6, kind: input, shape index: {}]   ;;  %s1469_s7 = inlined_call_operand.hbm [shape: f32[2,10], index: 7, kind: output, shape index: {}]  }
   0x1   :  { %v1087_v0 = vld [vmem:[%s1463_s1 + $0x40] sm:$0xff]   ;;  %v1091_v4 = vld [vmem:[%s1463_s1 + $0x48] sm:$0xff]   ;;  %v1095_v8 = vld [vmem:[%s1463_s1 + $0x50] sm:$0xff]   ;;  %v34_v36 = vunpack.c.l.s4 %v1177_v35  ;;  %vm486_vm1 = vcmask 261120  }
   0x2   :  { %v1088_v1 = vld [vmem:[%s1463_s1] sm:$0xff]   ;;  %954 = vmatprep.subr.bf16.mxu0 %v1087_v0  ;;  %v1092_v5 = vld [vmem:[%s1463_s1 + $0x8] sm:$0xff]   ;;  %v1096_v9 = vld [vmem:[%s1463_s1 + $0x10] sm:$0xff]   ;;  %v37_v32 = vshrl.u32 %v36_v27, 7 }
   0x3   :  { %v1089_v2 = vld [vmem:[%s1463_s1 + $0xc0] sm:$0xff]   ;;  %955 = vmatpush3.bf16.msra.mxu0 %v1088_v1  ;;  %v1093_v6 = vld [vmem:[%s1463_s1 + $0xc8] sm:$0xff]   ;;  %v1097_v10 = vld [vmem:[%s1463_s1 + $0xd0] sm:$0xff]   ;;  %v35_v38 = vunpack.c.0.s8 %v34_v36 }
   0x4   :  { %v1090_v3 = vld [vmem:[%s1463_s1 + $0x80] sm:$0xff]   ;;  %976 = vmatprep.subr.bf16.mxu1 %v1089_v2  ;;  %956 = vmatprep.subr.bf16.mxu0 %v1091_v4  ;;  %v1094_v7 = vld [vmem:[%s1463_s1 + $0x88] sm:$0xff]   ;;  %v1098_v11 = vld [vmem:[%s1463_s1 + $0x90] sm:$0xff]  }
   0x5   :  { %977 = vmatpush3.bf16.msra.mxu1 %v1090_v3  ;;  %v1099_v12 = vld [vmem:[%s1463_s1 + $0x58] sm:$0xff]   ;;  %v1103_v16 = vld [vmem:[%s1463_s1 + $0x60] sm:$0xff]   ;;  %v1107_v20 = vld [vmem:[%s1463_s1 + $0x68] sm:$0xff]   ;;  %v38_v41 = vsub.s32 %v35_v38, %v37_v32 }
   0x6   :  { %978 = vmatprep.subr.bf16.mxu1 %v1093_v6  ;;  %v1100_v13 = vld [vmem:[%s1463_s1 + $0x18] sm:$0xff]   ;;  %v1104_v17 = vld [vmem:[%s1463_s1 + $0x20] sm:$0xff]   ;;  %v1108_v21 = vld [vmem:[%s1463_s1 + $0x28] sm:$0xff]  }
   0x7   :  { %957 = vmatpush3.bf16.msra.mxu0 %v1092_v5  ;;  %v1101_v14 = vld [vmem:[%s1463_s1 + $0xd8] sm:$0xff]   ;;  %v1105_v18 = vld [vmem:[%s1463_s1 + $0xe0] sm:$0xff]   ;;  %v1109_v22 = vld [vmem:[%s1463_s1 + $0xe8] sm:$0xff]  }
   0x8   :  { %958 = vmatprep.subr.bf16.mxu0 %v1095_v8  ;;  %v1102_v15 = vld [vmem:[%s1463_s1 + $0x98] sm:$0xff]   ;;  %v1106_v19 = vld [vmem:[%s1463_s1 + $0xa0] sm:$0xff]   ;;  %v1110_v23 = vld [vmem:[%s1463_s1 + $0xa8] sm:$0xff]  }
   0x9   :  { %979 = vmatpush3.bf16.msra.mxu1 %v1094_v7  ;;  %v1111_v24 = vld [vmem:[%s1463_s1 + $0x70] sm:$0xff]   ;;  %v1115_v29 = vld [vmem:[%s1463_s1 + $0x78] sm:$0xff]   ;;  %v28_v33 = vld [vmem:[%s1462_s0] sm:$0xff] }
   0xa   :  { %980 = vmatprep.subr.bf16.mxu1 %v1097_v10  ;;  %v1112_v25 = vld [vmem:[%s1463_s1 + $0x30] sm:$0xff]   ;;  %v1116_v30 = vld [vmem:[%s1463_s1 + $0x38] sm:$0xff]   ;;  %v1119_v37 = vld [vmem:[%s1463_s1 + $0x140] sm:$0xff]   ;;  %v32_v39 = vcombine.high %v28_v33, %v28_v33  ;;  %v39_v42 = vrot.slane %v28_v33, %v38_v41 }
   0xb   :  { %959 = vmatpush3.bf16.msra.mxu0 %v1096_v9  ;;  %v1113_v26 = vld [vmem:[%s1463_s1 + $0xf0] sm:$0xff]   ;;  %v1117_v31 = vld [vmem:[%s1463_s1 + $0xf8] sm:$0xff]   ;;  %v1121_v50 = vld [vmem:[%s1463_s1 + $0x100] sm:$0xff]  }
   0xc   :  { %960 = vmatprep.subr.bf16.mxu0 %v1099_v12  ;;  %v1114_v28 = vld [vmem:[%s1463_s1 + $0xb0] sm:$0xff]   ;;  %v1118_v34 = vld [vmem:[%s1463_s1 + $0xb8] sm:$0xff]   ;;  %v46_v43 = vrot.slane %v32_v39, %v38_v41  ;;  %v47_v44 = vcombine.high %v39_v42, %v39_v42  ;;  %v72_v46 = vpack.c.bf16 %v39_v42, %v39_v42  ;;  %v1122_v51 = vld [vmem:[%s1463_s1 + $0x148] sm:$0xff]  }
   0xd   :  { %981 = vmatpush3.bf16.msra.mxu1 %v1098_v11  ;;  %v1123_v52 = vld [vmem:[%s1463_s1 + $0x108] sm:$0xff]   ;;  %v1124_v53 = vld [vmem:[%s1463_s1 + $0x150] sm:$0xff]   ;;  %v1134_v54 = vld [vmem:[%s1463_s1 + $0x180] sm:$0xff]  }
   0xe   :  { %982 = vmatprep.subr.bf16.mxu1 %v1101_v14  ;;  %v48_v45 = vcombine.high %v46_v43, %v46_v43  ;;  %v74_v47 = vpack.c.bf16 %v46_v43, %v46_v43  ;;  %v73_v48 = vpack.c.bf16 %v47_v44, %v47_v44  ;;  %v1125_v55 = vld [vmem:[%s1463_s1 + $0x110] sm:$0xff]   ;;  %v1126_v56 = vld [vmem:[%s1463_s1 + $0x158] sm:$0xff]   ;;  %v29_v57 = vld [vmem:[%s1462_s0 + $0x8] sm:$0x3f] }
   0xf   :  { %961 = vmatpush3.bf16.msra.mxu0 %v1100_v13  ;;  %v49_v58 = vcombine.high %v29_v57, %v29_v57  ;;  %v56_v59 = vrot.slane %v29_v57, %v38_v41  ;;  %v1138_v60 = vld [vmem:[%s1463_s1 + $0x188] sm:$0xff]   ;;  %v1127_v61 = vld [vmem:[%s1463_s1 + $0x118] sm:$0xff]   ;;  %v1128_v0 = vld [vmem:[%s1463_s1 + $0x160] sm:$0xff]  }
  0x10   :  { %962 = vmatprep.subr.bf16.mxu0 %v1103_v16  ;;  %v75_v49 = vpack.c.bf16 %v48_v45, %v48_v45  ;;  %522 = vmatprep.mubr.bf16.mxu0 %v73_v48  ;;  %v1129_v3 = vld [vmem:[%s1463_s1 + $0x120] sm:$0xff]   ;;  %v1130_v4 = vld [vmem:[%s1463_s1 + $0x168] sm:$0xff]  }
  0x11   :  { %983 = vmatpush3.bf16.msra.mxu1 %v1102_v15  ;;  %v63_v62 = vrot.slane %v49_v58, %v38_v41  ;;  %v64_v63 = vcombine.high %v56_v59, %v56_v59 }
  0x12   :  { %984 = vmatprep.subr.bf16.mxu1 %v1105_v18  ;;  %562 = vmatprep.mubr.bf16.mxu1 %v75_v49 }
  0x13   :  { %963 = vmatpush3.bf16.msra.mxu0 %v1104_v17  ;;  %v77_v1 = vpack.c.bf16 %v64_v63, %v64_v63  ;;  %v78_v2 = vpack.c.bf16 %v63_v62, %v63_v62 }
  0x14   :  { %964 = vmatprep.subr.bf16.mxu0 %v1107_v20 }
  0x15   :  { %985 = vmatpush3.bf16.msra.mxu1 %v1106_v19 }
  0x16   :  { %986 = vmatprep.subr.bf16.mxu1 %v1109_v22 }
  0x17   :  { %965 = vmatpush3.bf16.msra.mxu0 %v1108_v21 }
  0x18   :  { %966 = vmatprep.subr.bf16.mxu0 %v1111_v24 }
  0x19   :  { %987 = vmatpush3.bf16.msra.mxu1 %v1110_v23 }
  0x1a   :  { %988 = vmatprep.subr.bf16.mxu1 %v1113_v26 }
  0x1b   :  { %967 = vmatpush3.bf16.msra.mxu0 %v1112_v25 }
  0x1c   :  { %968 = vmatprep.subr.bf16.mxu0 %v1115_v29 }
  0x1d   :  { %989 = vmatpush3.bf16.msra.mxu1 %v1114_v28 }
  0x1e   :  { %990 = vmatprep.subr.bf16.mxu1 %v1117_v31 }
  0x1f   :  { %969 = vmatpush3.bf16.msra.mxu0 %v1116_v30 }
  0x20   :  { %998 = vmatprep.subr.bf16.mxu0 %v1119_v37 }
  0x21   :  { %991 = vmatpush3.bf16.msra.mxu1 %v1118_v34 }
  0x22   :  { %1039 = vmatprep.subr.bf16.mxu1 %v1178_v40  ;;  %523 = vmatmul.mubr.bf16.vlgmr.msra.gmra.mrb[0].mxu0 %v72_v46 }
  0x23   :  { %999 = vmatpush3.bf16.msra.mxu0 %v1121_v50  ;;  %602 = vmatprep.mubr.bf16.mxu0 %v77_v1 }
  0x24   :  { %563 = vmatmul.mubr.bf16.vlgmr.msra.gmra.mrb[0].mxu1 %v74_v47  ;;  %1000 = vmatprep.subr.bf16.mxu0 %v1122_v51 }
  0x25   :  { %1043 = vmatprep.mubr.msk.bf16.mxu1 %vm1179_vm0, %v1178_v40  ;;  %1040 = vmatpush3.bf16.msra.mxu1 %v1134_v54 }
  0x26   :  { %1041 = vmatprep.subr.bf16.mxu1 %v1178_v40 }
  0x27   :  { %1001 = vmatpush3.bf16.msra.mxu0 %v1123_v52 }
  0x28   :  { %1002 = vmatprep.subr.bf16.mxu0 %v1124_v53 }
  0x29   :  { %1042 = vmatpush3.bf16.msra.mxu1 %v1138_v60 }
  0x2a   :  { %1047 = vmatprep.subr.bf16.mxu1 %v1178_v40 }
  0x2b   :  { %1003 = vmatpush3.bf16.msra.mxu0 %v1125_v55 }
  0x2c   :  { %1004 = vmatprep.subr.bf16.mxu0 %v1126_v56  ;;  %1044 = vmatmul.mubr.msk.bf16.vlgmr.msra.gmra.mrb[4].mxu1 %vm486_vm1, %v78_v2 }
  0x2d   :  { %1063 = vmatprep.mubr.msk.bf16.mxu1 %vm1179_vm0, %v1178_v40 }
  0x2f   :  { %1005 = vmatpush3.bf16.msra.mxu0 %v1127_v61 }
  0x30   :  { %1006 = vmatprep.subr.bf16.mxu0 %v1128_v0 }
  0x31   :  { %12 = vsyncpa [#allocation3], 0  ;;  %v1131_v5 = vld [vmem:[%s1463_s1 + $0x128] sm:$0xff]   ;;  %v1132_v6 = vld [vmem:[%s1463_s1 + $0x170] sm:$0xff]   ;;  %v76_v10 = vpack.c.bf16 %v56_v59, %v56_v59  ;;  %vm723_vm2 = vcmask 1043456   ;;  %vm719_vm3 = vcmask 982016  }
  0x32   :  { %v1133_v7 = vld [vmem:[%s1463_s1 + $0x130] sm:$0xff]   ;;  %v1135_v8 = vld [vmem:[%s1463_s1 + $0x178] sm:$0xff]   ;;  %v1139_v11 = vld [vmem:[%s1465_s3] sm:$0xff]   ;;  %vm824_vm4 = vcmask 1041408   ;;  %vm820_vm5 = vcmask 687104   ;;  %vm868_vm6 = vcmask 74752  }
  0x33   :  { %1007 = vmatpush3.bf16.msra.mxu0 %v1129_v3  ;;  %v1136_v9 = vld [vmem:[%s1463_s1 + $0x138] sm:$0xff]   ;;  %1048 = vmatpush3.bf16.msra.mxu1 %v1139_v11  ;;  %v1140_v12 = vld [vmem:[%s1465_s3 + $0x8] sm:$0xff]   ;;  %v1141_v13 = vld [vmem:[%s1465_s3 + $0x10] sm:$0xff]  }
  0x34   :  { %1008 = vmatprep.subr.bf16.mxu0 %v1130_v4  ;;  %1049 = vmatprep.subr.bf16.mxu1 %v1178_v40  ;;  %v1142_v14 = vld [vmem:[%s1465_s3 + $0x18] sm:$0xff]   ;;  %v1143_v15 = vld [vmem:[%s1465_s3 + $0x20] sm:$0xff]   ;;  %v1144_v16 = vld [vmem:[%s1465_s3 + $0x28] sm:$0xff]  }
  0x35   :  { %v1145_v17 = vld [vmem:[%s1465_s3 + $0x30] sm:$0xff]   ;;  %v1146_v18 = vld [vmem:[%s1465_s3 + $0x38] ss:$0 sps:$4 sm:$0xff]   ;;  %v1147_v20 = vld [vmem:[%s1467_s5] sm:$0xff]  }
  0x36   :  { %v725_v19 = vsel %vm723_vm2, %v1146_v18, 0  ;;  %v1148_v21 = vld [vmem:[%s1467_s5 + $0x8] sm:$0xff]   ;;  %v1149_v22 = vld [vmem:[%s1467_s5 + $0x10] sm:$0xff]   ;;  %v1150_v23 = vld [vmem:[%s1467_s5 + $0x18] sm:$0xff]  }
  0x37   :  { %1009 = vmatpush3.bf16.msra.mxu0 %v1131_v5  ;;  %1050 = vmatpush3.bf16.msra.mxu1 %v1140_v12  ;;  %v884_v26 = vld [vmem:[%s1464_s2] ss:$0 sm:$0xff]  ;;  %v1152_v52 = vld [vmem:[%s1467_s5 + $0x28] ss:$0 sps:$4 sm:$0x33]  }
  0x38   :  { %1010 = vmatprep.subr.bf16.mxu0 %v1132_v6  ;;  %1051 = vmatprep.subr.bf16.mxu1 %v1178_v40  ;;  %v1151_v51 = vld [vmem:[%s1467_s5 + $0x20] sm:$0xff]   ;;  %v826_v53 = vsel %vm824_vm4, %v1152_v52, 0  ;;  %s1180_s5 = smov [#allocation2]  }
  0x39   :  { %v936_v54 = vld [vmem:[%s1466_s4] ss:$0 sm:$0xff]  ;;  %s876_s18 = sshll.u32 %s1180_s5, 4  ;;  %s877_s18 = int_to_ptr.vmem [resolvable:$true] %s876_s18 }
  0x3a   :  { %s1153_s4 = scalar_lea.vmem %s877_s18, 32  ;;  %p1158_p1 = scmp.lt.s32.totalorder %s877_s18, %s877_s18 }
  0x3b   :  { %1011 = vmatpush3.bf16.msra.mxu0 %v1133_v7  ;;  %1052 = vmatpush3.bf16.msra.mxu1 %v1141_v13  ;;  %p1154_p0 = scmp.ne.s32.totalorder %s877_s18, %s1153_s4  ;;  %p1159_p2 = scmp.lt.s32.totalorder %s1153_s4, %s1153_s4 }
  0x3c   :  { %1012 = vmatprep.subr.bf16.mxu0 %v1135_v8  ;;  %1053 = vmatprep.subr.bf16.mxu1 %v1178_v40 }
  0x3d   :  { %p1160_p3 = por %p1159_p2, %p1158_p1 }
  0x3f   :  { %1013 = vmatpush3.bf16.msra.mxu0 %v1136_v9  ;;  %1054 = vmatpush3.bf16.msra.mxu1 %v1142_v14  ;;  %p1161_p4 = pnand %p1160_p3, %p1154_p0 }
  0x40   :  { %1067 = vmatprep.subr.bf16.mxu0 %v1178_v40  ;;  %1055 = vmatprep.subr.bf16.mxu1 %v1178_v40 }
  0x42   :  { %603 = vmatmul.mubr.bf16.vlgmr.msra.gmra.mrb[4].mxu0 %v76_v10 }
  0x43   :  { %1079 = vmatprep.mubr.msk.bf16.mxu0 %vm1179_vm0, %v1178_v40  ;;  %1056 = vmatpush3.bf16.msra.mxu1 %v1143_v15 }
  0x44   :  { %1057 = vmatprep.subr.bf16.mxu1 %v1178_v40  ;;  %1068 = vmatpush3.bf16.msra.mxu0 %v1147_v20 }
  0x45   :  { %1069 = vmatprep.subr.bf16.mxu0 %v1178_v40 }
  0x47   :  { %1058 = vmatpush3.bf16.msra.mxu1 %v1144_v16 }
  0x48   :  { %1059 = vmatprep.subr.bf16.mxu1 %v1178_v40  ;;  %1070 = vmatpush3.bf16.msra.mxu0 %v1148_v21 }
  0x49   :  { %1071 = vmatprep.subr.bf16.mxu0 %v1178_v40 }
  0x4b   :  { %1060 = vmatpush3.bf16.msra.mxu1 %v1145_v17 }
  0x4c   :  { %1061 = vmatprep.subr.bf16.mxu1 %v1178_v40  ;;  %1072 = vmatpush3.bf16.msra.mxu0 %v1149_v22 }
  0x4d   :  { %1073 = vmatprep.subr.bf16.mxu0 %v1178_v40 }
  0x4f   :  { %1062 = vmatpush3.bf16.msra.mxu1 %v725_v19 }
  0x50   :  { %1074 = vmatpush3.bf16.msra.mxu0 %v1150_v23 }
  0x51   :  { %1075 = vmatprep.subr.bf16.mxu0 %v1178_v40 }
  0x54   :  { %1076 = vmatpush3.bf16.msra.mxu0 %v1151_v51 }
  0x55   :  { %1077 = vmatprep.subr.bf16.mxu0 %v1178_v40  ;;  %v946_v40 = vld [vmem:[%s1468_s6] ss:$0 sm:$0xff] }
  0x58   :  { %1078 = vmatpush3.bf16.msra.mxu0 %v826_v53 }
  0xf5   :  { %v970_v24 = vpop.f32.mrb[0].mxu0 }
  0xf6   :  { %v971_v27 = vpop.f32.mrb[1].mxu0 }
  0xf7   :  { %v992_v25 = vpop.f32.mrb[0].mxu1  ;;  %v972_v29 = vadd.f32 %v971_v27, %v970_v24  ;;  %v973_v30 = vpop.f32.mrb[2].mxu0 }
  0xf8   :  { %v993_v28 = vpop.f32.mrb[1].mxu1  ;;  %v974_v33 = vpop.f32.mrb[3].mxu0 }
  0xf9   :  { %v994_v31 = vadd.f32 %v993_v28, %v992_v25  ;;  %v995_v32 = vpop.f32.mrb[2].mxu1  ;;  %v525_v35 = vadd.f32 %v972_v29, %v884_v26 }
  0xfa   :  { %v996_v34 = vpop.f32.mrb[3].mxu1 }
  0xfb   :  { %v565_v36 = vadd.f32 %v994_v31, %v525_v35 }
  0xff   :  { %v644_v37 = vpop.f32.mrb[4].mxu1 }
 0x100   :  { %v1045_v38 = vpop.f32.mrb[5].mxu1 }
 0x101   :  { %v647_v39 = vpop.f32.mrb[6].mxu1 }
 0x102   :  { %v1046_v41 = vpop.f32.mrb[7].mxu1 }
 0x115   :  { %v1014_v42 = vpop.f32.mrb[4].mxu0 }
 0x116   :  { %v1015_v43 = vpop.f32.mrb[5].mxu0 }
 0x117   :  { %v1016_v44 = vadd.f32 %v1015_v43, %v1014_v42  ;;  %v1017_v45 = vpop.f32.mrb[6].mxu0 }
 0x118   :  { %v1018_v46 = vpop.f32.mrb[7].mxu0 }
 0x119   :  { %v605_v47 = vadd.f32 %v1016_v44, %v565_v36 }
 0x11b   :  { %v645_v48 = vadd.f32 %v644_v37, %v605_v47 }
 0x11d   :  { %v650_v49 = vmax.f32 %v645_v48, 0.0 }
 0x11f   :  { %v651_v50 = vpack.c.bf16 %v650_v49, %v650_v49 }
 0x121   :  { %1064 = vmatmul.mubr.msk.bf16.vlgmr.msra.gmra.mrb[8].mxu1 %vm719_vm3, %v651_v50 }
 0x1f4   :  { %v761_v55 = vpop.f32.mrb[8].mxu1 }
 0x1f5   :  { %v762_v56 = vadd.f32 %v936_v54, %v761_v55  ;;  %v1065_v57 = vpop.f32.mrb[9].mxu1 }
 0x1f6   :  { %v764_v58 = vpop.f32.mrb[10].mxu1 }
 0x1f7   :  { %v767_v59 = vmax.f32 %v762_v56, 0.0  ;;  %v1066_v60 = vpop.f32.mrb[11].mxu1 }
 0x1f9   :  { %v768_v61 = vpack.c.bf16 %v767_v59, %v767_v59 }
 0x1fb   :  { %1080 = vmatmul.mubr.msk.bf16.vlgmr.msra.gmra.mrb[8].mxu0 %vm820_vm5, %v768_v61 }
 0x2ce   :  { %v862_v62 = vpop.f32.mrb[8].mxu0 }
 0x2cf   :  { %v863_v63 = vadd.f32 %v946_v40, %v862_v62  ;;  %v1081_v0 = vpop.f32.mrb[9].mxu0 }
 0x2d0   :  { %v865_v1 = vpop.f32.mrb[10].mxu0 }
 0x2d1   :  { %v1082_v2 = vpop.f32.mrb[11].mxu0  ;;  %869 = vst.msk [vmem:[#allocation2] sm:$0x3] %vm868_vm6, %v863_v63 }
 0x2d2   :  { %1164 = shalt.err (!%p1161_p4)
}
 0x2d3   :  { %s1165_s6 = scalar_lea.hbm %s1469_s7, 32 }
 0x2d4   :  { %p1166_p5 = scmp.ne.s32.totalorder %s1469_s7, %s1165_s6  ;;  %p1169_p6 = scmp.lt.u32.totalorder %s1165_s6, %s1469_s7 }
 0x2d6   :  { %p1171_p7 = pnand %p1169_p6, %p1166_p5 }
 0x2d8   :  { %1174 = shalt.err (!%p1171_p7)
}
 0x2d9   :  { %879 = dma.vmem_to_hbm [thread:$0]  %s877_s18, 32, %s1469_s7, [#allocation3]  }
 0x2da   :  { %1175 = dma.done.wait [#allocation3], 32  }
 0x2db   :  { %1176 = vsyncadd [#allocation3], 4294967264 }
 0x2dc   :  { %883 = vsyncpa [#allocation3], 1 }

// kernel: lenet5_forward.7
= control target key start
LH: loop header
LB: loop body
LE: loop exit
PB: predicated region body
PF: predicated region fallthrough
CT: control target
= control target key end

     0   :  { %s10669_s12 = smov 0   ;;  %s13614_s0 = inlined_call_operand.vmem [shape: f32[2,14,224], index: 0, kind: input, shape index: {}]   ;;  %s13615_s1 = inlined_call_operand.vmem [shape: bf16[25,160,320], index: 1, kind: input, shape index: {}]   ;;  %s13616_s2 = inlined_call_operand.vmem [shape: f32[1,320], index: 2, kind: input, shape index: {}]   ;;  %s13617_s3 = inlined_call_operand.vmem [shape: f32[2,10,320], index: 3, kind: output, shape index: {}]  }
   0x1 LB: > { %s7755_s13 = sadd.s32 4294967295, %s10642_s12   ;;  %p7759_p0 = scmp.ge.s32.totalorder %s10642_s12, 1  ;;  %s10642_s12 = sphi %s10669_s12, %s13_s12  }
   0x2   : > { %p137_p1 = scmp.lt.s32.totalorder %s10642_s12, 3 }
   0x4   : > { %p138_p2 = pnand %p7759_p0, %p137_p1 }
   0x5   : > { %p161_p3 = scmp.lt.s32.totalorder (!%p138_p2), %s7755_s13, 1  ;;  %v9636_v0 = vld [vmem:[%s13615_s1 + $0xf4] ss:$12 sps:$4 sm:$0xff] (!%p138_p2)   ;;  %v9638_v1 = vld [vmem:[%s13615_s1 + $0xf0] ss:$12 sps:$4 sm:$0xff] (!%p138_p2)   ;;  %v10644_v2 = vmov (!%p138_p2), 0  }
   0x6   : > { %141 = sbr.rel (%p138_p2) target bundleno = 1318 (0x526), region = 32  ;;  %432 = vmatprep.subr.bf16.mxu0 (!%p138_p2), %v9636_v0  ;;  %475 = vmatprep.subr.bf16.mxu1 (!%p138_p2), %v10644_v2  ;;  %v9639_v3 = vld [vmem:[%s13615_s1 + $0xf8] ss:$12 sps:$4 sm:$0xff] (!%p138_p2)   ;;  %v9642_v5 = vld [vmem:[%s13615_s1 + $0x108] ss:$12 sps:$4 sm:$0xff] (!%p138_p2)   ;;  %s10645_s9 = smov (!%p138_p2), 112  }
   0x7   : > { %433 = vmatpush1.bf16.msra.mxu0 (!%p138_p2), %v9638_v1  ;;  %v9640_v4 = vld [vmem:[%s13615_s1 + $0x10c] ss:$12 sps:$4 sm:$0xff] (!%p138_p2)   ;;  %476 = vmatpush1.bf16.msra.mxu1 (!%p138_p2), %v9639_v3  ;;  %v9643_v6 = vld [vmem:[%s13615_s1 + $0x110] ss:$12 sps:$4 sm:$0xff] (!%p138_p2)   ;;  %v9647_v14 = vld [vmem:[%s13615_s1 + $0x128] ss:$12 sps:$4 sm:$0xff] (!%p138_p2)  }
   0x8   : > { %434 = vmatprep.subr.bf16.mxu0 (!%p138_p2), %v9640_v4  ;;  %477 = vmatprep.subr.bf16.mxu1 (!%p138_p2), %v10644_v2  ;;  %v9644_v7 = vld [vmem:[%s13615_s1 + $0x124] ss:$12 sps:$4 sm:$0xff] (!%p138_p2)   ;;  %v9646_v13 = vld [vmem:[%s13615_s1 + $0x120] ss:$12 sps:$4 sm:$0xff] (!%p138_p2)   ;;  %s10646_s10 = smov (!%p138_p2), 96   ;;  %s10648_s11 = smov (!%p138_p2), 64  }
   0x9   : > { %v9648_v16 = vld [vmem:[%s13615_s1 + $0x13c] ss:$12 sps:$4 sm:$0xff] (!%p138_p2)   ;;  %v9650_v17 = vld [vmem:[%s13615_s1 + $0x138] ss:$12 sps:$4 sm:$0xff] (!%p138_p2)   ;;  %v9651_v18 = vld [vmem:[%s13615_s1 + $0x140] ss:$12 sps:$4 sm:$0xff] (!%p138_p2)  }
   0xa   : > { %v9652_v19 = vld [vmem:[%s13615_s1 + $0x154] ss:$12 sps:$4 sm:$0xff] (!%p138_p2)   ;;  %v9654_v20 = vld [vmem:[%s13615_s1 + $0x150] ss:$12 sps:$4 sm:$0xff] (!%p138_p2)   ;;  %v9655_v21 = vld [vmem:[%s13615_s1 + $0x158] ss:$12 sps:$4 sm:$0xff] (!%p138_p2)  }
   0xb   : > { %435 = vmatpush1.bf16.msra.mxu0 (!%p138_p2), %v9642_v5  ;;  %478 = vmatpush1.bf16.msra.mxu1 (!%p138_p2), %v9643_v6  ;;  %v9656_v22 = vld [vmem:[%s13615_s1 + $0x16c] ss:$12 sps:$4 sm:$0xff] (!%p138_p2)   ;;  %v9658_v23 = vld [vmem:[%s13615_s1 + $0x168] ss:$12 sps:$4 sm:$0xff] (!%p138_p2)   ;;  %v9659_v24 = vld [vmem:[%s13615_s1 + $0x170] ss:$12 sps:$4 sm:$0xff] (!%p138_p2)  }
   0xc   : > { %436 = vmatprep.subr.bf16.mxu0 (!%p138_p2), %v9644_v7  ;;  %479 = vmatprep.subr.bf16.mxu1 (!%p138_p2), %v10644_v2  ;;  %v9660_v25 = vld [vmem:[%s13615_s1 + $0x184] ss:$12 sps:$4 sm:$0xff] (!%p138_p2)   ;;  %v9662_v26 = vld [vmem:[%s13615_s1 + $0x180] ss:$12 sps:$4 sm:$0xff] (!%p138_p2)   ;;  %v9663_v27 = vld [vmem:[%s13615_s1 + $0x188] ss:$12 sps:$4 sm:$0xff] (!%p138_p2)  }
   0xd   : > { %s13619_s13 = smov (!%p161_p3, %s7755_s13), 1  ;;  %v9664_v28 = vld [vmem:[%s13615_s1 + $0x19c] ss:$12 sps:$4 sm:$0xff]   ;;  %v9666_v29 = vld [vmem:[%s13615_s1 + $0x198] ss:$12 sps:$4 sm:$0xff]   ;;  %vm428_vm0 = vcmask 261120  }
   0xe   : > { %s9525_s24 = sshll.u32 %s13619_s13, 5  ;;  %v9667_v30 = vld [vmem:[%s13615_s1 + $0x1a0] ss:$12 sps:$4 sm:$0xff]   ;;  %v9670_v32 = vld [vmem:[%s13615_s1 + $0x1b0] ss:$12 sps:$4 sm:$0xff]   ;;  %vm265_vm1 = vcmask 916480  }
   0xf   : > { %s165_s27 = scalar_lea.vmem %s13614_s0, %s9525_s24  ;;  %437 = vmatpush1.bf16.msra.mxu0 %v9646_v13  ;;  %480 = vmatpush1.bf16.msra.mxu1 %v9647_v14  ;;  %v9668_v31 = vld [vmem:[%s13615_s1 + $0x1b4] ss:$12 sps:$4 sm:$0xff]   ;;  %v9671_v33 = vld [vmem:[%s13615_s1 + $0x1b8] ss:$12 sps:$4 sm:$0xff]   ;;  %v9675_v36 = vld [vmem:[%s13615_s1 + $0x1d0] ss:$12 sps:$4 sm:$0xff]  }
  0x10   : > { %v172_v8 = vld [vmem:[%s165_s27] sm:$0xff]  ;;  %v174_v9 = vld [vmem:[%s165_s27 + $0x10] sm:$0x3f]  ;;  %v173_v10 = vld [vmem:[%s165_s27 + $0x8] sm:$0xff]  ;;  %438 = vmatprep.subr.bf16.mxu0 %v9648_v16  ;;  %481 = vmatprep.subr.bf16.mxu1 %v10644_v2  ;;  %vm808_vm2 = vcmask 785408   ;;  %vm1109_vm3 = vcmask 654336  }
  0x11   : > { %v10706_v11 = vpack.c.bf16 %v174_v9, %v172_v8  ;;  %v175_v12 = vld [vmem:[%s165_s27 + $0x18] sm:$0x3f]  ;;  %s10647_s27 = smov 80   ;;  %v9674_v35 = vld [vmem:[%s13615_s1 + $0x1c8] ss:$12 sps:$4 sm:$0xff]   ;;  %vm1410_vm4 = vcmask 523264  }
  0x12   : > { %v10716_v15 = vpack.c.bf16 %v175_v12, %v173_v10  ;;  %v9672_v34 = vld [vmem:[%s13615_s1 + $0x1cc] ss:$12 sps:$4 sm:$0xff]   ;;  %v9678_v37 = vld [vmem:[%s13615_s1 + $0x4] ss:$12 sps:$4 sm:$0xff]   ;;  %v9679_v48 = vld [vmem:[%s13615_s1 + $0x8] ss:$12 sps:$4 sm:$0xff]  }
  0x13   : > { %261 = vrot.lane.b32.xlu0 %v10706_v11, %s10645_s9  ;;  %804 = vrot.lane.b32.xlu1 %v10706_v11, %s10646_s10  ;;  %v1710_v39 = vshll.u32 %v10706_v11, 16  ;;  %v1708_v42 = vshrl.u32 %v10706_v11, 16  ;;  %v9676_v47 = vld [vmem:[%s13615_s1] ss:$12 sps:$4 sm:$0xff]   ;;  %v9682_v49 = vld [vmem:[%s13615_s1 + $0x1c] ss:$12 sps:$4 sm:$0xff]  }
  0x14   : > { %439 = vmatpush1.bf16.msra.mxu0 %v9650_v17  ;;  %482 = vmatpush1.bf16.msra.mxu1 %v9651_v18  ;;  %v1716_v38 = vshll.u32 %v10716_v15, 16  ;;  %v1714_v40 = vshrl.u32 %v10716_v15, 16  ;;  %v9680_v52 = vld [vmem:[%s13615_s1 + $0x18] ss:$12 sps:$4 sm:$0xff]   ;;  %v9683_v53 = vld [vmem:[%s13615_s1 + $0x20] ss:$12 sps:$4 sm:$0xff]  }
  0x15   : > { %440 = vmatprep.subr.bf16.mxu0 %v9652_v19  ;;  %483 = vmatprep.subr.bf16.mxu1 %v10644_v2  ;;  %v1712_v43 = vrot.slane %v1710_v39, 1  ;;  %v9686_v54 = vld [vmem:[%s13615_s1 + $0x34] ss:$12 sps:$4 sm:$0xff]   ;;  %v9684_v55 = vld [vmem:[%s13615_s1 + $0x30] ss:$12 sps:$4 sm:$0xff]   ;;  %s9622_s24 = smul.u32 48, %s13619_s13 }
  0x16   : > { %v1718_v41 = vrot.slane %v1716_v38, 1  ;;  %v9687_v56 = vld [vmem:[%s13615_s1 + $0x38] ss:$12 sps:$4 sm:$0xff]   ;;  %v9688_v58 = vld [vmem:[%s13615_s1 + $0x48] ss:$12 sps:$4 sm:$0xff]   ;;  %vm7698_vm5 = vcmask 517120  }
  0x17   : > { %263 = vrot.lane.b32.xlu0 %v10716_v15, %s10645_s9  ;;  %806 = vrot.lane.b32.xlu1 %v10716_v15, %s10646_s10  ;;  %v10821_v46 = vor.u32 %v1712_v43, %v1708_v42  ;;  %v9690_v57 = vld [vmem:[%s13615_s1 + $0x4c] ss:$12 sps:$4 sm:$0xff]   ;;  %v9691_v59 = vld [vmem:[%s13615_s1 + $0x50] ss:$12 sps:$4 sm:$0xff]  }
  0x18   : > { %441 = vmatpush1.bf16.msra.mxu0 %v9654_v20  ;;  %484 = vmatpush1.bf16.msra.mxu1 %v9655_v21  ;;  %v10817_v45 = vor.u32 %v1718_v41, %v1714_v40  ;;  %v9694_v60 = vld [vmem:[%s13615_s1 + $0x64] ss:$12 sps:$4 sm:$0xff]   ;;  %v9692_v61 = vld [vmem:[%s13615_s1 + $0x60] ss:$12 sps:$4 sm:$0xff]   ;;  %v9695_v62 = vld [vmem:[%s13615_s1 + $0x68] ss:$12 sps:$4 sm:$0xff]  }
  0x19   : > { %442 = vmatprep.subr.bf16.mxu0 %v9656_v22  ;;  %485 = vmatprep.subr.bf16.mxu1 %v10644_v2  ;;  %v9698_v63 = vld [vmem:[%s13615_s1 + $0x7c] ss:$12 sps:$4 sm:$0xff]   ;;  %v9696_v0 = vld [vmem:[%s13615_s1 + $0x78] ss:$12 sps:$4 sm:$0xff]   ;;  %v9699_v1 = vld [vmem:[%s13615_s1 + $0x80] ss:$12 sps:$4 sm:$0xff]  }
  0x1a   : > { %v9702_v3 = vld [vmem:[%s13615_s1 + $0x94] ss:$12 sps:$4 sm:$0xff]   ;;  %v9700_v4 = vld [vmem:[%s13615_s1 + $0x90] ss:$12 sps:$4 sm:$0xff]   ;;  %v9703_v5 = vld [vmem:[%s13615_s1 + $0x98] ss:$12 sps:$4 sm:$0xff]  }
  0x1b   : > { %1107 = vrot.lane.b32.xlu1 %v10716_v15, %s10647_s27  ;;  %1105 = vrot.lane.b32.xlu0 %v10706_v11, %s10647_s27  ;;  %v9706_v6 = vld [vmem:[%s13615_s1 + $0xac] ss:$12 sps:$4 sm:$0xff]   ;;  %v9704_v7 = vld [vmem:[%s13615_s1 + $0xa8] ss:$12 sps:$4 sm:$0xff]  }
  0x1c   : > { %443 = vmatpush1.bf16.msra.mxu0 %v9658_v23  ;;  %486 = vmatpush1.bf16.msra.mxu1 %v9659_v24  ;;  %v9707_v8 = vld [vmem:[%s13615_s1 + $0xb0] ss:$12 sps:$4 sm:$0xff]   ;;  %v9708_v10 = vld [vmem:[%s13615_s1 + $0xc0] ss:$12 sps:$4 sm:$0xff]   ;;  %v9711_v12 = vld [vmem:[%s13615_s1 + $0xc8] ss:$12 sps:$4 sm:$0xff]  }
  0x1d   : > { %444 = vmatprep.subr.bf16.mxu0 %v9660_v25  ;;  %487 = vmatprep.subr.bf16.mxu1 %v10644_v2  ;;  %v9710_v9 = vld [vmem:[%s13615_s1 + $0xc4] ss:$12 sps:$4 sm:$0xff]   ;;  %v9714_v13 = vld [vmem:[%s13615_s1 + $0xdc] ss:$12 sps:$4 sm:$0xff]   ;;  %v9715_v16 = vld [vmem:[%s13615_s1 + $0xe0] ss:$12 sps:$4 sm:$0xff]  }
  0x1e   : > { %v9712_v14 = vld [vmem:[%s13615_s1 + $0xd8] ss:$12 sps:$4 sm:$0xff]   ;;  %v9716_v18 = vld [vmem:[%s13615_s1 + $0x1e0] ss:$12 sps:$4 sm:$0xff]   ;;  %v9719_v20 = vld [vmem:[%s13615_s1 + $0x1e8] ss:$12 sps:$4 sm:$0xff]  }
  0x1f   : > { %1408 = vrot.lane.b32.xlu1 %v10716_v15, %s10648_s11  ;;  %1406 = vrot.lane.b32.xlu0 %v10706_v11, %s10648_s11  ;;  %v9718_v17 = vld [vmem:[%s13615_s1 + $0x1e4] ss:$12 sps:$4 sm:$0xff]   ;;  %v9722_v21 = vld [vmem:[%s13615_s1 + $0x1fc] ss:$12 sps:$4 sm:$0xff]  }
  0x20   : > { %445 = vmatpush1.bf16.msra.mxu0 %v9662_v26  ;;  %488 = vmatpush1.bf16.msra.mxu1 %v9663_v27  ;;  %v9720_v22 = vld [vmem:[%s13615_s1 + $0x1f8] ss:$12 sps:$4 sm:$0xff]   ;;  %v9723_v23 = vld [vmem:[%s13615_s1 + $0x200] ss:$12 sps:$4 sm:$0xff]   ;;  %v9724_v26 = vld [vmem:[%s13615_s1 + $0x210] ss:$12 sps:$4 sm:$0xff]  }
  0x21   : > { %446 = vmatprep.subr.bf16.mxu0 %v9664_v28  ;;  %489 = vmatprep.subr.bf16.mxu1 %v10644_v2  ;;  %v9726_v24 = vld [vmem:[%s13615_s1 + $0x214] ss:$12 sps:$4 sm:$0xff]   ;;  %v9727_v27 = vld [vmem:[%s13615_s1 + $0x218] ss:$12 sps:$4 sm:$0xff]   ;;  %v9740_v41 = vld [vmem:[%s13615_s1 + $0x270] ss:$12 sps:$4 sm:$0xff]  }
  0x22   : > { %v9730_v28 = vld [vmem:[%s13615_s1 + $0x22c] ss:$12 sps:$4 sm:$0xff]  }
  0x23   : > { %2017 = vrot.lane.b32.xlu1 %v10817_v45, %s10645_s9  ;;  %2015 = vrot.lane.b32.xlu0 %v10821_v46, %s10645_s9  ;;  %v9743_v43 = vld [vmem:[%s13615_s1 + $0x278] ss:$12 sps:$4 sm:$0xff]  }
  0x24   : > { %447 = vmatpush1.bf16.msra.mxu0 %v9666_v29  ;;  %490 = vmatpush1.bf16.msra.mxu1 %v9667_v30  ;;  %v9728_v29 = vld [vmem:[%s13615_s1 + $0x228] ss:$12 sps:$4 sm:$0xff]   ;;  %v9731_v30 = vld [vmem:[%s13615_s1 + $0x230] ss:$12 sps:$4 sm:$0xff]  }
  0x25   : > { %448 = vmatprep.subr.bf16.mxu0 %v9668_v31  ;;  %491 = vmatprep.subr.bf16.mxu1 %v10644_v2  ;;  %v9734_v31 = vld [vmem:[%s13615_s1 + $0x244] ss:$12 sps:$4 sm:$0xff]  }
  0x27   : > { %2317 = vrot.lane.b32.xlu1 %v10817_v45, %s10646_s10  ;;  %2315 = vrot.lane.b32.xlu0 %v10821_v46, %s10646_s10 }
  0x28   : > { %449 = vmatpush1.bf16.msra.mxu0 %v9670_v32  ;;  %492 = vmatpush1.bf16.msra.mxu1 %v9671_v33  ;;  %v9732_v32 = vld [vmem:[%s13615_s1 + $0x240] ss:$12 sps:$4 sm:$0xff]   ;;  %v9735_v33 = vld [vmem:[%s13615_s1 + $0x248] ss:$12 sps:$4 sm:$0xff]  }
  0x29   : > { %450 = vmatprep.subr.bf16.mxu0 %v9672_v34  ;;  %493 = vmatprep.subr.bf16.mxu1 %v10644_v2  ;;  %v9738_v34 = vld [vmem:[%s13615_s1 + $0x25c] ss:$12 sps:$4 sm:$0xff]  }
  0x2b   : > { %2617 = vrot.lane.b32.xlu1 %v10817_v45, %s10647_s27  ;;  %2615 = vrot.lane.b32.xlu0 %v10821_v46, %s10647_s27 }
  0x2c   : > { %451 = vmatpush1.bf16.msra.mxu0 %v9674_v35  ;;  %494 = vmatpush1.bf16.msra.mxu1 %v9675_v36  ;;  %v9736_v35 = vld [vmem:[%s13615_s1 + $0x258] ss:$12 sps:$4 sm:$0xff]   ;;  %v9739_v36 = vld [vmem:[%s13615_s1 + $0x260] ss:$12 sps:$4 sm:$0xff]  }
  0x2d   : > { %679 = vmatprep.subr.bf16.mxu0 %v9678_v37  ;;  %722 = vmatprep.subr.bf16.mxu1 %v10644_v2  ;;  %v9742_v37 = vld [vmem:[%s13615_s1 + $0x274] ss:$12 sps:$4 sm:$0xff]  }
  0x2f   : > { %2917 = vrot.lane.b32.xlu1 %v10817_v45, %s10648_s11  ;;  %2915 = vrot.lane.b32.xlu0 %v10821_v46, %s10648_s11 }
  0x85   : > { %v262_v44 = vpop.permute.xlu0 %261  ;;  %v10948_v19 = vpop.permute.xlu1 %804 }
  0x89   : > { %v264_v50 = vpop.permute.xlu0 %263  ;;  %v10969_v25 = vpop.permute.xlu1 %806 }
  0x8a   : > { %7833 = vmatprep.mubr.msk.bf16.mxu0 %vm428_vm0, %v264_v50  ;;  %7834 = vmatprep.mubr.msk.bf16.mxu1 %vm428_vm0, %v264_v50  ;;  %v266_v51 = vsel %vm265_vm1, %v262_v44, %v264_v50  ;;  %v9746_v44 = vld [vmem:[%s13615_s1 + $0x28c] ss:$12 sps:$4 sm:$0xff]  }
  0x8b   : > { %465 = vmatmul.mubr.bf16.vlgmr.msra.gmra.mrb[0].mxu0 %v266_v51  ;;  %508 = vmatmul.mubr.bf16.vlgmr.msra.gmra.mrb[0].mxu1 %v266_v51  ;;  %v9748_v50 = vld [vmem:[%s13615_s1 + $0x2a0] ss:$12 sps:$4 sm:$0xff]   ;;  %v9751_v51 = vld [vmem:[%s13615_s1 + $0x2a8] ss:$12 sps:$4 sm:$0xff]  }
  0x8c   : > { %680 = vmatpush1.bf16.msra.mxu0 %v9676_v47  ;;  %723 = vmatpush1.bf16.msra.mxu1 %v9679_v48  ;;  %v9744_v47 = vld [vmem:[%s13615_s1 + $0x288] ss:$12 sps:$4 sm:$0xff]   ;;  %v9747_v48 = vld [vmem:[%s13615_s1 + $0x290] ss:$12 sps:$4 sm:$0xff]  }
  0x8d   : > { %681 = vmatprep.subr.bf16.mxu0 %v9682_v49  ;;  %724 = vmatprep.subr.bf16.mxu1 %v10644_v2  ;;  %v9750_v49 = vld [vmem:[%s13615_s1 + $0x2a4] ss:$12 sps:$4 sm:$0xff]  }
  0x8e   : > { %7866 = vmatprep.mubr.msk.bf16.mxu1 %vm428_vm0, %v10716_v15  ;;  %7865 = vmatprep.mubr.msk.bf16.mxu0 %vm428_vm0, %v10716_v15 }
  0x90   : > { %682 = vmatpush1.bf16.msra.mxu0 %v9680_v52  ;;  %725 = vmatpush1.bf16.msra.mxu1 %v9683_v53  ;;  %v9754_v52 = vld [vmem:[%s13615_s1 + $0x2bc] ss:$12 sps:$4 sm:$0xff]   ;;  %v9752_v53 = vld [vmem:[%s13615_s1 + $0x2b8] ss:$12 sps:$4 sm:$0xff]  }
  0x91   : > { %683 = vmatprep.subr.bf16.mxu0 %v9686_v54  ;;  %726 = vmatprep.subr.bf16.mxu1 %v10644_v2  ;;  %v9755_v54 = vld [vmem:[%s13615_s1 + $0x2c0] ss:$12 sps:$4 sm:$0xff]  }
  0x94   : > { %684 = vmatpush1.bf16.msra.mxu0 %v9684_v55  ;;  %727 = vmatpush1.bf16.msra.mxu1 %v9687_v56  ;;  %v9758_v55 = vld [vmem:[%s13615_s1 + $0x2d4] ss:$12 sps:$4 sm:$0xff]   ;;  %v9756_v56 = vld [vmem:[%s13615_s1 + $0x2d0] ss:$12 sps:$4 sm:$0xff]  }
  0x95   : > { %685 = vmatprep.subr.bf16.mxu0 %v9690_v57  ;;  %728 = vmatprep.subr.bf16.mxu1 %v10644_v2  ;;  %v9759_v57 = vld [vmem:[%s13615_s1 + $0x2d8] ss:$12 sps:$4 sm:$0xff]  }
  0x98   : > { %686 = vmatpush1.bf16.msra.mxu0 %v9688_v58  ;;  %729 = vmatpush1.bf16.msra.mxu1 %v9691_v59  ;;  %v9762_v58 = vld [vmem:[%s13615_s1 + $0x2ec] ss:$12 sps:$4 sm:$0xff]   ;;  %v809_v59 = vsel %vm808_vm2, %v10948_v19, %v10969_v25 }
  0x99   : > { %687 = vmatprep.subr.bf16.mxu0 %v9694_v60  ;;  %730 = vmatprep.subr.bf16.mxu1 %v10644_v2  ;;  %v9760_v60 = vld [vmem:[%s13615_s1 + $0x2e8] ss:$12 sps:$4 sm:$0xff]   ;;  %v9787_v19 = vld [vmem:[%s13615_s1 + $0x380] ss:$12 sps:$4 sm:$0xff]  }
  0x9c   : > { %688 = vmatpush1.bf16.msra.mxu0 %v9692_v61  ;;  %731 = vmatpush1.bf16.msra.mxu1 %v9695_v62  ;;  %v9763_v61 = vld [vmem:[%s13615_s1 + $0x2f0] ss:$12 sps:$4 sm:$0xff]   ;;  %v11074_v62 = vpop.permute.xlu1 %1107 }
  0x9d   : > { %689 = vmatprep.subr.bf16.mxu0 %v9698_v63  ;;  %732 = vmatprep.subr.bf16.mxu1 %v10644_v2  ;;  %v9766_v63 = vld [vmem:[%s13615_s1 + $0x304] ss:$12 sps:$4 sm:$0xff]  }
  0xa0   : > { %690 = vmatpush1.bf16.msra.mxu0 %v9696_v0  ;;  %733 = vmatpush1.bf16.msra.mxu1 %v9699_v1  ;;  %v9764_v0 = vld [vmem:[%s13615_s1 + $0x300] ss:$12 sps:$4 sm:$0xff]   ;;  %v9767_v1 = vld [vmem:[%s13615_s1 + $0x308] ss:$12 sps:$4 sm:$0xff]  }
  0xa1   : > { %691 = vmatprep.subr.bf16.mxu0 %v9702_v3  ;;  %734 = vmatprep.subr.bf16.mxu1 %v10644_v2  ;;  %v9770_v3 = vld [vmem:[%s13615_s1 + $0x31c] ss:$12 sps:$4 sm:$0xff]  }
  0xa4   : > { %692 = vmatpush1.bf16.msra.mxu0 %v9700_v4  ;;  %735 = vmatpush1.bf16.msra.mxu1 %v9703_v5  ;;  %v9768_v4 = vld [vmem:[%s13615_s1 + $0x318] ss:$12 sps:$4 sm:$0xff]   ;;  %v9771_v5 = vld [vmem:[%s13615_s1 + $0x320] ss:$12 sps:$4 sm:$0xff]  }
  0xa5   : > { %693 = vmatprep.subr.bf16.mxu0 %v9706_v6  ;;  %736 = vmatprep.subr.bf16.mxu1 %v10644_v2  ;;  %v9774_v6 = vld [vmem:[%s13615_s1 + $0x334] ss:$12 sps:$4 sm:$0xff]  }
  0xa8   : > { %694 = vmatpush1.bf16.msra.mxu0 %v9704_v7  ;;  %737 = vmatpush1.bf16.msra.mxu1 %v9707_v8  ;;  %v9772_v7 = vld [vmem:[%s13615_s1 + $0x330] ss:$12 sps:$4 sm:$0xff]   ;;  %v9775_v8 = vld [vmem:[%s13615_s1 + $0x338] ss:$12 sps:$4 sm:$0xff]  }
  0xa9   : > { %695 = vmatprep.subr.bf16.mxu0 %v9710_v9  ;;  %738 = vmatprep.subr.bf16.mxu1 %v10644_v2  ;;  %v9778_v9 = vld [vmem:[%s13615_s1 + $0x34c] ss:$12 sps:$4 sm:$0xff]  }
  0xac   : > { %696 = vmatpush1.bf16.msra.mxu0 %v9708_v10  ;;  %739 = vmatpush1.bf16.msra.mxu1 %v9711_v12  ;;  %v9776_v10 = vld [vmem:[%s13615_s1 + $0x348] ss:$12 sps:$4 sm:$0xff]   ;;  %v9779_v12 = vld [vmem:[%s13615_s1 + $0x350] ss:$12 sps:$4 sm:$0xff]  }
  0xad   : > { %697 = vmatprep.subr.bf16.mxu0 %v9714_v13  ;;  %740 = vmatprep.subr.bf16.mxu1 %v10644_v2  ;;  %v9782_v13 = vld [vmem:[%s13615_s1 + $0x364] ss:$12 sps:$4 sm:$0xff]  }
  0xb0   : > { %698 = vmatpush1.bf16.msra.mxu0 %v9712_v14  ;;  %741 = vmatpush1.bf16.msra.mxu1 %v9715_v16  ;;  %v9780_v14 = vld [vmem:[%s13615_s1 + $0x360] ss:$12 sps:$4 sm:$0xff]   ;;  %v9783_v16 = vld [vmem:[%s13615_s1 + $0x368] ss:$12 sps:$4 sm:$0xff]  }
  0xb1   : > { %974 = vmatprep.subr.bf16.mxu0 %v9718_v17  ;;  %1017 = vmatprep.subr.bf16.mxu1 %v10644_v2  ;;  %v9786_v17 = vld [vmem:[%s13615_s1 + $0x37c] ss:$12 sps:$4 sm:$0xff]  }
  0xb3   : > { %755 = vmatmul.mubr.bf16.vlgmr.msra.gmra.mrb[4].mxu1 %v10706_v11  ;;  %712 = vmatmul.mubr.bf16.vlgmr.msra.gmra.mrb[0].mxu0 %v10706_v11 }
  0xb4   : > { %975 = vmatpush1.bf16.msra.mxu0 %v9716_v18  ;;  %1018 = vmatpush1.bf16.msra.mxu1 %v9719_v20  ;;  %v9784_v18 = vld [vmem:[%s13615_s1 + $0x378] ss:$12 sps:$4 sm:$0xff]   ;;  %v9790_v20 = vld [vmem:[%s13615_s1 + $0x394] ss:$12 sps:$4 sm:$0xff]  }
  0xb5   : > { %976 = vmatprep.subr.bf16.mxu0 %v9722_v21  ;;  %1019 = vmatprep.subr.bf16.mxu1 %v10644_v2  ;;  %v9788_v21 = vld [vmem:[%s13615_s1 + $0x390] ss:$12 sps:$4 sm:$0xff]  }
  0xb6   : > { %7937 = vmatprep.mubr.msk.bf16.mxu0 %vm428_vm0, %v10969_v25  ;;  %7938 = vmatprep.mubr.msk.bf16.mxu1 %vm428_vm0, %v10969_v25  ;;  %v9795_v25 = vld [vmem:[%s13615_s1 + $0x3b0] ss:$12 sps:$4 sm:$0xff]  }
  0xb8   : > { %977 = vmatpush1.bf16.msra.mxu0 %v9720_v22  ;;  %1020 = vmatpush1.bf16.msra.mxu1 %v9723_v23  ;;  %v9791_v22 = vld [vmem:[%s13615_s1 + $0x398] ss:$12 sps:$4 sm:$0xff]  }
  0xb9   : > { %978 = vmatprep.subr.bf16.mxu0 %v9726_v24  ;;  %1021 = vmatprep.subr.bf16.mxu1 %v10644_v2  ;;  %v9794_v23 = vld [vmem:[%s13615_s1 + $0x3ac] ss:$12 sps:$4 sm:$0xff]   ;;  %v9792_v24 = vld [vmem:[%s13615_s1 + $0x3a8] ss:$12 sps:$4 sm:$0xff]  }
  0xbc   : > { %979 = vmatpush1.bf16.msra.mxu0 %v9724_v26  ;;  %1022 = vmatpush1.bf16.msra.mxu1 %v9727_v27  ;;  %v9798_v26 = vld [vmem:[%s13615_s1 + $0x3c4] ss:$12 sps:$4 sm:$0xff]   ;;  %v1106_v27 = vpop.permute.xlu0 %1105 }
  0xbd   : > { %980 = vmatprep.subr.bf16.mxu0 %v9730_v28  ;;  %1023 = vmatprep.subr.bf16.mxu1 %v10644_v2  ;;  %v9796_v28 = vld [vmem:[%s13615_s1 + $0x3c0] ss:$12 sps:$4 sm:$0xff]  }
  0xc0   : > { %981 = vmatpush1.bf16.msra.mxu0 %v9728_v29  ;;  %1024 = vmatpush1.bf16.msra.mxu1 %v9731_v30  ;;  %v1110_v29 = vsel %vm1109_vm3, %v1106_v27, %v11074_v62  ;;  %v9799_v30 = vld [vmem:[%s13615_s1 + $0x3c8] ss:$12 sps:$4 sm:$0xff]   ;;  %v9864_v27 = vld [vmem:[%s13615_s1 + $0x558] ss:$12 sps:$4 sm:$0xff]  }
  0xc1   : > { %982 = vmatprep.subr.bf16.mxu0 %v9734_v31  ;;  %1025 = vmatprep.subr.bf16.mxu1 %v10644_v2  ;;  %v9802_v31 = vld [vmem:[%s13615_s1 + $0x3dc] ss:$12 sps:$4 sm:$0xff]  }
  0xc4   : > { %983 = vmatpush1.bf16.msra.mxu0 %v9732_v32  ;;  %1026 = vmatpush1.bf16.msra.mxu1 %v9735_v33  ;;  %v9800_v32 = vld [vmem:[%s13615_s1 + $0x3d8] ss:$12 sps:$4 sm:$0xff]   ;;  %v9803_v33 = vld [vmem:[%s13615_s1 + $0x3e0] ss:$12 sps:$4 sm:$0xff]  }
  0xc5   : > { %984 = vmatprep.subr.bf16.mxu0 %v9738_v34  ;;  %1027 = vmatprep.subr.bf16.mxu1 %v10644_v2  ;;  %v11182_v34 = vpop.permute.xlu1 %1408 }
  0xc8   : > { %985 = vmatpush1.bf16.msra.mxu0 %v9736_v35  ;;  %1028 = vmatpush1.bf16.msra.mxu1 %v9739_v36  ;;  %v9806_v35 = vld [vmem:[%s13615_s1 + $0x3f4] ss:$12 sps:$4 sm:$0xff]   ;;  %v9804_v36 = vld [vmem:[%s13615_s1 + $0x3f0] ss:$12 sps:$4 sm:$0xff]  }
  0xc9   : > { %986 = vmatprep.subr.bf16.mxu0 %v9742_v37  ;;  %1029 = vmatprep.subr.bf16.mxu1 %v10644_v2  ;;  %v9807_v37 = vld [vmem:[%s13615_s1 + $0x3f8] ss:$12 sps:$4 sm:$0xff]  }
  0xcc   : > { %987 = vmatpush1.bf16.msra.mxu0 %v9740_v41  ;;  %1030 = vmatpush1.bf16.msra.mxu1 %v9743_v43  ;;  %v9810_v41 = vld [vmem:[%s13615_s1 + $0x40c] ss:$12 sps:$4 sm:$0xff]   ;;  %v9808_v43 = vld [vmem:[%s13615_s1 + $0x408] ss:$12 sps:$4 sm:$0xff]  }
  0xcd   : > { %988 = vmatprep.subr.bf16.mxu0 %v9746_v44  ;;  %1031 = vmatprep.subr.bf16.mxu1 %v10644_v2  ;;  %v9811_v44 = vld [vmem:[%s13615_s1 + $0x410] ss:$12 sps:$4 sm:$0xff]  }
  0xd0   : > { %989 = vmatpush1.bf16.msra.mxu0 %v9744_v47  ;;  %1032 = vmatpush1.bf16.msra.mxu1 %v9747_v48  ;;  %v9814_v47 = vld [vmem:[%s13615_s1 + $0x424] ss:$12 sps:$4 sm:$0xff]   ;;  %v9812_v48 = vld [vmem:[%s13615_s1 + $0x420] ss:$12 sps:$4 sm:$0xff]  }
  0xd1   : > { %990 = vmatprep.subr.bf16.mxu0 %v9750_v49  ;;  %1033 = vmatprep.subr.bf16.mxu1 %v10644_v2  ;;  %v9815_v49 = vld [vmem:[%s13615_s1 + $0x428] ss:$12 sps:$4 sm:$0xff]  }
  0xd4   : > { %991 = vmatpush1.bf16.msra.mxu0 %v9748_v50  ;;  %1034 = vmatpush1.bf16.msra.mxu1 %v9751_v51  ;;  %v9818_v50 = vld [vmem:[%s13615_s1 + $0x43c] ss:$12 sps:$4 sm:$0xff]   ;;  %v9816_v51 = vld [vmem:[%s13615_s1 + $0x438] ss:$12 sps:$4 sm:$0xff]  }
  0xd5   : > { %992 = vmatprep.subr.bf16.mxu0 %v9754_v52  ;;  %1035 = vmatprep.subr.bf16.mxu1 %v10644_v2  ;;  %v9819_v52 = vld [vmem:[%s13615_s1 + $0x440] ss:$12 sps:$4 sm:$0xff]  }
  0xd8   : > { %993 = vmatpush1.bf16.msra.mxu0 %v9752_v53  ;;  %1036 = vmatpush1.bf16.msra.mxu1 %v9755_v54  ;;  %v9822_v53 = vld [vmem:[%s13615_s1 + $0x454] ss:$12 sps:$4 sm:$0xff]   ;;  %v9820_v54 = vld [vmem:[%s13615_s1 + $0x450] ss:$12 sps:$4 sm:$0xff]  }
  0xd9   : > { %1275 = vmatprep.subr.bf16.mxu0 %v9758_v55  ;;  %1318 = vmatprep.subr.bf16.mxu1 %v10644_v2  ;;  %v9823_v55 = vld [vmem:[%s13615_s1 + $0x458] ss:$12 sps:$4 sm:$0xff]  }
  0xdb   : > { %1007 = vmatmul.mubr.bf16.vlgmr.msra.gmra.mrb[0].mxu0 %v809_v59  ;;  %1050 = vmatmul.mubr.bf16.vlgmr.msra.gmra.mrb[8].mxu1 %v809_v59  ;;  %v9830_v59 = vld [vmem:[%s13615_s1 + $0x484] ss:$12 sps:$4 sm:$0xff]  }
  0xdc   : > { %1276 = vmatpush1.bf16.msra.mxu0 %v9756_v56  ;;  %1319 = vmatpush1.bf16.msra.mxu1 %v9759_v57  ;;  %v9826_v56 = vld [vmem:[%s13615_s1 + $0x46c] ss:$12 sps:$4 sm:$0xff]   ;;  %v9824_v57 = vld [vmem:[%s13615_s1 + $0x468] ss:$12 sps:$4 sm:$0xff]  }
  0xdd   : > { %1277 = vmatprep.subr.bf16.mxu0 %v9762_v58  ;;  %1320 = vmatprep.subr.bf16.mxu1 %v10644_v2  ;;  %v9827_v58 = vld [vmem:[%s13615_s1 + $0x470] ss:$12 sps:$4 sm:$0xff]  }
  0xde   : > { %8010 = vmatprep.mubr.msk.bf16.mxu1 %vm428_vm0, %v11074_v62  ;;  %8009 = vmatprep.mubr.msk.bf16.mxu0 %vm428_vm0, %v11074_v62  ;;  %v9834_v62 = vld [vmem:[%s13615_s1 + $0x49c] ss:$12 sps:$4 sm:$0xff]  }
  0xe0   : > { %1278 = vmatpush1.bf16.msra.mxu0 %v9760_v60  ;;  %1321 = vmatpush1.bf16.msra.mxu1 %v9763_v61  ;;  %v9828_v60 = vld [vmem:[%s13615_s1 + $0x480] ss:$12 sps:$4 sm:$0xff]   ;;  %v9831_v61 = vld [vmem:[%s13615_s1 + $0x488] ss:$12 sps:$4 sm:$0xff]  }
  0xe1   : > { %1279 = vmatprep.subr.bf16.mxu0 %v9766_v63  ;;  %1322 = vmatprep.subr.bf16.mxu1 %v10644_v2  ;;  %v9832_v63 = vld [vmem:[%s13615_s1 + $0x498] ss:$12 sps:$4 sm:$0xff]  }
  0xe4   : > { %1280 = vmatpush1.bf16.msra.mxu0 %v9764_v0  ;;  %1323 = vmatpush1.bf16.msra.mxu1 %v9767_v1  ;;  %v9835_v0 = vld [vmem:[%s13615_s1 + $0x4a0] ss:$12 sps:$4 sm:$0xff]  }
  0xe5   : > { %1281 = vmatprep.subr.bf16.mxu0 %v9770_v3  ;;  %1324 = vmatprep.subr.bf16.mxu1 %v10644_v2  ;;  %v9838_v1 = vld [vmem:[%s13615_s1 + $0x4b4] ss:$12 sps:$4 sm:$0xff]   ;;  %v1407_v3 = vpop.permute.xlu0 %1406 }
  0xe8   : > { %1282 = vmatpush1.bf16.msra.mxu0 %v9768_v4  ;;  %1325 = vmatpush1.bf16.msra.mxu1 %v9771_v5  ;;  %v9836_v4 = vld [vmem:[%s13615_s1 + $0x4b0] ss:$12 sps:$4 sm:$0xff]   ;;  %v1411_v5 = vsel %vm1410_vm4, %v1407_v3, %v11182_v34 }
  0xe9   : > { %1283 = vmatprep.subr.bf16.mxu0 %v9774_v6  ;;  %1326 = vmatprep.subr.bf16.mxu1 %v10644_v2  ;;  %v9839_v6 = vld [vmem:[%s13615_s1 + $0x4b8] ss:$12 sps:$4 sm:$0xff]   ;;  %v9900_v3 = vld [vmem:[%s13615_s1 + $0x630] ss:$12 sps:$4 sm:$0xff]  }
  0xec   : > { %1284 = vmatpush1.bf16.msra.mxu0 %v9772_v7  ;;  %1327 = vmatpush1.bf16.msra.mxu1 %v9775_v8  ;;  %v9842_v7 = vld [vmem:[%s13615_s1 + $0x4cc] ss:$12 sps:$4 sm:$0xff]   ;;  %v9840_v8 = vld [vmem:[%s13615_s1 + $0x4c8] ss:$12 sps:$4 sm:$0xff]  }
  0xed   : > { %1285 = vmatprep.subr.bf16.mxu0 %v9778_v9  ;;  %1328 = vmatprep.subr.bf16.mxu1 %v10644_v2  ;;  %v9843_v9 = vld [vmem:[%s13615_s1 + $0x4d0] ss:$12 sps:$4 sm:$0xff]  }
  0xf0   : > { %1286 = vmatpush1.bf16.msra.mxu0 %v9776_v10  ;;  %1329 = vmatpush1.bf16.msra.mxu1 %v9779_v12  ;;  %v9846_v10 = vld [vmem:[%s13615_s1 + $0x4e4] ss:$12 sps:$4 sm:$0xff]   ;;  %v9844_v12 = vld [vmem:[%s13615_s1 + $0x4e0] ss:$12 sps:$4 sm:$0xff]  }
  0xf1   : > { %1287 = vmatprep.subr.bf16.mxu0 %v9782_v13  ;;  %1330 = vmatprep.subr.bf16.mxu1 %v10644_v2  ;;  %v9847_v13 = vld [vmem:[%s13615_s1 + $0x4e8] ss:$12 sps:$4 sm:$0xff]  }
  0xf4   : > { %1288 = vmatpush1.bf16.msra.mxu0 %v9780_v14  ;;  %1331 = vmatpush1.bf16.msra.mxu1 %v9783_v16  ;;  %v9850_v14 = vld [vmem:[%s13615_s1 + $0x4fc] ss:$12 sps:$4 sm:$0xff]   ;;  %v9848_v16 = vld [vmem:[%s13615_s1 + $0x4f8] ss:$12 sps:$4 sm:$0xff]  }
  0xf5   : > { %1289 = vmatprep.subr.bf16.mxu0 %v9786_v17  ;;  %1332 = vmatprep.subr.bf16.mxu1 %v10644_v2  ;;  %v9851_v17 = vld [vmem:[%s13615_s1 + $0x500] ss:$12 sps:$4 sm:$0xff]  }
  0xf8   : > { %1290 = vmatpush1.bf16.msra.mxu0 %v9784_v18  ;;  %1333 = vmatpush1.bf16.msra.mxu1 %v9787_v19  ;;  %v9852_v18 = vld [vmem:[%s13615_s1 + $0x510] ss:$12 sps:$4 sm:$0xff]   ;;  %v9855_v19 = vld [vmem:[%s13615_s1 + $0x518] ss:$12 sps:$4 sm:$0xff]  }
  0xf9   : > { %1291 = vmatprep.subr.bf16.mxu0 %v9790_v20  ;;  %1334 = vmatprep.subr.bf16.mxu1 %v10644_v2  ;;  %v9858_v20 = vld [vmem:[%s13615_s1 + $0x52c] ss:$12 sps:$4 sm:$0xff]  }
  0xfc   : > { %1292 = vmatpush1.bf16.msra.mxu0 %v9788_v21  ;;  %1335 = vmatpush1.bf16.msra.mxu1 %v9791_v22  ;;  %v9856_v21 = vld [vmem:[%s13615_s1 + $0x528] ss:$12 sps:$4 sm:$0xff]   ;;  %v9859_v22 = vld [vmem:[%s13615_s1 + $0x530] ss:$12 sps:$4 sm:$0xff]  }
  0xfd   : > { %1293 = vmatprep.subr.bf16.mxu0 %v9794_v23  ;;  %1336 = vmatprep.subr.bf16.mxu1 %v10644_v2  ;;  %v9862_v23 = vld [vmem:[%s13615_s1 + $0x544] ss:$12 sps:$4 sm:$0xff]  }
 0x100   : > { %1294 = vmatpush1.bf16.msra.mxu0 %v9792_v24  ;;  %1337 = vmatpush1.bf16.msra.mxu1 %v9795_v25  ;;  %v9860_v24 = vld [vmem:[%s13615_s1 + $0x540] ss:$12 sps:$4 sm:$0xff]   ;;  %v9863_v25 = vld [vmem:[%s13615_s1 + $0x548] ss:$12 sps:$4 sm:$0xff]  }
 0x101   : > { %1576 = vmatprep.subr.bf16.mxu0 %v9798_v26  ;;  %1619 = vmatprep.subr.bf16.mxu1 %v10644_v2  ;;  %v9866_v26 = vld [vmem:[%s13615_s1 + $0x55c] ss:$12 sps:$4 sm:$0xff]  }
 0x103   : > { %1351 = vmatmul.mubr.bf16.vlgmr.msra.gmra.mrb[12].mxu1 %v1110_v29  ;;  %1308 = vmatmul.mubr.bf16.vlgmr.msra.gmra.mrb[0].mxu0 %v1110_v29  ;;  %v9870_v29 = vld [vmem:[%s13615_s1 + $0x574] ss:$12 sps:$4 sm:$0xff]  }
 0x104   : > { %1577 = vmatpush1.bf16.msra.mxu0 %v9796_v28  ;;  %1620 = vmatpush1.bf16.msra.mxu1 %v9799_v30  ;;  %v9867_v28 = vld [vmem:[%s13615_s1 + $0x560] ss:$12 sps:$4 sm:$0xff]   ;;  %v9868_v30 = vld [vmem:[%s13615_s1 + $0x570] ss:$12 sps:$4 sm:$0xff]  }
 0x105   : > { %1578 = vmatprep.subr.bf16.mxu0 %v9802_v31  ;;  %1621 = vmatprep.subr.bf16.mxu1 %v10644_v2  ;;  %v9871_v31 = vld [vmem:[%s13615_s1 + $0x578] ss:$12 sps:$4 sm:$0xff]  }
 0x106   : > { %8082 = vmatprep.mubr.msk.bf16.mxu1 %vm428_vm0, %v11182_v34  ;;  %8081 = vmatprep.mubr.msk.bf16.mxu0 %vm428_vm0, %v11182_v34  ;;  %v9875_v34 = vld [vmem:[%s13615_s1 + $0x590] ss:$12 sps:$4 sm:$0xff]  }
 0x108   : > { %1579 = vmatpush1.bf16.msra.mxu0 %v9800_v32  ;;  %1622 = vmatpush1.bf16.msra.mxu1 %v9803_v33  ;;  %v9874_v32 = vld [vmem:[%s13615_s1 + $0x58c] ss:$12 sps:$4 sm:$0xff]   ;;  %v9872_v33 = vld [vmem:[%s13615_s1 + $0x588] ss:$12 sps:$4 sm:$0xff]  }
 0x109   : > { %1580 = vmatprep.subr.bf16.mxu0 %v9806_v35  ;;  %1623 = vmatprep.subr.bf16.mxu1 %v10644_v2  ;;  %v9878_v35 = vld [vmem:[%s13615_s1 + $0x5a4] ss:$12 sps:$4 sm:$0xff]  }
 0x10c   : > { %1581 = vmatpush1.bf16.msra.mxu0 %v9804_v36  ;;  %1624 = vmatpush1.bf16.msra.mxu1 %v9807_v37  ;;  %v11378_v36 = vrot.slane %v10716_v15, 1  ;;  %v11381_v37 = vrot.slane %v10706_v11, 1 }
 0x10d   : > { %1582 = vmatprep.subr.bf16.mxu0 %v9810_v41  ;;  %1625 = vmatprep.subr.bf16.mxu1 %v10644_v2  ;;  %v9876_v41 = vld [vmem:[%s13615_s1 + $0x5a0] ss:$12 sps:$4 sm:$0xff]  }
 0x10e   : > { %3514 = vrot.lane.b32.xlu1 %v11378_v36, %s10645_s9  ;;  %3512 = vrot.lane.b32.xlu0 %v11381_v37, %s10645_s9 }
 0x110   : > { %1583 = vmatpush1.bf16.msra.mxu0 %v9808_v43  ;;  %1626 = vmatpush1.bf16.msra.mxu1 %v9811_v44  ;;  %v9879_v43 = vld [vmem:[%s13615_s1 + $0x5a8] ss:$12 sps:$4 sm:$0xff]  }
 0x111   : > { %1584 = vmatprep.subr.bf16.mxu0 %v9814_v47  ;;  %1627 = vmatprep.subr.bf16.mxu1 %v10644_v2  ;;  %v9882_v44 = vld [vmem:[%s13615_s1 + $0x5bc] ss:$12 sps:$4 sm:$0xff]   ;;  %v9880_v47 = vld [vmem:[%s13615_s1 + $0x5b8] ss:$12 sps:$4 sm:$0xff]  }
 0x112   : > { %3814 = vrot.lane.b32.xlu1 %v11378_v36, %s10646_s10  ;;  %3812 = vrot.lane.b32.xlu0 %v11381_v37, %s10646_s10 }
 0x114   : > { %1585 = vmatpush1.bf16.msra.mxu0 %v9812_v48  ;;  %1628 = vmatpush1.bf16.msra.mxu1 %v9815_v49  ;;  %v9883_v48 = vld [vmem:[%s13615_s1 + $0x5c0] ss:$12 sps:$4 sm:$0xff]   ;;  %v11410_v49 = vpop.permute.xlu1 %2017 }
 0x115   : > { %1586 = vmatprep.subr.bf16.mxu0 %v9818_v50  ;;  %1629 = vmatprep.subr.bf16.mxu1 %v10644_v2  ;;  %v9886_v50 = vld [vmem:[%s13615_s1 + $0x5d4] ss:$12 sps:$4 sm:$0xff]  }
 0x116   : > { %4114 = vrot.lane.b32.xlu1 %v11378_v36, %s10647_s27  ;;  %4112 = vrot.lane.b32.xlu0 %v11381_v37, %s10647_s27 }
 0x118   : > { %1587 = vmatpush1.bf16.msra.mxu0 %v9816_v51  ;;  %1630 = vmatpush1.bf16.msra.mxu1 %v9819_v52  ;;  %v9884_v51 = vld [vmem:[%s13615_s1 + $0x5d0] ss:$12 sps:$4 sm:$0xff]   ;;  %v9887_v52 = vld [vmem:[%s13615_s1 + $0x5d8] ss:$12 sps:$4 sm:$0xff]  }
 0x119   : > { %1588 = vmatprep.subr.bf16.mxu0 %v9822_v53  ;;  %1631 = vmatprep.subr.bf16.mxu1 %v10644_v2  ;;  %v9888_v53 = vld [vmem:[%s13615_s1 + $0x5e8] ss:$12 sps:$4 sm:$0xff]  }
 0x11a   : > { %4414 = vrot.lane.b32.xlu1 %v11378_v36, %s10648_s11  ;;  %4412 = vrot.lane.b32.xlu0 %v11381_v37, %s10648_s11 }
 0x11c   : > { %1589 = vmatpush1.bf16.msra.mxu0 %v9820_v54  ;;  %1632 = vmatpush1.bf16.msra.mxu1 %v9823_v55  ;;  %v9891_v54 = vld [vmem:[%s13615_s1 + $0x5f0] ss:$12 sps:$4 sm:$0xff]  }
 0x11d   : > { %1590 = vmatprep.subr.bf16.mxu0 %v9826_v56  ;;  %1633 = vmatprep.subr.bf16.mxu1 %v10644_v2  ;;  %v9894_v55 = vld [vmem:[%s13615_s1 + $0x604] ss:$12 sps:$4 sm:$0xff]  }
 0x120   : > { %1591 = vmatpush1.bf16.msra.mxu0 %v9824_v57  ;;  %1634 = vmatpush1.bf16.msra.mxu1 %v9827_v58  ;;  %v9892_v57 = vld [vmem:[%s13615_s1 + $0x600] ss:$12 sps:$4 sm:$0xff]  }
 0x121   : > { %1592 = vmatprep.subr.bf16.mxu0 %v9830_v59  ;;  %1635 = vmatprep.subr.bf16.mxu1 %v10644_v2 }
 0x124   : > { %1593 = vmatpush1.bf16.msra.mxu0 %v9828_v60  ;;  %1636 = vmatpush1.bf16.msra.mxu1 %v9831_v61  ;;  %v9895_v60 = vld [vmem:[%s13615_s1 + $0x608] ss:$12 sps:$4 sm:$0xff]  }
 0x125   : > { %1594 = vmatprep.subr.bf16.mxu0 %v9834_v62  ;;  %1637 = vmatprep.subr.bf16.mxu1 %v10644_v2  ;;  %v9898_v61 = vld [vmem:[%s13615_s1 + $0x61c] ss:$12 sps:$4 sm:$0xff]  }
 0x128   : > { %1595 = vmatpush1.bf16.msra.mxu0 %v9832_v63  ;;  %1638 = vmatpush1.bf16.msra.mxu1 %v9835_v0  ;;  %v9896_v63 = vld [vmem:[%s13615_s1 + $0x618] ss:$12 sps:$4 sm:$0xff]   ;;  %v9899_v0 = vld [vmem:[%s13615_s1 + $0x620] ss:$12 sps:$4 sm:$0xff]  }
 0x129   : > { %1884 = vmatprep.subr.bf16.mxu0 %v9838_v1  ;;  %1927 = vmatprep.subr.bf16.mxu1 %v10644_v2  ;;  %v9902_v1 = vld [vmem:[%s13615_s1 + $0x634] ss:$12 sps:$4 sm:$0xff]  }
 0x12b   : > { %1652 = vmatmul.mubr.bf16.vlgmr.msra.gmra.mrb[16].mxu1 %v1411_v5  ;;  %1609 = vmatmul.mubr.bf16.vlgmr.msra.gmra.mrb[0].mxu0 %v1411_v5  ;;  %v9906_v5 = vld [vmem:[%s13615_s1 + $0x64c] ss:$12 sps:$4 sm:$0xff]  }
 0x12c   : > { %1885 = vmatpush1.bf16.msra.mxu0 %v9836_v4  ;;  %1928 = vmatpush1.bf16.msra.mxu1 %v9839_v6  ;;  %v9903_v4 = vld [vmem:[%s13615_s1 + $0x638] ss:$12 sps:$4 sm:$0xff]   ;;  %v9904_v6 = vld [vmem:[%s13615_s1 + $0x648] ss:$12 sps:$4 sm:$0xff]  }
 0x12d   : > { %1886 = vmatprep.subr.bf16.mxu0 %v9842_v7  ;;  %1929 = vmatprep.subr.bf16.mxu1 %v10644_v2  ;;  %v9907_v7 = vld [vmem:[%s13615_s1 + $0x650] ss:$12 sps:$4 sm:$0xff]  }
 0x12e   : > { %8154 = vmatprep.mubr.msk.bf16.mxu1 %vm428_vm0, %v10817_v45  ;;  %8153 = vmatprep.mubr.msk.bf16.mxu0 %vm428_vm0, %v10817_v45  ;;  %v9854_v45 = vld [vmem:[%s13615_s1 + $0x514] ss:$12 sps:$4 sm:$0xff]  }
 0x130   : > { %1887 = vmatpush1.bf16.msra.mxu0 %v9840_v8  ;;  %1930 = vmatpush1.bf16.msra.mxu1 %v9843_v9  ;;  %v9910_v8 = vld [vmem:[%s13615_s1 + $0x664] ss:$12 sps:$4 sm:$0xff]   ;;  %v9908_v9 = vld [vmem:[%s13615_s1 + $0x660] ss:$12 sps:$4 sm:$0xff]  }
 0x131   : > { %1888 = vmatprep.subr.bf16.mxu0 %v9846_v10  ;;  %1931 = vmatprep.subr.bf16.mxu1 %v10644_v2  ;;  %v9911_v10 = vld [vmem:[%s13615_s1 + $0x668] ss:$12 sps:$4 sm:$0xff]  }
 0x134   : > { %1889 = vmatpush1.bf16.msra.mxu0 %v9844_v12  ;;  %1932 = vmatpush1.bf16.msra.mxu1 %v9847_v13  ;;  %v9914_v12 = vld [vmem:[%s13615_s1 + $0x67c] ss:$12 sps:$4 sm:$0xff]   ;;  %v9912_v13 = vld [vmem:[%s13615_s1 + $0x678] ss:$12 sps:$4 sm:$0xff]  }
 0x135   : > { %1890 = vmatprep.subr.bf16.mxu0 %v9850_v14  ;;  %1933 = vmatprep.subr.bf16.mxu1 %v10644_v2  ;;  %v9915_v14 = vld [vmem:[%s13615_s1 + $0x680] ss:$12 sps:$4 sm:$0xff]  }
 0x138   : > { %1891 = vmatpush1.bf16.msra.mxu0 %v9848_v16  ;;  %1934 = vmatpush1.bf16.msra.mxu1 %v9851_v17  ;;  %v9918_v16 = vld [vmem:[%s13615_s1 + $0x694] ss:$12 sps:$4 sm:$0xff]   ;;  %v2016_v17 = vpop.permute.xlu0 %2015 }
 0x139   : > { %1892 = vmatprep.subr.bf16.mxu0 %v9854_v45  ;;  %1935 = vmatprep.subr.bf16.mxu1 %v10644_v2  ;;  %v9916_v45 = vld [vmem:[%s13615_s1 + $0x690] ss:$12 sps:$4 sm:$0xff]  }
 0x13c   : > { %1893 = vmatpush1.bf16.msra.mxu0 %v9852_v18  ;;  %1936 = vmatpush1.bf16.msra.mxu1 %v9855_v19  ;;  %v2019_v18 = vsel %vm265_vm1, %v2016_v17, %v11410_v49  ;;  %v9919_v19 = vld [vmem:[%s13615_s1 + $0x698] ss:$12 sps:$4 sm:$0xff]   ;;  %v9972_v17 = vld [vmem:[%s13615_s1 + $0x7e0] ss:$12 sps:$4 sm:$0xff]  }
 0x13d   : > { %1894 = vmatprep.subr.bf16.mxu0 %v9858_v20  ;;  %1937 = vmatprep.subr.bf16.mxu1 %v10644_v2  ;;  %v9922_v20 = vld [vmem:[%s13615_s1 + $0x6ac] ss:$12 sps:$4 sm:$0xff]  }
 0x140   : > { %1895 = vmatpush1.bf16.msra.mxu0 %v9856_v21  ;;  %1938 = vmatpush1.bf16.msra.mxu1 %v9859_v22  ;;  %v9920_v21 = vld [vmem:[%s13615_s1 + $0x6a8] ss:$12 sps:$4 sm:$0xff]   ;;  %v9923_v22 = vld [vmem:[%s13615_s1 + $0x6b0] ss:$12 sps:$4 sm:$0xff]  }
 0x141   : > { %1896 = vmatprep.subr.bf16.mxu0 %v9862_v23  ;;  %1939 = vmatprep.subr.bf16.mxu1 %v10644_v2  ;;  %v11530_v23 = vpop.permute.xlu1 %2317 }
 0x144   : > { %1897 = vmatpush1.bf16.msra.mxu0 %v9860_v24  ;;  %1940 = vmatpush1.bf16.msra.mxu1 %v9863_v25  ;;  %v9926_v24 = vld [vmem:[%s13615_s1 + $0x6c4] ss:$12 sps:$4 sm:$0xff]   ;;  %v9924_v25 = vld [vmem:[%s13615_s1 + $0x6c0] ss:$12 sps:$4 sm:$0xff]  }
 0x145   : > { %1898 = vmatprep.subr.bf16.mxu0 %v9866_v26  ;;  %1941 = vmatprep.subr.bf16.mxu1 %v10644_v2  ;;  %v9927_v26 = vld [vmem:[%s13615_s1 + $0x6c8] ss:$12 sps:$4 sm:$0xff]  }
 0x148   : > { %1899 = vmatpush1.bf16.msra.mxu0 %v9864_v27  ;;  %1942 = vmatpush1.bf16.msra.mxu1 %v9867_v28  ;;  %v9930_v27 = vld [vmem:[%s13615_s1 + $0x6dc] ss:$12 sps:$4 sm:$0xff]   ;;  %v9928_v28 = vld [vmem:[%s13615_s1 + $0x6d8] ss:$12 sps:$4 sm:$0xff]  }
 0x149   : > { %1900 = vmatprep.subr.bf16.mxu0 %v9870_v29  ;;  %1943 = vmatprep.subr.bf16.mxu1 %v10644_v2  ;;  %v9931_v29 = vld [vmem:[%s13615_s1 + $0x6e0] ss:$12 sps:$4 sm:$0xff]  }
 0x14c   : > { %1901 = vmatpush1.bf16.msra.mxu0 %v9868_v30  ;;  %1944 = vmatpush1.bf16.msra.mxu1 %v9871_v31  ;;  %v9934_v30 = vld [vmem:[%s13615_s1 + $0x6f4] ss:$12 sps:$4 sm:$0xff]  }
 0x14d   : > { %1902 = vmatprep.subr.bf16.mxu0 %v9874_v32  ;;  %1945 = vmatprep.subr.bf16.mxu1 %v10644_v2  ;;  %v9932_v32 = vld [vmem:[%s13615_s1 + $0x6f0] ss:$12 sps:$4 sm:$0xff]  }
 0x150   : > { %1903 = vmatpush1.bf16.msra.mxu0 %v9872_v33  ;;  %1946 = vmatpush1.bf16.msra.mxu1 %v9875_v34 }
 0x151   : > { %2184 = vmatprep.subr.bf16.mxu0 %v9878_v35  ;;  %2227 = vmatprep.subr.bf16.mxu1 %v10644_v2 }
 0x153   : > { %1960 = vmatmul.mubr.bf16.vlgmr.msra.gmra.mrb[20].mxu1 %v10821_v46  ;;  %1917 = vmatmul.mubr.bf16.vlgmr.msra.gmra.mrb[0].mxu0 %v10821_v46  ;;  %v9890_v46 = vld [vmem:[%s13615_s1 + $0x5ec] ss:$12 sps:$4 sm:$0xff]  }
 0x154   : > { %2185 = vmatpush1.bf16.msra.mxu0 %v9876_v41  ;;  %2228 = vmatpush1.bf16.msra.mxu1 %v9879_v43  ;;  %v9935_v41 = vld [vmem:[%s13615_s1 + $0x6f8] ss:$12 sps:$4 sm:$0xff]  }
 0x155   : > { %2186 = vmatprep.subr.bf16.mxu0 %v9882_v44  ;;  %2229 = vmatprep.subr.bf16.mxu1 %v10644_v2  ;;  %v9938_v43 = vld [vmem:[%s13615_s1 + $0x70c] ss:$12 sps:$4 sm:$0xff]  }
 0x156   : > { %8226 = vmatprep.mubr.msk.bf16.mxu1 %vm428_vm0, %v11410_v49  ;;  %8225 = vmatprep.mubr.msk.bf16.mxu0 %vm428_vm0, %v11410_v49  ;;  %v9939_v49 = vld [vmem:[%s13615_s1 + $0x710] ss:$12 sps:$4 sm:$0xff]  }
 0x158   : > { %2187 = vmatpush1.bf16.msra.mxu0 %v9880_v47  ;;  %2230 = vmatpush1.bf16.msra.mxu1 %v9883_v48  ;;  %v9936_v48 = vld [vmem:[%s13615_s1 + $0x708] ss:$12 sps:$4 sm:$0xff]  }
 0x159   : > { %2188 = vmatprep.subr.bf16.mxu0 %v9886_v50  ;;  %2231 = vmatprep.subr.bf16.mxu1 %v10644_v2  ;;  %v9942_v50 = vld [vmem:[%s13615_s1 + $0x724] ss:$12 sps:$4 sm:$0xff]  }
 0x15c   : > { %2189 = vmatpush1.bf16.msra.mxu0 %v9884_v51  ;;  %2232 = vmatpush1.bf16.msra.mxu1 %v9887_v52  ;;  %v9940_v51 = vld [vmem:[%s13615_s1 + $0x720] ss:$12 sps:$4 sm:$0xff]   ;;  %v9943_v52 = vld [vmem:[%s13615_s1 + $0x728] ss:$12 sps:$4 sm:$0xff]  }
 0x15d   : > { %2190 = vmatprep.subr.bf16.mxu0 %v9890_v46  ;;  %2233 = vmatprep.subr.bf16.mxu1 %v10644_v2  ;;  %v9946_v46 = vld [vmem:[%s13615_s1 + $0x73c] ss:$12 sps:$4 sm:$0xff]  }
 0x15e   : > { %v11448_v56 = vpop.f32.mrb[0].mxu1 }
 0x15f   : > { %v511_v58 = vpop.f32.mrb[1].mxu1 }
 0x160   : > { %2191 = vmatpush1.bf16.msra.mxu0 %v9888_v53  ;;  %2234 = vmatpush1.bf16.msra.mxu1 %v9891_v54  ;;  %v11453_v59 = vpop.f32.mrb[2].mxu1  ;;  %v9944_v53 = vld [vmem:[%s13615_s1 + $0x738] ss:$12 sps:$4 sm:$0xff]   ;;  %v9947_v54 = vld [vmem:[%s13615_s1 + $0x740] ss:$12 sps:$4 sm:$0xff]  }
 0x161   : > { %v514_v62 = vpop.f32.mrb[3].mxu1  ;;  %2192 = vmatprep.subr.bf16.mxu0 %v9894_v55  ;;  %2235 = vmatprep.subr.bf16.mxu1 %v10644_v2  ;;  %v9950_v55 = vld [vmem:[%s13615_s1 + $0x754] ss:$12 sps:$4 sm:$0xff]   ;;  %v9954_v58 = vld [vmem:[%s13615_s1 + $0x76c] ss:$12 sps:$4 sm:$0xff]  }
 0x162   : > { %v2316_v62 = vpop.permute.xlu0 %2315 }
 0x164   : > { %2193 = vmatpush1.bf16.msra.mxu0 %v9892_v57  ;;  %2236 = vmatpush1.bf16.msra.mxu1 %v9895_v60  ;;  %v9951_v57 = vld [vmem:[%s13615_s1 + $0x758] ss:$12 sps:$4 sm:$0xff]   ;;  %v9955_v60 = vld [vmem:[%s13615_s1 + $0x770] ss:$12 sps:$4 sm:$0xff]  }
 0x165   : > { %2194 = vmatprep.subr.bf16.mxu0 %v9898_v61  ;;  %2237 = vmatprep.subr.bf16.mxu1 %v10644_v2  ;;  %v9958_v61 = vld [vmem:[%s13615_s1 + $0x784] ss:$12 sps:$4 sm:$0xff]  }
 0x168   : > { %2195 = vmatpush1.bf16.msra.mxu0 %v9896_v63  ;;  %2238 = vmatpush1.bf16.msra.mxu1 %v9899_v0  ;;  %v9956_v63 = vld [vmem:[%s13615_s1 + $0x780] ss:$12 sps:$4 sm:$0xff]   ;;  %v2319_v0 = vsel %vm808_vm2, %v2316_v62, %v11530_v23  ;;  %v10012_v62 = vld [vmem:[%s13615_s1 + $0x8d0] ss:$12 sps:$4 sm:$0xff]  }
 0x169   : > { %2196 = vmatprep.subr.bf16.mxu0 %v9902_v1  ;;  %2239 = vmatprep.subr.bf16.mxu1 %v10644_v2  ;;  %v9959_v1 = vld [vmem:[%s13615_s1 + $0x788] ss:$12 sps:$4 sm:$0xff]  }
 0x16c   : > { %2197 = vmatpush1.bf16.msra.mxu0 %v9900_v3  ;;  %2240 = vmatpush1.bf16.msra.mxu1 %v9903_v4  ;;  %v9962_v3 = vld [vmem:[%s13615_s1 + $0x79c] ss:$12 sps:$4 sm:$0xff]   ;;  %v9960_v4 = vld [vmem:[%s13615_s1 + $0x798] ss:$12 sps:$4 sm:$0xff]  }
 0x16d   : > { %2198 = vmatprep.subr.bf16.mxu0 %v9906_v5  ;;  %2241 = vmatprep.subr.bf16.mxu1 %v10644_v2  ;;  %v9963_v5 = vld [vmem:[%s13615_s1 + $0x7a0] ss:$12 sps:$4 sm:$0xff]  }
 0x170   : > { %2199 = vmatpush1.bf16.msra.mxu0 %v9904_v6  ;;  %2242 = vmatpush1.bf16.msra.mxu1 %v9907_v7  ;;  %v11644_v6 = vpop.permute.xlu1 %2617  ;;  %v9966_v7 = vld [vmem:[%s13615_s1 + $0x7b4] ss:$12 sps:$4 sm:$0xff]  }
 0x171   : > { %2200 = vmatprep.subr.bf16.mxu0 %v9910_v8  ;;  %2243 = vmatprep.subr.bf16.mxu1 %v10644_v2  ;;  %v9964_v8 = vld [vmem:[%s13615_s1 + $0x7b0] ss:$12 sps:$4 sm:$0xff]  }
 0x174   : > { %2201 = vmatpush1.bf16.msra.mxu0 %v9908_v9  ;;  %2244 = vmatpush1.bf16.msra.mxu1 %v9911_v10  ;;  %v9967_v9 = vld [vmem:[%s13615_s1 + $0x7b8] ss:$12 sps:$4 sm:$0xff]  }
 0x175   : > { %2202 = vmatprep.subr.bf16.mxu0 %v9914_v12  ;;  %2245 = vmatprep.subr.bf16.mxu1 %v10644_v2  ;;  %v9970_v10 = vld [vmem:[%s13615_s1 + $0x7cc] ss:$12 sps:$4 sm:$0xff]   ;;  %v9968_v12 = vld [vmem:[%s13615_s1 + $0x7c8] ss:$12 sps:$4 sm:$0xff]  }
 0x178   : > { %2203 = vmatpush1.bf16.msra.mxu0 %v9912_v13  ;;  %2246 = vmatpush1.bf16.msra.mxu1 %v9915_v14  ;;  %v9971_v13 = vld [vmem:[%s13615_s1 + $0x7d0] ss:$12 sps:$4 sm:$0xff]  }
 0x179   : > { %2484 = vmatprep.subr.bf16.mxu0 %v9918_v16  ;;  %2527 = vmatprep.subr.bf16.mxu1 %v10644_v2  ;;  %v9974_v14 = vld [vmem:[%s13615_s1 + $0x7e4] ss:$12 sps:$4 sm:$0xff]  }
 0x17b   : > { %2260 = vmatmul.mubr.bf16.vlgmr.msra.gmra.mrb[24].mxu1 %v2019_v18  ;;  %2217 = vmatmul.mubr.bf16.vlgmr.msra.gmra.mrb[0].mxu0 %v2019_v18 }
 0x17c   : > { %2485 = vmatpush1.bf16.msra.mxu0 %v9916_v45  ;;  %2528 = vmatpush1.bf16.msra.mxu1 %v9919_v19 }
 0x17d   : > { %2486 = vmatprep.subr.bf16.mxu0 %v9922_v20  ;;  %2529 = vmatprep.subr.bf16.mxu1 %v10644_v2  ;;  %v9975_v20 = vld [vmem:[%s13615_s1 + $0x7e8] ss:$12 sps:$4 sm:$0xff]  }
 0x17e   : > { %8298 = vmatprep.mubr.msk.bf16.mxu1 %vm428_vm0, %v11530_v23  ;;  %8297 = vmatprep.mubr.msk.bf16.mxu0 %vm428_vm0, %v11530_v23 }
 0x180   : > { %2487 = vmatpush1.bf16.msra.mxu0 %v9920_v21  ;;  %2530 = vmatpush1.bf16.msra.mxu1 %v9923_v22  ;;  %v9978_v21 = vld [vmem:[%s13615_s1 + $0x7fc] ss:$12 sps:$4 sm:$0xff]  }
 0x181   : > { %2488 = vmatprep.subr.bf16.mxu0 %v9926_v24  ;;  %2531 = vmatprep.subr.bf16.mxu1 %v10644_v2  ;;  %v9976_v24 = vld [vmem:[%s13615_s1 + $0x7f8] ss:$12 sps:$4 sm:$0xff]  }
 0x184   : > { %2489 = vmatpush1.bf16.msra.mxu0 %v9924_v25  ;;  %2532 = vmatpush1.bf16.msra.mxu1 %v9927_v26  ;;  %v9979_v25 = vld [vmem:[%s13615_s1 + $0x800] ss:$12 sps:$4 sm:$0xff]  }
 0x185   : > { %2490 = vmatprep.subr.bf16.mxu0 %v9930_v27  ;;  %2533 = vmatprep.subr.bf16.mxu1 %v10644_v2  ;;  %v9982_v26 = vld [vmem:[%s13615_s1 + $0x814] ss:$12 sps:$4 sm:$0xff]   ;;  %v9980_v27 = vld [vmem:[%s13615_s1 + $0x810] ss:$12 sps:$4 sm:$0xff]  }
 0x186   : > { %v756_v31 = vpop.f32.mrb[4].mxu1 }
 0x187   : > { %v11564_v33 = vadd.f32 %v756_v31, %v11448_v56  ;;  %v758_v34 = vpop.f32.mrb[5].mxu1  ;;  %v9948_v56 = vld [vmem:[%s13615_s1 + $0x750] ss:$12 sps:$4 sm:$0xff]  }
 0x188   : > { %v759_v35 = vpop.f32.mrb[6].mxu1  ;;  %2491 = vmatpush1.bf16.msra.mxu0 %v9928_v28  ;;  %2534 = vmatpush1.bf16.msra.mxu1 %v9931_v29  ;;  %v9983_v28 = vld [vmem:[%s13615_s1 + $0x818] ss:$12 sps:$4 sm:$0xff]   ;;  %v9987_v31 = vld [vmem:[%s13615_s1 + $0x830] ss:$12 sps:$4 sm:$0xff]  }
 0x189   : > { %v11573_v44 = vadd.f32 %v759_v35, %v11453_v59  ;;  %v761_v47 = vpop.f32.mrb[7].mxu1  ;;  %2492 = vmatprep.subr.bf16.mxu0 %v9934_v30  ;;  %2535 = vmatprep.subr.bf16.mxu1 %v10644_v2  ;;  %v9952_v59 = vld [vmem:[%s13615_s1 + $0x768] ss:$12 sps:$4 sm:$0xff]   ;;  %v9986_v29 = vld [vmem:[%s13615_s1 + $0x82c] ss:$12 sps:$4 sm:$0xff]  }
 0x18a   : > { %v9984_v30 = vld [vmem:[%s13615_s1 + $0x828] ss:$12 sps:$4 sm:$0xff]   ;;  %v2616_v47 = vpop.permute.xlu0 %2615 }
 0x18b   : > { %v9991_v34 = vld [vmem:[%s13615_s1 + $0x848] ss:$12 sps:$4 sm:$0xff]  }
 0x18c   : > { %2493 = vmatpush1.bf16.msra.mxu0 %v9932_v32  ;;  %2536 = vmatpush1.bf16.msra.mxu1 %v9935_v41  ;;  %v9990_v32 = vld [vmem:[%s13615_s1 + $0x844] ss:$12 sps:$4 sm:$0xff]   ;;  %v9994_v35 = vld [vmem:[%s13615_s1 + $0x85c] ss:$12 sps:$4 sm:$0xff]  }
 0x18d   : > { %2494 = vmatprep.subr.bf16.mxu0 %v9938_v43  ;;  %2537 = vmatprep.subr.bf16.mxu1 %v10644_v2  ;;  %v9992_v41 = vld [vmem:[%s13615_s1 + $0x858] ss:$12 sps:$4 sm:$0xff]   ;;  %v9995_v43 = vld [vmem:[%s13615_s1 + $0x860] ss:$12 sps:$4 sm:$0xff]  }
 0x190   : > { %2495 = vmatpush1.bf16.msra.mxu0 %v9936_v48  ;;  %2538 = vmatpush1.bf16.msra.mxu1 %v9939_v49  ;;  %v9996_v48 = vld [vmem:[%s13615_s1 + $0x870] ss:$12 sps:$4 sm:$0xff]   ;;  %v2619_v49 = vsel %vm1109_vm3, %v2616_v47, %v11644_v6 }
 0x191   : > { %2496 = vmatprep.subr.bf16.mxu0 %v9942_v50  ;;  %2539 = vmatprep.subr.bf16.mxu1 %v10644_v2  ;;  %v9999_v50 = vld [vmem:[%s13615_s1 + $0x878] ss:$12 sps:$4 sm:$0xff]  }
 0x194   : > { %2497 = vmatpush1.bf16.msra.mxu0 %v9940_v51  ;;  %2540 = vmatpush1.bf16.msra.mxu1 %v9943_v52  ;;  %v10002_v51 = vld [vmem:[%s13615_s1 + $0x88c] ss:$12 sps:$4 sm:$0xff]   ;;  %v10000_v52 = vld [vmem:[%s13615_s1 + $0x888] ss:$12 sps:$4 sm:$0xff]  }
 0x195   : > { %2498 = vmatprep.subr.bf16.mxu0 %v9946_v46  ;;  %2541 = vmatprep.subr.bf16.mxu1 %v10644_v2  ;;  %v10003_v46 = vld [vmem:[%s13615_s1 + $0x890] ss:$12 sps:$4 sm:$0xff]  }
 0x198   : > { %2499 = vmatpush1.bf16.msra.mxu0 %v9944_v53  ;;  %2542 = vmatpush1.bf16.msra.mxu1 %v9947_v54  ;;  %v11758_v53 = vpop.permute.xlu1 %2917  ;;  %v10006_v54 = vld [vmem:[%s13615_s1 + $0x8a4] ss:$12 sps:$4 sm:$0xff]  }
 0x199   : > { %2500 = vmatprep.subr.bf16.mxu0 %v9950_v55  ;;  %2543 = vmatprep.subr.bf16.mxu1 %v10644_v2  ;;  %v10004_v55 = vld [vmem:[%s13615_s1 + $0x8a0] ss:$12 sps:$4 sm:$0xff]  }
 0x19c   : > { %2501 = vmatpush1.bf16.msra.mxu0 %v9948_v56  ;;  %2544 = vmatpush1.bf16.msra.mxu1 %v9951_v57  ;;  %v10007_v56 = vld [vmem:[%s13615_s1 + $0x8a8] ss:$12 sps:$4 sm:$0xff]  }
 0x19d   : > { %2502 = vmatprep.subr.bf16.mxu0 %v9954_v58  ;;  %2545 = vmatprep.subr.bf16.mxu1 %v10644_v2  ;;  %v10010_v57 = vld [vmem:[%s13615_s1 + $0x8bc] ss:$12 sps:$4 sm:$0xff]   ;;  %v10008_v58 = vld [vmem:[%s13615_s1 + $0x8b8] ss:$12 sps:$4 sm:$0xff]  }
 0x1a0   : > { %2503 = vmatpush1.bf16.msra.mxu0 %v9952_v59  ;;  %2546 = vmatpush1.bf16.msra.mxu1 %v9955_v60  ;;  %v10011_v59 = vld [vmem:[%s13615_s1 + $0x8c0] ss:$12 sps:$4 sm:$0xff]  }
 0x1a1   : > { %2784 = vmatprep.subr.bf16.mxu0 %v9958_v61  ;;  %2827 = vmatprep.subr.bf16.mxu1 %v10644_v2  ;;  %v10014_v60 = vld [vmem:[%s13615_s1 + $0x8d4] ss:$12 sps:$4 sm:$0xff]  }
 0x1a3   : > { %2560 = vmatmul.mubr.bf16.vlgmr.msra.gmra.mrb[28].mxu1 %v2319_v0  ;;  %2517 = vmatmul.mubr.bf16.vlgmr.msra.gmra.mrb[0].mxu0 %v2319_v0 }
 0x1a4   : > { %2785 = vmatpush1.bf16.msra.mxu0 %v9956_v63  ;;  %2828 = vmatpush1.bf16.msra.mxu1 %v9959_v1 }
 0x1a5   : > { %2786 = vmatprep.subr.bf16.mxu0 %v9962_v3  ;;  %2829 = vmatprep.subr.bf16.mxu1 %v10644_v2  ;;  %v10015_v3 = vld [vmem:[%s13615_s1 + $0x8d8] ss:$12 sps:$4 sm:$0xff]  }
 0x1a6   : > { %8370 = vmatprep.mubr.msk.bf16.mxu1 %vm428_vm0, %v11644_v6  ;;  %8369 = vmatprep.mubr.msk.bf16.mxu0 %vm428_vm0, %v11644_v6 }
 0x1a8   : > { %2787 = vmatpush1.bf16.msra.mxu0 %v9960_v4  ;;  %2830 = vmatpush1.bf16.msra.mxu1 %v9963_v5  ;;  %v10018_v4 = vld [vmem:[%s13615_s1 + $0x8ec] ss:$12 sps:$4 sm:$0xff]  }
 0x1a9   : > { %2788 = vmatprep.subr.bf16.mxu0 %v9966_v7  ;;  %2831 = vmatprep.subr.bf16.mxu1 %v10644_v2  ;;  %v10016_v7 = vld [vmem:[%s13615_s1 + $0x8e8] ss:$12 sps:$4 sm:$0xff]  }
 0x1ac   : > { %2789 = vmatpush1.bf16.msra.mxu0 %v9964_v8  ;;  %2832 = vmatpush1.bf16.msra.mxu1 %v9967_v9  ;;  %v10019_v8 = vld [vmem:[%s13615_s1 + $0x8f0] ss:$12 sps:$4 sm:$0xff]  }
 0x1ad   : > { %2790 = vmatprep.subr.bf16.mxu0 %v9970_v10  ;;  %2833 = vmatprep.subr.bf16.mxu1 %v10644_v2  ;;  %v10022_v9 = vld [vmem:[%s13615_s1 + $0x904] ss:$12 sps:$4 sm:$0xff]   ;;  %v10020_v10 = vld [vmem:[%s13615_s1 + $0x900] ss:$12 sps:$4 sm:$0xff]  }
 0x1ae   : > { %v1051_v16 = vpop.f32.mrb[8].mxu1 }
 0x1af   : > { %v11678_v45 = vadd.f32 %v1051_v16, %v11564_v33  ;;  %v1053_v18 = vpop.f32.mrb[9].mxu1  ;;  %v9988_v33 = vld [vmem:[%s13615_s1 + $0x840] ss:$12 sps:$4 sm:$0xff]  }
 0x1b0   : > { %v1054_v19 = vpop.f32.mrb[10].mxu1  ;;  %2791 = vmatpush1.bf16.msra.mxu0 %v9968_v12  ;;  %2834 = vmatpush1.bf16.msra.mxu1 %v9971_v13  ;;  %v10023_v12 = vld [vmem:[%s13615_s1 + $0x908] ss:$12 sps:$4 sm:$0xff]   ;;  %v10027_v16 = vld [vmem:[%s13615_s1 + $0x920] ss:$12 sps:$4 sm:$0xff]  }
 0x1b1   : > { %v11687_v22 = vadd.f32 %v1054_v19, %v11573_v44  ;;  %v1056_v23 = vpop.f32.mrb[11].mxu1  ;;  %2792 = vmatprep.subr.bf16.mxu0 %v9974_v14  ;;  %2835 = vmatprep.subr.bf16.mxu1 %v10644_v2  ;;  %v9998_v44 = vld [vmem:[%s13615_s1 + $0x874] ss:$12 sps:$4 sm:$0xff]   ;;  %v10026_v13 = vld [vmem:[%s13615_s1 + $0x91c] ss:$12 sps:$4 sm:$0xff]  }
 0x1b2   : > { %v10024_v14 = vld [vmem:[%s13615_s1 + $0x918] ss:$12 sps:$4 sm:$0xff]  }
 0x1b3   : > { %v10031_v18 = vld [vmem:[%s13615_s1 + $0x938] ss:$12 sps:$4 sm:$0xff]  }
 0x1b4   : > { %2793 = vmatpush1.bf16.msra.mxu0 %v9972_v17  ;;  %2836 = vmatpush1.bf16.msra.mxu1 %v9975_v20  ;;  %v10030_v17 = vld [vmem:[%s13615_s1 + $0x934] ss:$12 sps:$4 sm:$0xff]   ;;  %v10034_v19 = vld [vmem:[%s13615_s1 + $0x94c] ss:$12 sps:$4 sm:$0xff]   ;;  %v10038_v23 = vld [vmem:[%s13615_s1 + $0x964] ss:$12 sps:$4 sm:$0xff]  }
 0x1b5   : > { %2794 = vmatprep.subr.bf16.mxu0 %v9978_v21  ;;  %2837 = vmatprep.subr.bf16.mxu1 %v10644_v2  ;;  %v10032_v20 = vld [vmem:[%s13615_s1 + $0x948] ss:$12 sps:$4 sm:$0xff]   ;;  %v10035_v21 = vld [vmem:[%s13615_s1 + $0x950] ss:$12 sps:$4 sm:$0xff]  }
 0x1b8   : > { %2795 = vmatpush1.bf16.msra.mxu0 %v9976_v24  ;;  %2838 = vmatpush1.bf16.msra.mxu1 %v9979_v25  ;;  %v10036_v25 = vld [vmem:[%s13615_s1 + $0x960] ss:$12 sps:$4 sm:$0xff]  }
 0x1b9   : > { %2796 = vmatprep.subr.bf16.mxu0 %v9982_v26  ;;  %2839 = vmatprep.subr.bf16.mxu1 %v10644_v2  ;;  %v10039_v26 = vld [vmem:[%s13615_s1 + $0x968] ss:$12 sps:$4 sm:$0xff]  }
 0x1bc   : > { %2797 = vmatpush1.bf16.msra.mxu0 %v9980_v27  ;;  %2840 = vmatpush1.bf16.msra.mxu1 %v9983_v28  ;;  %v10042_v27 = vld [vmem:[%s13615_s1 + $0x97c] ss:$12 sps:$4 sm:$0xff]   ;;  %v10040_v28 = vld [vmem:[%s13615_s1 + $0x978] ss:$12 sps:$4 sm:$0xff]  }
 0x1bd   : > { %2798 = vmatprep.subr.bf16.mxu0 %v9986_v29  ;;  %2841 = vmatprep.subr.bf16.mxu1 %v10644_v2  ;;  %v10043_v29 = vld [vmem:[%s13615_s1 + $0x980] ss:$12 sps:$4 sm:$0xff]  }
 0x1c0   : > { %2799 = vmatpush1.bf16.msra.mxu0 %v9984_v30  ;;  %2842 = vmatpush1.bf16.msra.mxu1 %v9987_v31  ;;  %v10046_v30 = vld [vmem:[%s13615_s1 + $0x994] ss:$12 sps:$4 sm:$0xff]   ;;  %v10044_v31 = vld [vmem:[%s13615_s1 + $0x990] ss:$12 sps:$4 sm:$0xff]  }
 0x1c1   : > { %2800 = vmatprep.subr.bf16.mxu0 %v9990_v32  ;;  %2843 = vmatprep.subr.bf16.mxu1 %v10644_v2  ;;  %v10047_v32 = vld [vmem:[%s13615_s1 + $0x998] ss:$12 sps:$4 sm:$0xff]  }
 0x1c4   : > { %2801 = vmatpush1.bf16.msra.mxu0 %v9988_v33  ;;  %2844 = vmatpush1.bf16.msra.mxu1 %v9991_v34  ;;  %v10050_v33 = vld [vmem:[%s13615_s1 + $0x9ac] ss:$12 sps:$4 sm:$0xff]   ;;  %v10051_v34 = vld [vmem:[%s13615_s1 + $0x9b0] ss:$12 sps:$4 sm:$0xff]  }
 0x1c5   : > { %2802 = vmatprep.subr.bf16.mxu0 %v9994_v35  ;;  %2845 = vmatprep.subr.bf16.mxu1 %v10644_v2  ;;  %v10054_v35 = vld [vmem:[%s13615_s1 + $0x9c4] ss:$12 sps:$4 sm:$0xff]  }
 0x1c8   : > { %2803 = vmatpush1.bf16.msra.mxu0 %v9992_v41  ;;  %2846 = vmatpush1.bf16.msra.mxu1 %v9995_v43 }
 0x1c9   : > { %3084 = vmatprep.subr.bf16.mxu0 %v9998_v44  ;;  %3127 = vmatprep.subr.bf16.mxu1 %v10644_v2 }
 0x1cb   : > { %2860 = vmatmul.mubr.bf16.vlgmr.msra.gmra.mrb[32].mxu1 %v2619_v49  ;;  %2817 = vmatmul.mubr.bf16.vlgmr.msra.gmra.mrb[0].mxu0 %v2619_v49  ;;  %v10055_v49 = vld [vmem:[%s13615_s1 + $0x9c8] ss:$12 sps:$4 sm:$0xff]  }
 0x1cc   : > { %3085 = vmatpush1.bf16.msra.mxu0 %v9996_v48  ;;  %3128 = vmatpush1.bf16.msra.mxu1 %v9999_v50  ;;  %v10052_v48 = vld [vmem:[%s13615_s1 + $0x9c0] ss:$12 sps:$4 sm:$0xff]  }
 0x1cd   : > { %3086 = vmatprep.subr.bf16.mxu0 %v10002_v51  ;;  %3129 = vmatprep.subr.bf16.mxu1 %v10644_v2 }
 0x1ce   : > { %8442 = vmatprep.mubr.msk.bf16.mxu1 %vm428_vm0, %v11758_v53  ;;  %8441 = vmatprep.mubr.msk.bf16.mxu0 %vm428_vm0, %v11758_v53 }
 0x1d0   : > { %3087 = vmatpush1.bf16.msra.mxu0 %v10000_v52  ;;  %3130 = vmatpush1.bf16.msra.mxu1 %v10003_v46  ;;  %v10058_v52 = vld [vmem:[%s13615_s1 + $0x9dc] ss:$12 sps:$4 sm:$0xff]   ;;  %v10056_v46 = vld [vmem:[%s13615_s1 + $0x9d8] ss:$12 sps:$4 sm:$0xff]  }
 0x1d1   : > { %3088 = vmatprep.subr.bf16.mxu0 %v10006_v54  ;;  %3131 = vmatprep.subr.bf16.mxu1 %v10644_v2  ;;  %v10062_v54 = vld [vmem:[%s13615_s1 + $0x9f4] ss:$12 sps:$4 sm:$0xff]  }
 0x1d4   : > { %3089 = vmatpush1.bf16.msra.mxu0 %v10004_v55  ;;  %3132 = vmatpush1.bf16.msra.mxu1 %v10007_v56  ;;  %v10060_v55 = vld [vmem:[%s13615_s1 + $0x9f0] ss:$12 sps:$4 sm:$0xff]   ;;  %v10063_v56 = vld [vmem:[%s13615_s1 + $0x9f8] ss:$12 sps:$4 sm:$0xff]  }
 0x1d5   : > { %3090 = vmatprep.subr.bf16.mxu0 %v10010_v57  ;;  %3133 = vmatprep.subr.bf16.mxu1 %v10644_v2  ;;  %v10066_v57 = vld [vmem:[%s13615_s1 + $0xa0c] ss:$12 sps:$4 sm:$0xff]  }
 0x1d6   : > { %v1352_v61 = vpop.f32.mrb[12].mxu1 }
 0x1d7   : > { %v11792_v63 = vadd.f32 %v1352_v61, %v11678_v45  ;;  %v1354_v0 = vpop.f32.mrb[13].mxu1  ;;  %v10028_v45 = vld [vmem:[%s13615_s1 + $0x930] ss:$12 sps:$4 sm:$0xff]   ;;  %v10068_v61 = vld [vmem:[%s13615_s1 + $0xa20] ss:$12 sps:$4 sm:$0xff]  }
 0x1d8   : > { %v1355_v1 = vpop.f32.mrb[14].mxu1  ;;  %3091 = vmatpush1.bf16.msra.mxu0 %v10008_v58  ;;  %3134 = vmatpush1.bf16.msra.mxu1 %v10011_v59  ;;  %v10064_v58 = vld [vmem:[%s13615_s1 + $0xa08] ss:$12 sps:$4 sm:$0xff]   ;;  %v10067_v59 = vld [vmem:[%s13615_s1 + $0xa10] ss:$12 sps:$4 sm:$0xff]   ;;  %v4715_v0 = vrot.slane %v1714_v40, 1 }
 0x1d9   : > { %v11801_v5 = vadd.f32 %v1355_v1, %v11687_v22  ;;  %v1357_v6 = vpop.f32.mrb[15].mxu1  ;;  %3092 = vmatprep.subr.bf16.mxu0 %v10014_v60  ;;  %3135 = vmatprep.subr.bf16.mxu1 %v10644_v2  ;;  %v2916_v22 = vpop.permute.xlu0 %2915  ;;  %v10070_v60 = vld [vmem:[%s13615_s1 + $0xa24] ss:$12 sps:$4 sm:$0xff]   ;;  %v4716_v1 = vrot.slane %v1716_v38, 2  ;;  %v10078_v38 = vld [vmem:[%s13615_s1 + $0xa54] ss:$12 sps:$4 sm:$0xff]  }
 0x1da   : > { %v2919_v24 = vsel %vm1410_vm4, %v2916_v22, %v11758_v53  ;;  %v10059_v53 = vld [vmem:[%s13615_s1 + $0x9e0] ss:$12 sps:$4 sm:$0xff]  }
 0x1db   : > { %v10075_v6 = vld [vmem:[%s13615_s1 + $0xa40] ss:$12 sps:$4 sm:$0xff]   ;;  %v11974_v40 = vor.u32 %v4716_v1, %v4715_v0 }
 0x1dc   : > { %3093 = vmatpush1.bf16.msra.mxu0 %v10012_v62  ;;  %3136 = vmatpush1.bf16.msra.mxu1 %v10015_v3  ;;  %v10071_v62 = vld [vmem:[%s13615_s1 + $0xa28] ss:$12 sps:$4 sm:$0xff]   ;;  %v4712_v3 = vrot.slane %v1708_v42, 1  ;;  %v10076_v42 = vld [vmem:[%s13615_s1 + $0xa50] ss:$12 sps:$4 sm:$0xff]  }
 0x1dd   : > { %3094 = vmatprep.subr.bf16.mxu0 %v10018_v4  ;;  %3137 = vmatprep.subr.bf16.mxu1 %v10644_v2  ;;  %v4713_v4 = vrot.slane %v1710_v39, 2 }
 0x1de   : > { %5015 = vrot.lane.b32.xlu1 %v11974_v40, %s10645_s9 }
 0x1df   : > { %v11976_v39 = vor.u32 %v4713_v4, %v4712_v3 }
 0x1e0   : > { %3095 = vmatpush1.bf16.msra.mxu0 %v10016_v7  ;;  %3138 = vmatpush1.bf16.msra.mxu1 %v10019_v8  ;;  %v10079_v7 = vld [vmem:[%s13615_s1 + $0xa58] ss:$12 sps:$4 sm:$0xff]  }
 0x1e1   : > { %3096 = vmatprep.subr.bf16.mxu0 %v10022_v9  ;;  %3139 = vmatprep.subr.bf16.mxu1 %v10644_v2  ;;  %v10082_v8 = vld [vmem:[%s13615_s1 + $0xa6c] ss:$12 sps:$4 sm:$0xff]   ;;  %v11994_v9 = vpop.permute.xlu1 %3514 }
 0x1e2   : > { %5013 = vrot.lane.b32.xlu0 %v11976_v39, %s10645_s9  ;;  %5315 = vrot.lane.b32.xlu1 %v11974_v40, %s10646_s10 }
 0x1e4   : > { %3097 = vmatpush1.bf16.msra.mxu0 %v10020_v10  ;;  %3140 = vmatpush1.bf16.msra.mxu1 %v10023_v12  ;;  %v10080_v10 = vld [vmem:[%s13615_s1 + $0xa68] ss:$12 sps:$4 sm:$0xff]   ;;  %v10083_v12 = vld [vmem:[%s13615_s1 + $0xa70] ss:$12 sps:$4 sm:$0xff]  }
 0x1e5   : > { %3098 = vmatprep.subr.bf16.mxu0 %v10026_v13  ;;  %3141 = vmatprep.subr.bf16.mxu1 %v10644_v2  ;;  %v10086_v13 = vld [vmem:[%s13615_s1 + $0xa84] ss:$12 sps:$4 sm:$0xff]  }
 0x1e6   : > { %5313 = vrot.lane.b32.xlu0 %v11976_v39, %s10646_s10  ;;  %5615 = vrot.lane.b32.xlu1 %v11974_v40, %s10647_s27 }
 0x1e8   : > { %3099 = vmatpush1.bf16.msra.mxu0 %v10024_v14  ;;  %3142 = vmatpush1.bf16.msra.mxu1 %v10027_v16  ;;  %v10087_v14 = vld [vmem:[%s13615_s1 + $0xa88] ss:$12 sps:$4 sm:$0xff]  }
 0x1e9   : > { %3100 = vmatprep.subr.bf16.mxu0 %v10030_v17  ;;  %3143 = vmatprep.subr.bf16.mxu1 %v10644_v2  ;;  %v10090_v16 = vld [vmem:[%s13615_s1 + $0xa9c] ss:$12 sps:$4 sm:$0xff]   ;;  %v10088_v17 = vld [vmem:[%s13615_s1 + $0xa98] ss:$12 sps:$4 sm:$0xff]  }
 0x1ea   : > { %5613 = vrot.lane.b32.xlu0 %v11976_v39, %s10647_s27  ;;  %5915 = vrot.lane.b32.xlu1 %v11974_v40, %s10648_s11 }
 0x1ec   : > { %3101 = vmatpush1.bf16.msra.mxu0 %v10028_v45  ;;  %3144 = vmatpush1.bf16.msra.mxu1 %v10031_v18  ;;  %v10091_v45 = vld [vmem:[%s13615_s1 + $0xaa0] ss:$12 sps:$4 sm:$0xff]  }
 0x1ed   : > { %3102 = vmatprep.subr.bf16.mxu0 %v10034_v19  ;;  %3145 = vmatprep.subr.bf16.mxu1 %v10644_v2  ;;  %v10094_v18 = vld [vmem:[%s13615_s1 + $0xab4] ss:$12 sps:$4 sm:$0xff]  }
 0x1ee   : > { %5913 = vrot.lane.b32.xlu0 %v11976_v39, %s10648_s11 }
 0x1f0   : > { %3103 = vmatpush1.bf16.msra.mxu0 %v10032_v20  ;;  %3146 = vmatpush1.bf16.msra.mxu1 %v10035_v21 }
 0x1f1   : > { %3381 = vmatprep.subr.bf16.mxu0 %v10038_v23  ;;  %3424 = vmatprep.subr.bf16.mxu1 %v10644_v2  ;;  %v10092_v23 = vld [vmem:[%s13615_s1 + $0xab0] ss:$12 sps:$4 sm:$0xff]  }
 0x1f3   : > { %3160 = vmatmul.mubr.bf16.vlgmr.msra.gmra.mrb[36].mxu1 %v2919_v24  ;;  %3117 = vmatmul.mubr.bf16.vlgmr.msra.gmra.mrb[0].mxu0 %v2919_v24  ;;  %v10095_v24 = vld [vmem:[%s13615_s1 + $0xab8] ss:$12 sps:$4 sm:$0xff]  }
 0x1f4   : > { %3382 = vmatpush1.bf16.msra.mxu0 %v10036_v25  ;;  %3425 = vmatpush1.bf16.msra.mxu1 %v10039_v26 }
 0x1f5   : > { %3383 = vmatprep.subr.bf16.mxu0 %v10042_v27  ;;  %3426 = vmatprep.subr.bf16.mxu1 %v10644_v2  ;;  %v10098_v27 = vld [vmem:[%s13615_s1 + $0xacc] ss:$12 sps:$4 sm:$0xff]  }
 0x1f6   : > { %8514 = vmatprep.mubr.msk.bf16.mxu1 %vm428_vm0, %v11378_v36  ;;  %8513 = vmatprep.mubr.msk.bf16.mxu0 %vm428_vm0, %v11378_v36  ;;  %v10048_v36 = vld [vmem:[%s13615_s1 + $0x9a8] ss:$12 sps:$4 sm:$0xff]  }
 0x1f8   : > { %3384 = vmatpush1.bf16.msra.mxu0 %v10040_v28  ;;  %3427 = vmatpush1.bf16.msra.mxu1 %v10043_v29  ;;  %v10096_v28 = vld [vmem:[%s13615_s1 + $0xac8] ss:$12 sps:$4 sm:$0xff]   ;;  %v10099_v29 = vld [vmem:[%s13615_s1 + $0xad0] ss:$12 sps:$4 sm:$0xff]  }
 0x1f9   : > { %3385 = vmatprep.subr.bf16.mxu0 %v10046_v30  ;;  %3428 = vmatprep.subr.bf16.mxu1 %v10644_v2  ;;  %v10102_v30 = vld [vmem:[%s13615_s1 + $0xae4] ss:$12 sps:$4 sm:$0xff]  }
 0x1fc   : > { %3386 = vmatpush1.bf16.msra.mxu0 %v10044_v31  ;;  %3429 = vmatpush1.bf16.msra.mxu1 %v10047_v32  ;;  %v10100_v31 = vld [vmem:[%s13615_s1 + $0xae0] ss:$12 sps:$4 sm:$0xff]   ;;  %v10103_v32 = vld [vmem:[%s13615_s1 + $0xae8] ss:$12 sps:$4 sm:$0xff]  }
 0x1fd   : > { %3387 = vmatprep.subr.bf16.mxu0 %v10050_v33  ;;  %3430 = vmatprep.subr.bf16.mxu1 %v10644_v2  ;;  %v10106_v33 = vld [vmem:[%s13615_s1 + $0xafc] ss:$12 sps:$4 sm:$0xff]  }
 0x1fe   : > { %v1653_v41 = vpop.f32.mrb[16].mxu1 }
 0x1ff   : > { %v11901_v43 = vadd.f32 %v1653_v41, %v11792_v63  ;;  %v1655_v44 = vpop.f32.mrb[17].mxu1  ;;  %v10074_v63 = vld [vmem:[%s13615_s1 + $0xa3c] ss:$12 sps:$4 sm:$0xff]  }
 0x200   : > { %v1656_v47 = vpop.f32.mrb[18].mxu1  ;;  %3388 = vmatpush1.bf16.msra.mxu0 %v10048_v36  ;;  %3431 = vmatpush1.bf16.msra.mxu1 %v10051_v34  ;;  %v10104_v36 = vld [vmem:[%s13615_s1 + $0xaf8] ss:$12 sps:$4 sm:$0xff]   ;;  %v10107_v34 = vld [vmem:[%s13615_s1 + $0xb00] ss:$12 sps:$4 sm:$0xff]  }
 0x201   : > { %v11910_v50 = vadd.f32 %v1656_v47, %v11801_v5  ;;  %v1658_v51 = vpop.f32.mrb[19].mxu1  ;;  %3389 = vmatprep.subr.bf16.mxu0 %v10054_v35  ;;  %3432 = vmatprep.subr.bf16.mxu1 %v10644_v2  ;;  %v10072_v5 = vld [vmem:[%s13615_s1 + $0xa38] ss:$12 sps:$4 sm:$0xff]   ;;  %v10110_v35 = vld [vmem:[%s13615_s1 + $0xb14] ss:$12 sps:$4 sm:$0xff]  }
 0x202   : > { %v10108_v41 = vld [vmem:[%s13615_s1 + $0xb10] ss:$12 sps:$4 sm:$0xff]   ;;  %v10114_v44 = vld [vmem:[%s13615_s1 + $0xb2c] ss:$12 sps:$4 sm:$0xff]   ;;  %v10112_v47 = vld [vmem:[%s13615_s1 + $0xb28] ss:$12 sps:$4 sm:$0xff]  }
 0x204   : > { %3390 = vmatpush1.bf16.msra.mxu0 %v10052_v48  ;;  %3433 = vmatpush1.bf16.msra.mxu1 %v10055_v49  ;;  %v10115_v48 = vld [vmem:[%s13615_s1 + $0xb30] ss:$12 sps:$4 sm:$0xff]   ;;  %v3513_v49 = vpop.permute.xlu0 %3512 }
 0x205   : > { %3391 = vmatprep.subr.bf16.mxu0 %v10058_v52  ;;  %3434 = vmatprep.subr.bf16.mxu1 %v10644_v2  ;;  %v3516_v51 = vsel %vm265_vm1, %v3513_v49, %v11994_v9  ;;  %v10116_v52 = vld [vmem:[%s13615_s1 + $0xb40] ss:$12 sps:$4 sm:$0xff]   ;;  %v10172_v49 = vld [vmem:[%s13615_s1 + $0xc90] ss:$12 sps:$4 sm:$0xff]  }
 0x208   : > { %3392 = vmatpush1.bf16.msra.mxu0 %v10056_v46  ;;  %3435 = vmatpush1.bf16.msra.mxu1 %v10059_v53  ;;  %v10119_v46 = vld [vmem:[%s13615_s1 + $0xb48] ss:$12 sps:$4 sm:$0xff]  }
 0x209   : > { %3393 = vmatprep.subr.bf16.mxu0 %v10062_v54  ;;  %3436 = vmatprep.subr.bf16.mxu1 %v10644_v2  ;;  %v10122_v53 = vld [vmem:[%s13615_s1 + $0xb5c] ss:$12 sps:$4 sm:$0xff]   ;;  %v12120_v54 = vpop.permute.xlu1 %3814 }
 0x20c   : > { %3394 = vmatpush1.bf16.msra.mxu0 %v10060_v55  ;;  %3437 = vmatpush1.bf16.msra.mxu1 %v10063_v56  ;;  %v10120_v55 = vld [vmem:[%s13615_s1 + $0xb58] ss:$12 sps:$4 sm:$0xff]   ;;  %v10123_v56 = vld [vmem:[%s13615_s1 + $0xb60] ss:$12 sps:$4 sm:$0xff]  }
 0x20d   : > { %3395 = vmatprep.subr.bf16.mxu0 %v10066_v57  ;;  %3438 = vmatprep.subr.bf16.mxu1 %v10644_v2  ;;  %v10126_v57 = vld [vmem:[%s13615_s1 + $0xb74] ss:$12 sps:$4 sm:$0xff]  }
 0x210   : > { %3396 = vmatpush1.bf16.msra.mxu0 %v10064_v58  ;;  %3439 = vmatpush1.bf16.msra.mxu1 %v10067_v59  ;;  %v10124_v58 = vld [vmem:[%s13615_s1 + $0xb70] ss:$12 sps:$4 sm:$0xff]   ;;  %v10127_v59 = vld [vmem:[%s13615_s1 + $0xb78] ss:$12 sps:$4 sm:$0xff]  }
 0x211   : > { %3397 = vmatprep.subr.bf16.mxu0 %v10070_v60  ;;  %3440 = vmatprep.subr.bf16.mxu1 %v10644_v2  ;;  %v10130_v60 = vld [vmem:[%s13615_s1 + $0xb8c] ss:$12 sps:$4 sm:$0xff]  }
 0x214   : > { %3398 = vmatpush1.bf16.msra.mxu0 %v10068_v61  ;;  %3441 = vmatpush1.bf16.msra.mxu1 %v10071_v62  ;;  %v10128_v61 = vld [vmem:[%s13615_s1 + $0xb88] ss:$12 sps:$4 sm:$0xff]   ;;  %v10131_v62 = vld [vmem:[%s13615_s1 + $0xb90] ss:$12 sps:$4 sm:$0xff]  }
 0x215   : > { %3399 = vmatprep.subr.bf16.mxu0 %v10074_v63  ;;  %3442 = vmatprep.subr.bf16.mxu1 %v10644_v2  ;;  %v10134_v63 = vld [vmem:[%s13615_s1 + $0xba4] ss:$12 sps:$4 sm:$0xff]  }
 0x218   : > { %3400 = vmatpush1.bf16.msra.mxu0 %v10072_v5  ;;  %3443 = vmatpush1.bf16.msra.mxu1 %v10075_v6  ;;  %v10132_v5 = vld [vmem:[%s13615_s1 + $0xba0] ss:$12 sps:$4 sm:$0xff]   ;;  %v10135_v6 = vld [vmem:[%s13615_s1 + $0xba8] ss:$12 sps:$4 sm:$0xff]  }
 0x219   : > { %3681 = vmatprep.subr.bf16.mxu0 %v10078_v38  ;;  %3724 = vmatprep.subr.bf16.mxu1 %v10644_v2 }
 0x21b   : > { %3457 = vmatmul.mubr.bf16.vlgmr.msra.gmra.mrb[40].mxu1 %v11381_v37  ;;  %3414 = vmatmul.mubr.bf16.vlgmr.msra.gmra.mrb[0].mxu0 %v11381_v37  ;;  %v10084_v37 = vld [vmem:[%s13615_s1 + $0xa80] ss:$12 sps:$4 sm:$0xff]  }
 0x21c   : > { %3682 = vmatpush1.bf16.msra.mxu0 %v10076_v42  ;;  %3725 = vmatpush1.bf16.msra.mxu1 %v10079_v7  ;;  %v10138_v7 = vld [vmem:[%s13615_s1 + $0xbbc] ss:$12 sps:$4 sm:$0xff]  }
 0x21d   : > { %3683 = vmatprep.subr.bf16.mxu0 %v10082_v8  ;;  %3726 = vmatprep.subr.bf16.mxu1 %v10644_v2  ;;  %v10136_v8 = vld [vmem:[%s13615_s1 + $0xbb8] ss:$12 sps:$4 sm:$0xff]  }
 0x21e   : > { %8586 = vmatprep.mubr.msk.bf16.mxu1 %vm428_vm0, %v11994_v9  ;;  %8585 = vmatprep.mubr.msk.bf16.mxu0 %vm428_vm0, %v11994_v9  ;;  %v10139_v9 = vld [vmem:[%s13615_s1 + $0xbc0] ss:$12 sps:$4 sm:$0xff]  }
 0x220   : > { %3684 = vmatpush1.bf16.msra.mxu0 %v10080_v10  ;;  %3727 = vmatpush1.bf16.msra.mxu1 %v10083_v12  ;;  %v10142_v10 = vld [vmem:[%s13615_s1 + $0xbd4] ss:$12 sps:$4 sm:$0xff]   ;;  %v10140_v12 = vld [vmem:[%s13615_s1 + $0xbd0] ss:$12 sps:$4 sm:$0xff]  }
 0x221   : > { %3685 = vmatprep.subr.bf16.mxu0 %v10086_v13  ;;  %3728 = vmatprep.subr.bf16.mxu1 %v10644_v2  ;;  %v10143_v13 = vld [vmem:[%s13615_s1 + $0xbd8] ss:$12 sps:$4 sm:$0xff]  }
 0x224   : > { %3686 = vmatpush1.bf16.msra.mxu0 %v10084_v37  ;;  %3729 = vmatpush1.bf16.msra.mxu1 %v10087_v14  ;;  %v10146_v37 = vld [vmem:[%s13615_s1 + $0xbec] ss:$12 sps:$4 sm:$0xff]   ;;  %v10144_v14 = vld [vmem:[%s13615_s1 + $0xbe8] ss:$12 sps:$4 sm:$0xff]  }
 0x225   : > { %3687 = vmatprep.subr.bf16.mxu0 %v10090_v16  ;;  %3730 = vmatprep.subr.bf16.mxu1 %v10644_v2  ;;  %v10147_v16 = vld [vmem:[%s13615_s1 + $0xbf0] ss:$12 sps:$4 sm:$0xff]  }
 0x226   : > { %v1961_v19 = vpop.f32.mrb[20].mxu1 }
 0x227   : > { %v12039_v20 = vadd.f32 %v1961_v19, %v11901_v43  ;;  %v1963_v21 = vpop.f32.mrb[21].mxu1  ;;  %v10111_v43 = vld [vmem:[%s13615_s1 + $0xb18] ss:$12 sps:$4 sm:$0xff]   ;;  %v10154_v19 = vld [vmem:[%s13615_s1 + $0xc1c] ss:$12 sps:$4 sm:$0xff]  }
 0x228   : > { %v1964_v22 = vpop.f32.mrb[22].mxu1  ;;  %3688 = vmatpush1.bf16.msra.mxu0 %v10088_v17  ;;  %3731 = vmatpush1.bf16.msra.mxu1 %v10091_v45  ;;  %v10150_v17 = vld [vmem:[%s13615_s1 + $0xc04] ss:$12 sps:$4 sm:$0xff]   ;;  %v10148_v45 = vld [vmem:[%s13615_s1 + $0xc00] ss:$12 sps:$4 sm:$0xff]  }
 0x229   : > { %v12052_v25 = vadd.f32 %v1964_v22, %v11910_v50  ;;  %v1966_v26 = vpop.f32.mrb[23].mxu1  ;;  %3689 = vmatprep.subr.bf16.mxu0 %v10094_v18  ;;  %3732 = vmatprep.subr.bf16.mxu1 %v10644_v2  ;;  %v10118_v50 = vld [vmem:[%s13615_s1 + $0xb44] ss:$12 sps:$4 sm:$0xff]   ;;  %v10151_v18 = vld [vmem:[%s13615_s1 + $0xc08] ss:$12 sps:$4 sm:$0xff]   ;;  %v3813_v22 = vpop.permute.xlu0 %3812 }
 0x22a   : > { %v10155_v21 = vld [vmem:[%s13615_s1 + $0xc20] ss:$12 sps:$4 sm:$0xff]   ;;  %v10159_v26 = vld [vmem:[%s13615_s1 + $0xc38] ss:$12 sps:$4 sm:$0xff]  }
 0x22c   : > { %3690 = vmatpush1.bf16.msra.mxu0 %v10092_v23  ;;  %3733 = vmatpush1.bf16.msra.mxu1 %v10095_v24  ;;  %v10158_v23 = vld [vmem:[%s13615_s1 + $0xc34] ss:$12 sps:$4 sm:$0xff]   ;;  %v3816_v24 = vsel %vm808_vm2, %v3813_v22, %v12120_v54 }
 0x22d   : > { %3691 = vmatprep.subr.bf16.mxu0 %v10098_v27  ;;  %3734 = vmatprep.subr.bf16.mxu1 %v10644_v2  ;;  %v10162_v27 = vld [vmem:[%s13615_s1 + $0xc4c] ss:$12 sps:$4 sm:$0xff]  }
 0x22e   : > { %v10212_v22 = vld [vmem:[%s13615_s1 + $0xd80] ss:$12 sps:$4 sm:$0xff]  }
 0x230   : > { %3692 = vmatpush1.bf16.msra.mxu0 %v10096_v28  ;;  %3735 = vmatpush1.bf16.msra.mxu1 %v10099_v29  ;;  %v12234_v28 = vpop.permute.xlu1 %4114  ;;  %v10160_v29 = vld [vmem:[%s13615_s1 + $0xc48] ss:$12 sps:$4 sm:$0xff]  }
 0x231   : > { %3693 = vmatprep.subr.bf16.mxu0 %v10102_v30  ;;  %3736 = vmatprep.subr.bf16.mxu1 %v10644_v2  ;;  %v10163_v30 = vld [vmem:[%s13615_s1 + $0xc50] ss:$12 sps:$4 sm:$0xff]  }
 0x234   : > { %3694 = vmatpush1.bf16.msra.mxu0 %v10100_v31  ;;  %3737 = vmatpush1.bf16.msra.mxu1 %v10103_v32  ;;  %v10166_v31 = vld [vmem:[%s13615_s1 + $0xc64] ss:$12 sps:$4 sm:$0xff]   ;;  %v10164_v32 = vld [vmem:[%s13615_s1 + $0xc60] ss:$12 sps:$4 sm:$0xff]  }
 0x235   : > { %3695 = vmatprep.subr.bf16.mxu0 %v10106_v33  ;;  %3738 = vmatprep.subr.bf16.mxu1 %v10644_v2  ;;  %v10167_v33 = vld [vmem:[%s13615_s1 + $0xc68] ss:$12 sps:$4 sm:$0xff]  }
 0x238   : > { %3696 = vmatpush1.bf16.msra.mxu0 %v10104_v36  ;;  %3739 = vmatpush1.bf16.msra.mxu1 %v10107_v34  ;;  %v10170_v36 = vld [vmem:[%s13615_s1 + $0xc7c] ss:$12 sps:$4 sm:$0xff]   ;;  %v10168_v34 = vld [vmem:[%s13615_s1 + $0xc78] ss:$12 sps:$4 sm:$0xff]  }
 0x239   : > { %3697 = vmatprep.subr.bf16.mxu0 %v10110_v35  ;;  %3740 = vmatprep.subr.bf16.mxu1 %v10644_v2  ;;  %v10171_v35 = vld [vmem:[%s13615_s1 + $0xc80] ss:$12 sps:$4 sm:$0xff]  }
 0x23c   : > { %3698 = vmatpush1.bf16.msra.mxu0 %v10108_v41  ;;  %3741 = vmatpush1.bf16.msra.mxu1 %v10111_v43  ;;  %v10174_v41 = vld [vmem:[%s13615_s1 + $0xc94] ss:$12 sps:$4 sm:$0xff]  }
 0x23d   : > { %3699 = vmatprep.subr.bf16.mxu0 %v10114_v44  ;;  %3742 = vmatprep.subr.bf16.mxu1 %v10644_v2 }
 0x240   : > { %3700 = vmatpush1.bf16.msra.mxu0 %v10112_v47  ;;  %3743 = vmatpush1.bf16.msra.mxu1 %v10115_v48 }
 0x241   : > { %3981 = vmatprep.subr.bf16.mxu0 %v10118_v50  ;;  %4024 = vmatprep.subr.bf16.mxu1 %v10644_v2  ;;  %v10175_v50 = vld [vmem:[%s13615_s1 + $0xc98] ss:$12 sps:$4 sm:$0xff]  }
 0x243   : > { %3757 = vmatmul.mubr.bf16.vlgmr.msra.gmra.mrb[44].mxu1 %v3516_v51  ;;  %3714 = vmatmul.mubr.bf16.vlgmr.msra.gmra.mrb[0].mxu0 %v3516_v51 }
 0x244   : > { %3982 = vmatpush1.bf16.msra.mxu0 %v10116_v52  ;;  %4025 = vmatpush1.bf16.msra.mxu1 %v10119_v46  ;;  %v10178_v46 = vld [vmem:[%s13615_s1 + $0xcac] ss:$12 sps:$4 sm:$0xff]  }
 0x245   : > { %3983 = vmatprep.subr.bf16.mxu0 %v10122_v53  ;;  %4026 = vmatprep.subr.bf16.mxu1 %v10644_v2  ;;  %v10176_v53 = vld [vmem:[%s13615_s1 + $0xca8] ss:$12 sps:$4 sm:$0xff]  }
 0x246   : > { %8658 = vmatprep.mubr.msk.bf16.mxu1 %vm428_vm0, %v12120_v54  ;;  %8657 = vmatprep.mubr.msk.bf16.mxu0 %vm428_vm0, %v12120_v54  ;;  %v10179_v54 = vld [vmem:[%s13615_s1 + $0xcb0] ss:$12 sps:$4 sm:$0xff]  }
 0x248   : > { %3984 = vmatpush1.bf16.msra.mxu0 %v10120_v55  ;;  %4027 = vmatpush1.bf16.msra.mxu1 %v10123_v56  ;;  %v10182_v55 = vld [vmem:[%s13615_s1 + $0xcc4] ss:$12 sps:$4 sm:$0xff]   ;;  %v10180_v56 = vld [vmem:[%s13615_s1 + $0xcc0] ss:$12 sps:$4 sm:$0xff]  }
 0x249   : > { %3985 = vmatprep.subr.bf16.mxu0 %v10126_v57  ;;  %4028 = vmatprep.subr.bf16.mxu1 %v10644_v2  ;;  %v10183_v57 = vld [vmem:[%s13615_s1 + $0xcc8] ss:$12 sps:$4 sm:$0xff]  }
 0x24c   : > { %3986 = vmatpush1.bf16.msra.mxu0 %v10124_v58  ;;  %4029 = vmatpush1.bf16.msra.mxu1 %v10127_v59  ;;  %v10186_v58 = vld [vmem:[%s13615_s1 + $0xcdc] ss:$12 sps:$4 sm:$0xff]   ;;  %v10184_v59 = vld [vmem:[%s13615_s1 + $0xcd8] ss:$12 sps:$4 sm:$0xff]  }
 0x24d   : > { %3987 = vmatprep.subr.bf16.mxu0 %v10130_v60  ;;  %4030 = vmatprep.subr.bf16.mxu1 %v10644_v2  ;;  %v10187_v60 = vld [vmem:[%s13615_s1 + $0xce0] ss:$12 sps:$4 sm:$0xff]  }
 0x24e   : > { %v2261_v0 = vpop.f32.mrb[24].mxu1 }
 0x24f   : > { %v12157_v1 = vadd.f32 %v2261_v0, %v12039_v20  ;;  %v2263_v3 = vpop.f32.mrb[25].mxu1  ;;  %v10152_v20 = vld [vmem:[%s13615_s1 + $0xc18] ss:$12 sps:$4 sm:$0xff]  }
 0x250   : > { %v2264_v4 = vpop.f32.mrb[26].mxu1  ;;  %3988 = vmatpush1.bf16.msra.mxu0 %v10128_v61  ;;  %4031 = vmatpush1.bf16.msra.mxu1 %v10131_v62  ;;  %v10190_v61 = vld [vmem:[%s13615_s1 + $0xcf4] ss:$12 sps:$4 sm:$0xff]   ;;  %v10188_v62 = vld [vmem:[%s13615_s1 + $0xcf0] ss:$12 sps:$4 sm:$0xff]  }
 0x251   : > { %v12166_v38 = vadd.f32 %v2264_v4, %v12052_v25  ;;  %v2266_v42 = vpop.f32.mrb[27].mxu1  ;;  %3989 = vmatprep.subr.bf16.mxu0 %v10134_v63  ;;  %4032 = vmatprep.subr.bf16.mxu1 %v10644_v2  ;;  %v10156_v25 = vld [vmem:[%s13615_s1 + $0xc30] ss:$12 sps:$4 sm:$0xff]   ;;  %v10191_v63 = vld [vmem:[%s13615_s1 + $0xcf8] ss:$12 sps:$4 sm:$0xff]   ;;  %v4113_v4 = vpop.permute.xlu0 %4112 }
 0x252   : > { %v10194_v0 = vld [vmem:[%s13615_s1 + $0xd0c] ss:$12 sps:$4 sm:$0xff]   ;;  %v10195_v3 = vld [vmem:[%s13615_s1 + $0xd10] ss:$12 sps:$4 sm:$0xff]   ;;  %v10199_v42 = vld [vmem:[%s13615_s1 + $0xd28] ss:$12 sps:$4 sm:$0xff]  }
 0x254   : > { %3990 = vmatpush1.bf16.msra.mxu0 %v10132_v5  ;;  %4033 = vmatpush1.bf16.msra.mxu1 %v10135_v6  ;;  %v10198_v5 = vld [vmem:[%s13615_s1 + $0xd24] ss:$12 sps:$4 sm:$0xff]   ;;  %v4116_v6 = vsel %vm1109_vm3, %v4113_v4, %v12234_v28 }
 0x255   : > { %3991 = vmatprep.subr.bf16.mxu0 %v10138_v7  ;;  %4034 = vmatprep.subr.bf16.mxu1 %v10644_v2  ;;  %v10202_v7 = vld [vmem:[%s13615_s1 + $0xd3c] ss:$12 sps:$4 sm:$0xff]  }
 0x258   : > { %3992 = vmatpush1.bf16.msra.mxu0 %v10136_v8  ;;  %4035 = vmatpush1.bf16.msra.mxu1 %v10139_v9  ;;  %v12348_v8 = vpop.permute.xlu1 %4414  ;;  %v10200_v9 = vld [vmem:[%s13615_s1 + $0xd38] ss:$12 sps:$4 sm:$0xff]  }
 0x259   : > { %3993 = vmatprep.subr.bf16.mxu0 %v10142_v10  ;;  %4036 = vmatprep.subr.bf16.mxu1 %v10644_v2  ;;  %v10203_v10 = vld [vmem:[%s13615_s1 + $0xd40] ss:$12 sps:$4 sm:$0xff]  }
 0x25c   : > { %3994 = vmatpush1.bf16.msra.mxu0 %v10140_v12  ;;  %4037 = vmatpush1.bf16.msra.mxu1 %v10143_v13  ;;  %v10206_v12 = vld [vmem:[%s13615_s1 + $0xd54] ss:$12 sps:$4 sm:$0xff]   ;;  %v10204_v13 = vld [vmem:[%s13615_s1 + $0xd50] ss:$12 sps:$4 sm:$0xff]  }
 0x25d   : > { %3995 = vmatprep.subr.bf16.mxu0 %v10146_v37  ;;  %4038 = vmatprep.subr.bf16.mxu1 %v10644_v2  ;;  %v10207_v37 = vld [vmem:[%s13615_s1 + $0xd58] ss:$12 sps:$4 sm:$0xff]  }
 0x260   : > { %3996 = vmatpush1.bf16.msra.mxu0 %v10144_v14  ;;  %4039 = vmatpush1.bf16.msra.mxu1 %v10147_v16  ;;  %v10210_v14 = vld [vmem:[%s13615_s1 + $0xd6c] ss:$12 sps:$4 sm:$0xff]   ;;  %v10208_v16 = vld [vmem:[%s13615_s1 + $0xd68] ss:$12 sps:$4 sm:$0xff]  }
 0x261   : > { %3997 = vmatprep.subr.bf16.mxu0 %v10150_v17  ;;  %4040 = vmatprep.subr.bf16.mxu1 %v10644_v2  ;;  %v10211_v17 = vld [vmem:[%s13615_s1 + $0xd70] ss:$12 sps:$4 sm:$0xff]  }
 0x264   : > { %3998 = vmatpush1.bf16.msra.mxu0 %v10148_v45  ;;  %4041 = vmatpush1.bf16.msra.mxu1 %v10151_v18  ;;  %v10214_v45 = vld [vmem:[%s13615_s1 + $0xd84] ss:$12 sps:$4 sm:$0xff]  }
 0x265   : > { %3999 = vmatprep.subr.bf16.mxu0 %v10154_v19  ;;  %4042 = vmatprep.subr.bf16.mxu1 %v10644_v2 }
 0x268   : > { %4000 = vmatpush1.bf16.msra.mxu0 %v10152_v20  ;;  %4043 = vmatpush1.bf16.msra.mxu1 %v10155_v21 }
 0x269   : > { %4281 = vmatprep.subr.bf16.mxu0 %v10158_v23  ;;  %4324 = vmatprep.subr.bf16.mxu1 %v10644_v2  ;;  %v10215_v23 = vld [vmem:[%s13615_s1 + $0xd88] ss:$12 sps:$4 sm:$0xff]  }
 0x26b   : > { %4057 = vmatmul.mubr.bf16.vlgmr.msra.gmra.mrb[48].mxu1 %v3816_v24  ;;  %4014 = vmatmul.mubr.bf16.vlgmr.msra.gmra.mrb[0].mxu0 %v3816_v24 }
 0x26c   : > { %4282 = vmatpush1.bf16.msra.mxu0 %v10156_v25  ;;  %4325 = vmatpush1.bf16.msra.mxu1 %v10159_v26  ;;  %v10218_v26 = vld [vmem:[%s13615_s1 + $0xd9c] ss:$12 sps:$4 sm:$0xff]  }
 0x26d   : > { %4283 = vmatprep.subr.bf16.mxu0 %v10162_v27  ;;  %4326 = vmatprep.subr.bf16.mxu1 %v10644_v2  ;;  %v10216_v27 = vld [vmem:[%s13615_s1 + $0xd98] ss:$12 sps:$4 sm:$0xff]  }
 0x26e   : > { %8730 = vmatprep.mubr.msk.bf16.mxu1 %vm428_vm0, %v12234_v28  ;;  %8729 = vmatprep.mubr.msk.bf16.mxu0 %vm428_vm0, %v12234_v28  ;;  %v10219_v28 = vld [vmem:[%s13615_s1 + $0xda0] ss:$12 sps:$4 sm:$0xff]  }
 0x270   : > { %4284 = vmatpush1.bf16.msra.mxu0 %v10160_v29  ;;  %4327 = vmatpush1.bf16.msra.mxu1 %v10163_v30  ;;  %v10222_v29 = vld [vmem:[%s13615_s1 + $0xdb4] ss:$12 sps:$4 sm:$0xff]   ;;  %v10220_v30 = vld [vmem:[%s13615_s1 + $0xdb0] ss:$12 sps:$4 sm:$0xff]  }
 0x271   : > { %4285 = vmatprep.subr.bf16.mxu0 %v10166_v31  ;;  %4328 = vmatprep.subr.bf16.mxu1 %v10644_v2  ;;  %v10223_v31 = vld [vmem:[%s13615_s1 + $0xdb8] ss:$12 sps:$4 sm:$0xff]  }
 0x274   : > { %4286 = vmatpush1.bf16.msra.mxu0 %v10164_v32  ;;  %4329 = vmatpush1.bf16.msra.mxu1 %v10167_v33  ;;  %v10226_v32 = vld [vmem:[%s13615_s1 + $0xdcc] ss:$12 sps:$4 sm:$0xff]   ;;  %v10224_v33 = vld [vmem:[%s13615_s1 + $0xdc8] ss:$12 sps:$4 sm:$0xff]  }
 0x275   : > { %4287 = vmatprep.subr.bf16.mxu0 %v10170_v36  ;;  %4330 = vmatprep.subr.bf16.mxu1 %v10644_v2  ;;  %v10227_v36 = vld [vmem:[%s13615_s1 + $0xdd0] ss:$12 sps:$4 sm:$0xff]  }
 0x276   : > { %v2561_v43 = vpop.f32.mrb[28].mxu1 }
 0x277   : > { %v12271_v44 = vadd.f32 %v2561_v43, %v12157_v1  ;;  %v2563_v47 = vpop.f32.mrb[29].mxu1  ;;  %v10192_v1 = vld [vmem:[%s13615_s1 + $0xd08] ss:$12 sps:$4 sm:$0xff]  }
 0x278   : > { %v2564_v48 = vpop.f32.mrb[30].mxu1  ;;  %4288 = vmatpush1.bf16.msra.mxu0 %v10168_v34  ;;  %4331 = vmatpush1.bf16.msra.mxu1 %v10171_v35  ;;  %v10230_v34 = vld [vmem:[%s13615_s1 + $0xde4] ss:$12 sps:$4 sm:$0xff]   ;;  %v10228_v35 = vld [vmem:[%s13615_s1 + $0xde0] ss:$12 sps:$4 sm:$0xff]  }
 0x279   : > { %v12280_v51 = vadd.f32 %v2564_v48, %v12166_v38  ;;  %v2566_v52 = vpop.f32.mrb[31].mxu1  ;;  %4289 = vmatprep.subr.bf16.mxu0 %v10174_v41  ;;  %4332 = vmatprep.subr.bf16.mxu1 %v10644_v2  ;;  %v10196_v38 = vld [vmem:[%s13615_s1 + $0xd20] ss:$12 sps:$4 sm:$0xff]   ;;  %v10231_v41 = vld [vmem:[%s13615_s1 + $0xde8] ss:$12 sps:$4 sm:$0xff]   ;;  %v4413_v48 = vpop.permute.xlu0 %4412 }
 0x27a   : > { %v10234_v43 = vld [vmem:[%s13615_s1 + $0xdfc] ss:$12 sps:$4 sm:$0xff]   ;;  %v10235_v47 = vld [vmem:[%s13615_s1 + $0xe00] ss:$12 sps:$4 sm:$0xff]   ;;  %v10239_v52 = vld [vmem:[%s13615_s1 + $0xe18] ss:$12 sps:$4 sm:$0xff]  }
 0x27c   : > { %4290 = vmatpush1.bf16.msra.mxu0 %v10172_v49  ;;  %4333 = vmatpush1.bf16.msra.mxu1 %v10175_v50  ;;  %v10238_v49 = vld [vmem:[%s13615_s1 + $0xe14] ss:$12 sps:$4 sm:$0xff]   ;;  %v4416_v50 = vsel %vm1410_vm4, %v4413_v48, %v12348_v8  ;;  %v10296_v48 = vld [vmem:[%s13615_s1 + $0xf78] ss:$12 sps:$4 sm:$0xff]  }
 0x27d   : > { %4291 = vmatprep.subr.bf16.mxu0 %v10178_v46  ;;  %4334 = vmatprep.subr.bf16.mxu1 %v10644_v2  ;;  %v10242_v46 = vld [vmem:[%s13615_s1 + $0xe2c] ss:$12 sps:$4 sm:$0xff]  }
 0x280   : > { %4292 = vmatpush1.bf16.msra.mxu0 %v10176_v53  ;;  %4335 = vmatpush1.bf16.msra.mxu1 %v10179_v54  ;;  %v10240_v53 = vld [vmem:[%s13615_s1 + $0xe28] ss:$12 sps:$4 sm:$0xff]   ;;  %v10243_v54 = vld [vmem:[%s13615_s1 + $0xe30] ss:$12 sps:$4 sm:$0xff]  }
 0x281   : > { %4293 = vmatprep.subr.bf16.mxu0 %v10182_v55  ;;  %4336 = vmatprep.subr.bf16.mxu1 %v10644_v2  ;;  %v10246_v55 = vld [vmem:[%s13615_s1 + $0xe44] ss:$12 sps:$4 sm:$0xff]  }
 0x284   : > { %4294 = vmatpush1.bf16.msra.mxu0 %v10180_v56  ;;  %4337 = vmatpush1.bf16.msra.mxu1 %v10183_v57  ;;  %v10244_v56 = vld [vmem:[%s13615_s1 + $0xe40] ss:$12 sps:$4 sm:$0xff]   ;;  %v10247_v57 = vld [vmem:[%s13615_s1 + $0xe48] ss:$12 sps:$4 sm:$0xff]  }
 0x285   : > { %4295 = vmatprep.subr.bf16.mxu0 %v10186_v58  ;;  %4338 = vmatprep.subr.bf16.mxu1 %v10644_v2  ;;  %v10250_v58 = vld [vmem:[%s13615_s1 + $0xe5c] ss:$12 sps:$4 sm:$0xff]  }
 0x288   : > { %4296 = vmatpush1.bf16.msra.mxu0 %v10184_v59  ;;  %4339 = vmatpush1.bf16.msra.mxu1 %v10187_v60  ;;  %v10251_v59 = vld [vmem:[%s13615_s1 + $0xe60] ss:$12 sps:$4 sm:$0xff]  }
 0x289   : > { %4297 = vmatprep.subr.bf16.mxu0 %v10190_v61  ;;  %4340 = vmatprep.subr.bf16.mxu1 %v10644_v2  ;;  %v10254_v60 = vld [vmem:[%s13615_s1 + $0xe74] ss:$12 sps:$4 sm:$0xff]  }
 0x28c   : > { %4298 = vmatpush1.bf16.msra.mxu0 %v10188_v62  ;;  %4341 = vmatpush1.bf16.msra.mxu1 %v10191_v63 }
 0x28d   : > { %4299 = vmatprep.subr.bf16.mxu0 %v10194_v0  ;;  %4342 = vmatprep.subr.bf16.mxu1 %v10644_v2 }
 0x290   : > { %4300 = vmatpush1.bf16.msra.mxu0 %v10192_v1  ;;  %4343 = vmatpush1.bf16.msra.mxu1 %v10195_v3  ;;  %v10252_v1 = vld [vmem:[%s13615_s1 + $0xe70] ss:$12 sps:$4 sm:$0xff]   ;;  %v10255_v3 = vld [vmem:[%s13615_s1 + $0xe78] ss:$12 sps:$4 sm:$0xff]  }
 0x291   : > { %4581 = vmatprep.subr.bf16.mxu0 %v10198_v5  ;;  %4624 = vmatprep.subr.bf16.mxu1 %v10644_v2 }
 0x293   : > { %4357 = vmatmul.mubr.bf16.vlgmr.msra.gmra.mrb[52].mxu1 %v4116_v6  ;;  %4314 = vmatmul.mubr.bf16.vlgmr.msra.gmra.mrb[0].mxu0 %v4116_v6  ;;  %v10258_v6 = vld [vmem:[%s13615_s1 + $0xe8c] ss:$12 sps:$4 sm:$0xff]  }
 0x294   : > { %4582 = vmatpush1.bf16.msra.mxu0 %v10196_v38  ;;  %4625 = vmatpush1.bf16.msra.mxu1 %v10199_v42  ;;  %v10256_v38 = vld [vmem:[%s13615_s1 + $0xe88] ss:$12 sps:$4 sm:$0xff]   ;;  %v10259_v42 = vld [vmem:[%s13615_s1 + $0xe90] ss:$12 sps:$4 sm:$0xff]  }
 0x295   : > { %4583 = vmatprep.subr.bf16.mxu0 %v10202_v7  ;;  %4626 = vmatprep.subr.bf16.mxu1 %v10644_v2  ;;  %v10262_v7 = vld [vmem:[%s13615_s1 + $0xea4] ss:$12 sps:$4 sm:$0xff]  }
 0x296   : > { %8802 = vmatprep.mubr.msk.bf16.mxu1 %vm428_vm0, %v12348_v8  ;;  %8801 = vmatprep.mubr.msk.bf16.mxu0 %vm428_vm0, %v12348_v8  ;;  %v10260_v8 = vld [vmem:[%s13615_s1 + $0xea0] ss:$12 sps:$4 sm:$0xff]  }
 0x298   : > { %4584 = vmatpush1.bf16.msra.mxu0 %v10200_v9  ;;  %4627 = vmatpush1.bf16.msra.mxu1 %v10203_v10  ;;  %v10263_v9 = vld [vmem:[%s13615_s1 + $0xea8] ss:$12 sps:$4 sm:$0xff]  }
 0x299   : > { %4585 = vmatprep.subr.bf16.mxu0 %v10206_v12  ;;  %4628 = vmatprep.subr.bf16.mxu1 %v10644_v2  ;;  %v10266_v10 = vld [vmem:[%s13615_s1 + $0xebc] ss:$12 sps:$4 sm:$0xff]   ;;  %v10264_v12 = vld [vmem:[%s13615_s1 + $0xeb8] ss:$12 sps:$4 sm:$0xff]  }
 0x29c   : > { %4586 = vmatpush1.bf16.msra.mxu0 %v10204_v13  ;;  %4629 = vmatpush1.bf16.msra.mxu1 %v10207_v37  ;;  %v10267_v13 = vld [vmem:[%s13615_s1 + $0xec0] ss:$12 sps:$4 sm:$0xff]  }
 0x29d   : > { %4587 = vmatprep.subr.bf16.mxu0 %v10210_v14  ;;  %4630 = vmatprep.subr.bf16.mxu1 %v10644_v2  ;;  %v10270_v37 = vld [vmem:[%s13615_s1 + $0xed4] ss:$12 sps:$4 sm:$0xff]   ;;  %v10268_v14 = vld [vmem:[%s13615_s1 + $0xed0] ss:$12 sps:$4 sm:$0xff]  }
 0x29e   : > { %v2861_v18 = vpop.f32.mrb[32].mxu1 }
 0x29f   : > { %v12385_v19 = vadd.f32 %v2861_v18, %v12271_v44  ;;  %v2863_v20 = vpop.f32.mrb[33].mxu1  ;;  %v10232_v44 = vld [vmem:[%s13615_s1 + $0xdf8] ss:$12 sps:$4 sm:$0xff]   ;;  %v10275_v18 = vld [vmem:[%s13615_s1 + $0xef0] ss:$12 sps:$4 sm:$0xff]  }
 0x2a0   : > { %v2864_v21 = vpop.f32.mrb[34].mxu1  ;;  %4588 = vmatpush1.bf16.msra.mxu0 %v10208_v16  ;;  %4631 = vmatpush1.bf16.msra.mxu1 %v10211_v17  ;;  %v10271_v16 = vld [vmem:[%s13615_s1 + $0xed8] ss:$12 sps:$4 sm:$0xff]   ;;  %v12562_v20 = vrot.slane %v10706_v11, 2  ;;  %v10276_v11 = vld [vmem:[%s13615_s1 + $0xf00] ss:$12 sps:$4 sm:$0xff]  }
 0x2a1   : > { %v12394_v24 = vadd.f32 %v2864_v21, %v12280_v51  ;;  %v2866_v25 = vpop.f32.mrb[35].mxu1  ;;  %4589 = vmatprep.subr.bf16.mxu0 %v10214_v45  ;;  %4632 = vmatprep.subr.bf16.mxu1 %v10644_v2  ;;  %v10236_v51 = vld [vmem:[%s13615_s1 + $0xe10] ss:$12 sps:$4 sm:$0xff]   ;;  %v10274_v17 = vld [vmem:[%s13615_s1 + $0xeec] ss:$12 sps:$4 sm:$0xff]  }
 0x2a2   : > { %v10272_v45 = vld [vmem:[%s13615_s1 + $0xee8] ss:$12 sps:$4 sm:$0xff]   ;;  %v10278_v21 = vld [vmem:[%s13615_s1 + $0xf04] ss:$12 sps:$4 sm:$0xff]   ;;  %6510 = vrot.lane.b32.xlu0 %v12562_v20, %s10645_s9  ;;  %v10283_v25 = vld [vmem:[%s13615_s1 + $0xf20] ss:$12 sps:$4 sm:$0xff]  }
 0x2a4   : > { %4590 = vmatpush1.bf16.msra.mxu0 %v10212_v22  ;;  %4633 = vmatpush1.bf16.msra.mxu1 %v10215_v23  ;;  %v10282_v22 = vld [vmem:[%s13615_s1 + $0xf1c] ss:$12 sps:$4 sm:$0xff]   ;;  %v12588_v23 = vpop.permute.xlu1 %5015 }
 0x2a5   : > { %4591 = vmatprep.subr.bf16.mxu0 %v10218_v26  ;;  %4634 = vmatprep.subr.bf16.mxu1 %v10644_v2  ;;  %v10286_v26 = vld [vmem:[%s13615_s1 + $0xf34] ss:$12 sps:$4 sm:$0xff]  }
 0x2a6   : > { %6810 = vrot.lane.b32.xlu0 %v12562_v20, %s10646_s10 }
 0x2a8   : > { %4592 = vmatpush1.bf16.msra.mxu0 %v10216_v27  ;;  %4635 = vmatpush1.bf16.msra.mxu1 %v10219_v28  ;;  %v10287_v27 = vld [vmem:[%s13615_s1 + $0xf38] ss:$12 sps:$4 sm:$0xff]  }
 0x2a9   : > { %4593 = vmatprep.subr.bf16.mxu0 %v10222_v29  ;;  %4636 = vmatprep.subr.bf16.mxu1 %v10644_v2  ;;  %v10290_v28 = vld [vmem:[%s13615_s1 + $0xf4c] ss:$12 sps:$4 sm:$0xff]   ;;  %v10288_v29 = vld [vmem:[%s13615_s1 + $0xf48] ss:$12 sps:$4 sm:$0xff]  }
 0x2aa   : > { %7110 = vrot.lane.b32.xlu0 %v12562_v20, %s10647_s27 }
 0x2ac   : > { %4594 = vmatpush1.bf16.msra.mxu0 %v10220_v30  ;;  %4637 = vmatpush1.bf16.msra.mxu1 %v10223_v31  ;;  %v10291_v30 = vld [vmem:[%s13615_s1 + $0xf50] ss:$12 sps:$4 sm:$0xff]  }
 0x2ad   : > { %4595 = vmatprep.subr.bf16.mxu0 %v10226_v32  ;;  %4638 = vmatprep.subr.bf16.mxu1 %v10644_v2  ;;  %v10294_v31 = vld [vmem:[%s13615_s1 + $0xf64] ss:$12 sps:$4 sm:$0xff]  }
 0x2ae   : > { %7410 = vrot.lane.b32.xlu0 %v12562_v20, %s10648_s11 }
 0x2b0   : > { %4596 = vmatpush1.bf16.msra.mxu0 %v10224_v33  ;;  %4639 = vmatpush1.bf16.msra.mxu1 %v10227_v36 }
 0x2b1   : > { %4597 = vmatprep.subr.bf16.mxu0 %v10230_v34  ;;  %4640 = vmatprep.subr.bf16.mxu1 %v10644_v2 }
 0x2b4   : > { %4598 = vmatpush1.bf16.msra.mxu0 %v10228_v35  ;;  %4641 = vmatpush1.bf16.msra.mxu1 %v10231_v41  ;;  %v10292_v35 = vld [vmem:[%s13615_s1 + $0xf60] ss:$12 sps:$4 sm:$0xff]   ;;  %v10295_v41 = vld [vmem:[%s13615_s1 + $0xf68] ss:$12 sps:$4 sm:$0xff]  }
 0x2b5   : > { %4599 = vmatprep.subr.bf16.mxu0 %v10234_v43  ;;  %4642 = vmatprep.subr.bf16.mxu1 %v10644_v2 }
 0x2b8   : > { %4600 = vmatpush1.bf16.msra.mxu0 %v10232_v44  ;;  %4643 = vmatpush1.bf16.msra.mxu1 %v10235_v47  ;;  %v10298_v47 = vld [vmem:[%s13615_s1 + $0xf7c] ss:$12 sps:$4 sm:$0xff]  }
 0x2b9   : > { %4882 = vmatprep.subr.bf16.mxu0 %v10238_v49  ;;  %4925 = vmatprep.subr.bf16.mxu1 %v10644_v2  ;;  %v10299_v49 = vld [vmem:[%s13615_s1 + $0xf80] ss:$12 sps:$4 sm:$0xff]  }
 0x2bb   : > { %4657 = vmatmul.mubr.bf16.vlgmr.msra.gmra.mrb[56].mxu1 %v4416_v50  ;;  %4614 = vmatmul.mubr.bf16.vlgmr.msra.gmra.mrb[0].mxu0 %v4416_v50  ;;  %v10302_v50 = vld [vmem:[%s13615_s1 + $0xf94] ss:$12 sps:$4 sm:$0xff]  }
 0x2bc   : > { %4883 = vmatpush1.bf16.msra.mxu0 %v10236_v51  ;;  %4926 = vmatpush1.bf16.msra.mxu1 %v10239_v52  ;;  %v10300_v51 = vld [vmem:[%s13615_s1 + $0xf90] ss:$12 sps:$4 sm:$0xff]   ;;  %v10303_v52 = vld [vmem:[%s13615_s1 + $0xf98] ss:$12 sps:$4 sm:$0xff]  }
 0x2bd   : > { %4884 = vmatprep.subr.bf16.mxu0 %v10242_v46  ;;  %4927 = vmatprep.subr.bf16.mxu1 %v10644_v2  ;;  %v10306_v46 = vld [vmem:[%s13615_s1 + $0xfac] ss:$12 sps:$4 sm:$0xff]  }
 0x2be   : > { %8874 = vmatprep.mubr.msk.bf16.mxu1 %vm428_vm0, %v11974_v40  ;;  %8873 = vmatprep.mubr.msk.bf16.mxu0 %vm428_vm0, %v11974_v40  ;;  %v10248_v40 = vld [vmem:[%s13615_s1 + $0xe58] ss:$12 sps:$4 sm:$0xff]  }
 0x2c0   : > { %4885 = vmatpush1.bf16.msra.mxu0 %v10240_v53  ;;  %4928 = vmatpush1.bf16.msra.mxu1 %v10243_v54  ;;  %v10304_v53 = vld [vmem:[%s13615_s1 + $0xfa8] ss:$12 sps:$4 sm:$0xff]   ;;  %v10307_v54 = vld [vmem:[%s13615_s1 + $0xfb0] ss:$12 sps:$4 sm:$0xff]  }
 0x2c1   : > { %4886 = vmatprep.subr.bf16.mxu0 %v10246_v55  ;;  %4929 = vmatprep.subr.bf16.mxu1 %v10644_v2  ;;  %v10310_v55 = vld [vmem:[%s13615_s1 + $0xfc4] ss:$12 sps:$4 sm:$0xff]  }
 0x2c4   : > { %4887 = vmatpush1.bf16.msra.mxu0 %v10244_v56  ;;  %4930 = vmatpush1.bf16.msra.mxu1 %v10247_v57  ;;  %v10308_v56 = vld [vmem:[%s13615_s1 + $0xfc0] ss:$12 sps:$4 sm:$0xff]   ;;  %v10311_v57 = vld [vmem:[%s13615_s1 + $0xfc8] ss:$12 sps:$4 sm:$0xff]  }
 0x2c5   : > { %4888 = vmatprep.subr.bf16.mxu0 %v10250_v58  ;;  %4931 = vmatprep.subr.bf16.mxu1 %v10644_v2  ;;  %v10314_v58 = vld [vmem:[%s13615_s1 + $0xfdc] ss:$12 sps:$4 sm:$0xff]  }
 0x2c6   : > { %v3161_v61 = vpop.f32.mrb[36].mxu1 }
 0x2c7   : > { %v12497_v62 = vadd.f32 %v3161_v61, %v12385_v19  ;;  %v3163_v63 = vpop.f32.mrb[37].mxu1  ;;  %v12559_v19 = vrot.slane %v10716_v15, 2  ;;  %v10279_v15 = vld [vmem:[%s13615_s1 + $0xf08] ss:$12 sps:$4 sm:$0xff]  }
 0x2c8   : > { %v3164_v0 = vpop.f32.mrb[38].mxu1  ;;  %4889 = vmatpush1.bf16.msra.mxu0 %v10248_v40  ;;  %4932 = vmatpush1.bf16.msra.mxu1 %v10251_v59  ;;  %v10312_v40 = vld [vmem:[%s13615_s1 + $0xfd8] ss:$12 sps:$4 sm:$0xff]   ;;  %v10315_v59 = vld [vmem:[%s13615_s1 + $0xfe0] ss:$12 sps:$4 sm:$0xff]  }
 0x2c9   : > { %v12506_v4 = vadd.f32 %v3164_v0, %v12394_v24  ;;  %v3166_v5 = vpop.f32.mrb[39].mxu1  ;;  %4890 = vmatprep.subr.bf16.mxu0 %v10254_v60  ;;  %4933 = vmatprep.subr.bf16.mxu1 %v10644_v2  ;;  %v10280_v24 = vld [vmem:[%s13615_s1 + $0xf18] ss:$12 sps:$4 sm:$0xff]   ;;  %v5014_v60 = vpop.permute.xlu0 %5013  ;;  %v10318_v61 = vld [vmem:[%s13615_s1 + $0xff4] ss:$12 sps:$4 sm:$0xff]  }
 0x2ca   : > { %6512 = vrot.lane.b32.xlu1 %v12559_v19, %s10645_s9  ;;  %v10316_v63 = vld [vmem:[%s13615_s1 + $0xff0] ss:$12 sps:$4 sm:$0xff]   ;;  %v10319_v0 = vld [vmem:[%s13615_s1 + $0xff8] ss:$12 sps:$4 sm:$0xff]  }
 0x2cb   : > { %v10323_v5 = vld [vmem:[%s13615_s1 + $0x1010] ss:$12 sps:$4 sm:$0xff]  }
 0x2cc   : > { %4891 = vmatpush1.bf16.msra.mxu0 %v10252_v1  ;;  %4934 = vmatpush1.bf16.msra.mxu1 %v10255_v3  ;;  %v10322_v1 = vld [vmem:[%s13615_s1 + $0x100c] ss:$12 sps:$4 sm:$0xff]   ;;  %v12710_v3 = vpop.permute.xlu1 %5315 }
 0x2cd   : > { %4892 = vmatprep.subr.bf16.mxu0 %v10258_v6  ;;  %4935 = vmatprep.subr.bf16.mxu1 %v10644_v2  ;;  %v10326_v6 = vld [vmem:[%s13615_s1 + $0x1024] ss:$12 sps:$4 sm:$0xff]  }
 0x2ce   : > { %6812 = vrot.lane.b32.xlu1 %v12559_v19, %s10646_s10 }
 0x2d0   : > { %4893 = vmatpush1.bf16.msra.mxu0 %v10256_v38  ;;  %4936 = vmatpush1.bf16.msra.mxu1 %v10259_v42  ;;  %v10324_v38 = vld [vmem:[%s13615_s1 + $0x1020] ss:$12 sps:$4 sm:$0xff]   ;;  %v10327_v42 = vld [vmem:[%s13615_s1 + $0x1028] ss:$12 sps:$4 sm:$0xff]  }
 0x2d1   : > { %4894 = vmatprep.subr.bf16.mxu0 %v10262_v7  ;;  %4937 = vmatprep.subr.bf16.mxu1 %v10644_v2  ;;  %v10330_v7 = vld [vmem:[%s13615_s1 + $0x103c] ss:$12 sps:$4 sm:$0xff]  }
 0x2d2   : > { %7112 = vrot.lane.b32.xlu1 %v12559_v19, %s10647_s27  ;;  %s170_s27 = scalar_lea.vmem %s13617_s3, %s9622_s24 }
 0x2d4   : > { %4895 = vmatpush1.bf16.msra.mxu0 %v10260_v8  ;;  %4938 = vmatpush1.bf16.msra.mxu1 %v10263_v9  ;;  %v10328_v8 = vld [vmem:[%s13615_s1 + $0x1038] ss:$12 sps:$4 sm:$0xff]   ;;  %v10331_v9 = vld [vmem:[%s13615_s1 + $0x1040] ss:$12 sps:$4 sm:$0xff]  }
 0x2d5   : > { %4896 = vmatprep.subr.bf16.mxu0 %v10266_v10  ;;  %4939 = vmatprep.subr.bf16.mxu1 %v10644_v2  ;;  %v10334_v10 = vld [vmem:[%s13615_s1 + $0x1054] ss:$12 sps:$4 sm:$0xff]  }
 0x2d6   : > { %7412 = vrot.lane.b32.xlu1 %v12559_v19, %s10648_s11 }
 0x2d8   : > { %4897 = vmatpush1.bf16.msra.mxu0 %v10264_v12  ;;  %4940 = vmatpush1.bf16.msra.mxu1 %v10267_v13 }
 0x2d9   : > { %4898 = vmatprep.subr.bf16.mxu0 %v10270_v37  ;;  %4941 = vmatprep.subr.bf16.mxu1 %v10644_v2 }
 0x2dc   : > { %4899 = vmatpush1.bf16.msra.mxu0 %v10268_v14  ;;  %4942 = vmatpush1.bf16.msra.mxu1 %v10271_v16  ;;  %v10332_v16 = vld [vmem:[%s13615_s1 + $0x1050] ss:$12 sps:$4 sm:$0xff]  }
 0x2dd   : > { %4900 = vmatprep.subr.bf16.mxu0 %v10274_v17  ;;  %4943 = vmatprep.subr.bf16.mxu1 %v10644_v2  ;;  %v10335_v17 = vld [vmem:[%s13615_s1 + $0x1058] ss:$12 sps:$4 sm:$0xff]  }
 0x2e0   : > { %4901 = vmatpush1.bf16.msra.mxu0 %v10272_v45  ;;  %4944 = vmatpush1.bf16.msra.mxu1 %v10275_v18 }
 0x2e1   : > { %5182 = vmatprep.subr.bf16.mxu0 %v10278_v21  ;;  %5225 = vmatprep.subr.bf16.mxu1 %v10644_v2  ;;  %v10338_v21 = vld [vmem:[%s13615_s1 + $0x106c] ss:$12 sps:$4 sm:$0xff]  }
 0x2e3   : > { %4958 = vmatmul.mubr.bf16.vlgmr.msra.gmra.mrb[60].mxu1 %v11976_v39  ;;  %4915 = vmatmul.mubr.bf16.vlgmr.msra.gmra.mrb[0].mxu0 %v11976_v39  ;;  %v10284_v39 = vld [vmem:[%s13615_s1 + $0xf30] ss:$12 sps:$4 sm:$0xff]  }
 0x2e4   : > { %5183 = vmatpush1.bf16.msra.mxu0 %v10276_v11  ;;  %5226 = vmatpush1.bf16.msra.mxu1 %v10279_v15  ;;  %v10336_v11 = vld [vmem:[%s13615_s1 + $0x1068] ss:$12 sps:$4 sm:$0xff]   ;;  %v10339_v15 = vld [vmem:[%s13615_s1 + $0x1070] ss:$12 sps:$4 sm:$0xff]  }
 0x2e5   : > { %5184 = vmatprep.subr.bf16.mxu0 %v10282_v22  ;;  %5227 = vmatprep.subr.bf16.mxu1 %v10644_v2  ;;  %v10342_v22 = vld [vmem:[%s13615_s1 + $0x1084] ss:$12 sps:$4 sm:$0xff]  }
 0x2e6   : > { %8946 = vmatprep.mubr.msk.bf16.mxu1 %vm428_vm0, %v12588_v23  ;;  %8945 = vmatprep.mubr.msk.bf16.mxu0 %vm428_vm0, %v12588_v23 }
 0x2e8   : > { %5185 = vmatpush1.bf16.msra.mxu0 %v10280_v24  ;;  %5228 = vmatpush1.bf16.msra.mxu1 %v10283_v25  ;;  %v10343_v24 = vld [vmem:[%s13615_s1 + $0x1088] ss:$12 sps:$4 sm:$0xff]  }
 0x2e9   : > { %5186 = vmatprep.subr.bf16.mxu0 %v10286_v26  ;;  %5229 = vmatprep.subr.bf16.mxu1 %v10644_v2  ;;  %v10346_v25 = vld [vmem:[%s13615_s1 + $0x109c] ss:$12 sps:$4 sm:$0xff]   ;;  %v10344_v26 = vld [vmem:[%s13615_s1 + $0x1098] ss:$12 sps:$4 sm:$0xff]  }
 0x2ec   : > { %5187 = vmatpush1.bf16.msra.mxu0 %v10284_v39  ;;  %5230 = vmatpush1.bf16.msra.mxu1 %v10287_v27  ;;  %v10347_v39 = vld [vmem:[%s13615_s1 + $0x10a0] ss:$12 sps:$4 sm:$0xff]  }
 0x2ed   : > { %5188 = vmatprep.subr.bf16.mxu0 %v10290_v28  ;;  %5231 = vmatprep.subr.bf16.mxu1 %v10644_v2  ;;  %v10350_v27 = vld [vmem:[%s13615_s1 + $0x10b4] ss:$12 sps:$4 sm:$0xff]   ;;  %v10348_v28 = vld [vmem:[%s13615_s1 + $0x10b0] ss:$12 sps:$4 sm:$0xff]  }
 0x2ee   : > { %v3458_v32 = vpop.f32.mrb[40].mxu1 }
 0x2ef   : > { %v12633_v33 = vadd.f32 %v3458_v32, %v12497_v62  ;;  %v3460_v36 = vpop.f32.mrb[41].mxu1  ;;  %v5017_v62 = vsel %vm265_vm1, %v5014_v60, %v12588_v23  ;;  %v10340_v23 = vld [vmem:[%s13615_s1 + $0x1080] ss:$12 sps:$4 sm:$0xff]   ;;  %v10355_v32 = vld [vmem:[%s13615_s1 + $0x10d0] ss:$12 sps:$4 sm:$0xff]  }
 0x2f0   : > { %v3461_v34 = vpop.f32.mrb[42].mxu1  ;;  %5189 = vmatpush1.bf16.msra.mxu0 %v10288_v29  ;;  %5232 = vmatpush1.bf16.msra.mxu1 %v10291_v30  ;;  %v10351_v29 = vld [vmem:[%s13615_s1 + $0x10b8] ss:$12 sps:$4 sm:$0xff]  }
 0x2f1   : > { %v12642_v43 = vadd.f32 %v3461_v34, %v12506_v4  ;;  %v3463_v44 = vpop.f32.mrb[43].mxu1  ;;  %5190 = vmatprep.subr.bf16.mxu0 %v10294_v31  ;;  %5233 = vmatprep.subr.bf16.mxu1 %v10644_v2  ;;  %v10320_v4 = vld [vmem:[%s13615_s1 + $0x1008] ss:$12 sps:$4 sm:$0xff]   ;;  %v10354_v30 = vld [vmem:[%s13615_s1 + $0x10cc] ss:$12 sps:$4 sm:$0xff]  }
 0x2f2   : > { %v10352_v31 = vld [vmem:[%s13615_s1 + $0x10c8] ss:$12 sps:$4 sm:$0xff]   ;;  %v10358_v36 = vld [vmem:[%s13615_s1 + $0x10e4] ss:$12 sps:$4 sm:$0xff]   ;;  %v12824_v44 = vpop.permute.xlu1 %5615 }
 0x2f4   : > { %5191 = vmatpush1.bf16.msra.mxu0 %v10292_v35  ;;  %5234 = vmatpush1.bf16.msra.mxu1 %v10295_v41  ;;  %v10356_v35 = vld [vmem:[%s13615_s1 + $0x10e0] ss:$12 sps:$4 sm:$0xff]   ;;  %v10359_v41 = vld [vmem:[%s13615_s1 + $0x10e8] ss:$12 sps:$4 sm:$0xff]  }
 0x2f5   : > { %5192 = vmatprep.subr.bf16.mxu0 %v10298_v47  ;;  %5235 = vmatprep.subr.bf16.mxu1 %v10644_v2  ;;  %v10360_v47 = vld [vmem:[%s13615_s1 + $0x10f8] ss:$12 sps:$4 sm:$0xff]  }
 0x2f8   : > { %5193 = vmatpush1.bf16.msra.mxu0 %v10296_v48  ;;  %5236 = vmatpush1.bf16.msra.mxu1 %v10299_v49  ;;  %v10363_v48 = vld [vmem:[%s13615_s1 + $0x1100] ss:$12 sps:$4 sm:$0xff]  }
 0x2f9   : > { %5194 = vmatprep.subr.bf16.mxu0 %v10302_v50  ;;  %5237 = vmatprep.subr.bf16.mxu1 %v10644_v2  ;;  %v10366_v49 = vld [vmem:[%s13615_s1 + $0x1114] ss:$12 sps:$4 sm:$0xff]   ;;  %v10364_v50 = vld [vmem:[%s13615_s1 + $0x1110] ss:$12 sps:$4 sm:$0xff]  }
 0x2fc   : > { %5195 = vmatpush1.bf16.msra.mxu0 %v10300_v51  ;;  %5238 = vmatpush1.bf16.msra.mxu1 %v10303_v52  ;;  %v10367_v51 = vld [vmem:[%s13615_s1 + $0x1118] ss:$12 sps:$4 sm:$0xff]  }
 0x2fd   : > { %5196 = vmatprep.subr.bf16.mxu0 %v10306_v46  ;;  %5239 = vmatprep.subr.bf16.mxu1 %v10644_v2  ;;  %v10370_v52 = vld [vmem:[%s13615_s1 + $0x112c] ss:$12 sps:$4 sm:$0xff]   ;;  %v10368_v46 = vld [vmem:[%s13615_s1 + $0x1128] ss:$12 sps:$4 sm:$0xff]  }
 0x300   : > { %5197 = vmatpush1.bf16.msra.mxu0 %v10304_v53  ;;  %5240 = vmatpush1.bf16.msra.mxu1 %v10307_v54  ;;  %v10371_v53 = vld [vmem:[%s13615_s1 + $0x1130] ss:$12 sps:$4 sm:$0xff]  }
 0x301   : > { %5198 = vmatprep.subr.bf16.mxu0 %v10310_v55  ;;  %5241 = vmatprep.subr.bf16.mxu1 %v10644_v2  ;;  %v10374_v54 = vld [vmem:[%s13615_s1 + $0x1144] ss:$12 sps:$4 sm:$0xff]  }
 0x304   : > { %5199 = vmatpush1.bf16.msra.mxu0 %v10308_v56  ;;  %5242 = vmatpush1.bf16.msra.mxu1 %v10311_v57 }
 0x305   : > { %5200 = vmatprep.subr.bf16.mxu0 %v10314_v58  ;;  %5243 = vmatprep.subr.bf16.mxu1 %v10644_v2 }
 0x308   : > { %5201 = vmatpush1.bf16.msra.mxu0 %v10312_v40  ;;  %5244 = vmatpush1.bf16.msra.mxu1 %v10315_v59  ;;  %v10372_v40 = vld [vmem:[%s13615_s1 + $0x1140] ss:$12 sps:$4 sm:$0xff]   ;;  %v10375_v59 = vld [vmem:[%s13615_s1 + $0x1148] ss:$12 sps:$4 sm:$0xff]  }
 0x309   : > { %5482 = vmatprep.subr.bf16.mxu0 %v10318_v61  ;;  %5525 = vmatprep.subr.bf16.mxu1 %v10644_v2 }
 0x30b   : > { %5258 = vmatmul.mubr.bf16.vlgmr.msra.gmra.mrb[64].mxu1 %v5017_v62  ;;  %5215 = vmatmul.mubr.bf16.vlgmr.msra.gmra.mrb[0].mxu0 %v5017_v62  ;;  %v10378_v62 = vld [vmem:[%s13615_s1 + $0x115c] ss:$12 sps:$4 sm:$0xff]  }
 0x30c   : > { %5483 = vmatpush1.bf16.msra.mxu0 %v10316_v63  ;;  %5526 = vmatpush1.bf16.msra.mxu1 %v10319_v0  ;;  %v10376_v63 = vld [vmem:[%s13615_s1 + $0x1158] ss:$12 sps:$4 sm:$0xff]   ;;  %v10379_v0 = vld [vmem:[%s13615_s1 + $0x1160] ss:$12 sps:$4 sm:$0xff]  }
 0x30d   : > { %5484 = vmatprep.subr.bf16.mxu0 %v10322_v1  ;;  %5527 = vmatprep.subr.bf16.mxu1 %v10644_v2  ;;  %v10382_v1 = vld [vmem:[%s13615_s1 + $0x1174] ss:$12 sps:$4 sm:$0xff]  }
 0x30e   : > { %9018 = vmatprep.mubr.msk.bf16.mxu1 %vm428_vm0, %v12710_v3  ;;  %9017 = vmatprep.mubr.msk.bf16.mxu0 %vm428_vm0, %v12710_v3 }
 0x310   : > { %5485 = vmatpush1.bf16.msra.mxu0 %v10320_v4  ;;  %5528 = vmatpush1.bf16.msra.mxu1 %v10323_v5  ;;  %v10383_v4 = vld [vmem:[%s13615_s1 + $0x1178] ss:$12 sps:$4 sm:$0xff]  }
 0x311   : > { %5486 = vmatprep.subr.bf16.mxu0 %v10326_v6  ;;  %5529 = vmatprep.subr.bf16.mxu1 %v10644_v2  ;;  %v10386_v5 = vld [vmem:[%s13615_s1 + $0x118c] ss:$12 sps:$4 sm:$0xff]   ;;  %v10384_v6 = vld [vmem:[%s13615_s1 + $0x1188] ss:$12 sps:$4 sm:$0xff]  }
 0x314   : > { %5487 = vmatpush1.bf16.msra.mxu0 %v10324_v38  ;;  %5530 = vmatpush1.bf16.msra.mxu1 %v10327_v42  ;;  %v10387_v38 = vld [vmem:[%s13615_s1 + $0x1190] ss:$12 sps:$4 sm:$0xff]  }
 0x315   : > { %5488 = vmatprep.subr.bf16.mxu0 %v10330_v7  ;;  %5531 = vmatprep.subr.bf16.mxu1 %v10644_v2  ;;  %v10390_v42 = vld [vmem:[%s13615_s1 + $0x11a4] ss:$12 sps:$4 sm:$0xff]   ;;  %v10388_v7 = vld [vmem:[%s13615_s1 + $0x11a0] ss:$12 sps:$4 sm:$0xff]  }
 0x316   : > { %v3758_v12 = vpop.f32.mrb[44].mxu1 }
 0x317   : > { %v12747_v13 = vadd.f32 %v3758_v12, %v12633_v33  ;;  %v3760_v37 = vpop.f32.mrb[45].mxu1  ;;  %v5314_v33 = vpop.permute.xlu0 %5313  ;;  %v10395_v12 = vld [vmem:[%s13615_s1 + $0x11c0] ss:$12 sps:$4 sm:$0xff]  }
 0x318   : > { %v3761_v14 = vpop.f32.mrb[46].mxu1  ;;  %5489 = vmatpush1.bf16.msra.mxu0 %v10328_v8  ;;  %5532 = vmatpush1.bf16.msra.mxu1 %v10331_v9  ;;  %v5317_v34 = vsel %vm808_vm2, %v5314_v33, %v12710_v3  ;;  %v10380_v3 = vld [vmem:[%s13615_s1 + $0x1170] ss:$12 sps:$4 sm:$0xff]   ;;  %v10391_v8 = vld [vmem:[%s13615_s1 + $0x11a8] ss:$12 sps:$4 sm:$0xff]  }
 0x319   : > { %v12756_v45 = vadd.f32 %v3761_v14, %v12642_v43  ;;  %v3763_v18 = vpop.f32.mrb[47].mxu1  ;;  %5490 = vmatprep.subr.bf16.mxu0 %v10334_v10  ;;  %5533 = vmatprep.subr.bf16.mxu1 %v10644_v2  ;;  %v10362_v43 = vld [vmem:[%s13615_s1 + $0x10fc] ss:$12 sps:$4 sm:$0xff]   ;;  %v10392_v10 = vld [vmem:[%s13615_s1 + $0x11b8] ss:$12 sps:$4 sm:$0xff]  }
 0x31a   : > { %v10394_v9 = vld [vmem:[%s13615_s1 + $0x11bc] ss:$12 sps:$4 sm:$0xff]   ;;  %v10398_v37 = vld [vmem:[%s13615_s1 + $0x11d4] ss:$12 sps:$4 sm:$0xff]   ;;  %v12938_v18 = vpop.permute.xlu1 %5915 }
 0x31c   : > { %5491 = vmatpush1.bf16.msra.mxu0 %v10332_v16  ;;  %5534 = vmatpush1.bf16.msra.mxu1 %v10335_v17  ;;  %v10396_v16 = vld [vmem:[%s13615_s1 + $0x11d0] ss:$12 sps:$4 sm:$0xff]   ;;  %v10399_v17 = vld [vmem:[%s13615_s1 + $0x11d8] ss:$12 sps:$4 sm:$0xff]  }
 0x31d   : > { %5492 = vmatprep.subr.bf16.mxu0 %v10338_v21  ;;  %5535 = vmatprep.subr.bf16.mxu1 %v10644_v2  ;;  %v10400_v21 = vld [vmem:[%s13615_s1 + $0x11e8] ss:$12 sps:$4 sm:$0xff]  }
 0x320   : > { %5493 = vmatpush1.bf16.msra.mxu0 %v10336_v11  ;;  %5536 = vmatpush1.bf16.msra.mxu1 %v10339_v15  ;;  %v10403_v11 = vld [vmem:[%s13615_s1 + $0x11f0] ss:$12 sps:$4 sm:$0xff]  }
 0x321   : > { %5494 = vmatprep.subr.bf16.mxu0 %v10342_v22  ;;  %5537 = vmatprep.subr.bf16.mxu1 %v10644_v2  ;;  %v10406_v15 = vld [vmem:[%s13615_s1 + $0x1204] ss:$12 sps:$4 sm:$0xff]   ;;  %v10404_v22 = vld [vmem:[%s13615_s1 + $0x1200] ss:$12 sps:$4 sm:$0xff]  }
 0x324   : > { %5495 = vmatpush1.bf16.msra.mxu0 %v10340_v23  ;;  %5538 = vmatpush1.bf16.msra.mxu1 %v10343_v24  ;;  %v10407_v23 = vld [vmem:[%s13615_s1 + $0x1208] ss:$12 sps:$4 sm:$0xff]  }
 0x325   : > { %5496 = vmatprep.subr.bf16.mxu0 %v10346_v25  ;;  %5539 = vmatprep.subr.bf16.mxu1 %v10644_v2  ;;  %v10410_v24 = vld [vmem:[%s13615_s1 + $0x121c] ss:$12 sps:$4 sm:$0xff]   ;;  %v10408_v25 = vld [vmem:[%s13615_s1 + $0x1218] ss:$12 sps:$4 sm:$0xff]  }
 0x328   : > { %5497 = vmatpush1.bf16.msra.mxu0 %v10344_v26  ;;  %5540 = vmatpush1.bf16.msra.mxu1 %v10347_v39  ;;  %v10411_v26 = vld [vmem:[%s13615_s1 + $0x1220] ss:$12 sps:$4 sm:$0xff]  }
 0x329   : > { %5498 = vmatprep.subr.bf16.mxu0 %v10350_v27  ;;  %5541 = vmatprep.subr.bf16.mxu1 %v10644_v2  ;;  %v10414_v39 = vld [vmem:[%s13615_s1 + $0x1234] ss:$12 sps:$4 sm:$0xff]  }
 0x32c   : > { %5499 = vmatpush1.bf16.msra.mxu0 %v10348_v28  ;;  %5542 = vmatpush1.bf16.msra.mxu1 %v10351_v29 }
 0x32d   : > { %5500 = vmatprep.subr.bf16.mxu0 %v10354_v30  ;;  %5543 = vmatprep.subr.bf16.mxu1 %v10644_v2 }
 0x330   : > { %5501 = vmatpush1.bf16.msra.mxu0 %v10352_v31  ;;  %5544 = vmatpush1.bf16.msra.mxu1 %v10355_v32  ;;  %v10412_v31 = vld [vmem:[%s13615_s1 + $0x1230] ss:$12 sps:$4 sm:$0xff]   ;;  %v10415_v32 = vld [vmem:[%s13615_s1 + $0x1238] ss:$12 sps:$4 sm:$0xff]  }
 0x331   : > { %5782 = vmatprep.subr.bf16.mxu0 %v10358_v36  ;;  %5825 = vmatprep.subr.bf16.mxu1 %v10644_v2 }
 0x333   : > { %5558 = vmatmul.mubr.bf16.vlgmr.msra.gmra.mrb[68].mxu1 %v5317_v34  ;;  %5515 = vmatmul.mubr.bf16.vlgmr.msra.gmra.mrb[0].mxu0 %v5317_v34  ;;  %v10418_v34 = vld [vmem:[%s13615_s1 + $0x124c] ss:$12 sps:$4 sm:$0xff]  }
 0x334   : > { %5783 = vmatpush1.bf16.msra.mxu0 %v10356_v35  ;;  %5826 = vmatpush1.bf16.msra.mxu1 %v10359_v41  ;;  %v10416_v35 = vld [vmem:[%s13615_s1 + $0x1248] ss:$12 sps:$4 sm:$0xff]   ;;  %v10419_v41 = vld [vmem:[%s13615_s1 + $0x1250] ss:$12 sps:$4 sm:$0xff]  }
 0x335   : > { %5784 = vmatprep.subr.bf16.mxu0 %v10362_v43  ;;  %5827 = vmatprep.subr.bf16.mxu1 %v10644_v2  ;;  %v10422_v43 = vld [vmem:[%s13615_s1 + $0x1264] ss:$12 sps:$4 sm:$0xff]  }
 0x336   : > { %9090 = vmatprep.mubr.msk.bf16.mxu1 %vm428_vm0, %v12824_v44  ;;  %9089 = vmatprep.mubr.msk.bf16.mxu0 %vm428_vm0, %v12824_v44 }
 0x338   : > { %5785 = vmatpush1.bf16.msra.mxu0 %v10360_v47  ;;  %5828 = vmatpush1.bf16.msra.mxu1 %v10363_v48  ;;  %v10423_v47 = vld [vmem:[%s13615_s1 + $0x1268] ss:$12 sps:$4 sm:$0xff]  }
 0x339   : > { %5786 = vmatprep.subr.bf16.mxu0 %v10366_v49  ;;  %5829 = vmatprep.subr.bf16.mxu1 %v10644_v2  ;;  %v10426_v48 = vld [vmem:[%s13615_s1 + $0x127c] ss:$12 sps:$4 sm:$0xff]   ;;  %v10424_v49 = vld [vmem:[%s13615_s1 + $0x1278] ss:$12 sps:$4 sm:$0xff]  }
 0x33c   : > { %5787 = vmatpush1.bf16.msra.mxu0 %v10364_v50  ;;  %5830 = vmatpush1.bf16.msra.mxu1 %v10367_v51  ;;  %v10427_v50 = vld [vmem:[%s13615_s1 + $0x1280] ss:$12 sps:$4 sm:$0xff]  }
 0x33d   : > { %5788 = vmatprep.subr.bf16.mxu0 %v10370_v52  ;;  %5831 = vmatprep.subr.bf16.mxu1 %v10644_v2  ;;  %v10430_v51 = vld [vmem:[%s13615_s1 + $0x1294] ss:$12 sps:$4 sm:$0xff]   ;;  %v10428_v52 = vld [vmem:[%s13615_s1 + $0x1290] ss:$12 sps:$4 sm:$0xff]  }
 0x33e   : > { %v4058_v55 = vpop.f32.mrb[48].mxu1 }
 0x33f   : > { %v12861_v56 = vadd.f32 %v4058_v55, %v12747_v13  ;;  %v4060_v57 = vpop.f32.mrb[49].mxu1  ;;  %v5614_v13 = vpop.permute.xlu0 %5613  ;;  %v10435_v55 = vld [vmem:[%s13615_s1 + $0x12b0] ss:$12 sps:$4 sm:$0xff]  }
 0x340   : > { %v4061_v58 = vpop.f32.mrb[50].mxu1  ;;  %5789 = vmatpush1.bf16.msra.mxu0 %v10368_v46  ;;  %5832 = vmatpush1.bf16.msra.mxu1 %v10371_v53  ;;  %v5617_v14 = vsel %vm1109_vm3, %v5614_v13, %v12824_v44  ;;  %v10420_v44 = vld [vmem:[%s13615_s1 + $0x1260] ss:$12 sps:$4 sm:$0xff]   ;;  %v10431_v46 = vld [vmem:[%s13615_s1 + $0x1298] ss:$12 sps:$4 sm:$0xff]  }
 0x341   : > { %v12870_v60 = vadd.f32 %v4061_v58, %v12756_v45  ;;  %v4063_v61 = vpop.f32.mrb[51].mxu1  ;;  %5790 = vmatprep.subr.bf16.mxu0 %v10374_v54  ;;  %5833 = vmatprep.subr.bf16.mxu1 %v10644_v2  ;;  %v10402_v45 = vld [vmem:[%s13615_s1 + $0x11ec] ss:$12 sps:$4 sm:$0xff]   ;;  %v10432_v54 = vld [vmem:[%s13615_s1 + $0x12a8] ss:$12 sps:$4 sm:$0xff]  }
 0x342   : > { %v10434_v53 = vld [vmem:[%s13615_s1 + $0x12ac] ss:$12 sps:$4 sm:$0xff]   ;;  %v10438_v57 = vld [vmem:[%s13615_s1 + $0x12c4] ss:$12 sps:$4 sm:$0xff]   ;;  %v10458_v13 = vld [vmem:[%s13615_s1 + $0x133c] ss:$12 sps:$4 sm:$0xff]  }
 0x343   : > { %v10440_v61 = vld [vmem:[%s13615_s1 + $0x12d8] ss:$12 sps:$4 sm:$0xff]  }
 0x344   : > { %5791 = vmatpush1.bf16.msra.mxu0 %v10372_v40  ;;  %5834 = vmatpush1.bf16.msra.mxu1 %v10375_v59  ;;  %v10436_v40 = vld [vmem:[%s13615_s1 + $0x12c0] ss:$12 sps:$4 sm:$0xff]   ;;  %v10439_v59 = vld [vmem:[%s13615_s1 + $0x12c8] ss:$12 sps:$4 sm:$0xff]  }
 0x345   : > { %5792 = vmatprep.subr.bf16.mxu0 %v10378_v62  ;;  %5835 = vmatprep.subr.bf16.mxu1 %v10644_v2  ;;  %v10443_v62 = vld [vmem:[%s13615_s1 + $0x12e0] ss:$12 sps:$4 sm:$0xff]  }
 0x348   : > { %5793 = vmatpush1.bf16.msra.mxu0 %v10376_v63  ;;  %5836 = vmatpush1.bf16.msra.mxu1 %v10379_v0  ;;  %v10446_v63 = vld [vmem:[%s13615_s1 + $0x12f4] ss:$12 sps:$4 sm:$0xff]   ;;  %v10444_v0 = vld [vmem:[%s13615_s1 + $0x12f0] ss:$12 sps:$4 sm:$0xff]  }
 0x349   : > { %5794 = vmatprep.subr.bf16.mxu0 %v10382_v1  ;;  %5837 = vmatprep.subr.bf16.mxu1 %v10644_v2  ;;  %v10447_v1 = vld [vmem:[%s13615_s1 + $0x12f8] ss:$12 sps:$4 sm:$0xff]  }
 0x34c   : > { %5795 = vmatpush1.bf16.msra.mxu0 %v10380_v3  ;;  %5838 = vmatpush1.bf16.msra.mxu1 %v10383_v4  ;;  %v10450_v3 = vld [vmem:[%s13615_s1 + $0x130c] ss:$12 sps:$4 sm:$0xff]   ;;  %v10451_v4 = vld [vmem:[%s13615_s1 + $0x1310] ss:$12 sps:$4 sm:$0xff]  }
 0x34d   : > { %5796 = vmatprep.subr.bf16.mxu0 %v10386_v5  ;;  %5839 = vmatprep.subr.bf16.mxu1 %v10644_v2  ;;  %v10454_v5 = vld [vmem:[%s13615_s1 + $0x1324] ss:$12 sps:$4 sm:$0xff]  }
 0x350   : > { %5797 = vmatpush1.bf16.msra.mxu0 %v10384_v6  ;;  %5840 = vmatpush1.bf16.msra.mxu1 %v10387_v38 }
 0x351   : > { %5798 = vmatprep.subr.bf16.mxu0 %v10390_v42  ;;  %5841 = vmatprep.subr.bf16.mxu1 %v10644_v2 }
 0x354   : > { %5799 = vmatpush1.bf16.msra.mxu0 %v10388_v7  ;;  %5842 = vmatpush1.bf16.msra.mxu1 %v10391_v8  ;;  %v10452_v8 = vld [vmem:[%s13615_s1 + $0x1320] ss:$12 sps:$4 sm:$0xff]  }
 0x355   : > { %5800 = vmatprep.subr.bf16.mxu0 %v10394_v9  ;;  %5843 = vmatprep.subr.bf16.mxu1 %v10644_v2  ;;  %v10455_v9 = vld [vmem:[%s13615_s1 + $0x1328] ss:$12 sps:$4 sm:$0xff]  }
 0x358   : > { %5801 = vmatpush1.bf16.msra.mxu0 %v10392_v10  ;;  %5844 = vmatpush1.bf16.msra.mxu1 %v10395_v12 }
 0x359   : > { %6082 = vmatprep.subr.bf16.mxu0 %v10398_v37  ;;  %6125 = vmatprep.subr.bf16.mxu1 %v10644_v2  ;;  %v10456_v37 = vld [vmem:[%s13615_s1 + $0x1338] ss:$12 sps:$4 sm:$0xff]  }
 0x35b   : > { %5858 = vmatmul.mubr.bf16.vlgmr.msra.gmra.mrb[72].mxu1 %v5617_v14  ;;  %5815 = vmatmul.mubr.bf16.vlgmr.msra.gmra.mrb[0].mxu0 %v5617_v14  ;;  %v10459_v14 = vld [vmem:[%s13615_s1 + $0x1340] ss:$12 sps:$4 sm:$0xff]  }
 0x35c   : > { %6083 = vmatpush1.bf16.msra.mxu0 %v10396_v16  ;;  %6126 = vmatpush1.bf16.msra.mxu1 %v10399_v17  ;;  %v10462_v16 = vld [vmem:[%s13615_s1 + $0x1354] ss:$12 sps:$4 sm:$0xff]   ;;  %v10460_v17 = vld [vmem:[%s13615_s1 + $0x1350] ss:$12 sps:$4 sm:$0xff]  }
 0x35d   : > { %6084 = vmatprep.subr.bf16.mxu0 %v10402_v45  ;;  %6127 = vmatprep.subr.bf16.mxu1 %v10644_v2  ;;  %v10463_v45 = vld [vmem:[%s13615_s1 + $0x1358] ss:$12 sps:$4 sm:$0xff]  }
 0x35e   : > { %9162 = vmatprep.mubr.msk.bf16.mxu1 %vm428_vm0, %v12938_v18  ;;  %9161 = vmatprep.mubr.msk.bf16.mxu0 %vm428_vm0, %v12938_v18 }
 0x360   : > { %6085 = vmatpush1.bf16.msra.mxu0 %v10400_v21  ;;  %6128 = vmatpush1.bf16.msra.mxu1 %v10403_v11  ;;  %v10464_v21 = vld [vmem:[%s13615_s1 + $0x1368] ss:$12 sps:$4 sm:$0xff]   ;;  %v10467_v11 = vld [vmem:[%s13615_s1 + $0x1370] ss:$12 sps:$4 sm:$0xff]  }
 0x361   : > { %6086 = vmatprep.subr.bf16.mxu0 %v10406_v15  ;;  %6129 = vmatprep.subr.bf16.mxu1 %v10644_v2  ;;  %v10470_v15 = vld [vmem:[%s13615_s1 + $0x1384] ss:$12 sps:$4 sm:$0xff]  }
 0x364   : > { %6087 = vmatpush1.bf16.msra.mxu0 %v10404_v22  ;;  %6130 = vmatpush1.bf16.msra.mxu1 %v10407_v23  ;;  %v10468_v22 = vld [vmem:[%s13615_s1 + $0x1380] ss:$12 sps:$4 sm:$0xff]   ;;  %v10471_v23 = vld [vmem:[%s13615_s1 + $0x1388] ss:$12 sps:$4 sm:$0xff]  }
 0x365   : > { %6088 = vmatprep.subr.bf16.mxu0 %v10410_v24  ;;  %6131 = vmatprep.subr.bf16.mxu1 %v10644_v2  ;;  %v10474_v24 = vld [vmem:[%s13615_s1 + $0x139c] ss:$12 sps:$4 sm:$0xff]  }
 0x366   : > { %v4358_v27 = vpop.f32.mrb[52].mxu1 }
 0x367   : > { %v12975_v28 = vadd.f32 %v4358_v27, %v12861_v56  ;;  %v4360_v29 = vpop.f32.mrb[53].mxu1  ;;  %v5914_v56 = vpop.permute.xlu0 %5913  ;;  %v10476_v27 = vld [vmem:[%s13615_s1 + $0x13b0] ss:$12 sps:$4 sm:$0xff]  }
 0x368   : > { %v4361_v30 = vpop.f32.mrb[54].mxu1  ;;  %6089 = vmatpush1.bf16.msra.mxu0 %v10408_v25  ;;  %6132 = vmatpush1.bf16.msra.mxu1 %v10411_v26  ;;  %v5917_v58 = vsel %vm1410_vm4, %v5914_v56, %v12938_v18  ;;  %v10466_v18 = vld [vmem:[%s13615_s1 + $0x136c] ss:$12 sps:$4 sm:$0xff]   ;;  %v10502_v56 = vld [vmem:[%s13615_s1 + $0x1444] ss:$12 sps:$4 sm:$0xff]  }
 0x369   : > { %v12984_v33 = vadd.f32 %v4361_v30, %v12870_v60  ;;  %v4363_v36 = vpop.f32.mrb[55].mxu1  ;;  %6090 = vmatprep.subr.bf16.mxu0 %v10414_v39  ;;  %6133 = vmatprep.subr.bf16.mxu1 %v10644_v2  ;;  %v10442_v60 = vld [vmem:[%s13615_s1 + $0x12dc] ss:$12 sps:$4 sm:$0xff]   ;;  %v10472_v25 = vld [vmem:[%s13615_s1 + $0x1398] ss:$12 sps:$4 sm:$0xff]   ;;  %v13164_v30 = vpop.permute.xlu1 %6512 }
 0x36a   : > { %v10475_v26 = vld [vmem:[%s13615_s1 + $0x13a0] ss:$12 sps:$4 sm:$0xff]   ;;  %v10487_v36 = vld [vmem:[%s13615_s1 + $0x13e8] ss:$12 sps:$4 sm:$0xff]  }
 0x36b   : > { %v10478_v39 = vld [vmem:[%s13615_s1 + $0x13b4] ss:$12 sps:$4 sm:$0xff]   ;;  %v10482_v29 = vld [vmem:[%s13615_s1 + $0x13cc] ss:$12 sps:$4 sm:$0xff]  }
 0x36c   : > { %6091 = vmatpush1.bf16.msra.mxu0 %v10412_v31  ;;  %6134 = vmatpush1.bf16.msra.mxu1 %v10415_v32  ;;  %v10480_v31 = vld [vmem:[%s13615_s1 + $0x13c8] ss:$12 sps:$4 sm:$0xff]   ;;  %v10483_v32 = vld [vmem:[%s13615_s1 + $0x13d0] ss:$12 sps:$4 sm:$0xff]  }
 0x36d   : > { %6092 = vmatprep.subr.bf16.mxu0 %v10418_v34  ;;  %6135 = vmatprep.subr.bf16.mxu1 %v10644_v2  ;;  %v10490_v34 = vld [vmem:[%s13615_s1 + $0x13fc] ss:$12 sps:$4 sm:$0xff]  }
 0x370   : > { %6093 = vmatpush1.bf16.msra.mxu0 %v10416_v35  ;;  %6136 = vmatpush1.bf16.msra.mxu1 %v10419_v41  ;;  %v10488_v35 = vld [vmem:[%s13615_s1 + $0x13f8] ss:$12 sps:$4 sm:$0xff]   ;;  %v10491_v41 = vld [vmem:[%s13615_s1 + $0x1400] ss:$12 sps:$4 sm:$0xff]  }
 0x371   : > { %6094 = vmatprep.subr.bf16.mxu0 %v10422_v43  ;;  %6137 = vmatprep.subr.bf16.mxu1 %v10644_v2  ;;  %v10494_v43 = vld [vmem:[%s13615_s1 + $0x1414] ss:$12 sps:$4 sm:$0xff]  }
 0x374   : > { %6095 = vmatpush1.bf16.msra.mxu0 %v10420_v44  ;;  %6138 = vmatpush1.bf16.msra.mxu1 %v10423_v47 }
 0x375   : > { %6096 = vmatprep.subr.bf16.mxu0 %v10426_v48  ;;  %6139 = vmatprep.subr.bf16.mxu1 %v10644_v2 }
 0x378   : > { %6097 = vmatpush1.bf16.msra.mxu0 %v10424_v49  ;;  %6140 = vmatpush1.bf16.msra.mxu1 %v10427_v50  ;;  %v10492_v50 = vld [vmem:[%s13615_s1 + $0x1410] ss:$12 sps:$4 sm:$0xff]  }
 0x379   : > { %6098 = vmatprep.subr.bf16.mxu0 %v10430_v51  ;;  %6141 = vmatprep.subr.bf16.mxu1 %v10644_v2  ;;  %v10495_v51 = vld [vmem:[%s13615_s1 + $0x1418] ss:$12 sps:$4 sm:$0xff]  }
 0x37c   : > { %6099 = vmatpush1.bf16.msra.mxu0 %v10428_v52  ;;  %6142 = vmatpush1.bf16.msra.mxu1 %v10431_v46 }
 0x37d   : > { %6100 = vmatprep.subr.bf16.mxu0 %v10434_v53  ;;  %6143 = vmatprep.subr.bf16.mxu1 %v10644_v2  ;;  %v10498_v53 = vld [vmem:[%s13615_s1 + $0x142c] ss:$12 sps:$4 sm:$0xff]  }
 0x380   : > { %6101 = vmatpush1.bf16.msra.mxu0 %v10432_v54  ;;  %6144 = vmatpush1.bf16.msra.mxu1 %v10435_v55  ;;  %v10496_v54 = vld [vmem:[%s13615_s1 + $0x1428] ss:$12 sps:$4 sm:$0xff]   ;;  %v10499_v55 = vld [vmem:[%s13615_s1 + $0x1430] ss:$12 sps:$4 sm:$0xff]  }
 0x381   : > { %6379 = vmatprep.subr.bf16.mxu0 %v10438_v57  ;;  %6422 = vmatprep.subr.bf16.mxu1 %v10644_v2  ;;  %v10500_v57 = vld [vmem:[%s13615_s1 + $0x1440] ss:$12 sps:$4 sm:$0xff]  }
 0x383   : > { %6158 = vmatmul.mubr.bf16.vlgmr.msra.gmra.mrb[76].mxu1 %v5917_v58  ;;  %6115 = vmatmul.mubr.bf16.vlgmr.msra.gmra.mrb[0].mxu0 %v5917_v58  ;;  %v10503_v58 = vld [vmem:[%s13615_s1 + $0x1448] ss:$12 sps:$4 sm:$0xff]  }
 0x384   : > { %6380 = vmatpush1.bf16.msra.mxu0 %v10436_v40  ;;  %6423 = vmatpush1.bf16.msra.mxu1 %v10439_v59  ;;  %v10506_v40 = vld [vmem:[%s13615_s1 + $0x145c] ss:$12 sps:$4 sm:$0xff]   ;;  %v10504_v59 = vld [vmem:[%s13615_s1 + $0x1458] ss:$12 sps:$4 sm:$0xff]  }
 0x385   : > { %6381 = vmatprep.subr.bf16.mxu0 %v10442_v60  ;;  %6424 = vmatprep.subr.bf16.mxu1 %v10644_v2  ;;  %v10507_v60 = vld [vmem:[%s13615_s1 + $0x1460] ss:$12 sps:$4 sm:$0xff]  }
 0x386   : > { %9234 = vmatprep.mubr.msk.bf16.mxu1 %vm428_vm0, %v12559_v19  ;;  %9233 = vmatprep.mubr.msk.bf16.mxu0 %vm428_vm0, %v12559_v19  ;;  %v10448_v19 = vld [vmem:[%s13615_s1 + $0x1308] ss:$12 sps:$4 sm:$0xff]  }
 0x388   : > { %6382 = vmatpush1.bf16.msra.mxu0 %v10440_v61  ;;  %6425 = vmatpush1.bf16.msra.mxu1 %v10443_v62  ;;  %v10510_v61 = vld [vmem:[%s13615_s1 + $0x1474] ss:$12 sps:$4 sm:$0xff]   ;;  %v10508_v62 = vld [vmem:[%s13615_s1 + $0x1470] ss:$12 sps:$4 sm:$0xff]  }
 0x389   : > { %6383 = vmatprep.subr.bf16.mxu0 %v10446_v63  ;;  %6426 = vmatprep.subr.bf16.mxu1 %v10644_v2  ;;  %v10511_v63 = vld [vmem:[%s13615_s1 + $0x1478] ss:$12 sps:$4 sm:$0xff]  }
 0x38c   : > { %6384 = vmatpush1.bf16.msra.mxu0 %v10444_v0  ;;  %6427 = vmatpush1.bf16.msra.mxu1 %v10447_v1  ;;  %v10514_v0 = vld [vmem:[%s13615_s1 + $0x148c] ss:$12 sps:$4 sm:$0xff]   ;;  %v10512_v1 = vld [vmem:[%s13615_s1 + $0x1488] ss:$12 sps:$4 sm:$0xff]  }
 0x38d   : > { %6385 = vmatprep.subr.bf16.mxu0 %v10450_v3  ;;  %6428 = vmatprep.subr.bf16.mxu1 %v10644_v2  ;;  %v10515_v3 = vld [vmem:[%s13615_s1 + $0x1490] ss:$12 sps:$4 sm:$0xff]  }
 0x38e   : > { %v4658_v6 = vpop.f32.mrb[56].mxu1 }
 0x38f   : > { %v13087_v38 = vadd.f32 %v4658_v6, %v12975_v28  ;;  %v4660_v42 = vpop.f32.mrb[57].mxu1  ;;  %v10479_v28 = vld [vmem:[%s13615_s1 + $0x13b8] ss:$12 sps:$4 sm:$0xff]   ;;  %v10516_v6 = vld [vmem:[%s13615_s1 + $0x14a0] ss:$12 sps:$4 sm:$0xff]  }
 0x390   : > { %v4661_v7 = vpop.f32.mrb[58].mxu1  ;;  %6386 = vmatpush1.bf16.msra.mxu0 %v10448_v19  ;;  %6429 = vmatpush1.bf16.msra.mxu1 %v10451_v4  ;;  %v6511_v19 = vpop.permute.xlu0 %6510  ;;  %v10518_v4 = vld [vmem:[%s13615_s1 + $0x14a4] ss:$12 sps:$4 sm:$0xff]   ;;  %v10522_v42 = vld [vmem:[%s13615_s1 + $0x14bc] ss:$12 sps:$4 sm:$0xff]  }
 0x391   : > { %v13096_v10 = vadd.f32 %v4661_v7, %v12984_v33  ;;  %v4663_v12 = vpop.f32.mrb[59].mxu1  ;;  %6387 = vmatprep.subr.bf16.mxu0 %v10454_v5  ;;  %6430 = vmatprep.subr.bf16.mxu1 %v10644_v2  ;;  %v10486_v33 = vld [vmem:[%s13615_s1 + $0x13e4] ss:$12 sps:$4 sm:$0xff]   ;;  %v6514_v5 = vsel %vm265_vm1, %v6511_v19, %v13164_v30  ;;  %v13278_v7 = vpop.permute.xlu1 %6812  ;;  %v10578_v19 = vld [vmem:[%s13615_s1 + $0x160c] ss:$12 sps:$4 sm:$0xff]  }
 0x392   : > { %v10524_v12 = vld [vmem:[%s13615_s1 + $0x14d0] ss:$12 sps:$4 sm:$0xff]  }
 0x394   : > { %6388 = vmatpush1.bf16.msra.mxu0 %v10452_v8  ;;  %6431 = vmatpush1.bf16.msra.mxu1 %v10455_v9  ;;  %v10520_v8 = vld [vmem:[%s13615_s1 + $0x14b8] ss:$12 sps:$4 sm:$0xff]   ;;  %v10523_v9 = vld [vmem:[%s13615_s1 + $0x14c0] ss:$12 sps:$4 sm:$0xff]  }
 0x395   : > { %6389 = vmatprep.subr.bf16.mxu0 %v10458_v13  ;;  %6432 = vmatprep.subr.bf16.mxu1 %v10644_v2  ;;  %v10527_v13 = vld [vmem:[%s13615_s1 + $0x14d8] ss:$12 sps:$4 sm:$0xff]  }
 0x398   : > { %6390 = vmatpush1.bf16.msra.mxu0 %v10456_v37  ;;  %6433 = vmatpush1.bf16.msra.mxu1 %v10459_v14  ;;  %v10530_v37 = vld [vmem:[%s13615_s1 + $0x14ec] ss:$12 sps:$4 sm:$0xff]   ;;  %v10528_v14 = vld [vmem:[%s13615_s1 + $0x14e8] ss:$12 sps:$4 sm:$0xff]  }
 0x399   : > { %6391 = vmatprep.subr.bf16.mxu0 %v10462_v16  ;;  %6434 = vmatprep.subr.bf16.mxu1 %v10644_v2  ;;  %v10531_v16 = vld [vmem:[%s13615_s1 + $0x14f0] ss:$12 sps:$4 sm:$0xff]  }
 0x39c   : > { %6392 = vmatpush1.bf16.msra.mxu0 %v10460_v17  ;;  %6435 = vmatpush1.bf16.msra.mxu1 %v10463_v45  ;;  %v10534_v17 = vld [vmem:[%s13615_s1 + $0x1504] ss:$12 sps:$4 sm:$0xff]  }
 0x39d   : > { %6393 = vmatprep.subr.bf16.mxu0 %v10466_v18  ;;  %6436 = vmatprep.subr.bf16.mxu1 %v10644_v2 }
 0x3a0   : > { %6394 = vmatpush1.bf16.msra.mxu0 %v10464_v21  ;;  %6437 = vmatpush1.bf16.msra.mxu1 %v10467_v11 }
 0x3a1   : > { %6395 = vmatprep.subr.bf16.mxu0 %v10470_v15  ;;  %6438 = vmatprep.subr.bf16.mxu1 %v10644_v2  ;;  %v10532_v15 = vld [vmem:[%s13615_s1 + $0x1500] ss:$12 sps:$4 sm:$0xff]  }
 0x3a4   : > { %6396 = vmatpush1.bf16.msra.mxu0 %v10468_v22  ;;  %6439 = vmatpush1.bf16.msra.mxu1 %v10471_v23  ;;  %v10535_v22 = vld [vmem:[%s13615_s1 + $0x1508] ss:$12 sps:$4 sm:$0xff]  }
 0x3a5   : > { %6397 = vmatprep.subr.bf16.mxu0 %v10474_v24  ;;  %6440 = vmatprep.subr.bf16.mxu1 %v10644_v2 }
 0x3a8   : > { %6398 = vmatpush1.bf16.msra.mxu0 %v10472_v25  ;;  %6441 = vmatpush1.bf16.msra.mxu1 %v10475_v26  ;;  %v10538_v25 = vld [vmem:[%s13615_s1 + $0x151c] ss:$12 sps:$4 sm:$0xff]   ;;  %v10536_v26 = vld [vmem:[%s13615_s1 + $0x1518] ss:$12 sps:$4 sm:$0xff]  }
 0x3a9   : > { %6679 = vmatprep.subr.bf16.mxu0 %v10478_v39  ;;  %6722 = vmatprep.subr.bf16.mxu1 %v10644_v2  ;;  %v10539_v39 = vld [vmem:[%s13615_s1 + $0x1520] ss:$12 sps:$4 sm:$0xff]  }
 0x3ab   : > { %6455 = vmatmul.mubr.bf16.vlgmr.msra.gmra.mrb[80].mxu1 %v12562_v20  ;;  %6412 = vmatmul.mubr.bf16.vlgmr.msra.gmra.mrb[0].mxu0 %v12562_v20  ;;  %v10484_v20 = vld [vmem:[%s13615_s1 + $0x13e0] ss:$12 sps:$4 sm:$0xff]  }
 0x3ac   : > { %6680 = vmatpush1.bf16.msra.mxu0 %v10476_v27  ;;  %6723 = vmatpush1.bf16.msra.mxu1 %v10479_v28  ;;  %v10542_v27 = vld [vmem:[%s13615_s1 + $0x1534] ss:$12 sps:$4 sm:$0xff]   ;;  %v10540_v28 = vld [vmem:[%s13615_s1 + $0x1530] ss:$12 sps:$4 sm:$0xff]  }
 0x3ad   : > { %6681 = vmatprep.subr.bf16.mxu0 %v10482_v29  ;;  %6724 = vmatprep.subr.bf16.mxu1 %v10644_v2  ;;  %v10543_v29 = vld [vmem:[%s13615_s1 + $0x1538] ss:$12 sps:$4 sm:$0xff]  }
 0x3ae   : > { %9306 = vmatprep.mubr.msk.bf16.mxu1 %vm428_vm0, %v13164_v30  ;;  %9305 = vmatprep.mubr.msk.bf16.mxu0 %vm428_vm0, %v13164_v30  ;;  %v10546_v30 = vld [vmem:[%s13615_s1 + $0x154c] ss:$12 sps:$4 sm:$0xff]  }
 0x3b0   : > { %6682 = vmatpush1.bf16.msra.mxu0 %v10480_v31  ;;  %6725 = vmatpush1.bf16.msra.mxu1 %v10483_v32  ;;  %v10544_v31 = vld [vmem:[%s13615_s1 + $0x1548] ss:$12 sps:$4 sm:$0xff]   ;;  %v10547_v32 = vld [vmem:[%s13615_s1 + $0x1550] ss:$12 sps:$4 sm:$0xff]  }
 0x3b1   : > { %6683 = vmatprep.subr.bf16.mxu0 %v10486_v33  ;;  %6726 = vmatprep.subr.bf16.mxu1 %v10644_v2  ;;  %v10550_v33 = vld [vmem:[%s13615_s1 + $0x1564] ss:$12 sps:$4 sm:$0xff]  }
 0x3b4   : > { %6684 = vmatpush1.bf16.msra.mxu0 %v10484_v20  ;;  %6727 = vmatpush1.bf16.msra.mxu1 %v10487_v36  ;;  %v10548_v20 = vld [vmem:[%s13615_s1 + $0x1560] ss:$12 sps:$4 sm:$0xff]   ;;  %v10551_v36 = vld [vmem:[%s13615_s1 + $0x1568] ss:$12 sps:$4 sm:$0xff]  }
 0x3b5   : > { %6685 = vmatprep.subr.bf16.mxu0 %v10490_v34  ;;  %6728 = vmatprep.subr.bf16.mxu1 %v10644_v2  ;;  %v10554_v34 = vld [vmem:[%s13615_s1 + $0x157c] ss:$12 sps:$4 sm:$0xff]  }
 0x3b6   : > { %v4959_v44 = vpop.f32.mrb[60].mxu1 }
 0x3b7   : > { %v13201_v47 = vadd.f32 %v4959_v44, %v13087_v38  ;;  %v4961_v48 = vpop.f32.mrb[61].mxu1  ;;  %v10519_v38 = vld [vmem:[%s13615_s1 + $0x14a8] ss:$12 sps:$4 sm:$0xff]  }
 0x3b8   : > { %v4962_v49 = vpop.f32.mrb[62].mxu1  ;;  %6686 = vmatpush1.bf16.msra.mxu0 %v10488_v35  ;;  %6729 = vmatpush1.bf16.msra.mxu1 %v10491_v41  ;;  %v10552_v35 = vld [vmem:[%s13615_s1 + $0x1578] ss:$12 sps:$4 sm:$0xff]   ;;  %v10555_v41 = vld [vmem:[%s13615_s1 + $0x1580] ss:$12 sps:$4 sm:$0xff]  }
 0x3b9   : > { %v13210_v52 = vadd.f32 %v4962_v49, %v13096_v10  ;;  %v4964_v46 = vpop.f32.mrb[63].mxu1  ;;  %6687 = vmatprep.subr.bf16.mxu0 %v10494_v43  ;;  %6730 = vmatprep.subr.bf16.mxu1 %v10644_v2  ;;  %v10526_v10 = vld [vmem:[%s13615_s1 + $0x14d4] ss:$12 sps:$4 sm:$0xff]   ;;  %v6811_v43 = vpop.permute.xlu0 %6810  ;;  %v10556_v48 = vld [vmem:[%s13615_s1 + $0x1590] ss:$12 sps:$4 sm:$0xff]  }
 0x3ba   : > { %v10558_v44 = vld [vmem:[%s13615_s1 + $0x1594] ss:$12 sps:$4 sm:$0xff]   ;;  %v10559_v49 = vld [vmem:[%s13615_s1 + $0x1598] ss:$12 sps:$4 sm:$0xff]   ;;  %v10563_v46 = vld [vmem:[%s13615_s1 + $0x15b0] ss:$12 sps:$4 sm:$0xff]  }
 0x3bc   : > { %6688 = vmatpush1.bf16.msra.mxu0 %v10492_v50  ;;  %6731 = vmatpush1.bf16.msra.mxu1 %v10495_v51  ;;  %v10562_v50 = vld [vmem:[%s13615_s1 + $0x15ac] ss:$12 sps:$4 sm:$0xff]   ;;  %v13392_v51 = vpop.permute.xlu1 %7112 }
 0x3bd   : > { %6689 = vmatprep.subr.bf16.mxu0 %v10498_v53  ;;  %6732 = vmatprep.subr.bf16.mxu1 %v10644_v2  ;;  %v10566_v53 = vld [vmem:[%s13615_s1 + $0x15c4] ss:$12 sps:$4 sm:$0xff]  }
 0x3c0   : > { %6690 = vmatpush1.bf16.msra.mxu0 %v10496_v54  ;;  %6733 = vmatpush1.bf16.msra.mxu1 %v10499_v55  ;;  %v10564_v54 = vld [vmem:[%s13615_s1 + $0x15c0] ss:$12 sps:$4 sm:$0xff]   ;;  %v10567_v55 = vld [vmem:[%s13615_s1 + $0x15c8] ss:$12 sps:$4 sm:$0xff]  }
 0x3c1   : > { %6691 = vmatprep.subr.bf16.mxu0 %v10502_v56  ;;  %6734 = vmatprep.subr.bf16.mxu1 %v10644_v2  ;;  %v10570_v56 = vld [vmem:[%s13615_s1 + $0x15dc] ss:$12 sps:$4 sm:$0xff]  }
 0x3c4   : > { %6692 = vmatpush1.bf16.msra.mxu0 %v10500_v57  ;;  %6735 = vmatpush1.bf16.msra.mxu1 %v10503_v58  ;;  %v10568_v57 = vld [vmem:[%s13615_s1 + $0x15d8] ss:$12 sps:$4 sm:$0xff]   ;;  %v10571_v58 = vld [vmem:[%s13615_s1 + $0x15e0] ss:$12 sps:$4 sm:$0xff]  }
 0x3c5   : > { %6693 = vmatprep.subr.bf16.mxu0 %v10506_v40  ;;  %6736 = vmatprep.subr.bf16.mxu1 %v10644_v2  ;;  %v10574_v40 = vld [vmem:[%s13615_s1 + $0x15f4] ss:$12 sps:$4 sm:$0xff]  }
 0x3c8   : > { %6694 = vmatpush1.bf16.msra.mxu0 %v10504_v59  ;;  %6737 = vmatpush1.bf16.msra.mxu1 %v10507_v60 }
 0x3c9   : > { %6695 = vmatprep.subr.bf16.mxu0 %v10510_v61  ;;  %6738 = vmatprep.subr.bf16.mxu1 %v10644_v2 }
 0x3cc   : > { %6696 = vmatpush1.bf16.msra.mxu0 %v10508_v62  ;;  %6739 = vmatpush1.bf16.msra.mxu1 %v10511_v63  ;;  %v10572_v63 = vld [vmem:[%s13615_s1 + $0x15f0] ss:$12 sps:$4 sm:$0xff]  }
 0x3cd   : > { %6697 = vmatprep.subr.bf16.mxu0 %v10514_v0  ;;  %6740 = vmatprep.subr.bf16.mxu1 %v10644_v2  ;;  %v10575_v0 = vld [vmem:[%s13615_s1 + $0x15f8] ss:$12 sps:$4 sm:$0xff]  }
 0x3d0   : > { %6698 = vmatpush1.bf16.msra.mxu0 %v10512_v1  ;;  %6741 = vmatpush1.bf16.msra.mxu1 %v10515_v3 }
 0x3d1   : > { %6979 = vmatprep.subr.bf16.mxu0 %v10518_v4  ;;  %7022 = vmatprep.subr.bf16.mxu1 %v10644_v2  ;;  %v10576_v4 = vld [vmem:[%s13615_s1 + $0x1608] ss:$12 sps:$4 sm:$0xff]  }
 0x3d3   : > { %6755 = vmatmul.mubr.bf16.vlgmr.msra.gmra.mrb[84].mxu1 %v6514_v5  ;;  %6712 = vmatmul.mubr.bf16.vlgmr.msra.gmra.mrb[0].mxu0 %v6514_v5  ;;  %v10579_v5 = vld [vmem:[%s13615_s1 + $0x1610] ss:$12 sps:$4 sm:$0xff]  }
 0x3d4   : > { %6980 = vmatpush1.bf16.msra.mxu0 %v10516_v6  ;;  %7023 = vmatpush1.bf16.msra.mxu1 %v10519_v38  ;;  %v10582_v6 = vld [vmem:[%s13615_s1 + $0x1624] ss:$12 sps:$4 sm:$0xff]   ;;  %v10580_v38 = vld [vmem:[%s13615_s1 + $0x1620] ss:$12 sps:$4 sm:$0xff]  }
 0x3d5   : > { %6981 = vmatprep.subr.bf16.mxu0 %v10522_v42  ;;  %7024 = vmatprep.subr.bf16.mxu1 %v10644_v2  ;;  %v10583_v42 = vld [vmem:[%s13615_s1 + $0x1628] ss:$12 sps:$4 sm:$0xff]  }
 0x3d6   : > { %9378 = vmatprep.mubr.msk.bf16.mxu1 %vm428_vm0, %v13278_v7  ;;  %9377 = vmatprep.mubr.msk.bf16.mxu0 %vm428_vm0, %v13278_v7 }
 0x3d8   : > { %6982 = vmatpush1.bf16.msra.mxu0 %v10520_v8  ;;  %7025 = vmatpush1.bf16.msra.mxu1 %v10523_v9  ;;  %v10584_v8 = vld [vmem:[%s13615_s1 + $0x1638] ss:$12 sps:$4 sm:$0xff]   ;;  %v10587_v9 = vld [vmem:[%s13615_s1 + $0x1640] ss:$12 sps:$4 sm:$0xff]  }
 0x3d9   : > { %6983 = vmatprep.subr.bf16.mxu0 %v10526_v10  ;;  %7026 = vmatprep.subr.bf16.mxu1 %v10644_v2  ;;  %v10590_v10 = vld [vmem:[%s13615_s1 + $0x1654] ss:$12 sps:$4 sm:$0xff]  }
 0x3dc   : > { %6984 = vmatpush1.bf16.msra.mxu0 %v10524_v12  ;;  %7027 = vmatpush1.bf16.msra.mxu1 %v10527_v13  ;;  %v10588_v12 = vld [vmem:[%s13615_s1 + $0x1650] ss:$12 sps:$4 sm:$0xff]   ;;  %v10591_v13 = vld [vmem:[%s13615_s1 + $0x1658] ss:$12 sps:$4 sm:$0xff]  }
 0x3dd   : > { %6985 = vmatprep.subr.bf16.mxu0 %v10530_v37  ;;  %7028 = vmatprep.subr.bf16.mxu1 %v10644_v2  ;;  %v10594_v37 = vld [vmem:[%s13615_s1 + $0x166c] ss:$12 sps:$4 sm:$0xff]  }
 0x3de   : > { %v5259_v45 = vpop.f32.mrb[64].mxu1 }
 0x3df   : > { %v13315_v18 = vadd.f32 %v5259_v45, %v13201_v47  ;;  %v5261_v21 = vpop.f32.mrb[65].mxu1  ;;  %v6814_v47 = vsel %vm808_vm2, %v6811_v43, %v13278_v7  ;;  %v10586_v7 = vld [vmem:[%s13615_s1 + $0x163c] ss:$12 sps:$4 sm:$0xff]   ;;  %v10598_v45 = vld [vmem:[%s13615_s1 + $0x1684] ss:$12 sps:$4 sm:$0xff]  }
 0x3e0   : > { %v5262_v11 = vpop.f32.mrb[66].mxu1  ;;  %6986 = vmatpush1.bf16.msra.mxu0 %v10528_v14  ;;  %7029 = vmatpush1.bf16.msra.mxu1 %v10531_v16  ;;  %v10592_v14 = vld [vmem:[%s13615_s1 + $0x1668] ss:$12 sps:$4 sm:$0xff]   ;;  %v10595_v16 = vld [vmem:[%s13615_s1 + $0x1670] ss:$12 sps:$4 sm:$0xff]  }
 0x3e1   : > { %v13324_v23 = vadd.f32 %v5262_v11, %v13210_v52  ;;  %v5264_v24 = vpop.f32.mrb[67].mxu1  ;;  %6987 = vmatprep.subr.bf16.mxu0 %v10534_v17  ;;  %7030 = vmatprep.subr.bf16.mxu1 %v10644_v2  ;;  %v10560_v52 = vld [vmem:[%s13615_s1 + $0x15a8] ss:$12 sps:$4 sm:$0xff]   ;;  %v7111_v17 = vpop.permute.xlu0 %7110  ;;  %v10596_v21 = vld [vmem:[%s13615_s1 + $0x1680] ss:$12 sps:$4 sm:$0xff]  }
 0x3e2   : > { %v10599_v11 = vld [vmem:[%s13615_s1 + $0x1688] ss:$12 sps:$4 sm:$0xff]   ;;  %v10603_v24 = vld [vmem:[%s13615_s1 + $0x16a0] ss:$12 sps:$4 sm:$0xff]  }
 0x3e3   : > { %v10618_v43 = vld [vmem:[%s13615_s1 + $0x16fc] ss:$12 sps:$4 sm:$0xff]  }
 0x3e4   : > { %6988 = vmatpush1.bf16.msra.mxu0 %v10532_v15  ;;  %7031 = vmatpush1.bf16.msra.mxu1 %v10535_v22  ;;  %v10602_v15 = vld [vmem:[%s13615_s1 + $0x169c] ss:$12 sps:$4 sm:$0xff]   ;;  %v13506_v22 = vpop.permute.xlu1 %7412 }
 0x3e5   : > { %6989 = vmatprep.subr.bf16.mxu0 %v10538_v25  ;;  %7032 = vmatprep.subr.bf16.mxu1 %v10644_v2  ;;  %v10606_v25 = vld [vmem:[%s13615_s1 + $0x16b4] ss:$12 sps:$4 sm:$0xff]  }
 0x3e8   : > { %6990 = vmatpush1.bf16.msra.mxu0 %v10536_v26  ;;  %7033 = vmatpush1.bf16.msra.mxu1 %v10539_v39  ;;  %v10604_v26 = vld [vmem:[%s13615_s1 + $0x16b0] ss:$12 sps:$4 sm:$0xff]   ;;  %v10607_v39 = vld [vmem:[%s13615_s1 + $0x16b8] ss:$12 sps:$4 sm:$0xff]  }
 0x3e9   : > { %6991 = vmatprep.subr.bf16.mxu0 %v10542_v27  ;;  %7034 = vmatprep.subr.bf16.mxu1 %v10644_v2  ;;  %v10610_v27 = vld [vmem:[%s13615_s1 + $0x16cc] ss:$12 sps:$4 sm:$0xff]  }
 0x3ec   : > { %6992 = vmatpush1.bf16.msra.mxu0 %v10540_v28  ;;  %7035 = vmatpush1.bf16.msra.mxu1 %v10543_v29  ;;  %v10608_v28 = vld [vmem:[%s13615_s1 + $0x16c8] ss:$12 sps:$4 sm:$0xff]   ;;  %v10611_v29 = vld [vmem:[%s13615_s1 + $0x16d0] ss:$12 sps:$4 sm:$0xff]  }
 0x3ed   : > { %6993 = vmatprep.subr.bf16.mxu0 %v10546_v30  ;;  %7036 = vmatprep.subr.bf16.mxu1 %v10644_v2  ;;  %v10614_v30 = vld [vmem:[%s13615_s1 + $0x16e4] ss:$12 sps:$4 sm:$0xff]  }
 0x3f0   : > { %6994 = vmatpush1.bf16.msra.mxu0 %v10544_v31  ;;  %7037 = vmatpush1.bf16.msra.mxu1 %v10547_v32 }
 0x3f1   : > { %6995 = vmatprep.subr.bf16.mxu0 %v10550_v33  ;;  %7038 = vmatprep.subr.bf16.mxu1 %v10644_v2 }
 0x3f4   : > { %6996 = vmatpush1.bf16.msra.mxu0 %v10548_v20  ;;  %7039 = vmatpush1.bf16.msra.mxu1 %v10551_v36  ;;  %v10612_v36 = vld [vmem:[%s13615_s1 + $0x16e0] ss:$12 sps:$4 sm:$0xff]  }
 0x3f5   : > { %6997 = vmatprep.subr.bf16.mxu0 %v10554_v34  ;;  %7040 = vmatprep.subr.bf16.mxu1 %v10644_v2  ;;  %v10615_v34 = vld [vmem:[%s13615_s1 + $0x16e8] ss:$12 sps:$4 sm:$0xff]  }
 0x3f8   : > { %6998 = vmatpush1.bf16.msra.mxu0 %v10552_v35  ;;  %7041 = vmatpush1.bf16.msra.mxu1 %v10555_v41 }
 0x3f9   : > { %7279 = vmatprep.subr.bf16.mxu0 %v10558_v44  ;;  %7322 = vmatprep.subr.bf16.mxu1 %v10644_v2  ;;  %v10616_v44 = vld [vmem:[%s13615_s1 + $0x16f8] ss:$12 sps:$4 sm:$0xff]  }
 0x3fb   : > { %7055 = vmatmul.mubr.bf16.vlgmr.msra.gmra.mrb[88].mxu1 %v6814_v47  ;;  %7012 = vmatmul.mubr.bf16.vlgmr.msra.gmra.mrb[0].mxu0 %v6814_v47  ;;  %v10619_v47 = vld [vmem:[%s13615_s1 + $0x1700] ss:$12 sps:$4 sm:$0xff]  }
 0x3fc   : > { %7280 = vmatpush1.bf16.msra.mxu0 %v10556_v48  ;;  %7323 = vmatpush1.bf16.msra.mxu1 %v10559_v49  ;;  %v10622_v48 = vld [vmem:[%s13615_s1 + $0x1714] ss:$12 sps:$4 sm:$0xff]   ;;  %v10620_v49 = vld [vmem:[%s13615_s1 + $0x1710] ss:$12 sps:$4 sm:$0xff]  }
 0x3fd   : > { %7281 = vmatprep.subr.bf16.mxu0 %v10562_v50  ;;  %7324 = vmatprep.subr.bf16.mxu1 %v10644_v2  ;;  %v10623_v50 = vld [vmem:[%s13615_s1 + $0x1718] ss:$12 sps:$4 sm:$0xff]  }
 0x3fe   : > { %9450 = vmatprep.mubr.msk.bf16.mxu1 %vm428_vm0, %v13392_v51  ;;  %9449 = vmatprep.mubr.msk.bf16.mxu0 %vm428_vm0, %v13392_v51 }
 0x400   : > { %7282 = vmatpush1.bf16.msra.mxu0 %v10560_v52  ;;  %7325 = vmatpush1.bf16.msra.mxu1 %v10563_v46  ;;  %v10624_v52 = vld [vmem:[%s13615_s1 + $0x1728] ss:$12 sps:$4 sm:$0xff]   ;;  %v10627_v46 = vld [vmem:[%s13615_s1 + $0x1730] ss:$12 sps:$4 sm:$0xff]  }
 0x401   : > { %7283 = vmatprep.subr.bf16.mxu0 %v10566_v53  ;;  %7326 = vmatprep.subr.bf16.mxu1 %v10644_v2  ;;  %v10630_v53 = vld [vmem:[%s13615_s1 + $0x1744] ss:$12 sps:$4 sm:$0xff]  }
 0x404   : > { %7284 = vmatpush1.bf16.msra.mxu0 %v10564_v54  ;;  %7327 = vmatpush1.bf16.msra.mxu1 %v10567_v55  ;;  %v10628_v54 = vld [vmem:[%s13615_s1 + $0x1740] ss:$12 sps:$4 sm:$0xff]   ;;  %v10631_v55 = vld [vmem:[%s13615_s1 + $0x1748] ss:$12 sps:$4 sm:$0xff]  }
 0x405   : > { %7285 = vmatprep.subr.bf16.mxu0 %v10570_v56  ;;  %7328 = vmatprep.subr.bf16.mxu1 %v10644_v2  ;;  %v10634_v56 = vld [vmem:[%s13615_s1 + $0x175c] ss:$12 sps:$4 sm:$0xff]  }
 0x406   : > { %v5559_v59 = vpop.f32.mrb[68].mxu1 }
 0x407   : > { %v13429_v60 = vadd.f32 %v5559_v59, %v13315_v18  ;;  %v5561_v61 = vpop.f32.mrb[69].mxu1  ;;  %v7114_v18 = vsel %vm1109_vm3, %v7111_v17, %v13392_v51  ;;  %v10626_v51 = vld [vmem:[%s13615_s1 + $0x172c] ss:$12 sps:$4 sm:$0xff]  }
 0x408   : > { %v5562_v62 = vpop.f32.mrb[70].mxu1  ;;  %7286 = vmatpush1.bf16.msra.mxu0 %v10568_v57  ;;  %7329 = vmatpush1.bf16.msra.mxu1 %v10571_v58  ;;  %v10632_v57 = vld [vmem:[%s13615_s1 + $0x1758] ss:$12 sps:$4 sm:$0xff]   ;;  %v10635_v58 = vld [vmem:[%s13615_s1 + $0x1760] ss:$12 sps:$4 sm:$0xff]  }
 0x409   : > { %v13438_v1 = vadd.f32 %v5562_v62, %v13324_v23  ;;  %v5564_v3 = vpop.f32.mrb[71].mxu1  ;;  %7287 = vmatprep.subr.bf16.mxu0 %v10574_v40  ;;  %7330 = vmatprep.subr.bf16.mxu1 %v10644_v2  ;;  %v10600_v23 = vld [vmem:[%s13615_s1 + $0x1698] ss:$12 sps:$4 sm:$0xff]   ;;  %v7411_v40 = vpop.permute.xlu0 %7410 }
 0x40a   : > { %v7414_v59 = vsel %vm1410_vm4, %v7411_v40, %v13506_v22 }
 0x40c   : > { %7288 = vmatpush1.bf16.msra.mxu0 %v10572_v63  ;;  %7331 = vmatpush1.bf16.msra.mxu1 %v10575_v0 }
 0x40d   : > { %7289 = vmatprep.subr.bf16.mxu0 %v10578_v19  ;;  %7332 = vmatprep.subr.bf16.mxu1 %v10644_v2 }
 0x410   : > { %7290 = vmatpush1.bf16.msra.mxu0 %v10576_v4  ;;  %7333 = vmatpush1.bf16.msra.mxu1 %v10579_v5 }
 0x411   : > { %7291 = vmatprep.subr.bf16.mxu0 %v10582_v6  ;;  %7334 = vmatprep.subr.bf16.mxu1 %v10644_v2 }
 0x414   : > { %7292 = vmatpush1.bf16.msra.mxu0 %v10580_v38  ;;  %7335 = vmatpush1.bf16.msra.mxu1 %v10583_v42 }
 0x415   : > { %7293 = vmatprep.subr.bf16.mxu0 %v10586_v7  ;;  %7336 = vmatprep.subr.bf16.mxu1 %v10644_v2 }
 0x418   : > { %7294 = vmatpush1.bf16.msra.mxu0 %v10584_v8  ;;  %7337 = vmatpush1.bf16.msra.mxu1 %v10587_v9 }
 0x419   : > { %7295 = vmatprep.subr.bf16.mxu0 %v10590_v10  ;;  %7338 = vmatprep.subr.bf16.mxu1 %v10644_v2 }
 0x41c   : > { %7296 = vmatpush1.bf16.msra.mxu0 %v10588_v12  ;;  %7339 = vmatpush1.bf16.msra.mxu1 %v10591_v13 }
 0x41d   : > { %7297 = vmatprep.subr.bf16.mxu0 %v10594_v37  ;;  %7340 = vmatprep.subr.bf16.mxu1 %v10644_v2 }
 0x420   : > { %7298 = vmatpush1.bf16.msra.mxu0 %v10592_v14  ;;  %7341 = vmatpush1.bf16.msra.mxu1 %v10595_v16 }
 0x421   : > { %7579 = vmatprep.subr.bf16.mxu0 %v10598_v45  ;;  %7622 = vmatprep.subr.bf16.mxu1 %v10644_v2 }
 0x423   : > { %7355 = vmatmul.mubr.bf16.vlgmr.msra.gmra.mrb[92].mxu1 %v7114_v18  ;;  %7312 = vmatmul.mubr.bf16.vlgmr.msra.gmra.mrb[0].mxu0 %v7114_v18 }
 0x424   : > { %7580 = vmatpush1.bf16.msra.mxu0 %v10596_v21  ;;  %7623 = vmatpush1.bf16.msra.mxu1 %v10599_v11 }
 0x425   : > { %7581 = vmatprep.subr.bf16.mxu0 %v10602_v15  ;;  %7624 = vmatprep.subr.bf16.mxu1 %v10644_v2 }
 0x426   : > { %9521 = vmatprep.mubr.msk.bf16.mxu0 %vm428_vm0, %v13506_v22  ;;  %9522 = vmatprep.mubr.msk.bf16.mxu1 %vm428_vm0, %v13506_v22 }
 0x428   : > { %7582 = vmatpush1.bf16.msra.mxu0 %v10600_v23  ;;  %7625 = vmatpush1.bf16.msra.mxu1 %v10603_v24  ;;  %v7671_v23 = vlaneseq }
 0x429   : > { %7583 = vmatprep.subr.bf16.mxu0 %v10606_v25  ;;  %7626 = vmatprep.subr.bf16.mxu1 %v10644_v2 }
 0x42a   : > { %v7672_v24 = vshrl.u32 %v7671_v23, 7 }
 0x42c   : > { %7584 = vmatpush1.bf16.msra.mxu0 %v10604_v26  ;;  %7627 = vmatpush1.bf16.msra.mxu1 %v10607_v39  ;;  %v7673_v25 = vsub.s32 0, %v7672_v24  ;;  %v7669_v26 = vld [vmem:[%s13616_s2] sm:$0x7]  ;;  %v7677_v39 = vsub.s32 1, %v7672_v24 }
 0x42d   : > { %7585 = vmatprep.subr.bf16.mxu0 %v10610_v27  ;;  %7628 = vmatprep.subr.bf16.mxu1 %v10644_v2  ;;  %v7681_v27 = vsub.s32 2, %v7672_v24 }
 0x42e   : > { %v5859_v31 = vpop.f32.mrb[72].mxu1 }
 0x42f   : > { %v5868_v32 = vadd.f32 %v5859_v31, %v13429_v60  ;;  %v5861_v33 = vpop.f32.mrb[73].mxu1 }
 0x430   : > { %v5862_v20 = vpop.f32.mrb[74].mxu1  ;;  %7586 = vmatpush1.bf16.msra.mxu0 %v10608_v28  ;;  %7629 = vmatpush1.bf16.msra.mxu1 %v10611_v29  ;;  %v7674_v28 = vrot.slane %v7669_v26, %v7673_v25  ;;  %v7678_v29 = vrot.slane %v7669_v26, %v7677_v39 }
 0x431   : > { %v5871_v35 = vadd.f32 %v5862_v20, %v13438_v1  ;;  %v5864_v41 = vpop.f32.mrb[75].mxu1  ;;  %7587 = vmatprep.subr.bf16.mxu0 %v10614_v30  ;;  %7630 = vmatprep.subr.bf16.mxu1 %v10644_v2  ;;  %v7682_v30 = vrot.slane %v7669_v26, %v7681_v27 }
 0x434   : > { %7588 = vmatpush1.bf16.msra.mxu0 %v10612_v36  ;;  %7631 = vmatpush1.bf16.msra.mxu1 %v10615_v34 }
 0x435   : > { %7589 = vmatprep.subr.bf16.mxu0 %v10618_v43  ;;  %7632 = vmatprep.subr.bf16.mxu1 %v10644_v2 }
 0x438   : > { %7590 = vmatpush1.bf16.msra.mxu0 %v10616_v44  ;;  %7633 = vmatpush1.bf16.msra.mxu1 %v10619_v47 }
 0x439   : > { %7591 = vmatprep.subr.bf16.mxu0 %v10622_v48  ;;  %7634 = vmatprep.subr.bf16.mxu1 %v10644_v2 }
 0x43c   : > { %7592 = vmatpush1.bf16.msra.mxu0 %v10620_v49  ;;  %7635 = vmatpush1.bf16.msra.mxu1 %v10623_v50 }
 0x43d   : > { %7593 = vmatprep.subr.bf16.mxu0 %v10626_v51  ;;  %7636 = vmatprep.subr.bf16.mxu1 %v10644_v2 }
 0x440   : > { %7594 = vmatpush1.bf16.msra.mxu0 %v10624_v52  ;;  %7637 = vmatpush1.bf16.msra.mxu1 %v10627_v46 }
 0x441   : > { %7595 = vmatprep.subr.bf16.mxu0 %v10630_v53  ;;  %7638 = vmatprep.subr.bf16.mxu1 %v10644_v2 }
 0x444   : > { %7596 = vmatpush1.bf16.msra.mxu0 %v10628_v54  ;;  %7639 = vmatpush1.bf16.msra.mxu1 %v10631_v55 }
 0x445   : > { %7597 = vmatprep.subr.bf16.mxu0 %v10634_v56  ;;  %7640 = vmatprep.subr.bf16.mxu1 %v10644_v2 }
 0x448   : > { %7598 = vmatpush1.bf16.msra.mxu0 %v10632_v57  ;;  %7641 = vmatpush1.bf16.msra.mxu1 %v10635_v58 }
 0x44b   : > { %7612 = vmatmul.mubr.bf16.vlgmr.msra.gmra.mrb[0].mxu0 %v7414_v59  ;;  %7655 = vmatmul.mubr.bf16.vlgmr.msra.gmra.mrb[96].mxu1 %v7414_v59 }
 0x456   : > { %v6159_v60 = vpop.f32.mrb[76].mxu1 }
 0x457   : > { %v6168_v61 = vadd.f32 %v6159_v60, %v5868_v32  ;;  %v6161_v62 = vpop.f32.mrb[77].mxu1 }
 0x458   : > { %v6162_v63 = vpop.f32.mrb[78].mxu1 }
 0x459   : > { %v6171_v0 = vadd.f32 %v6162_v63, %v5871_v35  ;;  %v6164_v1 = vpop.f32.mrb[79].mxu1 }
 0x47e   : > { %v6456_v3 = vpop.f32.mrb[80].mxu1 }
 0x47f   : > { %v6465_v19 = vadd.f32 %v6456_v3, %v6168_v61  ;;  %v6458_v4 = vpop.f32.mrb[81].mxu1 }
 0x480   : > { %v6459_v5 = vpop.f32.mrb[82].mxu1 }
 0x481   : > { %v6468_v6 = vadd.f32 %v6459_v5, %v6171_v0  ;;  %v6461_v2 = vpop.f32.mrb[83].mxu1 }
 0x4a6   : > { %v6756_v38 = vpop.f32.mrb[84].mxu1 }
 0x4a7   : > { %v6765_v42 = vadd.f32 %v6756_v38, %v6465_v19  ;;  %v6758_v7 = vpop.f32.mrb[85].mxu1 }
 0x4a8   : > { %v6759_v8 = vpop.f32.mrb[86].mxu1 }
 0x4a9   : > { %v6768_v9 = vadd.f32 %v6759_v8, %v6468_v6  ;;  %v6761_v10 = vpop.f32.mrb[87].mxu1 }
 0x4ce   : > { %v7056_v12 = vpop.f32.mrb[88].mxu1 }
 0x4cf   : > { %v7065_v13 = vadd.f32 %v7056_v12, %v6765_v42  ;;  %v7058_v37 = vpop.f32.mrb[89].mxu1 }
 0x4d0   : > { %v7059_v14 = vpop.f32.mrb[90].mxu1 }
 0x4d1   : > { %v7068_v16 = vadd.f32 %v7059_v14, %v6768_v9  ;;  %v7061_v17 = vpop.f32.mrb[91].mxu1 }
 0x4f6   : > { %v7356_v45 = vpop.f32.mrb[92].mxu1 }
 0x4f7   : > { %v7365_v18 = vadd.f32 %v7356_v45, %v7065_v13  ;;  %v7358_v21 = vpop.f32.mrb[93].mxu1 }
 0x4f8   : > { %v7359_v11 = vpop.f32.mrb[94].mxu1 }
 0x4f9   : > { %v7368_v15 = vadd.f32 %v7359_v11, %v7068_v16  ;;  %v7361_v22 = vpop.f32.mrb[95].mxu1 }
 0x51e   : > { %v7613_v31 = vpop.f32.mrb[0].mxu0  ;;  %v7656_v32 = vpop.f32.mrb[96].mxu1 }
 0x51f   : > { %v7686_v33 = vadd.f32 %v7674_v28, %v7613_v31  ;;  %v7665_v20 = vadd.f32 %v7656_v32, %v7365_v18  ;;  %v7615_v36 = vpop.f32.mrb[1].mxu0  ;;  %v7658_v34 = vpop.f32.mrb[97].mxu1 }
 0x520   : > { %v7687_v35 = vadd.f32 %v7678_v29, %v7615_v36  ;;  %v7617_v41 = vpop.f32.mrb[2].mxu0  ;;  %v7659_v43 = vpop.f32.mrb[98].mxu1 }
 0x521   : > { %7692 = vst [vmem:[%s170_s27] sm:$0xff] %v7686_v33  ;;  %v7688_v44 = vadd.f32 %v7682_v30, %v7665_v20  ;;  %v7689_v47 = vadd.f32 %v7674_v28, %v7617_v41  ;;  %v7668_v48 = vadd.f32 %v7659_v43, %v7368_v15  ;;  %v7619_v49 = vpop.f32.mrb[3].mxu0  ;;  %v7661_v50 = vpop.f32.mrb[99].mxu1 }
 0x522   : > { %7693 = vst [vmem:[%s170_s27 + $0x8] sm:$0xff] %v7687_v35  ;;  %v7690_v51 = vadd.f32 %v7678_v29, %v7619_v49 }
 0x523   : > { %7695 = vst.msk [vmem:[%s170_s27 + $0x10] sm:$0xff] %vm1410_vm4, %v7688_v44  ;;  %7696 = vst [vmem:[%s170_s27 + $0x18] sm:$0x3] %v7689_v47  ;;  %v7691_v52 = vadd.f32 %v7682_v30, %v7668_v48 }
 0x524   : > { %7697 = vst [vmem:[%s170_s27 + $0x20] sm:$0x3] %v7690_v51 }
 0x525   : > { %7699 = vst.msk [vmem:[%s170_s27 + $0x28] sm:$0x3] %vm7698_vm5, %v7691_v52 }
 0x526 PF: > { %s13_s12 = sadd.s32 1, %s10642_s12  }
 0x527   : > { %p10_p4 = scmp.ge.s32.totalorder %s13_s12, 4  }
 0x529   :  { %12 = sbr.rel (!%p10_p4) target bundleno = 1 (0x1), region = 86 }

// kernel: lenet5_forward.5
= control target key start
LH: loop header
LB: loop body
LE: loop exit
PB: predicated region body
PF: predicated region fallthrough
CT: control target
= control target key end

     0   :  { %8 = vsyncpa [#allocation3], 0  ;;  %s9940_s0 = inlined_call_operand.vmem [shape: f32[2,32,96], index: 0, kind: input, shape index: {}]   ;;  %s9941_s1 = inlined_call_operand.hbm [shape: bf16[25,84,448], index: 1, kind: input, shape index: {}]   ;;  %s9942_s2 = inlined_call_operand.hbm [shape: f32[1,448], index: 2, kind: input, shape index: {}]   ;;  %s9943_s3 = inlined_call_operand.vmem [shape: f32[2,28,448], index: 3, kind: output, shape index: {}]  }
   0x1   :  { %9 = vsyncpa [#allocation5], 0  ;;  %s9383_s12 = smov 0  }
   0x2 LB: > { %s9389_s13 = sadd.s32 4294967295, %s9352_s12   ;;  %p7247_p0 = scmp.ge.s32.totalorder %s9352_s12, 1  ;;  %s9352_s12 = sphi %s9383_s12, %s15_s12  }
   0x3   : > { %p114_p1 = scmp.lt.s32.totalorder %s9352_s12, 3  ;;  %s9354_s14 = smov [#allocation2]  }
   0x4   : > { %s126_s15 = sshll.u32 %s9354_s14, 4  ;;  %p9944_p3 = scmp.eq.s32.totalorder %s9389_s13, 0  ;;  %s127_s15 = int_to_ptr.vmem [resolvable:$true] %s126_s15 }
   0x5   : > { %p9393_p2 = pnand %p7247_p0, %p114_p1  ;;  %s9355_s17 = smov [#allocation4]  }
   0x6   : > { %s140_s18 = sshll.u32 %s9355_s17, 4  ;;  %s9282_s22 = scalar_lea.hbm %s9941_s1, 70400  ;;  %s9406_s18 = int_to_ptr.vmem [resolvable:$true] %s140_s18 }
   0x7   : > { %s9946_s16 = scalar_select %p9393_p2, 1, 0 }
   0x8   : > { %p8404_p4 = pneg %p9393_p2  ;;  %p9283_p6 = scmp.ne.s32.totalorder %s9941_s1, %s9282_s22 }
   0x9   : > { %p9289_p10 = scmp.lt.u32.totalorder %s9282_s22, %s9941_s1 }
   0xa   : > { %p9402_p5 = pnand %p9944_p3, %p8404_p4 }
   0xc   : > { %p9284_p7 = pneg %p9402_p5 }
   0xe   : > { %p9285_p8 = pnand %p9284_p7, %p9283_p6 }
  0x10   : > { %p9286_p9 = pneg %p9285_p8 }
  0x12   : > { %p9291_p11 = pnand %p9289_p10, %p9286_p9 }
  0x14   : > { %9294 = shalt.err (!%p9291_p11)
}
  0x15   : > { %s9295_s27 = scalar_lea.vmem %s127_s15, 70400  ;;  %p9303_p1 = scmp.lt.s32.totalorder %s127_s15, %s127_s15 }
  0x16   : > { %p9296_p12 = scmp.ne.s32.totalorder %s127_s15, %s9295_s27  ;;  %p9304_p4 = scmp.lt.s32.totalorder %s9295_s27, %s9295_s27 }
  0x18   : > { %p9298_p13 = pnand %p9296_p12, %p9284_p7  ;;  %p9305_p3 = por %p9304_p4, %p9303_p1 }
  0x1a   : > { %p9299_p0 = pneg %p9298_p13 }
  0x1c   : > { %p9306_p2 = pnand %p9305_p3, %p9299_p0 }
  0x1e   : > { %9309 = shalt.err (!%p9306_p2)
}
  0x1f   : > { %s9356_s28 = smov 256   ;;  %s9357_s29 = smov 16  }
  0x20   : > { %8407 = dma.hbm_to_vmem [thread:$0]  (!%p9402_p5), %s9941_s1, 70400, %s127_s15, [#allocation3], %s9356_s28, %s9356_s28, %s9357_s29  }
  0x21   : > { %s9310_s7 = scalar_lea.hbm %s9942_s2, 64 }
  0x22   : > { %p9311_p6 = scmp.ne.s32.totalorder %s9942_s2, %s9310_s7  ;;  %p9317_p8 = scmp.lt.u32.totalorder %s9310_s7, %s9942_s2 }
  0x24   : > { %p9313_p2 = pnand %p9311_p6, %p9284_p7 }
  0x26   : > { %p9314_p3 = pneg %p9313_p2 }
  0x28   : > { %p9319_p9 = pnand %p9317_p8, %p9314_p3 }
  0x2a   : > { %9322 = shalt.err (!%p9319_p9)
}
  0x2b   : > { %s9323_s14 = scalar_lea.vmem %s9406_s18, 64  ;;  %p9331_p13 = scmp.lt.s32.totalorder %s9406_s18, %s9406_s18 }
  0x2c   : > { %p9324_p10 = scmp.ne.s32.totalorder %s9406_s18, %s9323_s14  ;;  %p9332_p0 = scmp.lt.s32.totalorder %s9323_s14, %s9323_s14 }
  0x2e   : > { %p9326_p11 = pnand %p9324_p10, %p9284_p7  ;;  %p9333_p1 = por %p9332_p0, %p9331_p13 }
  0x30   : > { %p9327_p12 = pneg %p9326_p11 }
  0x32   : > { %p9334_p4 = pnand %p9333_p1, %p9327_p12 }
  0x34   : > { %9337 = shalt.err (!%p9334_p4)
}
  0x35   : > { %8410 = dma.hbm_to_vmem [thread:$0]  (!%p9402_p5), %s9942_s2, 64, %s9406_s18, [#allocation5]  }
  0x36   : > { %p9948_p6 = scmp.ne.s32.totalorder %s9946_s16, 0 }
  0x37   : > { %p9949_p2 = scmp.eq.s32.totalorder (!%p9948_p6), %s9389_s13, 0 }
  0x38   : > { %161 = sbr.rel (%p9948_p6) target bundleno = 992 (0x3e0), region = 32 }
  0x3f   : > { %9343 = dma.done.wait (%p9949_p2), [#allocation3], 70400   ;;  %p9950_p7 = pmov %p9949_p2 }
  0x40   : > { %p9951_p3 = pmov %p9949_p2 }
  0x41   : > { %9345 = vsyncadd (%p9950_p7), [#allocation3], 4294896896 }
  0x42   : > { %9347 = dma.done.wait (%p9951_p3), [#allocation5], 64   ;;  %p9952_p8 = pmov %p9949_p2 }
  0x43   : > { %p189_p9 = scmp.lt.s32.totalorder %s9389_s13, 1  ;;  %v9358_v0 = vmov 0   ;;  %v8432_v6 = vld [vmem:[#allocation2 + $0xb4] ss:$16 sps:$4 sm:$0xff]   ;;  %s9359_s21 = smov 125   ;;  %vm374_vm0 = vcmask 1041408  }
  0x44   : > { %9349 = vsyncadd (%p9952_p8), [#allocation5], 4294967232  ;;  %419 = vmatprep.mubr.bf16.mxu0 %v9358_v0  ;;  %472 = vmatprep.mubr.bf16.mxu1 %v9358_v0  ;;  %s9360_s22 = smov 122   ;;  %v8434_v8 = vld [vmem:[#allocation2 + $0xbc] ss:$16 sps:$4 sm:$0xff]   ;;  %s9361_s23 = smov 119  }
  0x45   : > { %s9954_s13 = smov (!%p189_p9, %s9389_s13), 1  ;;  %v8436_v9 = vld [vmem:[#allocation2 + $0xb0] ss:$16 sps:$4 sm:$0xff]   ;;  %v8437_v10 = vld [vmem:[#allocation2 + $0xb8] ss:$16 sps:$4 sm:$0xff]   ;;  %387 = vmatprep.subr.bf16.mxu0 %v8432_v6  ;;  %440 = vmatprep.subr.bf16.mxu1 %v8434_v8  ;;  %s9362_s24 = smov 116  }
  0x46   : > { %s8010_s16 = sshll.u32 %s9954_s13, 5  ;;  %v8438_v11 = vld [vmem:[#allocation2 + $0xd4] ss:$16 sps:$4 sm:$0xff]   ;;  %388 = vmatpush1.bf16.msra.mxu0 %v8436_v9  ;;  %v8440_v12 = vld [vmem:[#allocation2 + $0xdc] ss:$16 sps:$4 sm:$0xff]   ;;  %441 = vmatpush1.bf16.msra.mxu1 %v8437_v10  ;;  %vm367_vm2 = vcmask 687104  }
  0x47   : > { %s193_s20 = scalar_lea.vmem %s9940_s0, %s8010_s16  ;;  %389 = vmatprep.subr.bf16.mxu0 %v8438_v11  ;;  %v8442_v13 = vld [vmem:[#allocation2 + $0xd0] ss:$16 sps:$4 sm:$0xff]   ;;  %v8443_v14 = vld [vmem:[#allocation2 + $0xd8] ss:$16 sps:$4 sm:$0xff]   ;;  %v8444_v15 = vld [vmem:[#allocation2 + $0xf4] ss:$16 sps:$4 sm:$0xff]   ;;  %442 = vmatprep.subr.bf16.mxu1 %v8440_v12 }
  0x48   : > { %v200_v1 = vld [vmem:[%s193_s20] sm:$0xff]  ;;  %v201_v2 = vld [vmem:[%s193_s20 + $0x8] sm:$0xff]  ;;  %v202_v3 = vld [vmem:[%s193_s20 + $0x10] sm:$0xff]  ;;  %vm1581_vm1 = vsmask.f32 7424  ;;  %vm2976_vm3 = vcmask 1046528  }
  0x49   : > { %v9475_v4 = vpack.c.bf16 %v201_v2, %v200_v1  ;;  %v203_v5 = vld [vmem:[%s193_s20 + $0x18] sm:$0xff]  ;;  %v8448_v17 = vld [vmem:[#allocation2 + $0xf0] ss:$16 sps:$4 sm:$0xff]   ;;  %v8450_v19 = vld [vmem:[#allocation2 + $0x114] ss:$16 sps:$4 sm:$0xff]   ;;  %vm5750_vm5 = vcmask 1045504  }
  0x4a   : > { %v9479_v7 = vpack.c.bf16 %v203_v5, %v202_v3  ;;  %v8446_v16 = vld [vmem:[#allocation2 + $0xfc] ss:$16 sps:$4 sm:$0xff]   ;;  %390 = vmatpush1.bf16.msra.mxu0 %v8442_v13  ;;  %v8449_v18 = vld [vmem:[#allocation2 + $0xf8] ss:$16 sps:$4 sm:$0xff]   ;;  %443 = vmatpush1.bf16.msra.mxu1 %v8443_v14  ;;  %v8454_v21 = vld [vmem:[#allocation2 + $0x110] ss:$16 sps:$4 sm:$0xff]  }
  0x4b   : > { %253 = vrot.lane.b32.xlu0 %v9475_v4, %s9359_s21  ;;  %750 = vrot.lane.b32.xlu1 %v9475_v4, %s9360_s22  ;;  %v8452_v20 = vld [vmem:[#allocation2 + $0x11c] ss:$16 sps:$4 sm:$0xff]   ;;  %v1584_v22 = vshll.u32 %v9475_v4, 16  ;;  %v8455_v23 = vld [vmem:[#allocation2 + $0x118] ss:$16 sps:$4 sm:$0xff]   ;;  %v1582_v27 = vshrl.u32 %v9475_v4, 16 }
  0x4c   : > { %391 = vmatprep.subr.bf16.mxu0 %v8444_v15  ;;  %444 = vmatprep.subr.bf16.mxu1 %v8446_v16  ;;  %v8456_v24 = vld [vmem:[#allocation2 + $0x134] ss:$16 sps:$4 sm:$0xff]   ;;  %v8458_v25 = vld [vmem:[#allocation2 + $0x13c] ss:$16 sps:$4 sm:$0xff]   ;;  %v1588_v30 = vshll.u32 %v9479_v7, 16  ;;  %v1592_v40 = vshrl.u32 %v9479_v7, 16 }
  0x4d   : > { %v249_v26 = vld [vmem:[#allocation2 + $0x150] sm:$0x33]  ;;  %v1586_v28 = vrot.slane %v1584_v22, 1  ;;  %v250_v29 = vld [vmem:[#allocation2 + $0x158] sm:$0x33]  ;;  %s8011_s25 = sshll.u32 %s9954_s13, 7 }
  0x4e   : > { %392 = vmatpush1.bf16.msra.mxu0 %v8448_v17  ;;  %445 = vmatpush1.bf16.msra.mxu1 %v8449_v18  ;;  %v8460_v31 = vld [vmem:[#allocation2 + $0x130] ss:$16 sps:$4 sm:$0xff]   ;;  %v8461_v33 = vld [vmem:[#allocation2 + $0x138] ss:$16 sps:$4 sm:$0xff]   ;;  %v7279_v34 = vcombine.high %v249_v26, %v249_v26  ;;  %v7278_v35 = vcombine.low %v249_v26, %v249_v26  ;;  %v1590_v36 = vrot.slane %v1588_v30, 1  ;;  %v7281_v37 = vcombine.high %v250_v29, %v250_v29  ;;  %s9916_s28 = scalar_lea.vmem %s9943_s3, %s8011_s25 }
  0x4f   : > { %255 = vrot.lane.b32.xlu0 %v9479_v7, %s9359_s21  ;;  %752 = vrot.lane.b32.xlu1 %v9479_v7, %s9360_s22  ;;  %v1587_v32 = vor.u32 %v1586_v28, %v1582_v27  ;;  %v7280_v38 = vcombine.low %v250_v29, %v250_v29  ;;  %v4366_v41 = vrot.slane %v1588_v30, 2  ;;  %v8468_v43 = vld [vmem:[#allocation2 + $0x4] ss:$16 sps:$4 sm:$0xff]   ;;  %v4365_v45 = vrot.slane %v1592_v40, 1  ;;  %v8471_v47 = vld [vmem:[#allocation2 + $0xc] ss:$16 sps:$4 sm:$0xff]  }
  0x50   : > { %393 = vmatprep.subr.bf16.mxu0 %v8450_v19  ;;  %446 = vmatprep.subr.bf16.mxu1 %v8452_v20  ;;  %v376_v42 = vsel %vm374_vm0, %v7278_v35, 0  ;;  %v9509_v44 = vor.u32 %v1592_v40, %v1590_v36  ;;  %v8466_v49 = vld [vmem:[#allocation2] ss:$16 sps:$4 sm:$0xff]   ;;  %v8469_v50 = vld [vmem:[#allocation2 + $0x8] ss:$16 sps:$4 sm:$0xff]   ;;  %v2977_v18 = vrot.slane %v9475_v4, 1 }
  0x51   : > { %v9502_v39 = vsel %vm1581_vm1, %v1587_v32, %v1590_v36  ;;  %v382_v46 = vsel %vm374_vm0, %v7280_v38, 0  ;;  %v9513_v48 = vor.u32 %v4366_v41, %v4365_v45  ;;  %v8474_v51 = vld [vmem:[#allocation2 + $0x24] ss:$16 sps:$4 sm:$0xff]   ;;  %v8477_v52 = vld [vmem:[#allocation2 + $0x2c] ss:$16 sps:$4 sm:$0xff]   ;;  %v9543_v19 = vrot.slane %v9479_v7, 1 }
  0x52   : > { %394 = vmatpush1.bf16.msra.mxu0 %v8454_v21  ;;  %447 = vmatpush1.bf16.msra.mxu1 %v8455_v23  ;;  %v8472_v54 = vld [vmem:[#allocation2 + $0x20] ss:$16 sps:$4 sm:$0xff]   ;;  %v8475_v55 = vld [vmem:[#allocation2 + $0x28] ss:$16 sps:$4 sm:$0xff]   ;;  %v8480_v56 = vld [vmem:[#allocation2 + $0x44] ss:$16 sps:$4 sm:$0xff]  }
  0x53   : > { %1027 = vrot.lane.b32.xlu0 %v9475_v4, %s9361_s23  ;;  %1029 = vrot.lane.b32.xlu1 %v9479_v7, %s9361_s23  ;;  %v8483_v57 = vld [vmem:[#allocation2 + $0x4c] ss:$16 sps:$4 sm:$0xff]   ;;  %v8478_v58 = vld [vmem:[#allocation2 + $0x40] ss:$16 sps:$4 sm:$0xff]   ;;  %v8481_v59 = vld [vmem:[#allocation2 + $0x48] ss:$16 sps:$4 sm:$0xff]   ;;  %v9546_v23 = vsel %vm2976_vm3, %v2977_v18, %v9543_v19 }
  0x54   : > { %395 = vmatprep.subr.bf16.mxu0 %v8456_v24  ;;  %448 = vmatprep.subr.bf16.mxu1 %v8458_v25  ;;  %v8486_v61 = vld [vmem:[#allocation2 + $0x64] ss:$16 sps:$4 sm:$0xff]   ;;  %v8489_v62 = vld [vmem:[#allocation2 + $0x6c] ss:$16 sps:$4 sm:$0xff]   ;;  %v8484_v63 = vld [vmem:[#allocation2 + $0x60] ss:$16 sps:$4 sm:$0xff]  }
  0x55   : > { %v8487_v1 = vld [vmem:[#allocation2 + $0x68] ss:$16 sps:$4 sm:$0xff]   ;;  %v8492_v2 = vld [vmem:[#allocation2 + $0x84] ss:$16 sps:$4 sm:$0xff]   ;;  %v8495_v3 = vld [vmem:[#allocation2 + $0x8c] ss:$16 sps:$4 sm:$0xff]  }
  0x56   : > { %396 = vmatpush1.bf16.msra.mxu0 %v8460_v31  ;;  %449 = vmatpush1.bf16.msra.mxu1 %v8461_v33  ;;  %v226_v5 = vld [vmem:[#allocation2 + $0xa0] sm:$0x33]  ;;  %v227_v6 = vld [vmem:[#allocation2 + $0xa8] sm:$0x33]  ;;  %vm4361_vm4 = vsmask.f32 6400 }
  0x57   : > { %1304 = vrot.lane.b32.xlu0 %v9475_v4, %s9362_s24  ;;  %1306 = vrot.lane.b32.xlu1 %v9479_v7, %s9362_s24  ;;  %v8490_v8 = vld [vmem:[#allocation2 + $0x80] ss:$16 sps:$4 sm:$0xff]   ;;  %v8493_v9 = vld [vmem:[#allocation2 + $0x88] ss:$16 sps:$4 sm:$0xff]   ;;  %v7309_v10 = vcombine.high %v226_v5, %v226_v5  ;;  %v7311_v11 = vcombine.high %v227_v6, %v227_v6  ;;  %v7308_v12 = vcombine.low %v226_v5, %v226_v5  ;;  %v8502_v14 = vld [vmem:[#allocation2 + $0x164] ss:$16 sps:$4 sm:$0xff]  }
  0x58   : > { %7282 = vmatprep.subr.msk.bf16.mxu0 %vm374_vm0, %v7279_v34  ;;  %7285 = vmatprep.subr.msk.bf16.mxu1 %vm374_vm0, %v7281_v37  ;;  %v7310_v13 = vcombine.low %v227_v6, %v227_v6  ;;  %v8505_v17 = vld [vmem:[#allocation2 + $0x16c] ss:$16 sps:$4 sm:$0xff]   ;;  %v8500_v20 = vld [vmem:[#allocation2 + $0x160] ss:$16 sps:$4 sm:$0xff]   ;;  %v8503_v21 = vld [vmem:[#allocation2 + $0x168] ss:$16 sps:$4 sm:$0xff]  }
  0x59   : > { %v610_v15 = vsel %vm374_vm0, %v7308_v12, 0  ;;  %v8508_v24 = vld [vmem:[#allocation2 + $0x184] ss:$16 sps:$4 sm:$0xff]   ;;  %v8511_v25 = vld [vmem:[#allocation2 + $0x18c] ss:$16 sps:$4 sm:$0xff]   ;;  %vm7153_vm6 = vcmask 523264  }
  0x5a   : > { %398 = vmatpush1.bf16.msra.mxu0 %v376_v42  ;;  %451 = vmatpush1.bf16.msra.mxu1 %v382_v46  ;;  %v616_v16 = vsel %vm374_vm0, %v7310_v13, 0  ;;  %v8506_v26 = vld [vmem:[#allocation2 + $0x180] ss:$16 sps:$4 sm:$0xff]   ;;  %v8509_v28 = vld [vmem:[#allocation2 + $0x188] ss:$16 sps:$4 sm:$0xff]   ;;  %vm7166_vm7 = vcmask 519168  }
  0x5b   : > { %1868 = vrot.lane.b32.xlu0 %v9502_v39, %s9359_s21  ;;  %1870 = vrot.lane.b32.xlu1 %v9509_v44, %s9359_s21  ;;  %v8514_v29 = vld [vmem:[#allocation2 + $0x1a4] ss:$16 sps:$4 sm:$0xff]   ;;  %v8517_v30 = vld [vmem:[#allocation2 + $0x1ac] ss:$16 sps:$4 sm:$0xff]   ;;  %v8512_v31 = vld [vmem:[#allocation2 + $0x1a0] ss:$16 sps:$4 sm:$0xff]  }
  0x5c   : > { %621 = vmatprep.subr.bf16.mxu0 %v8468_v43  ;;  %674 = vmatprep.subr.bf16.mxu1 %v8471_v47  ;;  %v8515_v32 = vld [vmem:[#allocation2 + $0x1a8] ss:$16 sps:$4 sm:$0xff]   ;;  %v8520_v33 = vld [vmem:[#allocation2 + $0x1c4] ss:$16 sps:$4 sm:$0xff]   ;;  %v8523_v34 = vld [vmem:[#allocation2 + $0x1cc] ss:$16 sps:$4 sm:$0xff]  }
  0x5d   : > { %v8518_v35 = vld [vmem:[#allocation2 + $0x1c0] ss:$16 sps:$4 sm:$0xff]   ;;  %v8521_v36 = vld [vmem:[#allocation2 + $0x1c8] ss:$16 sps:$4 sm:$0xff]   ;;  %v8526_v37 = vld [vmem:[#allocation2 + $0x1e4] ss:$16 sps:$4 sm:$0xff]  }
  0x5e   : > { %v8529_v38 = vld [vmem:[#allocation2 + $0x1ec] ss:$16 sps:$4 sm:$0xff]   ;;  %v748_v40 = vld [vmem:[#allocation2 + $0x200] sm:$0x33]  ;;  %v8527_v43 = vld [vmem:[#allocation2 + $0x1e8] ss:$16 sps:$4 sm:$0xff]  }
  0x5f   : > { %2145 = vrot.lane.b32.xlu0 %v9502_v39, %s9360_s22  ;;  %2147 = vrot.lane.b32.xlu1 %v9509_v44, %s9360_s22  ;;  %v749_v41 = vld [vmem:[#allocation2 + $0x208] sm:$0x33]  ;;  %v8524_v42 = vld [vmem:[#allocation2 + $0x1e0] ss:$16 sps:$4 sm:$0xff]   ;;  %v7339_v45 = vcombine.high %v748_v40, %v748_v40  ;;  %v7338_v47 = vcombine.low %v748_v40, %v748_v40  ;;  %v1026_v12 = vld [vmem:[#allocation2 + $0x2b8] sm:$0x33] }
  0x60   : > { %v7341_v46 = vcombine.high %v749_v41, %v749_v41  ;;  %v8557_v5 = vld [vmem:[#allocation2 + $0x27c] ss:$16 sps:$4 sm:$0xff]   ;;  %v8552_v6 = vld [vmem:[#allocation2 + $0x270] ss:$16 sps:$4 sm:$0xff]   ;;  %v7370_v18 = vcombine.low %v1026_v12, %v1026_v12  ;;  %v8588_v40 = vld [vmem:[#allocation2 + $0x324] ss:$16 sps:$4 sm:$0xff]  }
  0x61   : > { %v8558_v13 = vld [vmem:[#allocation2 + $0x290] ss:$16 sps:$4 sm:$0xff]  }
  0x63   : > { %2422 = vrot.lane.b32.xlu0 %v9502_v39, %s9361_s23  ;;  %2424 = vrot.lane.b32.xlu1 %v9509_v44, %s9361_s23 }
  0x67   : > { %2699 = vrot.lane.b32.xlu0 %v9502_v39, %s9362_s24  ;;  %2701 = vrot.lane.b32.xlu1 %v9509_v44, %s9362_s24 }
  0x6b   : > { %3253 = vrot.lane.b32.xlu0 %v9546_v23, %s9359_s21  ;;  %3255 = vrot.lane.b32.xlu1 %v9543_v19, %s9359_s21 }
  0x6f   : > { %3530 = vrot.lane.b32.xlu0 %v9546_v23, %s9360_s22  ;;  %3532 = vrot.lane.b32.xlu1 %v9543_v19, %s9360_s22 }
  0x73   : > { %3807 = vrot.lane.b32.xlu0 %v9546_v23, %s9361_s23  ;;  %3809 = vrot.lane.b32.xlu1 %v9543_v19, %s9361_s23 }
  0x77   : > { %4084 = vrot.lane.b32.xlu0 %v9546_v23, %s9362_s24  ;;  %4086 = vrot.lane.b32.xlu1 %v9543_v19, %s9362_s24 }
  0x7b   : > { %4644 = vrot.lane.b32.xlu1 %v9513_v48, %s9359_s21 }
  0x7f   : > { %4921 = vrot.lane.b32.xlu1 %v9513_v48, %s9360_s22 }
  0x83   : > { %5198 = vrot.lane.b32.xlu1 %v9513_v48, %s9361_s23 }
  0x87   : > { %5475 = vrot.lane.b32.xlu1 %v9513_v48, %s9362_s24 }
  0xbd   : > { %v254_v53 = vpop.permute.xlu0 %253 }
  0xbe   : > { %7283 = vmatmul.mubr.msk.bf16.vlgmr.msra.gmra.mrb[0].mxu0 %vm367_vm2, %v254_v53  ;;  %7286 = vmatmul.mubr.msk.bf16.vlgmr.msra.gmra.mrb[0].mxu1 %vm367_vm2, %v254_v53  ;;  %v8539_v53 = vld [vmem:[#allocation2 + $0x21c] ss:$16 sps:$4 sm:$0xff]  }
  0xbf   : > { %622 = vmatpush1.bf16.msra.mxu0 %v8466_v49  ;;  %675 = vmatpush1.bf16.msra.mxu1 %v8469_v50  ;;  %v7340_v49 = vcombine.low %v749_v41, %v749_v41  ;;  %v8536_v50 = vld [vmem:[#allocation2 + $0x214] ss:$16 sps:$4 sm:$0xff]   ;;  %v8591_v41 = vld [vmem:[#allocation2 + $0x32c] ss:$16 sps:$4 sm:$0xff]  }
  0xc0   : > { %623 = vmatprep.subr.bf16.mxu0 %v8474_v51  ;;  %676 = vmatprep.subr.bf16.mxu1 %v8477_v52  ;;  %v871_v51 = vsel %vm374_vm0, %v7338_v47, 0  ;;  %v1302_v47 = vld [vmem:[#allocation2 + $0x360] sm:$0x33] }
  0xc1   : > { %429 = vmatprep.mubr.bf16.mxu0 %v9358_v0  ;;  %482 = vmatprep.mubr.bf16.mxu1 %v9358_v0  ;;  %v256_v60 = vpop.permute.xlu0 %255  ;;  %v877_v52 = vsel %vm374_vm0, %v7340_v49, 0  ;;  %v1303_v49 = vld [vmem:[#allocation2 + $0x368] sm:$0x33] }
  0xc3   : > { %624 = vmatpush1.bf16.msra.mxu0 %v8472_v54  ;;  %677 = vmatpush1.bf16.msra.mxu1 %v8475_v55  ;;  %v751_v54 = vpop.permute.xlu1 %750  ;;  %v8534_v55 = vld [vmem:[#allocation2 + $0x210] ss:$16 sps:$4 sm:$0xff]  }
  0xc4   : > { %625 = vmatprep.subr.bf16.mxu0 %v8480_v56  ;;  %678 = vmatprep.subr.bf16.mxu1 %v8483_v57  ;;  %v8537_v56 = vld [vmem:[#allocation2 + $0x218] ss:$16 sps:$4 sm:$0xff]   ;;  %v8542_v57 = vld [vmem:[#allocation2 + $0x234] ss:$16 sps:$4 sm:$0xff]  }
  0xc6   : > { %7284 = vmatmul.mubr.msk.bf16.gmra.mrb[4].mxu0 %vm367_vm2, %v256_v60  ;;  %7287 = vmatmul.mubr.msk.bf16.gmra.mrb[4].mxu1 %vm367_vm2, %v256_v60  ;;  %v8543_v60 = vld [vmem:[#allocation2 + $0x238] ss:$16 sps:$4 sm:$0xff]  }
  0xc7   : > { %626 = vmatpush1.bf16.msra.mxu0 %v8478_v58  ;;  %679 = vmatpush1.bf16.msra.mxu1 %v8481_v59  ;;  %v8545_v58 = vld [vmem:[#allocation2 + $0x23c] ss:$16 sps:$4 sm:$0xff]   ;;  %v8540_v59 = vld [vmem:[#allocation2 + $0x230] ss:$16 sps:$4 sm:$0xff]  }
  0xc8   : > { %627 = vmatprep.subr.bf16.mxu0 %v8486_v61  ;;  %680 = vmatprep.subr.bf16.mxu1 %v8489_v62  ;;  %v8548_v61 = vld [vmem:[#allocation2 + $0x254] ss:$16 sps:$4 sm:$0xff]   ;;  %v8551_v62 = vld [vmem:[#allocation2 + $0x25c] ss:$16 sps:$4 sm:$0xff]  }
  0xc9   : > { %653 = vmatprep.mubr.bf16.mxu0 %v9358_v0  ;;  %706 = vmatprep.mubr.bf16.mxu1 %v9358_v0 }
  0xcb   : > { %628 = vmatpush1.bf16.msra.mxu0 %v8484_v63  ;;  %681 = vmatpush1.bf16.msra.mxu1 %v8487_v1  ;;  %v8546_v63 = vld [vmem:[#allocation2 + $0x250] ss:$16 sps:$4 sm:$0xff]   ;;  %v8549_v1 = vld [vmem:[#allocation2 + $0x258] ss:$16 sps:$4 sm:$0xff]  }
  0xcc   : > { %629 = vmatprep.subr.bf16.mxu0 %v8492_v2  ;;  %682 = vmatprep.subr.bf16.mxu1 %v8495_v3  ;;  %v753_v2 = vpop.permute.xlu1 %752  ;;  %v8554_v3 = vld [vmem:[#allocation2 + $0x274] ss:$16 sps:$4 sm:$0xff]  }
  0xcf   : > { %630 = vmatpush1.bf16.msra.mxu0 %v8490_v8  ;;  %683 = vmatpush1.bf16.msra.mxu1 %v8493_v9  ;;  %v8555_v8 = vld [vmem:[#allocation2 + $0x278] ss:$16 sps:$4 sm:$0xff]   ;;  %v8560_v9 = vld [vmem:[#allocation2 + $0x294] ss:$16 sps:$4 sm:$0xff]  }
  0xd0   : > { %7312 = vmatprep.subr.msk.bf16.mxu0 %vm374_vm0, %v7309_v10  ;;  %7315 = vmatprep.subr.msk.bf16.mxu1 %vm374_vm0, %v7311_v11  ;;  %v8563_v10 = vld [vmem:[#allocation2 + $0x29c] ss:$16 sps:$4 sm:$0xff]   ;;  %v1025_v11 = vld [vmem:[#allocation2 + $0x2b0] sm:$0x33] }
  0xd3   : > { %632 = vmatpush1.bf16.msra.mxu0 %v610_v15  ;;  %685 = vmatpush1.bf16.msra.mxu1 %v616_v16  ;;  %v7368_v15 = vcombine.low %v1025_v11, %v1025_v11  ;;  %v7369_v16 = vcombine.high %v1025_v11, %v1025_v11  ;;  %v8622_v11 = vld [vmem:[#allocation2 + $0x3d4] ss:$16 sps:$4 sm:$0xff]  }
  0xd4   : > { %882 = vmatprep.subr.bf16.mxu0 %v8502_v14  ;;  %935 = vmatprep.subr.bf16.mxu1 %v8505_v17  ;;  %v8561_v14 = vld [vmem:[#allocation2 + $0x298] ss:$16 sps:$4 sm:$0xff]   ;;  %v7371_v17 = vcombine.high %v1026_v12, %v1026_v12  ;;  %v8625_v12 = vld [vmem:[#allocation2 + $0x3dc] ss:$16 sps:$4 sm:$0xff]  }
  0xd6   : > { %7313 = vmatmul.mubr.msk.bf16.vlgmr.msra.gmra.mrb[0].mxu0 %vm367_vm2, %v9475_v4  ;;  %7316 = vmatmul.mubr.msk.bf16.vlgmr.msra.gmra.mrb[0].mxu1 %vm367_vm2, %v9475_v4 }
  0xd7   : > { %883 = vmatpush1.bf16.msra.mxu0 %v8500_v20  ;;  %936 = vmatpush1.bf16.msra.mxu1 %v8503_v21  ;;  %v1148_v20 = vsel %vm374_vm0, %v7368_v15, 0  ;;  %v1154_v21 = vsel %vm374_vm0, %v7370_v18, 0  ;;  %v8628_v15 = vld [vmem:[#allocation2 + $0x3f4] ss:$16 sps:$4 sm:$0xff]   ;;  %v1580_v18 = vld [vmem:[#allocation2 + $0x418] sm:$0x33] }
  0xd8   : > { %884 = vmatprep.subr.bf16.mxu0 %v8508_v24  ;;  %937 = vmatprep.subr.bf16.mxu1 %v8511_v25  ;;  %v8570_v24 = vld [vmem:[#allocation2 + $0x2c4] ss:$16 sps:$4 sm:$0xff]   ;;  %v8573_v25 = vld [vmem:[#allocation2 + $0x2cc] ss:$16 sps:$4 sm:$0xff]  }
  0xd9   : > { %663 = vmatprep.mubr.bf16.mxu0 %v9358_v0  ;;  %716 = vmatprep.mubr.bf16.mxu1 %v9358_v0 }
  0xdb   : > { %885 = vmatpush1.bf16.msra.mxu0 %v8506_v26  ;;  %938 = vmatpush1.bf16.msra.mxu1 %v8509_v28  ;;  %v8568_v26 = vld [vmem:[#allocation2 + $0x2c0] ss:$16 sps:$4 sm:$0xff]   ;;  %v8571_v28 = vld [vmem:[#allocation2 + $0x2c8] ss:$16 sps:$4 sm:$0xff]  }
  0xdc   : > { %886 = vmatprep.subr.bf16.mxu0 %v8514_v29  ;;  %939 = vmatprep.subr.bf16.mxu1 %v8517_v30  ;;  %v1028_v29 = vpop.permute.xlu0 %1027  ;;  %v8576_v30 = vld [vmem:[#allocation2 + $0x2e4] ss:$16 sps:$4 sm:$0xff]  }
  0xde   : > { %7314 = vmatmul.mubr.msk.bf16.gmra.mrb[4].mxu0 %vm367_vm2, %v9479_v7  ;;  %7317 = vmatmul.mubr.msk.bf16.gmra.mrb[4].mxu1 %vm367_vm2, %v9479_v7 }
  0xdf   : > { %887 = vmatpush1.bf16.msra.mxu0 %v8512_v31  ;;  %940 = vmatpush1.bf16.msra.mxu1 %v8515_v32  ;;  %v8579_v31 = vld [vmem:[#allocation2 + $0x2ec] ss:$16 sps:$4 sm:$0xff]   ;;  %v8574_v32 = vld [vmem:[#allocation2 + $0x2e0] ss:$16 sps:$4 sm:$0xff]  }
  0xe0   : > { %888 = vmatprep.subr.bf16.mxu0 %v8520_v33  ;;  %941 = vmatprep.subr.bf16.mxu1 %v8523_v34  ;;  %v8577_v33 = vld [vmem:[#allocation2 + $0x2e8] ss:$16 sps:$4 sm:$0xff]   ;;  %v8582_v34 = vld [vmem:[#allocation2 + $0x304] ss:$16 sps:$4 sm:$0xff]  }
  0xe1   : > { %914 = vmatprep.mubr.bf16.mxu0 %v9358_v0  ;;  %967 = vmatprep.mubr.bf16.mxu1 %v9358_v0 }
  0xe3   : > { %889 = vmatpush1.bf16.msra.mxu0 %v8518_v35  ;;  %942 = vmatpush1.bf16.msra.mxu1 %v8521_v36  ;;  %v8585_v35 = vld [vmem:[#allocation2 + $0x30c] ss:$16 sps:$4 sm:$0xff]   ;;  %v8580_v36 = vld [vmem:[#allocation2 + $0x300] ss:$16 sps:$4 sm:$0xff]  }
  0xe4   : > { %890 = vmatprep.subr.bf16.mxu0 %v8526_v37  ;;  %943 = vmatprep.subr.bf16.mxu1 %v8529_v38  ;;  %v8583_v37 = vld [vmem:[#allocation2 + $0x308] ss:$16 sps:$4 sm:$0xff]   ;;  %v1030_v38 = vpop.permute.xlu1 %1029 }
  0xe7   : > { %891 = vmatpush1.bf16.msra.mxu0 %v8524_v42  ;;  %944 = vmatpush1.bf16.msra.mxu1 %v8527_v43  ;;  %v8586_v42 = vld [vmem:[#allocation2 + $0x320] ss:$16 sps:$4 sm:$0xff]   ;;  %v8589_v43 = vld [vmem:[#allocation2 + $0x328] ss:$16 sps:$4 sm:$0xff]  }
  0xe8   : > { %7342 = vmatprep.subr.msk.bf16.mxu0 %vm374_vm0, %v7339_v45  ;;  %7345 = vmatprep.subr.msk.bf16.mxu1 %vm374_vm0, %v7341_v46  ;;  %v8594_v45 = vld [vmem:[#allocation2 + $0x344] ss:$16 sps:$4 sm:$0xff]   ;;  %v8597_v46 = vld [vmem:[#allocation2 + $0x34c] ss:$16 sps:$4 sm:$0xff]  }
  0xeb   : > { %893 = vmatpush1.bf16.msra.mxu0 %v871_v51  ;;  %946 = vmatpush1.bf16.msra.mxu1 %v877_v52  ;;  %v8595_v51 = vld [vmem:[#allocation2 + $0x348] ss:$16 sps:$4 sm:$0xff]   ;;  %v7398_v52 = vcombine.low %v1302_v47, %v1302_v47 }
  0xec   : > { %1159 = vmatprep.subr.bf16.mxu0 %v8536_v50  ;;  %1212 = vmatprep.subr.bf16.mxu1 %v8539_v53  ;;  %v8592_v50 = vld [vmem:[#allocation2 + $0x340] ss:$16 sps:$4 sm:$0xff]   ;;  %v7399_v53 = vcombine.high %v1302_v47, %v1302_v47  ;;  %v8657_v47 = vld [vmem:[#allocation2 + $0x488] ss:$16 sps:$4 sm:$0xff]  }
  0xee   : > { %7343 = vmatmul.mubr.msk.bf16.vlgmr.msra.gmra.mrb[0].mxu0 %vm367_vm2, %v751_v54  ;;  %7346 = vmatmul.mubr.msk.bf16.vlgmr.msra.gmra.mrb[0].mxu1 %vm367_vm2, %v751_v54  ;;  %v7401_v54 = vcombine.high %v1303_v49, %v1303_v49 }
  0xef   : > { %1160 = vmatpush1.bf16.msra.mxu0 %v8534_v55  ;;  %1213 = vmatpush1.bf16.msra.mxu1 %v8537_v56  ;;  %v7400_v55 = vcombine.low %v1303_v49, %v1303_v49  ;;  %v1425_v56 = vsel %vm374_vm0, %v7398_v52, 0  ;;  %v8662_v49 = vld [vmem:[#allocation2 + $0x4a4] ss:$16 sps:$4 sm:$0xff]   ;;  %v1867_v52 = vld [vmem:[#allocation2 + $0x4c8] sm:$0x33] }
  0xf0   : > { %1161 = vmatprep.subr.bf16.mxu0 %v8542_v57  ;;  %1214 = vmatprep.subr.bf16.mxu1 %v8545_v58  ;;  %v8604_v58 = vld [vmem:[#allocation2 + $0x374] ss:$16 sps:$4 sm:$0xff]  }
  0xf1   : > { %924 = vmatprep.mubr.bf16.mxu0 %v9358_v0  ;;  %977 = vmatprep.mubr.bf16.mxu1 %v9358_v0  ;;  %v1431_v57 = vsel %vm374_vm0, %v7400_v55, 0 }
  0xf3   : > { %1162 = vmatpush1.bf16.msra.mxu0 %v8540_v59  ;;  %1215 = vmatpush1.bf16.msra.mxu1 %v8543_v60  ;;  %v8607_v59 = vld [vmem:[#allocation2 + $0x37c] ss:$16 sps:$4 sm:$0xff]   ;;  %v8602_v60 = vld [vmem:[#allocation2 + $0x370] ss:$16 sps:$4 sm:$0xff]  }
  0xf4   : > { %1163 = vmatprep.subr.bf16.mxu0 %v8548_v61  ;;  %1216 = vmatprep.subr.bf16.mxu1 %v8551_v62  ;;  %v8605_v61 = vld [vmem:[#allocation2 + $0x378] ss:$16 sps:$4 sm:$0xff]   ;;  %v1305_v62 = vpop.permute.xlu0 %1304 }
  0xf6   : > { %7344 = vmatmul.mubr.msk.bf16.gmra.mrb[4].mxu0 %vm367_vm2, %v753_v2  ;;  %7347 = vmatmul.mubr.msk.bf16.gmra.mrb[4].mxu1 %vm367_vm2, %v753_v2  ;;  %v8608_v2 = vld [vmem:[#allocation2 + $0x390] ss:$16 sps:$4 sm:$0xff]  }
  0xf7   : > { %1164 = vmatpush1.bf16.msra.mxu0 %v8546_v63  ;;  %1217 = vmatpush1.bf16.msra.mxu1 %v8549_v1  ;;  %v8610_v63 = vld [vmem:[#allocation2 + $0x394] ss:$16 sps:$4 sm:$0xff]   ;;  %v8613_v1 = vld [vmem:[#allocation2 + $0x39c] ss:$16 sps:$4 sm:$0xff]  }
  0xf8   : > { %1165 = vmatprep.subr.bf16.mxu0 %v8554_v3  ;;  %1218 = vmatprep.subr.bf16.mxu1 %v8557_v5  ;;  %v8611_v3 = vld [vmem:[#allocation2 + $0x398] ss:$16 sps:$4 sm:$0xff]   ;;  %v8616_v5 = vld [vmem:[#allocation2 + $0x3b4] ss:$16 sps:$4 sm:$0xff]  }
  0xf9   : > { %1191 = vmatprep.mubr.bf16.mxu0 %v9358_v0  ;;  %1244 = vmatprep.mubr.bf16.mxu1 %v9358_v0 }
  0xfb   : > { %1166 = vmatpush1.bf16.msra.mxu0 %v8552_v6  ;;  %1219 = vmatpush1.bf16.msra.mxu1 %v8555_v8  ;;  %v8619_v6 = vld [vmem:[#allocation2 + $0x3bc] ss:$16 sps:$4 sm:$0xff]   ;;  %v8614_v8 = vld [vmem:[#allocation2 + $0x3b0] ss:$16 sps:$4 sm:$0xff]  }
  0xfc   : > { %1167 = vmatprep.subr.bf16.mxu0 %v8560_v9  ;;  %1220 = vmatprep.subr.bf16.mxu1 %v8563_v10  ;;  %v8617_v9 = vld [vmem:[#allocation2 + $0x3b8] ss:$16 sps:$4 sm:$0xff]   ;;  %v1307_v10 = vpop.permute.xlu1 %1306 }
  0xff   : > { %1168 = vmatpush1.bf16.msra.mxu0 %v8558_v13  ;;  %1221 = vmatpush1.bf16.msra.mxu1 %v8561_v14  ;;  %v8620_v13 = vld [vmem:[#allocation2 + $0x3d0] ss:$16 sps:$4 sm:$0xff]   ;;  %v8623_v14 = vld [vmem:[#allocation2 + $0x3d8] ss:$16 sps:$4 sm:$0xff]  }
 0x100   : > { %7372 = vmatprep.subr.msk.bf16.mxu0 %vm374_vm0, %v7369_v16  ;;  %7375 = vmatprep.subr.msk.bf16.mxu1 %vm374_vm0, %v7371_v17  ;;  %v8631_v16 = vld [vmem:[#allocation2 + $0x3fc] ss:$16 sps:$4 sm:$0xff]   ;;  %v1579_v17 = vld [vmem:[#allocation2 + $0x410] sm:$0x33] }
 0x103   : > { %1170 = vmatpush1.bf16.msra.mxu0 %v1148_v20  ;;  %1223 = vmatpush1.bf16.msra.mxu1 %v1154_v21  ;;  %v8626_v20 = vld [vmem:[#allocation2 + $0x3f0] ss:$16 sps:$4 sm:$0xff]   ;;  %v8629_v21 = vld [vmem:[#allocation2 + $0x3f8] ss:$16 sps:$4 sm:$0xff]  }
 0x104   : > { %1436 = vmatprep.subr.bf16.mxu0 %v8570_v24  ;;  %1489 = vmatprep.subr.bf16.mxu1 %v8573_v25  ;;  %v7428_v24 = vcombine.low %v1579_v17, %v1579_v17  ;;  %v7429_v25 = vcombine.high %v1579_v17, %v1579_v17  ;;  %v8688_v17 = vld [vmem:[#allocation2 + $0x530] ss:$16 sps:$4 sm:$0xff]  }
 0x106   : > { %7373 = vmatmul.mubr.msk.bf16.vlgmr.msra.gmra.mrb[0].mxu0 %vm367_vm2, %v1028_v29  ;;  %7376 = vmatmul.mubr.msk.bf16.vlgmr.msra.gmra.mrb[0].mxu1 %vm367_vm2, %v1028_v29  ;;  %v1712_v29 = vsel %vm374_vm0, %v7428_v24, 0  ;;  %v2143_v24 = vld [vmem:[#allocation2 + $0x570] sm:$0x33] }
 0x107   : > { %1437 = vmatpush1.bf16.msra.mxu0 %v8568_v26  ;;  %1490 = vmatpush1.bf16.msra.mxu1 %v8571_v28  ;;  %v7431_v26 = vcombine.high %v1580_v18, %v1580_v18  ;;  %v7430_v28 = vcombine.low %v1580_v18, %v1580_v18  ;;  %v8691_v18 = vld [vmem:[#allocation2 + $0x538] ss:$16 sps:$4 sm:$0xff]  }
 0x108   : > { %1438 = vmatprep.subr.bf16.mxu0 %v8576_v30  ;;  %1491 = vmatprep.subr.bf16.mxu1 %v8579_v31  ;;  %v8638_v31 = vld [vmem:[#allocation2 + $0x424] ss:$16 sps:$4 sm:$0xff]  }
 0x109   : > { %1201 = vmatprep.mubr.bf16.mxu0 %v9358_v0  ;;  %1254 = vmatprep.mubr.bf16.mxu1 %v9358_v0  ;;  %v1718_v30 = vsel %vm374_vm0, %v7430_v28, 0  ;;  %v8697_v28 = vld [vmem:[#allocation2 + $0x558] ss:$16 sps:$4 sm:$0xff]  }
 0x10b   : > { %1439 = vmatpush1.bf16.msra.mxu0 %v8574_v32  ;;  %1492 = vmatpush1.bf16.msra.mxu1 %v8577_v33  ;;  %v8641_v32 = vld [vmem:[#allocation2 + $0x42c] ss:$16 sps:$4 sm:$0xff]   ;;  %v8636_v33 = vld [vmem:[#allocation2 + $0x420] ss:$16 sps:$4 sm:$0xff]  }
 0x10c   : > { %1440 = vmatprep.subr.bf16.mxu0 %v8582_v34  ;;  %1493 = vmatprep.subr.bf16.mxu1 %v8585_v35  ;;  %v8639_v34 = vld [vmem:[#allocation2 + $0x428] ss:$16 sps:$4 sm:$0xff]   ;;  %v8644_v35 = vld [vmem:[#allocation2 + $0x444] ss:$16 sps:$4 sm:$0xff]  }
 0x10e   : > { %7374 = vmatmul.mubr.msk.bf16.gmra.mrb[4].mxu0 %vm367_vm2, %v1030_v38  ;;  %7377 = vmatmul.mubr.msk.bf16.gmra.mrb[4].mxu1 %vm367_vm2, %v1030_v38  ;;  %v8645_v38 = vld [vmem:[#allocation2 + $0x448] ss:$16 sps:$4 sm:$0xff]  }
 0x10f   : > { %1441 = vmatpush1.bf16.msra.mxu0 %v8580_v36  ;;  %1494 = vmatpush1.bf16.msra.mxu1 %v8583_v37  ;;  %v8647_v36 = vld [vmem:[#allocation2 + $0x44c] ss:$16 sps:$4 sm:$0xff]   ;;  %v8642_v37 = vld [vmem:[#allocation2 + $0x440] ss:$16 sps:$4 sm:$0xff]  }
 0x110   : > { %1442 = vmatprep.subr.bf16.mxu0 %v8588_v40  ;;  %1495 = vmatprep.subr.bf16.mxu1 %v8591_v41  ;;  %v8650_v40 = vld [vmem:[#allocation2 + $0x464] ss:$16 sps:$4 sm:$0xff]   ;;  %v8653_v41 = vld [vmem:[#allocation2 + $0x46c] ss:$16 sps:$4 sm:$0xff]  }
 0x111   : > { %1468 = vmatprep.mubr.bf16.mxu0 %v9358_v0  ;;  %1521 = vmatprep.mubr.bf16.mxu1 %v9358_v0 }
 0x113   : > { %1443 = vmatpush1.bf16.msra.mxu0 %v8586_v42  ;;  %1496 = vmatpush1.bf16.msra.mxu1 %v8589_v43  ;;  %v8648_v42 = vld [vmem:[#allocation2 + $0x460] ss:$16 sps:$4 sm:$0xff]   ;;  %v8651_v43 = vld [vmem:[#allocation2 + $0x468] ss:$16 sps:$4 sm:$0xff]  }
 0x114   : > { %1444 = vmatprep.subr.bf16.mxu0 %v8594_v45  ;;  %1497 = vmatprep.subr.bf16.mxu1 %v8597_v46  ;;  %v8656_v45 = vld [vmem:[#allocation2 + $0x484] ss:$16 sps:$4 sm:$0xff]   ;;  %v8654_v46 = vld [vmem:[#allocation2 + $0x480] ss:$16 sps:$4 sm:$0xff]  }
 0x117   : > { %1445 = vmatpush1.bf16.msra.mxu0 %v8592_v50  ;;  %1498 = vmatpush1.bf16.msra.mxu1 %v8595_v51  ;;  %v8665_v50 = vld [vmem:[#allocation2 + $0x4ac] ss:$16 sps:$4 sm:$0xff]   ;;  %v1866_v51 = vld [vmem:[#allocation2 + $0x4c0] sm:$0x33] }
 0x118   : > { %7402 = vmatprep.subr.msk.bf16.mxu0 %vm374_vm0, %v7399_v53  ;;  %7405 = vmatprep.subr.msk.bf16.mxu1 %vm374_vm0, %v7401_v54  ;;  %v8660_v53 = vld [vmem:[#allocation2 + $0x4a0] ss:$16 sps:$4 sm:$0xff]   ;;  %v8663_v54 = vld [vmem:[#allocation2 + $0x4a8] ss:$16 sps:$4 sm:$0xff]   ;;  %v7458_v55 = vcombine.low %v1866_v51, %v1866_v51 }
 0x11b   : > { %1447 = vmatpush1.bf16.msra.mxu0 %v1425_v56  ;;  %1500 = vmatpush1.bf16.msra.mxu1 %v1431_v57  ;;  %v7459_v56 = vcombine.high %v1866_v51, %v1866_v51  ;;  %v7461_v57 = vcombine.high %v1867_v52, %v1867_v52  ;;  %v8724_v51 = vld [vmem:[#allocation2 + $0x5e4] ss:$16 sps:$4 sm:$0xff]  }
 0x11c   : > { %1723 = vmatprep.subr.bf16.mxu0 %v8604_v58  ;;  %1776 = vmatprep.subr.bf16.mxu1 %v8607_v59  ;;  %v1989_v58 = vsel %vm374_vm0, %v7458_v55, 0  ;;  %v4362_v59 = vrot.slane %v1582_v27, 1  ;;  %v8730_v55 = vld [vmem:[#allocation2 + $0x604] ss:$16 sps:$4 sm:$0xff]  }
 0x11e   : > { %7403 = vmatmul.mubr.msk.bf16.vlgmr.msra.gmra.mrb[0].mxu0 %vm367_vm2, %v1305_v62  ;;  %7406 = vmatmul.mubr.msk.bf16.vlgmr.msra.gmra.mrb[0].mxu1 %vm367_vm2, %v1305_v62  ;;  %v8672_v62 = vld [vmem:[#allocation2 + $0x4d4] ss:$16 sps:$4 sm:$0xff]  }
 0x11f   : > { %1724 = vmatpush1.bf16.msra.mxu0 %v8602_v60  ;;  %1777 = vmatpush1.bf16.msra.mxu1 %v8605_v61  ;;  %v4363_v60 = vrot.slane %v1584_v22, 2  ;;  %v8678_v22 = vld [vmem:[#allocation2 + $0x4f4] ss:$16 sps:$4 sm:$0xff]  }
 0x120   : > { %1725 = vmatprep.subr.bf16.mxu0 %v8610_v63  ;;  %1778 = vmatprep.subr.bf16.mxu1 %v8613_v1  ;;  %v8675_v63 = vld [vmem:[#allocation2 + $0x4dc] ss:$16 sps:$4 sm:$0xff]  }
 0x121   : > { %1478 = vmatprep.mubr.bf16.mxu0 %v9358_v0  ;;  %1531 = vmatprep.mubr.bf16.mxu1 %v9358_v0  ;;  %v4364_v1 = vor.u32 %v4363_v60, %v4362_v59  ;;  %v8731_v59 = vld [vmem:[#allocation2 + $0x608] ss:$16 sps:$4 sm:$0xff]  }
 0x123   : > { %1726 = vmatpush1.bf16.msra.mxu0 %v8608_v2  ;;  %1779 = vmatpush1.bf16.msra.mxu1 %v8611_v3  ;;  %v1869_v2 = vpop.permute.xlu0 %1868  ;;  %v8670_v3 = vld [vmem:[#allocation2 + $0x4d0] ss:$16 sps:$4 sm:$0xff]   ;;  %v9645_v27 = vsel %vm4361_vm4, %v4364_v1, %v9513_v48 }
 0x124   : > { %1727 = vmatprep.subr.bf16.mxu0 %v8616_v5  ;;  %1780 = vmatprep.subr.bf16.mxu1 %v8619_v6  ;;  %v8673_v5 = vld [vmem:[#allocation2 + $0x4d8] ss:$16 sps:$4 sm:$0xff]   ;;  %v8681_v6 = vld [vmem:[#allocation2 + $0x4fc] ss:$16 sps:$4 sm:$0xff]  }
 0x125   : > { %4642 = vrot.lane.b32.xlu0 %v9645_v27, %s9359_s21 }
 0x126   : > { %7404 = vmatmul.mubr.msk.bf16.gmra.mrb[4].mxu0 %vm367_vm2, %v1307_v10  ;;  %7407 = vmatmul.mubr.msk.bf16.gmra.mrb[4].mxu1 %vm367_vm2, %v1307_v10  ;;  %v8684_v10 = vld [vmem:[#allocation2 + $0x514] ss:$16 sps:$4 sm:$0xff]  }
 0x127   : > { %1728 = vmatpush1.bf16.msra.mxu0 %v8614_v8  ;;  %1781 = vmatpush1.bf16.msra.mxu1 %v8617_v9  ;;  %v8676_v8 = vld [vmem:[#allocation2 + $0x4f0] ss:$16 sps:$4 sm:$0xff]   ;;  %v8679_v9 = vld [vmem:[#allocation2 + $0x4f8] ss:$16 sps:$4 sm:$0xff]  }
 0x128   : > { %1729 = vmatprep.subr.bf16.mxu0 %v8622_v11  ;;  %1782 = vmatprep.subr.bf16.mxu1 %v8625_v12  ;;  %v8687_v11 = vld [vmem:[#allocation2 + $0x51c] ss:$16 sps:$4 sm:$0xff]   ;;  %v8682_v12 = vld [vmem:[#allocation2 + $0x510] ss:$16 sps:$4 sm:$0xff]  }
 0x129   : > { %1755 = vmatprep.mubr.bf16.mxu0 %v9358_v0  ;;  %1808 = vmatprep.mubr.bf16.mxu1 %v9358_v0 }
 0x12a   : > { %4919 = vrot.lane.b32.xlu0 %v9645_v27, %s9360_s22 }
 0x12b   : > { %1730 = vmatpush1.bf16.msra.mxu0 %v8620_v13  ;;  %1783 = vmatpush1.bf16.msra.mxu1 %v8623_v14  ;;  %v8685_v13 = vld [vmem:[#allocation2 + $0x518] ss:$16 sps:$4 sm:$0xff]   ;;  %v1871_v14 = vpop.permute.xlu1 %1870 }
 0x12c   : > { %1731 = vmatprep.subr.bf16.mxu0 %v8628_v15  ;;  %1784 = vmatprep.subr.bf16.mxu1 %v8631_v16  ;;  %v8690_v15 = vld [vmem:[#allocation2 + $0x534] ss:$16 sps:$4 sm:$0xff]   ;;  %v8693_v16 = vld [vmem:[#allocation2 + $0x53c] ss:$16 sps:$4 sm:$0xff]  }
 0x12e   : > { %5196 = vrot.lane.b32.xlu0 %v9645_v27, %s9361_s23 }
 0x12f   : > { %1732 = vmatpush1.bf16.msra.mxu0 %v8626_v20  ;;  %1785 = vmatpush1.bf16.msra.mxu1 %v8629_v21  ;;  %v8696_v20 = vld [vmem:[#allocation2 + $0x554] ss:$16 sps:$4 sm:$0xff]   ;;  %v8699_v21 = vld [vmem:[#allocation2 + $0x55c] ss:$16 sps:$4 sm:$0xff]  }
 0x130   : > { %7432 = vmatprep.subr.msk.bf16.mxu0 %vm374_vm0, %v7429_v25  ;;  %7435 = vmatprep.subr.msk.bf16.mxu1 %vm374_vm0, %v7431_v26  ;;  %v2144_v25 = vld [vmem:[#allocation2 + $0x578] sm:$0x33]  ;;  %v8694_v26 = vld [vmem:[#allocation2 + $0x550] ss:$16 sps:$4 sm:$0xff]  }
 0x132   : > { %5473 = vrot.lane.b32.xlu0 %v9645_v27, %s9362_s24 }
 0x133   : > { %1734 = vmatpush1.bf16.msra.mxu0 %v1712_v29  ;;  %1787 = vmatpush1.bf16.msra.mxu1 %v1718_v30  ;;  %v7489_v29 = vcombine.high %v2143_v24, %v2143_v24  ;;  %v7491_v30 = vcombine.high %v2144_v25, %v2144_v25 }
 0x134   : > { %2000 = vmatprep.subr.bf16.mxu0 %v8638_v31  ;;  %2053 = vmatprep.subr.bf16.mxu1 %v8641_v32  ;;  %v7488_v31 = vcombine.low %v2143_v24, %v2143_v24  ;;  %v7490_v32 = vcombine.low %v2144_v25, %v2144_v25  ;;  %v8759_v24 = vld [vmem:[#allocation2 + $0x698] ss:$16 sps:$4 sm:$0xff]   ;;  %v8764_v25 = vld [vmem:[#allocation2 + $0x6b4] ss:$16 sps:$4 sm:$0xff]  }
 0x136   : > { %7433 = vmatmul.mubr.msk.bf16.vlgmr.msra.gmra.mrb[0].mxu0 %vm367_vm2, %v9502_v39  ;;  %7436 = vmatmul.mubr.msk.bf16.vlgmr.msra.gmra.mrb[0].mxu1 %vm367_vm2, %v9502_v39  ;;  %v8659_v39 = vld [vmem:[#allocation2 + $0x48c] ss:$16 sps:$4 sm:$0xff]  }
 0x137   : > { %2001 = vmatpush1.bf16.msra.mxu0 %v8636_v33  ;;  %2054 = vmatpush1.bf16.msra.mxu1 %v8639_v34  ;;  %v2266_v33 = vsel %vm374_vm0, %v7488_v31, 0  ;;  %v2272_v34 = vsel %vm374_vm0, %v7490_v32, 0  ;;  %v8765_v31 = vld [vmem:[#allocation2 + $0x6b8] ss:$16 sps:$4 sm:$0xff]  }
 0x138   : > { %2002 = vmatprep.subr.bf16.mxu0 %v8644_v35  ;;  %2055 = vmatprep.subr.bf16.mxu1 %v8647_v36  ;;  %v8706_v35 = vld [vmem:[#allocation2 + $0x584] ss:$16 sps:$4 sm:$0xff]   ;;  %v8709_v36 = vld [vmem:[#allocation2 + $0x58c] ss:$16 sps:$4 sm:$0xff]  }
 0x139   : > { %1765 = vmatprep.mubr.bf16.mxu0 %v9358_v0  ;;  %1818 = vmatprep.mubr.bf16.mxu1 %v9358_v0 }
 0x13b   : > { %2003 = vmatpush1.bf16.msra.mxu0 %v8642_v37  ;;  %2056 = vmatpush1.bf16.msra.mxu1 %v8645_v38  ;;  %v2146_v37 = vpop.permute.xlu0 %2145  ;;  %v8704_v38 = vld [vmem:[#allocation2 + $0x580] ss:$16 sps:$4 sm:$0xff]  }
 0x13c   : > { %2004 = vmatprep.subr.bf16.mxu0 %v8650_v40  ;;  %2057 = vmatprep.subr.bf16.mxu1 %v8653_v41  ;;  %v8707_v40 = vld [vmem:[#allocation2 + $0x588] ss:$16 sps:$4 sm:$0xff]   ;;  %v8712_v41 = vld [vmem:[#allocation2 + $0x5a4] ss:$16 sps:$4 sm:$0xff]  }
 0x13e   : > { %7434 = vmatmul.mubr.msk.bf16.gmra.mrb[4].mxu0 %vm367_vm2, %v9509_v44  ;;  %7437 = vmatmul.mubr.msk.bf16.gmra.mrb[4].mxu1 %vm367_vm2, %v9509_v44  ;;  %v7460_v44 = vcombine.low %v1867_v52, %v1867_v52  ;;  %v8727_v52 = vld [vmem:[#allocation2 + $0x5ec] ss:$16 sps:$4 sm:$0xff]  }
 0x13f   : > { %2005 = vmatpush1.bf16.msra.mxu0 %v8648_v42  ;;  %2058 = vmatpush1.bf16.msra.mxu1 %v8651_v43  ;;  %v8715_v42 = vld [vmem:[#allocation2 + $0x5ac] ss:$16 sps:$4 sm:$0xff]   ;;  %v8710_v43 = vld [vmem:[#allocation2 + $0x5a0] ss:$16 sps:$4 sm:$0xff]  }
 0x140   : > { %2006 = vmatprep.subr.bf16.mxu0 %v8656_v45  ;;  %2059 = vmatprep.subr.bf16.mxu1 %v8659_v39  ;;  %v1995_v61 = vsel %vm374_vm0, %v7460_v44, 0  ;;  %v8713_v45 = vld [vmem:[#allocation2 + $0x5a8] ss:$16 sps:$4 sm:$0xff]   ;;  %v8718_v39 = vld [vmem:[#allocation2 + $0x5c4] ss:$16 sps:$4 sm:$0xff]  }
 0x141   : > { %2032 = vmatprep.mubr.bf16.mxu0 %v9358_v0  ;;  %2085 = vmatprep.mubr.bf16.mxu1 %v9358_v0  ;;  %v2421_v44 = vld [vmem:[#allocation2 + $0x628] sm:$0x33] }
 0x143   : > { %2007 = vmatpush1.bf16.msra.mxu0 %v8654_v46  ;;  %2060 = vmatpush1.bf16.msra.mxu1 %v8657_v47  ;;  %v8721_v46 = vld [vmem:[#allocation2 + $0x5cc] ss:$16 sps:$4 sm:$0xff]   ;;  %v8716_v47 = vld [vmem:[#allocation2 + $0x5c0] ss:$16 sps:$4 sm:$0xff]  }
 0x144   : > { %2008 = vmatprep.subr.bf16.mxu0 %v8662_v49  ;;  %2061 = vmatprep.subr.bf16.mxu1 %v8665_v50  ;;  %v8719_v49 = vld [vmem:[#allocation2 + $0x5c8] ss:$16 sps:$4 sm:$0xff]   ;;  %v2148_v50 = vpop.permute.xlu1 %2147 }
 0x147   : > { %2009 = vmatpush1.bf16.msra.mxu0 %v8660_v53  ;;  %2062 = vmatpush1.bf16.msra.mxu1 %v8663_v54  ;;  %v8722_v53 = vld [vmem:[#allocation2 + $0x5e0] ss:$16 sps:$4 sm:$0xff]   ;;  %v8725_v54 = vld [vmem:[#allocation2 + $0x5e8] ss:$16 sps:$4 sm:$0xff]  }
 0x148   : > { %7462 = vmatprep.subr.msk.bf16.mxu0 %vm374_vm0, %v7459_v56  ;;  %7465 = vmatprep.subr.msk.bf16.mxu1 %vm374_vm0, %v7461_v57  ;;  %v8733_v56 = vld [vmem:[#allocation2 + $0x60c] ss:$16 sps:$4 sm:$0xff]   ;;  %v2420_v57 = vld [vmem:[#allocation2 + $0x620] sm:$0x33] }
 0x149   : > { %v7519_v60 = vcombine.high %v2420_v57, %v2420_v57 }
 0x14b   : > { %2011 = vmatpush1.bf16.msra.mxu0 %v1989_v58  ;;  %2064 = vmatpush1.bf16.msra.mxu1 %v1995_v61  ;;  %v8728_v58 = vld [vmem:[#allocation2 + $0x600] ss:$16 sps:$4 sm:$0xff]   ;;  %v7521_v61 = vcombine.high %v2421_v44, %v2421_v44 }
 0x14c   : > { %2277 = vmatprep.subr.bf16.mxu0 %v8672_v62  ;;  %2330 = vmatprep.subr.bf16.mxu1 %v8675_v63  ;;  %v7518_v62 = vcombine.low %v2420_v57, %v2420_v57  ;;  %v7520_v63 = vcombine.low %v2421_v44, %v2421_v44  ;;  %v8793_v57 = vld [vmem:[#allocation2 + $0x748] ss:$16 sps:$4 sm:$0xff]   ;;  %v8798_v44 = vld [vmem:[#allocation2 + $0x764] ss:$16 sps:$4 sm:$0xff]  }
 0x14e   : > { %7463 = vmatmul.mubr.msk.bf16.vlgmr.msra.gmra.mrb[0].mxu0 %vm367_vm2, %v1869_v2  ;;  %7466 = vmatmul.mubr.msk.bf16.vlgmr.msra.gmra.mrb[0].mxu1 %vm367_vm2, %v1869_v2  ;;  %v2543_v1 = vsel %vm374_vm0, %v7518_v62, 0  ;;  %v2549_v2 = vsel %vm374_vm0, %v7520_v63, 0  ;;  %v8799_v62 = vld [vmem:[#allocation2 + $0x768] ss:$16 sps:$4 sm:$0xff]  }
 0x14f   : > { %2278 = vmatpush1.bf16.msra.mxu0 %v8670_v3  ;;  %2331 = vmatpush1.bf16.msra.mxu1 %v8673_v5  ;;  %v8740_v3 = vld [vmem:[#allocation2 + $0x634] ss:$16 sps:$4 sm:$0xff]   ;;  %v8743_v5 = vld [vmem:[#allocation2 + $0x63c] ss:$16 sps:$4 sm:$0xff]  }
 0x150   : > { %2279 = vmatprep.subr.bf16.mxu0 %v8678_v22  ;;  %2332 = vmatprep.subr.bf16.mxu1 %v8681_v6  ;;  %v2423_v22 = vpop.permute.xlu0 %2422  ;;  %v8738_v6 = vld [vmem:[#allocation2 + $0x630] ss:$16 sps:$4 sm:$0xff]  }
 0x151   : > { %2042 = vmatprep.mubr.bf16.mxu0 %v9358_v0  ;;  %2095 = vmatprep.mubr.bf16.mxu1 %v9358_v0 }
 0x153   : > { %2280 = vmatpush1.bf16.msra.mxu0 %v8676_v8  ;;  %2333 = vmatpush1.bf16.msra.mxu1 %v8679_v9  ;;  %v8741_v8 = vld [vmem:[#allocation2 + $0x638] ss:$16 sps:$4 sm:$0xff]   ;;  %v8746_v9 = vld [vmem:[#allocation2 + $0x654] ss:$16 sps:$4 sm:$0xff]  }
 0x154   : > { %2281 = vmatprep.subr.bf16.mxu0 %v8684_v10  ;;  %2334 = vmatprep.subr.bf16.mxu1 %v8687_v11  ;;  %v8749_v10 = vld [vmem:[#allocation2 + $0x65c] ss:$16 sps:$4 sm:$0xff]   ;;  %v8744_v11 = vld [vmem:[#allocation2 + $0x650] ss:$16 sps:$4 sm:$0xff]  }
 0x156   : > { %7464 = vmatmul.mubr.msk.bf16.gmra.mrb[4].mxu0 %vm367_vm2, %v1871_v14  ;;  %7467 = vmatmul.mubr.msk.bf16.gmra.mrb[4].mxu1 %vm367_vm2, %v1871_v14  ;;  %v8755_v14 = vld [vmem:[#allocation2 + $0x67c] ss:$16 sps:$4 sm:$0xff]  }
 0x157   : > { %2282 = vmatpush1.bf16.msra.mxu0 %v8682_v12  ;;  %2335 = vmatpush1.bf16.msra.mxu1 %v8685_v13  ;;  %v8747_v12 = vld [vmem:[#allocation2 + $0x658] ss:$16 sps:$4 sm:$0xff]   ;;  %v8752_v13 = vld [vmem:[#allocation2 + $0x674] ss:$16 sps:$4 sm:$0xff]  }
 0x158   : > { %2283 = vmatprep.subr.bf16.mxu0 %v8690_v15  ;;  %2336 = vmatprep.subr.bf16.mxu1 %v8693_v16  ;;  %v8750_v15 = vld [vmem:[#allocation2 + $0x670] ss:$16 sps:$4 sm:$0xff]   ;;  %v8753_v16 = vld [vmem:[#allocation2 + $0x678] ss:$16 sps:$4 sm:$0xff]  }
 0x159   : > { %2309 = vmatprep.mubr.bf16.mxu0 %v9358_v0  ;;  %2362 = vmatprep.mubr.bf16.mxu1 %v9358_v0 }
 0x15b   : > { %2284 = vmatpush1.bf16.msra.mxu0 %v8688_v17  ;;  %2337 = vmatpush1.bf16.msra.mxu1 %v8691_v18  ;;  %v2425_v17 = vpop.permute.xlu1 %2424  ;;  %v8758_v18 = vld [vmem:[#allocation2 + $0x694] ss:$16 sps:$4 sm:$0xff]  }
 0x15c   : > { %2285 = vmatprep.subr.bf16.mxu0 %v8696_v20  ;;  %2338 = vmatprep.subr.bf16.mxu1 %v8699_v21  ;;  %v8761_v20 = vld [vmem:[#allocation2 + $0x69c] ss:$16 sps:$4 sm:$0xff]   ;;  %v8756_v21 = vld [vmem:[#allocation2 + $0x690] ss:$16 sps:$4 sm:$0xff]  }
 0x15f   : > { %2286 = vmatpush1.bf16.msra.mxu0 %v8694_v26  ;;  %2339 = vmatpush1.bf16.msra.mxu1 %v8697_v28  ;;  %v8767_v26 = vld [vmem:[#allocation2 + $0x6bc] ss:$16 sps:$4 sm:$0xff]   ;;  %v2697_v28 = vld [vmem:[#allocation2 + $0x6d0] sm:$0x33] }
 0x160   : > { %7492 = vmatprep.subr.msk.bf16.mxu0 %vm374_vm0, %v7489_v29  ;;  %7495 = vmatprep.subr.msk.bf16.mxu1 %vm374_vm0, %v7491_v30  ;;  %v2698_v29 = vld [vmem:[#allocation2 + $0x6d8] sm:$0x33]  ;;  %v8762_v30 = vld [vmem:[#allocation2 + $0x6b0] ss:$16 sps:$4 sm:$0xff]   ;;  %v7549_v32 = vcombine.high %v2697_v28, %v2697_v28 }
 0x163   : > { %2288 = vmatpush1.bf16.msra.mxu0 %v2266_v33  ;;  %2341 = vmatpush1.bf16.msra.mxu1 %v2272_v34  ;;  %v7551_v33 = vcombine.high %v2698_v29, %v2698_v29  ;;  %v7548_v34 = vcombine.low %v2697_v28, %v2697_v28  ;;  %v3251_v28 = vld [vmem:[#allocation2 + $0x830] sm:$0x33] }
 0x164   : > { %2554 = vmatprep.subr.bf16.mxu0 %v8706_v35  ;;  %2607 = vmatprep.subr.bf16.mxu1 %v8709_v36  ;;  %v7550_v35 = vcombine.low %v2698_v29, %v2698_v29  ;;  %v3252_v29 = vld [vmem:[#allocation2 + $0x838] sm:$0x33] }
 0x165   : > { %v2820_v36 = vsel %vm374_vm0, %v7548_v34, 0  ;;  %v7610_v34 = vcombine.low %v3252_v29, %v3252_v29 }
 0x166   : > { %7493 = vmatmul.mubr.msk.bf16.vlgmr.msra.gmra.mrb[0].mxu0 %vm367_vm2, %v2146_v37  ;;  %7496 = vmatmul.mubr.msk.bf16.vlgmr.msra.gmra.mrb[0].mxu1 %vm367_vm2, %v2146_v37  ;;  %v2826_v37 = vsel %vm374_vm0, %v7550_v35, 0 }
 0x167   : > { %2555 = vmatpush1.bf16.msra.mxu0 %v8704_v38  ;;  %2608 = vmatpush1.bf16.msra.mxu1 %v8707_v40  ;;  %v8774_v38 = vld [vmem:[#allocation2 + $0x6e4] ss:$16 sps:$4 sm:$0xff]   ;;  %v8777_v40 = vld [vmem:[#allocation2 + $0x6ec] ss:$16 sps:$4 sm:$0xff]  }
 0x168   : > { %2556 = vmatprep.subr.bf16.mxu0 %v8712_v41  ;;  %2609 = vmatprep.subr.bf16.mxu1 %v8715_v42  ;;  %v2700_v41 = vpop.permute.xlu0 %2699  ;;  %v8772_v42 = vld [vmem:[#allocation2 + $0x6e0] ss:$16 sps:$4 sm:$0xff]  }
 0x169   : > { %2319 = vmatprep.mubr.bf16.mxu0 %v9358_v0  ;;  %2372 = vmatprep.mubr.bf16.mxu1 %v9358_v0 }
 0x16b   : > { %2557 = vmatpush1.bf16.msra.mxu0 %v8710_v43  ;;  %2610 = vmatpush1.bf16.msra.mxu1 %v8713_v45  ;;  %v8775_v43 = vld [vmem:[#allocation2 + $0x6e8] ss:$16 sps:$4 sm:$0xff]   ;;  %v8780_v45 = vld [vmem:[#allocation2 + $0x704] ss:$16 sps:$4 sm:$0xff]  }
 0x16c   : > { %2558 = vmatprep.subr.bf16.mxu0 %v8718_v39  ;;  %2611 = vmatprep.subr.bf16.mxu1 %v8721_v46  ;;  %v8783_v39 = vld [vmem:[#allocation2 + $0x70c] ss:$16 sps:$4 sm:$0xff]   ;;  %v8778_v46 = vld [vmem:[#allocation2 + $0x700] ss:$16 sps:$4 sm:$0xff]  }
 0x16e   : > { %7494 = vmatmul.mubr.msk.bf16.gmra.mrb[4].mxu0 %vm367_vm2, %v2148_v50  ;;  %7497 = vmatmul.mubr.msk.bf16.gmra.mrb[4].mxu1 %vm367_vm2, %v2148_v50  ;;  %v8789_v50 = vld [vmem:[#allocation2 + $0x72c] ss:$16 sps:$4 sm:$0xff]  }
 0x16f   : > { %2559 = vmatpush1.bf16.msra.mxu0 %v8716_v47  ;;  %2612 = vmatpush1.bf16.msra.mxu1 %v8719_v49  ;;  %v8781_v47 = vld [vmem:[#allocation2 + $0x708] ss:$16 sps:$4 sm:$0xff]   ;;  %v8786_v49 = vld [vmem:[#allocation2 + $0x724] ss:$16 sps:$4 sm:$0xff]  }
 0x170   : > { %2560 = vmatprep.subr.bf16.mxu0 %v8724_v51  ;;  %2613 = vmatprep.subr.bf16.mxu1 %v8727_v52  ;;  %v8784_v51 = vld [vmem:[#allocation2 + $0x720] ss:$16 sps:$4 sm:$0xff]   ;;  %v8787_v52 = vld [vmem:[#allocation2 + $0x728] ss:$16 sps:$4 sm:$0xff]  }
 0x171   : > { %2586 = vmatprep.mubr.bf16.mxu0 %v9358_v0  ;;  %2639 = vmatprep.mubr.bf16.mxu1 %v9358_v0 }
 0x173   : > { %2561 = vmatpush1.bf16.msra.mxu0 %v8722_v53  ;;  %2614 = vmatpush1.bf16.msra.mxu1 %v8725_v54  ;;  %v2702_v53 = vpop.permute.xlu1 %2701  ;;  %v8792_v54 = vld [vmem:[#allocation2 + $0x744] ss:$16 sps:$4 sm:$0xff]  }
 0x174   : > { %2562 = vmatprep.subr.bf16.mxu0 %v8730_v55  ;;  %2615 = vmatprep.subr.bf16.mxu1 %v8733_v56  ;;  %v8795_v55 = vld [vmem:[#allocation2 + $0x74c] ss:$16 sps:$4 sm:$0xff]   ;;  %v8790_v56 = vld [vmem:[#allocation2 + $0x740] ss:$16 sps:$4 sm:$0xff]  }
 0x177   : > { %2563 = vmatpush1.bf16.msra.mxu0 %v8728_v58  ;;  %2616 = vmatpush1.bf16.msra.mxu1 %v8731_v59  ;;  %v8801_v58 = vld [vmem:[#allocation2 + $0x76c] ss:$16 sps:$4 sm:$0xff]   ;;  %v2974_v59 = vld [vmem:[#allocation2 + $0x780] sm:$0x33] }
 0x178   : > { %7522 = vmatprep.subr.msk.bf16.mxu0 %vm374_vm0, %v7519_v60  ;;  %7525 = vmatprep.subr.msk.bf16.mxu1 %vm374_vm0, %v7521_v61  ;;  %v2975_v60 = vld [vmem:[#allocation2 + $0x788] sm:$0x33]  ;;  %v8796_v61 = vld [vmem:[#allocation2 + $0x760] ss:$16 sps:$4 sm:$0xff]   ;;  %v7579_v63 = vcombine.high %v2974_v59, %v2974_v59 }
 0x17b   : > { %2565 = vmatpush1.bf16.msra.mxu0 %v2543_v1  ;;  %2618 = vmatpush1.bf16.msra.mxu1 %v2549_v2  ;;  %v7581_v1 = vcombine.high %v2975_v60, %v2975_v60  ;;  %v7578_v2 = vcombine.low %v2974_v59, %v2974_v59  ;;  %v3528_v59 = vld [vmem:[#allocation2 + $0x8e0] sm:$0x33] }
 0x17c   : > { %2831 = vmatprep.subr.bf16.mxu0 %v8740_v3  ;;  %2884 = vmatprep.subr.bf16.mxu1 %v8743_v5  ;;  %v7580_v3 = vcombine.low %v2975_v60, %v2975_v60  ;;  %v3529_v60 = vld [vmem:[#allocation2 + $0x8e8] sm:$0x33] }
 0x17d   : > { %v3097_v5 = vsel %vm374_vm0, %v7578_v2, 0  ;;  %v7638_v2 = vcombine.low %v3528_v59, %v3528_v59 }
 0x17e   : > { %7523 = vmatmul.mubr.msk.bf16.vlgmr.msra.gmra.mrb[0].mxu0 %vm367_vm2, %v2423_v22  ;;  %7526 = vmatmul.mubr.msk.bf16.vlgmr.msra.gmra.mrb[0].mxu1 %vm367_vm2, %v2423_v22  ;;  %v3103_v22 = vsel %vm374_vm0, %v7580_v3, 0  ;;  %v7640_v3 = vcombine.low %v3529_v60, %v3529_v60 }
 0x17f   : > { %2832 = vmatpush1.bf16.msra.mxu0 %v8738_v6  ;;  %2885 = vmatpush1.bf16.msra.mxu1 %v8741_v8  ;;  %v8808_v6 = vld [vmem:[#allocation2 + $0x794] ss:$16 sps:$4 sm:$0xff]   ;;  %v8811_v8 = vld [vmem:[#allocation2 + $0x79c] ss:$16 sps:$4 sm:$0xff]  }
 0x180   : > { %2833 = vmatprep.subr.bf16.mxu0 %v8746_v9  ;;  %2886 = vmatprep.subr.bf16.mxu1 %v8749_v10  ;;  %v8806_v9 = vld [vmem:[#allocation2 + $0x790] ss:$16 sps:$4 sm:$0xff]   ;;  %v8809_v10 = vld [vmem:[#allocation2 + $0x798] ss:$16 sps:$4 sm:$0xff]  }
 0x181   : > { %2596 = vmatprep.mubr.bf16.mxu0 %v9358_v0  ;;  %2649 = vmatprep.mubr.bf16.mxu1 %v9358_v0 }
 0x183   : > { %2834 = vmatpush1.bf16.msra.mxu0 %v8744_v11  ;;  %2887 = vmatpush1.bf16.msra.mxu1 %v8747_v12  ;;  %v8814_v11 = vld [vmem:[#allocation2 + $0x7b4] ss:$16 sps:$4 sm:$0xff]   ;;  %v8817_v12 = vld [vmem:[#allocation2 + $0x7bc] ss:$16 sps:$4 sm:$0xff]  }
 0x184   : > { %2835 = vmatprep.subr.bf16.mxu0 %v8752_v13  ;;  %2888 = vmatprep.subr.bf16.mxu1 %v8755_v14  ;;  %v8812_v13 = vld [vmem:[#allocation2 + $0x7b0] ss:$16 sps:$4 sm:$0xff]   ;;  %v8815_v14 = vld [vmem:[#allocation2 + $0x7b8] ss:$16 sps:$4 sm:$0xff]  }
 0x186   : > { %7524 = vmatmul.mubr.msk.bf16.gmra.mrb[4].mxu0 %vm367_vm2, %v2425_v17  ;;  %7527 = vmatmul.mubr.msk.bf16.gmra.mrb[4].mxu1 %vm367_vm2, %v2425_v17  ;;  %v8818_v17 = vld [vmem:[#allocation2 + $0x7d0] ss:$16 sps:$4 sm:$0xff]  }
 0x187   : > { %2836 = vmatpush1.bf16.msra.mxu0 %v8750_v15  ;;  %2889 = vmatpush1.bf16.msra.mxu1 %v8753_v16  ;;  %v8820_v15 = vld [vmem:[#allocation2 + $0x7d4] ss:$16 sps:$4 sm:$0xff]   ;;  %v8823_v16 = vld [vmem:[#allocation2 + $0x7dc] ss:$16 sps:$4 sm:$0xff]  }
 0x188   : > { %2837 = vmatprep.subr.bf16.mxu0 %v8758_v18  ;;  %2890 = vmatprep.subr.bf16.mxu1 %v8761_v20  ;;  %v8821_v18 = vld [vmem:[#allocation2 + $0x7d8] ss:$16 sps:$4 sm:$0xff]   ;;  %v8826_v20 = vld [vmem:[#allocation2 + $0x7f4] ss:$16 sps:$4 sm:$0xff]  }
 0x189   : > { %2863 = vmatprep.mubr.bf16.mxu0 %v9358_v0  ;;  %2916 = vmatprep.mubr.bf16.mxu1 %v9358_v0 }
 0x18b   : > { %2838 = vmatpush1.bf16.msra.mxu0 %v8756_v21  ;;  %2891 = vmatpush1.bf16.msra.mxu1 %v8759_v24  ;;  %v8824_v21 = vld [vmem:[#allocation2 + $0x7f0] ss:$16 sps:$4 sm:$0xff]   ;;  %v8827_v24 = vld [vmem:[#allocation2 + $0x7f8] ss:$16 sps:$4 sm:$0xff]  }
 0x18c   : > { %2839 = vmatprep.subr.bf16.mxu0 %v8764_v25  ;;  %2892 = vmatprep.subr.bf16.mxu1 %v8767_v26  ;;  %v8832_v25 = vld [vmem:[#allocation2 + $0x814] ss:$16 sps:$4 sm:$0xff]   ;;  %v8835_v26 = vld [vmem:[#allocation2 + $0x81c] ss:$16 sps:$4 sm:$0xff]  }
 0x18f   : > { %2840 = vmatpush1.bf16.msra.mxu0 %v8762_v30  ;;  %2893 = vmatpush1.bf16.msra.mxu1 %v8765_v31  ;;  %v8830_v30 = vld [vmem:[#allocation2 + $0x810] ss:$16 sps:$4 sm:$0xff]   ;;  %v8833_v31 = vld [vmem:[#allocation2 + $0x818] ss:$16 sps:$4 sm:$0xff]  }
 0x190   : > { %7552 = vmatprep.subr.msk.bf16.mxu0 %vm374_vm0, %v7549_v32  ;;  %7555 = vmatprep.subr.msk.bf16.mxu1 %vm374_vm0, %v7551_v33  ;;  %v7609_v32 = vcombine.high %v3251_v28, %v3251_v28  ;;  %v7608_v33 = vcombine.low %v3251_v28, %v3251_v28  ;;  %v8900_v28 = vld [vmem:[#allocation2 + $0x974] ss:$16 sps:$4 sm:$0xff]  }
 0x192   : > { %v3374_v35 = vsel %vm374_vm0, %v7608_v33, 0 }
 0x193   : > { %2842 = vmatpush1.bf16.msra.mxu0 %v2820_v36  ;;  %2895 = vmatpush1.bf16.msra.mxu1 %v2826_v37  ;;  %v3380_v36 = vsel %vm374_vm0, %v7610_v34, 0  ;;  %v8842_v37 = vld [vmem:[#allocation2 + $0x844] ss:$16 sps:$4 sm:$0xff]  }
 0x194   : > { %3108 = vmatprep.subr.bf16.mxu0 %v8774_v38  ;;  %3161 = vmatprep.subr.bf16.mxu1 %v8777_v40  ;;  %v8845_v38 = vld [vmem:[#allocation2 + $0x84c] ss:$16 sps:$4 sm:$0xff]   ;;  %v5751_v40 = vrot.slane %v9475_v4, 2  ;;  %v8846_v4 = vld [vmem:[#allocation2 + $0x860] ss:$16 sps:$4 sm:$0xff]  }
 0x196   : > { %7553 = vmatmul.mubr.msk.bf16.vlgmr.msra.gmra.mrb[0].mxu0 %vm367_vm2, %v2700_v41  ;;  %7556 = vmatmul.mubr.msk.bf16.vlgmr.msra.gmra.mrb[0].mxu1 %vm367_vm2, %v2700_v41  ;;  %v9721_v41 = vrot.slane %v9479_v7, 2  ;;  %v8849_v7 = vld [vmem:[#allocation2 + $0x868] ss:$16 sps:$4 sm:$0xff]  }
 0x197   : > { %3109 = vmatpush1.bf16.msra.mxu0 %v8772_v42  ;;  %3162 = vmatpush1.bf16.msra.mxu1 %v8775_v43  ;;  %v3254_v42 = vpop.permute.xlu0 %3253  ;;  %v8840_v43 = vld [vmem:[#allocation2 + $0x840] ss:$16 sps:$4 sm:$0xff]  }
 0x198   : > { %3110 = vmatprep.subr.bf16.mxu0 %v8780_v45  ;;  %3163 = vmatprep.subr.bf16.mxu1 %v8783_v39  ;;  %v8843_v45 = vld [vmem:[#allocation2 + $0x848] ss:$16 sps:$4 sm:$0xff]   ;;  %v9724_v39 = vsel %vm5750_vm5, %v5751_v40, %v9721_v41  ;;  %v8910_v40 = vld [vmem:[#allocation2 + $0x9a4] ss:$16 sps:$4 sm:$0xff]  }
 0x199   : > { %2873 = vmatprep.mubr.bf16.mxu0 %v9358_v0  ;;  %2926 = vmatprep.mubr.bf16.mxu1 %v9358_v0 }
 0x19a   : > { %6027 = vrot.lane.b32.xlu0 %v9724_v39, %s9359_s21  ;;  %6029 = vrot.lane.b32.xlu1 %v9721_v41, %s9359_s21 }
 0x19b   : > { %3111 = vmatpush1.bf16.msra.mxu0 %v8778_v46  ;;  %3164 = vmatpush1.bf16.msra.mxu1 %v8781_v47  ;;  %v8848_v46 = vld [vmem:[#allocation2 + $0x864] ss:$16 sps:$4 sm:$0xff]   ;;  %v8851_v47 = vld [vmem:[#allocation2 + $0x86c] ss:$16 sps:$4 sm:$0xff]  }
 0x19c   : > { %3112 = vmatprep.subr.bf16.mxu0 %v8786_v49  ;;  %3165 = vmatprep.subr.bf16.mxu1 %v8789_v50  ;;  %v8854_v49 = vld [vmem:[#allocation2 + $0x884] ss:$16 sps:$4 sm:$0xff]   ;;  %v8857_v50 = vld [vmem:[#allocation2 + $0x88c] ss:$16 sps:$4 sm:$0xff]  }
 0x19e   : > { %7554 = vmatmul.mubr.msk.bf16.gmra.mrb[4].mxu0 %vm367_vm2, %v2702_v53  ;;  %7557 = vmatmul.mubr.msk.bf16.gmra.mrb[4].mxu1 %vm367_vm2, %v2702_v53  ;;  %v3256_v53 = vpop.permute.xlu1 %3255 }
 0x19f   : > { %3113 = vmatpush1.bf16.msra.mxu0 %v8784_v51  ;;  %3166 = vmatpush1.bf16.msra.mxu1 %v8787_v52  ;;  %v8852_v51 = vld [vmem:[#allocation2 + $0x880] ss:$16 sps:$4 sm:$0xff]   ;;  %v8855_v52 = vld [vmem:[#allocation2 + $0x888] ss:$16 sps:$4 sm:$0xff]  }
 0x1a0   : > { %3114 = vmatprep.subr.bf16.mxu0 %v8792_v54  ;;  %3167 = vmatprep.subr.bf16.mxu1 %v8795_v55  ;;  %v8860_v54 = vld [vmem:[#allocation2 + $0x8a4] ss:$16 sps:$4 sm:$0xff]   ;;  %v8863_v55 = vld [vmem:[#allocation2 + $0x8ac] ss:$16 sps:$4 sm:$0xff]  }
 0x1a1   : > { %3140 = vmatprep.mubr.bf16.mxu0 %v9358_v0  ;;  %3193 = vmatprep.mubr.bf16.mxu1 %v9358_v0 }
 0x1a2   : > { %6304 = vrot.lane.b32.xlu0 %v9724_v39, %s9360_s22  ;;  %6306 = vrot.lane.b32.xlu1 %v9721_v41, %s9360_s22 }
 0x1a3   : > { %3115 = vmatpush1.bf16.msra.mxu0 %v8790_v56  ;;  %3168 = vmatpush1.bf16.msra.mxu1 %v8793_v57  ;;  %v8858_v56 = vld [vmem:[#allocation2 + $0x8a0] ss:$16 sps:$4 sm:$0xff]   ;;  %v8861_v57 = vld [vmem:[#allocation2 + $0x8a8] ss:$16 sps:$4 sm:$0xff]  }
 0x1a4   : > { %3116 = vmatprep.subr.bf16.mxu0 %v8798_v44  ;;  %3169 = vmatprep.subr.bf16.mxu1 %v8801_v58  ;;  %v8866_v44 = vld [vmem:[#allocation2 + $0x8c4] ss:$16 sps:$4 sm:$0xff]   ;;  %v8869_v58 = vld [vmem:[#allocation2 + $0x8cc] ss:$16 sps:$4 sm:$0xff]  }
 0x1a6   : > { %6581 = vrot.lane.b32.xlu0 %v9724_v39, %s9361_s23  ;;  %6583 = vrot.lane.b32.xlu1 %v9721_v41, %s9361_s23 }
 0x1a7   : > { %3117 = vmatpush1.bf16.msra.mxu0 %v8796_v61  ;;  %3170 = vmatpush1.bf16.msra.mxu1 %v8799_v62  ;;  %v8864_v61 = vld [vmem:[#allocation2 + $0x8c0] ss:$16 sps:$4 sm:$0xff]   ;;  %v8867_v62 = vld [vmem:[#allocation2 + $0x8c8] ss:$16 sps:$4 sm:$0xff]  }
 0x1a8   : > { %7582 = vmatprep.subr.msk.bf16.mxu0 %vm374_vm0, %v7579_v63  ;;  %7585 = vmatprep.subr.msk.bf16.mxu1 %vm374_vm0, %v7581_v1  ;;  %v7639_v63 = vcombine.high %v3528_v59, %v3528_v59  ;;  %v7641_v1 = vcombine.high %v3529_v60, %v3529_v60  ;;  %v8937_v59 = vld [vmem:[#allocation2 + $0xa2c] ss:$16 sps:$4 sm:$0xff]   ;;  %v4082_v60 = vld [vmem:[#allocation2 + $0xa40] sm:$0x33] }
 0x1aa   : > { %6858 = vrot.lane.b32.xlu0 %v9724_v39, %s9362_s24  ;;  %6860 = vrot.lane.b32.xlu1 %v9721_v41, %s9362_s24 }
 0x1ab   : > { %3119 = vmatpush1.bf16.msra.mxu0 %v3097_v5  ;;  %3172 = vmatpush1.bf16.msra.mxu1 %v3103_v22  ;;  %v3651_v5 = vsel %vm374_vm0, %v7638_v2, 0  ;;  %v3657_v22 = vsel %vm374_vm0, %v7640_v3, 0  ;;  %v7698_v3 = vcombine.low %v4082_v60, %v4082_v60 }
 0x1ac   : > { %3385 = vmatprep.subr.bf16.mxu0 %v8808_v6  ;;  %3438 = vmatprep.subr.bf16.mxu1 %v8811_v8  ;;  %v8876_v6 = vld [vmem:[#allocation2 + $0x8f4] ss:$16 sps:$4 sm:$0xff]   ;;  %v8879_v8 = vld [vmem:[#allocation2 + $0x8fc] ss:$16 sps:$4 sm:$0xff]  }
 0x1ae   : > { %7583 = vmatmul.mubr.msk.bf16.vlgmr.msra.gmra.mrb[0].mxu0 %vm367_vm2, %v9546_v23  ;;  %7586 = vmatmul.mubr.msk.bf16.vlgmr.msra.gmra.mrb[0].mxu1 %vm367_vm2, %v9546_v23  ;;  %v8829_v23 = vld [vmem:[#allocation2 + $0x7fc] ss:$16 sps:$4 sm:$0xff]  }
 0x1af   : > { %3386 = vmatpush1.bf16.msra.mxu0 %v8806_v9  ;;  %3439 = vmatpush1.bf16.msra.mxu1 %v8809_v10  ;;  %v3531_v9 = vpop.permute.xlu0 %3530  ;;  %v8874_v10 = vld [vmem:[#allocation2 + $0x8f0] ss:$16 sps:$4 sm:$0xff]  }
 0x1b0   : > { %3387 = vmatprep.subr.bf16.mxu0 %v8814_v11  ;;  %3440 = vmatprep.subr.bf16.mxu1 %v8817_v12  ;;  %v8877_v11 = vld [vmem:[#allocation2 + $0x8f8] ss:$16 sps:$4 sm:$0xff]   ;;  %v8882_v12 = vld [vmem:[#allocation2 + $0x914] ss:$16 sps:$4 sm:$0xff]  }
 0x1b1   : > { %3150 = vmatprep.mubr.bf16.mxu0 %v9358_v0  ;;  %3203 = vmatprep.mubr.bf16.mxu1 %v9358_v0 }
 0x1b3   : > { %3388 = vmatpush1.bf16.msra.mxu0 %v8812_v13  ;;  %3441 = vmatpush1.bf16.msra.mxu1 %v8815_v14  ;;  %v8885_v13 = vld [vmem:[#allocation2 + $0x91c] ss:$16 sps:$4 sm:$0xff]   ;;  %v8880_v14 = vld [vmem:[#allocation2 + $0x910] ss:$16 sps:$4 sm:$0xff]  }
 0x1b4   : > { %3389 = vmatprep.subr.bf16.mxu0 %v8820_v15  ;;  %3442 = vmatprep.subr.bf16.mxu1 %v8823_v16  ;;  %v8883_v15 = vld [vmem:[#allocation2 + $0x918] ss:$16 sps:$4 sm:$0xff]   ;;  %v8888_v16 = vld [vmem:[#allocation2 + $0x934] ss:$16 sps:$4 sm:$0xff]  }
 0x1b6   : > { %7584 = vmatmul.mubr.msk.bf16.gmra.mrb[4].mxu0 %vm367_vm2, %v9543_v19  ;;  %7587 = vmatmul.mubr.msk.bf16.gmra.mrb[4].mxu1 %vm367_vm2, %v9543_v19  ;;  %v7611_v19 = vcombine.high %v3252_v29, %v3252_v29  ;;  %v8903_v29 = vld [vmem:[#allocation2 + $0x97c] ss:$16 sps:$4 sm:$0xff]  }
 0x1b7   : > { %3390 = vmatpush1.bf16.msra.mxu0 %v8818_v17  ;;  %3443 = vmatpush1.bf16.msra.mxu1 %v8821_v18  ;;  %v8891_v17 = vld [vmem:[#allocation2 + $0x93c] ss:$16 sps:$4 sm:$0xff]   ;;  %v8886_v18 = vld [vmem:[#allocation2 + $0x930] ss:$16 sps:$4 sm:$0xff]  }
 0x1b8   : > { %3391 = vmatprep.subr.bf16.mxu0 %v8826_v20  ;;  %3444 = vmatprep.subr.bf16.mxu1 %v8829_v23  ;;  %v8889_v20 = vld [vmem:[#allocation2 + $0x938] ss:$16 sps:$4 sm:$0xff]   ;;  %v3533_v23 = vpop.permute.xlu1 %3532 }
 0x1b9   : > { %3417 = vmatprep.mubr.bf16.mxu0 %v9358_v0  ;;  %3470 = vmatprep.mubr.bf16.mxu1 %v9358_v0 }
 0x1bb   : > { %3392 = vmatpush1.bf16.msra.mxu0 %v8824_v21  ;;  %3445 = vmatpush1.bf16.msra.mxu1 %v8827_v24  ;;  %v8894_v21 = vld [vmem:[#allocation2 + $0x954] ss:$16 sps:$4 sm:$0xff]   ;;  %v8897_v24 = vld [vmem:[#allocation2 + $0x95c] ss:$16 sps:$4 sm:$0xff]  }
 0x1bc   : > { %3393 = vmatprep.subr.bf16.mxu0 %v8832_v25  ;;  %3446 = vmatprep.subr.bf16.mxu1 %v8835_v26  ;;  %v8892_v25 = vld [vmem:[#allocation2 + $0x950] ss:$16 sps:$4 sm:$0xff]   ;;  %v8895_v26 = vld [vmem:[#allocation2 + $0x958] ss:$16 sps:$4 sm:$0xff]  }
 0x1bf   : > { %3394 = vmatpush1.bf16.msra.mxu0 %v8830_v30  ;;  %3447 = vmatpush1.bf16.msra.mxu1 %v8833_v31  ;;  %v3805_v30 = vld [vmem:[#allocation2 + $0x990] sm:$0x33]  ;;  %v3806_v31 = vld [vmem:[#allocation2 + $0x998] sm:$0x33] }
 0x1c0   : > { %7612 = vmatprep.subr.msk.bf16.mxu0 %vm374_vm0, %v7609_v32  ;;  %7615 = vmatprep.subr.msk.bf16.mxu1 %vm374_vm0, %v7611_v19  ;;  %v8898_v32 = vld [vmem:[#allocation2 + $0x970] ss:$16 sps:$4 sm:$0xff]   ;;  %v8901_v19 = vld [vmem:[#allocation2 + $0x978] ss:$16 sps:$4 sm:$0xff]   ;;  %v7669_v33 = vcombine.high %v3805_v30, %v3805_v30  ;;  %v7671_v34 = vcombine.high %v3806_v31, %v3806_v31 }
 0x1c3   : > { %3396 = vmatpush1.bf16.msra.mxu0 %v3374_v35  ;;  %3449 = vmatpush1.bf16.msra.mxu1 %v3380_v36  ;;  %v7668_v35 = vcombine.low %v3805_v30, %v3805_v30  ;;  %v7670_v36 = vcombine.low %v3806_v31, %v3806_v31  ;;  %v8971_v30 = vld [vmem:[#allocation2 + $0xadc] ss:$16 sps:$4 sm:$0xff]   ;;  %v4359_v31 = vld [vmem:[#allocation2 + $0xaf0] sm:$0x33] }
 0x1c4   : > { %3662 = vmatprep.subr.bf16.mxu0 %v8842_v37  ;;  %3715 = vmatprep.subr.bf16.mxu1 %v8845_v38 }
 0x1c5   : > { %v3928_v37 = vsel %vm374_vm0, %v7668_v35, 0  ;;  %v3934_v38 = vsel %vm374_vm0, %v7670_v36, 0  ;;  %v7728_v36 = vcombine.low %v4359_v31, %v4359_v31 }
 0x1c6   : > { %7613 = vmatmul.mubr.msk.bf16.vlgmr.msra.gmra.mrb[0].mxu0 %vm367_vm2, %v3254_v42  ;;  %7616 = vmatmul.mubr.msk.bf16.vlgmr.msra.gmra.mrb[0].mxu1 %vm367_vm2, %v3254_v42  ;;  %v8913_v42 = vld [vmem:[#allocation2 + $0x9ac] ss:$16 sps:$4 sm:$0xff]  }
 0x1c7   : > { %3663 = vmatpush1.bf16.msra.mxu0 %v8840_v43  ;;  %3716 = vmatpush1.bf16.msra.mxu1 %v8843_v45  ;;  %v3808_v43 = vpop.permute.xlu0 %3807  ;;  %v8908_v45 = vld [vmem:[#allocation2 + $0x9a0] ss:$16 sps:$4 sm:$0xff]  }
 0x1c8   : > { %3664 = vmatprep.subr.bf16.mxu0 %v8848_v46  ;;  %3717 = vmatprep.subr.bf16.mxu1 %v8851_v47  ;;  %v8911_v46 = vld [vmem:[#allocation2 + $0x9a8] ss:$16 sps:$4 sm:$0xff]   ;;  %v8916_v47 = vld [vmem:[#allocation2 + $0x9c4] ss:$16 sps:$4 sm:$0xff]  }
 0x1c9   : > { %3427 = vmatprep.mubr.bf16.mxu0 %v9358_v0  ;;  %3480 = vmatprep.mubr.bf16.mxu1 %v9358_v0 }
 0x1cb   : > { %3665 = vmatpush1.bf16.msra.mxu0 %v8846_v4  ;;  %3718 = vmatpush1.bf16.msra.mxu1 %v8849_v7  ;;  %v8919_v4 = vld [vmem:[#allocation2 + $0x9cc] ss:$16 sps:$4 sm:$0xff]   ;;  %v8914_v7 = vld [vmem:[#allocation2 + $0x9c0] ss:$16 sps:$4 sm:$0xff]  }
 0x1cc   : > { %3666 = vmatprep.subr.bf16.mxu0 %v8854_v49  ;;  %3719 = vmatprep.subr.bf16.mxu1 %v8857_v50  ;;  %v8917_v49 = vld [vmem:[#allocation2 + $0x9c8] ss:$16 sps:$4 sm:$0xff]   ;;  %v8922_v50 = vld [vmem:[#allocation2 + $0x9e4] ss:$16 sps:$4 sm:$0xff]  }
 0x1ce   : > { %7614 = vmatmul.mubr.msk.bf16.gmra.mrb[4].mxu0 %vm367_vm2, %v3256_v53  ;;  %7617 = vmatmul.mubr.msk.bf16.gmra.mrb[4].mxu1 %vm367_vm2, %v3256_v53  ;;  %v8923_v53 = vld [vmem:[#allocation2 + $0x9e8] ss:$16 sps:$4 sm:$0xff]  }
 0x1cf   : > { %3667 = vmatpush1.bf16.msra.mxu0 %v8852_v51  ;;  %3720 = vmatpush1.bf16.msra.mxu1 %v8855_v52  ;;  %v8925_v51 = vld [vmem:[#allocation2 + $0x9ec] ss:$16 sps:$4 sm:$0xff]   ;;  %v8920_v52 = vld [vmem:[#allocation2 + $0x9e0] ss:$16 sps:$4 sm:$0xff]  }
 0x1d0   : > { %3668 = vmatprep.subr.bf16.mxu0 %v8860_v54  ;;  %3721 = vmatprep.subr.bf16.mxu1 %v8863_v55  ;;  %v3810_v54 = vpop.permute.xlu1 %3809  ;;  %v8928_v55 = vld [vmem:[#allocation2 + $0xa04] ss:$16 sps:$4 sm:$0xff]  }
 0x1d1   : > { %3694 = vmatprep.mubr.bf16.mxu0 %v9358_v0  ;;  %3747 = vmatprep.mubr.bf16.mxu1 %v9358_v0 }
 0x1d3   : > { %3669 = vmatpush1.bf16.msra.mxu0 %v8858_v56  ;;  %3722 = vmatpush1.bf16.msra.mxu1 %v8861_v57  ;;  %v8931_v56 = vld [vmem:[#allocation2 + $0xa0c] ss:$16 sps:$4 sm:$0xff]   ;;  %v8926_v57 = vld [vmem:[#allocation2 + $0xa00] ss:$16 sps:$4 sm:$0xff]  }
 0x1d4   : > { %3670 = vmatprep.subr.bf16.mxu0 %v8866_v44  ;;  %3723 = vmatprep.subr.bf16.mxu1 %v8869_v58  ;;  %v8929_v44 = vld [vmem:[#allocation2 + $0xa08] ss:$16 sps:$4 sm:$0xff]   ;;  %v8934_v58 = vld [vmem:[#allocation2 + $0xa24] ss:$16 sps:$4 sm:$0xff]  }
 0x1d7   : > { %3671 = vmatpush1.bf16.msra.mxu0 %v8864_v61  ;;  %3724 = vmatpush1.bf16.msra.mxu1 %v8867_v62  ;;  %v4083_v61 = vld [vmem:[#allocation2 + $0xa48] sm:$0x33]  ;;  %v8932_v62 = vld [vmem:[#allocation2 + $0xa20] ss:$16 sps:$4 sm:$0xff]  }
 0x1d8   : > { %7642 = vmatprep.subr.msk.bf16.mxu0 %vm374_vm0, %v7639_v63  ;;  %7645 = vmatprep.subr.msk.bf16.mxu1 %vm374_vm0, %v7641_v1  ;;  %v8935_v63 = vld [vmem:[#allocation2 + $0xa28] ss:$16 sps:$4 sm:$0xff]   ;;  %v7699_v1 = vcombine.high %v4082_v60, %v4082_v60  ;;  %v7701_v2 = vcombine.high %v4083_v61, %v4083_v61  ;;  %v9000_v60 = vld [vmem:[#allocation2 + $0xb80] ss:$16 sps:$4 sm:$0xff]  }
 0x1db   : > { %3673 = vmatpush1.bf16.msra.mxu0 %v3651_v5  ;;  %3726 = vmatpush1.bf16.msra.mxu1 %v3657_v22  ;;  %v7700_v5 = vcombine.low %v4083_v61, %v4083_v61  ;;  %v4205_v22 = vsel %vm374_vm0, %v7698_v3, 0  ;;  %v9003_v61 = vld [vmem:[#allocation2 + $0xb88] ss:$16 sps:$4 sm:$0xff]  }
 0x1dc   : > { %3939 = vmatprep.subr.bf16.mxu0 %v8876_v6  ;;  %3992 = vmatprep.subr.bf16.mxu1 %v8879_v8  ;;  %v8944_v8 = vld [vmem:[#allocation2 + $0xa54] ss:$16 sps:$4 sm:$0xff]  }
 0x1dd   : > { %v4211_v6 = vsel %vm374_vm0, %v7700_v5, 0  ;;  %v9012_v5 = vld [vmem:[#allocation2 + $0xbb4] ss:$16 sps:$4 sm:$0xff]  }
 0x1de   : > { %7643 = vmatmul.mubr.msk.bf16.vlgmr.msra.gmra.mrb[0].mxu0 %vm367_vm2, %v3531_v9  ;;  %7646 = vmatmul.mubr.msk.bf16.vlgmr.msra.gmra.mrb[0].mxu1 %vm367_vm2, %v3531_v9  ;;  %v8947_v9 = vld [vmem:[#allocation2 + $0xa5c] ss:$16 sps:$4 sm:$0xff]  }
 0x1df   : > { %3940 = vmatpush1.bf16.msra.mxu0 %v8874_v10  ;;  %3993 = vmatpush1.bf16.msra.mxu1 %v8877_v11  ;;  %v4085_v10 = vpop.permute.xlu0 %4084  ;;  %v8942_v11 = vld [vmem:[#allocation2 + $0xa50] ss:$16 sps:$4 sm:$0xff]  }
 0x1e0   : > { %3941 = vmatprep.subr.bf16.mxu0 %v8882_v12  ;;  %3994 = vmatprep.subr.bf16.mxu1 %v8885_v13  ;;  %v8945_v12 = vld [vmem:[#allocation2 + $0xa58] ss:$16 sps:$4 sm:$0xff]   ;;  %v8950_v13 = vld [vmem:[#allocation2 + $0xa74] ss:$16 sps:$4 sm:$0xff]  }
 0x1e1   : > { %3704 = vmatprep.mubr.bf16.mxu0 %v9358_v0  ;;  %3757 = vmatprep.mubr.bf16.mxu1 %v9358_v0 }
 0x1e3   : > { %3942 = vmatpush1.bf16.msra.mxu0 %v8880_v14  ;;  %3995 = vmatpush1.bf16.msra.mxu1 %v8883_v15  ;;  %v8953_v14 = vld [vmem:[#allocation2 + $0xa7c] ss:$16 sps:$4 sm:$0xff]   ;;  %v8948_v15 = vld [vmem:[#allocation2 + $0xa70] ss:$16 sps:$4 sm:$0xff]  }
 0x1e4   : > { %3943 = vmatprep.subr.bf16.mxu0 %v8888_v16  ;;  %3996 = vmatprep.subr.bf16.mxu1 %v8891_v17  ;;  %v8951_v16 = vld [vmem:[#allocation2 + $0xa78] ss:$16 sps:$4 sm:$0xff]   ;;  %v8956_v17 = vld [vmem:[#allocation2 + $0xa94] ss:$16 sps:$4 sm:$0xff]  }
 0x1e6   : > { %7644 = vmatmul.mubr.msk.bf16.gmra.mrb[4].mxu0 %vm367_vm2, %v3533_v23  ;;  %7647 = vmatmul.mubr.msk.bf16.gmra.mrb[4].mxu1 %vm367_vm2, %v3533_v23  ;;  %v8957_v23 = vld [vmem:[#allocation2 + $0xa98] ss:$16 sps:$4 sm:$0xff]  }
 0x1e7   : > { %3944 = vmatpush1.bf16.msra.mxu0 %v8886_v18  ;;  %3997 = vmatpush1.bf16.msra.mxu1 %v8889_v20  ;;  %v8959_v18 = vld [vmem:[#allocation2 + $0xa9c] ss:$16 sps:$4 sm:$0xff]   ;;  %v8954_v20 = vld [vmem:[#allocation2 + $0xa90] ss:$16 sps:$4 sm:$0xff]  }
 0x1e8   : > { %3945 = vmatprep.subr.bf16.mxu0 %v8894_v21  ;;  %3998 = vmatprep.subr.bf16.mxu1 %v8897_v24  ;;  %v4087_v21 = vpop.permute.xlu1 %4086  ;;  %v8962_v24 = vld [vmem:[#allocation2 + $0xab4] ss:$16 sps:$4 sm:$0xff]  }
 0x1e9   : > { %3971 = vmatprep.mubr.bf16.mxu0 %v9358_v0  ;;  %4024 = vmatprep.mubr.bf16.mxu1 %v9358_v0 }
 0x1eb   : > { %3946 = vmatpush1.bf16.msra.mxu0 %v8892_v25  ;;  %3999 = vmatpush1.bf16.msra.mxu1 %v8895_v26  ;;  %v8965_v25 = vld [vmem:[#allocation2 + $0xabc] ss:$16 sps:$4 sm:$0xff]   ;;  %v8960_v26 = vld [vmem:[#allocation2 + $0xab0] ss:$16 sps:$4 sm:$0xff]  }
 0x1ec   : > { %3947 = vmatprep.subr.bf16.mxu0 %v8900_v28  ;;  %4000 = vmatprep.subr.bf16.mxu1 %v8903_v29  ;;  %v8963_v28 = vld [vmem:[#allocation2 + $0xab8] ss:$16 sps:$4 sm:$0xff]   ;;  %v8968_v29 = vld [vmem:[#allocation2 + $0xad4] ss:$16 sps:$4 sm:$0xff]  }
 0x1ef   : > { %3948 = vmatpush1.bf16.msra.mxu0 %v8898_v32  ;;  %4001 = vmatpush1.bf16.msra.mxu1 %v8901_v19  ;;  %v4360_v32 = vld [vmem:[#allocation2 + $0xaf8] sm:$0x33]  ;;  %v8966_v19 = vld [vmem:[#allocation2 + $0xad0] ss:$16 sps:$4 sm:$0xff]  }
 0x1f0   : > { %7672 = vmatprep.subr.msk.bf16.mxu0 %vm374_vm0, %v7669_v33  ;;  %7675 = vmatprep.subr.msk.bf16.mxu1 %vm374_vm0, %v7671_v34  ;;  %v8969_v33 = vld [vmem:[#allocation2 + $0xad8] ss:$16 sps:$4 sm:$0xff]   ;;  %v7729_v34 = vcombine.high %v4359_v31, %v4359_v31  ;;  %v7731_v35 = vcombine.high %v4360_v32, %v4360_v32 }
 0x1f1   : > { %v9037_v31 = vld [vmem:[#allocation2 + $0xc38] ss:$16 sps:$4 sm:$0xff]  }
 0x1f3   : > { %3950 = vmatpush1.bf16.msra.mxu0 %v3928_v37  ;;  %4003 = vmatpush1.bf16.msra.mxu1 %v3934_v38  ;;  %v7730_v37 = vcombine.low %v4360_v32, %v4360_v32  ;;  %v4486_v38 = vsel %vm374_vm0, %v7728_v36, 0 }
 0x1f4   : > { %4216 = vmatprep.subr.bf16.mxu0 %v8910_v40  ;;  %4269 = vmatprep.subr.bf16.mxu1 %v8913_v42  ;;  %v8978_v42 = vld [vmem:[#allocation2 + $0xb04] ss:$16 sps:$4 sm:$0xff]  }
 0x1f5   : > { %v4492_v40 = vsel %vm374_vm0, %v7730_v37, 0  ;;  %v9046_v37 = vld [vmem:[#allocation2 + $0xc64] ss:$16 sps:$4 sm:$0xff]  }
 0x1f6   : > { %7673 = vmatmul.mubr.msk.bf16.vlgmr.msra.gmra.mrb[0].mxu0 %vm367_vm2, %v3808_v43  ;;  %7676 = vmatmul.mubr.msk.bf16.vlgmr.msra.gmra.mrb[0].mxu1 %vm367_vm2, %v3808_v43  ;;  %v8981_v43 = vld [vmem:[#allocation2 + $0xb0c] ss:$16 sps:$4 sm:$0xff]  }
 0x1f7   : > { %4217 = vmatpush1.bf16.msra.mxu0 %v8908_v45  ;;  %4270 = vmatpush1.bf16.msra.mxu1 %v8911_v46  ;;  %v8976_v45 = vld [vmem:[#allocation2 + $0xb00] ss:$16 sps:$4 sm:$0xff]   ;;  %v8979_v46 = vld [vmem:[#allocation2 + $0xb08] ss:$16 sps:$4 sm:$0xff]  }
 0x1f8   : > { %4218 = vmatprep.subr.bf16.mxu0 %v8916_v47  ;;  %4271 = vmatprep.subr.bf16.mxu1 %v8919_v4  ;;  %v8984_v47 = vld [vmem:[#allocation2 + $0xb24] ss:$16 sps:$4 sm:$0xff]   ;;  %v8987_v4 = vld [vmem:[#allocation2 + $0xb2c] ss:$16 sps:$4 sm:$0xff]  }
 0x1f9   : > { %3981 = vmatprep.mubr.bf16.mxu0 %v9358_v0  ;;  %4034 = vmatprep.mubr.bf16.mxu1 %v9358_v0 }
 0x1fb   : > { %4219 = vmatpush1.bf16.msra.mxu0 %v8914_v7  ;;  %4272 = vmatpush1.bf16.msra.mxu1 %v8917_v49  ;;  %v8982_v7 = vld [vmem:[#allocation2 + $0xb20] ss:$16 sps:$4 sm:$0xff]   ;;  %v8985_v49 = vld [vmem:[#allocation2 + $0xb28] ss:$16 sps:$4 sm:$0xff]  }
 0x1fc   : > { %4220 = vmatprep.subr.bf16.mxu0 %v8922_v50  ;;  %4273 = vmatprep.subr.bf16.mxu1 %v8925_v51  ;;  %v8990_v50 = vld [vmem:[#allocation2 + $0xb44] ss:$16 sps:$4 sm:$0xff]   ;;  %v8993_v51 = vld [vmem:[#allocation2 + $0xb4c] ss:$16 sps:$4 sm:$0xff]  }
 0x1fe   : > { %7674 = vmatmul.mubr.msk.bf16.gmra.mrb[4].mxu0 %vm367_vm2, %v3810_v54  ;;  %7677 = vmatmul.mubr.msk.bf16.gmra.mrb[4].mxu1 %vm367_vm2, %v3810_v54  ;;  %v8996_v54 = vld [vmem:[#allocation2 + $0xb64] ss:$16 sps:$4 sm:$0xff]  }
 0x1ff   : > { %4221 = vmatpush1.bf16.msra.mxu0 %v8920_v52  ;;  %4274 = vmatpush1.bf16.msra.mxu1 %v8923_v53  ;;  %v8988_v52 = vld [vmem:[#allocation2 + $0xb40] ss:$16 sps:$4 sm:$0xff]   ;;  %v8991_v53 = vld [vmem:[#allocation2 + $0xb48] ss:$16 sps:$4 sm:$0xff]  }
 0x200   : > { %4222 = vmatprep.subr.bf16.mxu0 %v8928_v55  ;;  %4275 = vmatprep.subr.bf16.mxu1 %v8931_v56  ;;  %v8994_v55 = vld [vmem:[#allocation2 + $0xb60] ss:$16 sps:$4 sm:$0xff]   ;;  %v8997_v56 = vld [vmem:[#allocation2 + $0xb68] ss:$16 sps:$4 sm:$0xff]  }
 0x201   : > { %4248 = vmatprep.mubr.bf16.mxu0 %v9358_v0  ;;  %4301 = vmatprep.mubr.bf16.mxu1 %v9358_v0 }
 0x203   : > { %4223 = vmatpush1.bf16.msra.mxu0 %v8926_v57  ;;  %4276 = vmatpush1.bf16.msra.mxu1 %v8929_v44  ;;  %v9002_v57 = vld [vmem:[#allocation2 + $0xb84] ss:$16 sps:$4 sm:$0xff]   ;;  %v9005_v44 = vld [vmem:[#allocation2 + $0xb8c] ss:$16 sps:$4 sm:$0xff]  }
 0x204   : > { %4224 = vmatprep.subr.bf16.mxu0 %v8934_v58  ;;  %4277 = vmatprep.subr.bf16.mxu1 %v8937_v59  ;;  %v4640_v58 = vld [vmem:[#allocation2 + $0xba0] sm:$0x33]  ;;  %v4641_v59 = vld [vmem:[#allocation2 + $0xba8] sm:$0x33] }
 0x207   : > { %4225 = vmatpush1.bf16.msra.mxu0 %v8932_v62  ;;  %4278 = vmatpush1.bf16.msra.mxu1 %v8935_v63  ;;  %v7759_v62 = vcombine.high %v4640_v58, %v4640_v58  ;;  %v7758_v63 = vcombine.low %v4640_v58, %v4640_v58  ;;  %v5195_v58 = vld [vmem:[#allocation2 + $0xd08] sm:$0x33] }
 0x208   : > { %7702 = vmatprep.subr.msk.bf16.mxu0 %vm374_vm0, %v7699_v1  ;;  %7705 = vmatprep.subr.msk.bf16.mxu1 %vm374_vm0, %v7701_v2  ;;  %v7760_v1 = vcombine.low %v4641_v59, %v4641_v59 }
 0x209   : > { %v4763_v2 = vsel %vm374_vm0, %v7758_v63, 0  ;;  %v7820_v63 = vcombine.low %v5195_v58, %v5195_v58 }
 0x20a   : > { %v4769_v3 = vsel %vm374_vm0, %v7760_v1, 0 }
 0x20b   : > { %4227 = vmatpush1.bf16.msra.mxu0 %v4205_v22  ;;  %4280 = vmatpush1.bf16.msra.mxu1 %v4211_v6  ;;  %v9015_v22 = vld [vmem:[#allocation2 + $0xbbc] ss:$16 sps:$4 sm:$0xff]   ;;  %v4643_v6 = vpop.permute.xlu0 %4642 }
 0x20c   : > { %4497 = vmatprep.subr.bf16.mxu0 %v8944_v8  ;;  %4550 = vmatprep.subr.bf16.mxu1 %v8947_v9  ;;  %v9010_v8 = vld [vmem:[#allocation2 + $0xbb0] ss:$16 sps:$4 sm:$0xff]   ;;  %v9013_v9 = vld [vmem:[#allocation2 + $0xbb8] ss:$16 sps:$4 sm:$0xff]  }
 0x20e   : > { %7703 = vmatmul.mubr.msk.bf16.vlgmr.msra.gmra.mrb[0].mxu0 %vm367_vm2, %v4085_v10  ;;  %7706 = vmatmul.mubr.msk.bf16.vlgmr.msra.gmra.mrb[0].mxu1 %vm367_vm2, %v4085_v10  ;;  %v9018_v10 = vld [vmem:[#allocation2 + $0xbd4] ss:$16 sps:$4 sm:$0xff]  }
 0x20f   : > { %4498 = vmatpush1.bf16.msra.mxu0 %v8942_v11  ;;  %4551 = vmatpush1.bf16.msra.mxu1 %v8945_v12  ;;  %v9021_v11 = vld [vmem:[#allocation2 + $0xbdc] ss:$16 sps:$4 sm:$0xff]   ;;  %v9016_v12 = vld [vmem:[#allocation2 + $0xbd0] ss:$16 sps:$4 sm:$0xff]  }
 0x210   : > { %4499 = vmatprep.subr.bf16.mxu0 %v8950_v13  ;;  %4552 = vmatprep.subr.bf16.mxu1 %v8953_v14  ;;  %v9019_v13 = vld [vmem:[#allocation2 + $0xbd8] ss:$16 sps:$4 sm:$0xff]   ;;  %v9024_v14 = vld [vmem:[#allocation2 + $0xbf4] ss:$16 sps:$4 sm:$0xff]  }
 0x211   : > { %4258 = vmatprep.mubr.bf16.mxu0 %v9358_v0  ;;  %4311 = vmatprep.mubr.bf16.mxu1 %v9358_v0 }
 0x213   : > { %4500 = vmatpush1.bf16.msra.mxu0 %v8948_v15  ;;  %4553 = vmatpush1.bf16.msra.mxu1 %v8951_v16  ;;  %v9027_v15 = vld [vmem:[#allocation2 + $0xbfc] ss:$16 sps:$4 sm:$0xff]   ;;  %v9022_v16 = vld [vmem:[#allocation2 + $0xbf0] ss:$16 sps:$4 sm:$0xff]  }
 0x214   : > { %4501 = vmatprep.subr.bf16.mxu0 %v8956_v17  ;;  %4554 = vmatprep.subr.bf16.mxu1 %v8959_v18  ;;  %v9025_v17 = vld [vmem:[#allocation2 + $0xbf8] ss:$16 sps:$4 sm:$0xff]   ;;  %v4645_v18 = vpop.permute.xlu1 %4644 }
 0x216   : > { %7704 = vmatmul.mubr.msk.bf16.gmra.mrb[4].mxu0 %vm367_vm2, %v4087_v21  ;;  %7707 = vmatmul.mubr.msk.bf16.gmra.mrb[4].mxu1 %vm367_vm2, %v4087_v21  ;;  %v9028_v21 = vld [vmem:[#allocation2 + $0xc10] ss:$16 sps:$4 sm:$0xff]  }
 0x217   : > { %4502 = vmatpush1.bf16.msra.mxu0 %v8954_v20  ;;  %4555 = vmatpush1.bf16.msra.mxu1 %v8957_v23  ;;  %v9030_v20 = vld [vmem:[#allocation2 + $0xc14] ss:$16 sps:$4 sm:$0xff]   ;;  %v9033_v23 = vld [vmem:[#allocation2 + $0xc1c] ss:$16 sps:$4 sm:$0xff]  }
 0x218   : > { %4503 = vmatprep.subr.bf16.mxu0 %v8962_v24  ;;  %4556 = vmatprep.subr.bf16.mxu1 %v8965_v25  ;;  %v9031_v24 = vld [vmem:[#allocation2 + $0xc18] ss:$16 sps:$4 sm:$0xff]   ;;  %v9036_v25 = vld [vmem:[#allocation2 + $0xc34] ss:$16 sps:$4 sm:$0xff]  }
 0x219   : > { %4529 = vmatprep.mubr.bf16.mxu0 %v9358_v0  ;;  %4582 = vmatprep.mubr.bf16.mxu1 %v9358_v0 }
 0x21b   : > { %4504 = vmatpush1.bf16.msra.mxu0 %v8960_v26  ;;  %4557 = vmatpush1.bf16.msra.mxu1 %v8963_v28  ;;  %v9039_v26 = vld [vmem:[#allocation2 + $0xc3c] ss:$16 sps:$4 sm:$0xff]   ;;  %v4917_v28 = vld [vmem:[#allocation2 + $0xc50] sm:$0x33] }
 0x21c   : > { %4505 = vmatprep.subr.bf16.mxu0 %v8968_v29  ;;  %4558 = vmatprep.subr.bf16.mxu1 %v8971_v30  ;;  %v4918_v29 = vld [vmem:[#allocation2 + $0xc58] sm:$0x33]  ;;  %v9034_v30 = vld [vmem:[#allocation2 + $0xc30] ss:$16 sps:$4 sm:$0xff]   ;;  %v7789_v32 = vcombine.high %v4917_v28, %v4917_v28 }
 0x21f   : > { %4506 = vmatpush1.bf16.msra.mxu0 %v8966_v19  ;;  %4559 = vmatpush1.bf16.msra.mxu1 %v8969_v33  ;;  %v7791_v19 = vcombine.high %v4918_v29, %v4918_v29  ;;  %v7788_v33 = vcombine.low %v4917_v28, %v4917_v28  ;;  %v5472_v28 = vld [vmem:[#allocation2 + $0xdb8] sm:$0x33] }
 0x220   : > { %7732 = vmatprep.subr.msk.bf16.mxu0 %vm374_vm0, %v7729_v34  ;;  %7735 = vmatprep.subr.msk.bf16.mxu1 %vm374_vm0, %v7731_v35  ;;  %v7790_v34 = vcombine.low %v4918_v29, %v4918_v29  ;;  %v9102_v29 = vld [vmem:[#allocation2 + $0xd90] ss:$16 sps:$4 sm:$0xff]  }
 0x221   : > { %v5040_v35 = vsel %vm374_vm0, %v7788_v33, 0  ;;  %v7850_v33 = vcombine.low %v5472_v28, %v5472_v28 }
 0x222   : > { %v5046_v36 = vsel %vm374_vm0, %v7790_v34, 0 }
 0x223   : > { %4508 = vmatpush1.bf16.msra.mxu0 %v4486_v38  ;;  %4561 = vmatpush1.bf16.msra.mxu1 %v4492_v40  ;;  %v9049_v38 = vld [vmem:[#allocation2 + $0xc6c] ss:$16 sps:$4 sm:$0xff]   ;;  %v4920_v40 = vpop.permute.xlu0 %4919 }
 0x224   : > { %4774 = vmatprep.subr.bf16.mxu0 %v8978_v42  ;;  %4827 = vmatprep.subr.bf16.mxu1 %v8981_v43  ;;  %v9044_v42 = vld [vmem:[#allocation2 + $0xc60] ss:$16 sps:$4 sm:$0xff]   ;;  %v9047_v43 = vld [vmem:[#allocation2 + $0xc68] ss:$16 sps:$4 sm:$0xff]  }
 0x226   : > { %7733 = vmatmul.mubr.msk.bf16.vlgmr.msra.gmra.mrb[0].mxu0 %vm367_vm2, %v9645_v27  ;;  %7736 = vmatmul.mubr.msk.bf16.vlgmr.msra.gmra.mrb[0].mxu1 %vm367_vm2, %v9645_v27  ;;  %v8999_v27 = vld [vmem:[#allocation2 + $0xb6c] ss:$16 sps:$4 sm:$0xff]  }
 0x227   : > { %4775 = vmatpush1.bf16.msra.mxu0 %v8976_v45  ;;  %4828 = vmatpush1.bf16.msra.mxu1 %v8979_v46  ;;  %v9052_v45 = vld [vmem:[#allocation2 + $0xc84] ss:$16 sps:$4 sm:$0xff]   ;;  %v9055_v46 = vld [vmem:[#allocation2 + $0xc8c] ss:$16 sps:$4 sm:$0xff]  }
 0x228   : > { %4776 = vmatprep.subr.bf16.mxu0 %v8984_v47  ;;  %4829 = vmatprep.subr.bf16.mxu1 %v8987_v4  ;;  %v9050_v47 = vld [vmem:[#allocation2 + $0xc80] ss:$16 sps:$4 sm:$0xff]   ;;  %v9053_v4 = vld [vmem:[#allocation2 + $0xc88] ss:$16 sps:$4 sm:$0xff]  }
 0x229   : > { %4539 = vmatprep.mubr.bf16.mxu0 %v9358_v0  ;;  %4592 = vmatprep.mubr.bf16.mxu1 %v9358_v0 }
 0x22b   : > { %4777 = vmatpush1.bf16.msra.mxu0 %v8982_v7  ;;  %4830 = vmatpush1.bf16.msra.mxu1 %v8985_v49  ;;  %v9058_v7 = vld [vmem:[#allocation2 + $0xca4] ss:$16 sps:$4 sm:$0xff]   ;;  %v9061_v49 = vld [vmem:[#allocation2 + $0xcac] ss:$16 sps:$4 sm:$0xff]  }
 0x22c   : > { %4778 = vmatprep.subr.bf16.mxu0 %v8990_v50  ;;  %4831 = vmatprep.subr.bf16.mxu1 %v8993_v51  ;;  %v9056_v50 = vld [vmem:[#allocation2 + $0xca0] ss:$16 sps:$4 sm:$0xff]   ;;  %v9059_v51 = vld [vmem:[#allocation2 + $0xca8] ss:$16 sps:$4 sm:$0xff]  }
 0x22e   : > { %7734 = vmatmul.mubr.msk.bf16.gmra.mrb[4].mxu0 %vm367_vm2, %v9513_v48  ;;  %7737 = vmatmul.mubr.msk.bf16.gmra.mrb[4].mxu1 %vm367_vm2, %v9513_v48  ;;  %v7761_v48 = vcombine.high %v4641_v59, %v4641_v59  ;;  %v9068_v59 = vld [vmem:[#allocation2 + $0xce0] ss:$16 sps:$4 sm:$0xff]  }
 0x22f   : > { %4779 = vmatpush1.bf16.msra.mxu0 %v8988_v52  ;;  %4832 = vmatpush1.bf16.msra.mxu1 %v8991_v53  ;;  %v4922_v52 = vpop.permute.xlu1 %4921  ;;  %v9064_v53 = vld [vmem:[#allocation2 + $0xcc4] ss:$16 sps:$4 sm:$0xff]  }
 0x230   : > { %4780 = vmatprep.subr.bf16.mxu0 %v8996_v54  ;;  %4833 = vmatprep.subr.bf16.mxu1 %v8999_v27  ;;  %v9067_v54 = vld [vmem:[#allocation2 + $0xccc] ss:$16 sps:$4 sm:$0xff]   ;;  %v9062_v27 = vld [vmem:[#allocation2 + $0xcc0] ss:$16 sps:$4 sm:$0xff]  }
 0x231   : > { %4806 = vmatprep.mubr.bf16.mxu0 %v9358_v0  ;;  %4859 = vmatprep.mubr.bf16.mxu1 %v9358_v0 }
 0x233   : > { %4781 = vmatpush1.bf16.msra.mxu0 %v8994_v55  ;;  %4834 = vmatpush1.bf16.msra.mxu1 %v8997_v56  ;;  %v9065_v55 = vld [vmem:[#allocation2 + $0xcc8] ss:$16 sps:$4 sm:$0xff]   ;;  %v9070_v56 = vld [vmem:[#allocation2 + $0xce4] ss:$16 sps:$4 sm:$0xff]  }
 0x234   : > { %4782 = vmatprep.subr.bf16.mxu0 %v9002_v57  ;;  %4835 = vmatprep.subr.bf16.mxu1 %v9005_v44  ;;  %v9073_v57 = vld [vmem:[#allocation2 + $0xcec] ss:$16 sps:$4 sm:$0xff]   ;;  %v5194_v44 = vld [vmem:[#allocation2 + $0xd00] sm:$0x33] }
 0x237   : > { %4783 = vmatpush1.bf16.msra.mxu0 %v9000_v60  ;;  %4836 = vmatpush1.bf16.msra.mxu1 %v9003_v61  ;;  %v9071_v60 = vld [vmem:[#allocation2 + $0xce8] ss:$16 sps:$4 sm:$0xff]   ;;  %v7819_v61 = vcombine.high %v5194_v44, %v5194_v44 }
 0x238   : > { %7762 = vmatprep.subr.msk.bf16.mxu0 %vm374_vm0, %v7759_v62  ;;  %7765 = vmatprep.subr.msk.bf16.mxu1 %vm374_vm0, %v7761_v48  ;;  %v7821_v62 = vcombine.high %v5195_v58, %v5195_v58  ;;  %v7818_v48 = vcombine.low %v5194_v44, %v5194_v44  ;;  %v5749_v44 = vld [vmem:[#allocation2 + $0xe68] sm:$0x33]  ;;  %v9136_v58 = vld [vmem:[#allocation2 + $0xe40] ss:$16 sps:$4 sm:$0xff]  }
 0x23a   : > { %v5317_v1 = vsel %vm374_vm0, %v7818_v48, 0  ;;  %v7880_v48 = vcombine.low %v5749_v44, %v5749_v44 }
 0x23b   : > { %4785 = vmatpush1.bf16.msra.mxu0 %v4763_v2  ;;  %4838 = vmatpush1.bf16.msra.mxu1 %v4769_v3  ;;  %v5323_v2 = vsel %vm374_vm0, %v7820_v63, 0  ;;  %v9080_v3 = vld [vmem:[#allocation2 + $0xd14] ss:$16 sps:$4 sm:$0xff]  }
 0x23c   : > { %5051 = vmatprep.subr.bf16.mxu0 %v9012_v5  ;;  %5104 = vmatprep.subr.bf16.mxu1 %v9015_v22  ;;  %v9083_v5 = vld [vmem:[#allocation2 + $0xd1c] ss:$16 sps:$4 sm:$0xff]   ;;  %v5197_v22 = vpop.permute.xlu0 %5196 }
 0x23e   : > { %7763 = vmatmul.mubr.msk.bf16.vlgmr.msra.gmra.mrb[0].mxu0 %vm367_vm2, %v4643_v6  ;;  %7766 = vmatmul.mubr.msk.bf16.vlgmr.msra.gmra.mrb[0].mxu1 %vm367_vm2, %v4643_v6  ;;  %v9078_v6 = vld [vmem:[#allocation2 + $0xd10] ss:$16 sps:$4 sm:$0xff]  }
 0x23f   : > { %5052 = vmatpush1.bf16.msra.mxu0 %v9010_v8  ;;  %5105 = vmatpush1.bf16.msra.mxu1 %v9013_v9  ;;  %v9081_v8 = vld [vmem:[#allocation2 + $0xd18] ss:$16 sps:$4 sm:$0xff]   ;;  %v9086_v9 = vld [vmem:[#allocation2 + $0xd34] ss:$16 sps:$4 sm:$0xff]  }
 0x240   : > { %5053 = vmatprep.subr.bf16.mxu0 %v9018_v10  ;;  %5106 = vmatprep.subr.bf16.mxu1 %v9021_v11  ;;  %v9089_v10 = vld [vmem:[#allocation2 + $0xd3c] ss:$16 sps:$4 sm:$0xff]   ;;  %v9084_v11 = vld [vmem:[#allocation2 + $0xd30] ss:$16 sps:$4 sm:$0xff]  }
 0x241   : > { %4816 = vmatprep.mubr.bf16.mxu0 %v9358_v0  ;;  %4869 = vmatprep.mubr.bf16.mxu1 %v9358_v0 }
 0x243   : > { %5054 = vmatpush1.bf16.msra.mxu0 %v9016_v12  ;;  %5107 = vmatpush1.bf16.msra.mxu1 %v9019_v13  ;;  %v9087_v12 = vld [vmem:[#allocation2 + $0xd38] ss:$16 sps:$4 sm:$0xff]   ;;  %v9092_v13 = vld [vmem:[#allocation2 + $0xd54] ss:$16 sps:$4 sm:$0xff]  }
 0x244   : > { %5055 = vmatprep.subr.bf16.mxu0 %v9024_v14  ;;  %5108 = vmatprep.subr.bf16.mxu1 %v9027_v15  ;;  %v9095_v14 = vld [vmem:[#allocation2 + $0xd5c] ss:$16 sps:$4 sm:$0xff]   ;;  %v9090_v15 = vld [vmem:[#allocation2 + $0xd50] ss:$16 sps:$4 sm:$0xff]  }
 0x246   : > { %7764 = vmatmul.mubr.msk.bf16.gmra.mrb[4].mxu0 %vm367_vm2, %v4645_v18  ;;  %7767 = vmatmul.mubr.msk.bf16.gmra.mrb[4].mxu1 %vm367_vm2, %v4645_v18  ;;  %v9098_v18 = vld [vmem:[#allocation2 + $0xd74] ss:$16 sps:$4 sm:$0xff]  }
 0x247   : > { %5056 = vmatpush1.bf16.msra.mxu0 %v9022_v16  ;;  %5109 = vmatpush1.bf16.msra.mxu1 %v9025_v17  ;;  %v9093_v16 = vld [vmem:[#allocation2 + $0xd58] ss:$16 sps:$4 sm:$0xff]   ;;  %v5199_v17 = vpop.permute.xlu1 %5198 }
 0x248   : > { %5057 = vmatprep.subr.bf16.mxu0 %v9030_v20  ;;  %5110 = vmatprep.subr.bf16.mxu1 %v9033_v23  ;;  %v9101_v20 = vld [vmem:[#allocation2 + $0xd7c] ss:$16 sps:$4 sm:$0xff]   ;;  %v9096_v23 = vld [vmem:[#allocation2 + $0xd70] ss:$16 sps:$4 sm:$0xff]  }
 0x249   : > { %5083 = vmatprep.mubr.bf16.mxu0 %v9358_v0  ;;  %5136 = vmatprep.mubr.bf16.mxu1 %v9358_v0 }
 0x24b   : > { %5058 = vmatpush1.bf16.msra.mxu0 %v9028_v21  ;;  %5111 = vmatpush1.bf16.msra.mxu1 %v9031_v24  ;;  %v9099_v21 = vld [vmem:[#allocation2 + $0xd78] ss:$16 sps:$4 sm:$0xff]   ;;  %v9104_v24 = vld [vmem:[#allocation2 + $0xd94] ss:$16 sps:$4 sm:$0xff]  }
 0x24c   : > { %5059 = vmatprep.subr.bf16.mxu0 %v9036_v25  ;;  %5112 = vmatprep.subr.bf16.mxu1 %v9039_v26  ;;  %v9107_v25 = vld [vmem:[#allocation2 + $0xd9c] ss:$16 sps:$4 sm:$0xff]   ;;  %v5471_v26 = vld [vmem:[#allocation2 + $0xdb0] sm:$0x33] }
 0x24f   : > { %5060 = vmatpush1.bf16.msra.mxu0 %v9034_v30  ;;  %5113 = vmatpush1.bf16.msra.mxu1 %v9037_v31  ;;  %v9105_v30 = vld [vmem:[#allocation2 + $0xd98] ss:$16 sps:$4 sm:$0xff]   ;;  %v7849_v31 = vcombine.high %v5471_v26, %v5471_v26 }
 0x250   : > { %7792 = vmatprep.subr.msk.bf16.mxu0 %vm374_vm0, %v7789_v32  ;;  %7795 = vmatprep.subr.msk.bf16.mxu1 %vm374_vm0, %v7791_v19  ;;  %v7851_v32 = vcombine.high %v5472_v28, %v5472_v28  ;;  %v7848_v19 = vcombine.low %v5471_v26, %v5471_v26 }
 0x252   : > { %v5594_v34 = vsel %vm374_vm0, %v7848_v19, 0  ;;  %v9185_v19 = vld [vmem:[#allocation2 + $0xf2c] ss:$16 sps:$4 sm:$0xff]  }
 0x253   : > { %5062 = vmatpush1.bf16.msra.mxu0 %v5040_v35  ;;  %5115 = vmatpush1.bf16.msra.mxu1 %v5046_v36  ;;  %v5600_v35 = vsel %vm374_vm0, %v7850_v33, 0  ;;  %v9114_v36 = vld [vmem:[#allocation2 + $0xdc4] ss:$16 sps:$4 sm:$0xff]  }
 0x254   : > { %5328 = vmatprep.subr.bf16.mxu0 %v9046_v37  ;;  %5381 = vmatprep.subr.bf16.mxu1 %v9049_v38  ;;  %v9117_v37 = vld [vmem:[#allocation2 + $0xdcc] ss:$16 sps:$4 sm:$0xff]   ;;  %v5474_v38 = vpop.permute.xlu0 %5473 }
 0x256   : > { %7793 = vmatmul.mubr.msk.bf16.vlgmr.msra.gmra.mrb[0].mxu0 %vm367_vm2, %v4920_v40  ;;  %7796 = vmatmul.mubr.msk.bf16.vlgmr.msra.gmra.mrb[0].mxu1 %vm367_vm2, %v4920_v40  ;;  %v9112_v40 = vld [vmem:[#allocation2 + $0xdc0] ss:$16 sps:$4 sm:$0xff]  }
 0x257   : > { %5329 = vmatpush1.bf16.msra.mxu0 %v9044_v42  ;;  %5382 = vmatpush1.bf16.msra.mxu1 %v9047_v43  ;;  %v9115_v42 = vld [vmem:[#allocation2 + $0xdc8] ss:$16 sps:$4 sm:$0xff]   ;;  %v9120_v43 = vld [vmem:[#allocation2 + $0xde4] ss:$16 sps:$4 sm:$0xff]  }
 0x258   : > { %5330 = vmatprep.subr.bf16.mxu0 %v9052_v45  ;;  %5383 = vmatprep.subr.bf16.mxu1 %v9055_v46  ;;  %v9123_v45 = vld [vmem:[#allocation2 + $0xdec] ss:$16 sps:$4 sm:$0xff]   ;;  %v9118_v46 = vld [vmem:[#allocation2 + $0xde0] ss:$16 sps:$4 sm:$0xff]   ;;  %v6028_v33 = vpop.permute.xlu0 %6027 }
 0x259   : > { %5093 = vmatprep.mubr.bf16.mxu0 %v9358_v0  ;;  %5146 = vmatprep.mubr.bf16.mxu1 %v9358_v0 }
 0x25b   : > { %5331 = vmatpush1.bf16.msra.mxu0 %v9050_v47  ;;  %5384 = vmatpush1.bf16.msra.mxu1 %v9053_v4  ;;  %v9121_v47 = vld [vmem:[#allocation2 + $0xde8] ss:$16 sps:$4 sm:$0xff]   ;;  %v9126_v4 = vld [vmem:[#allocation2 + $0xe04] ss:$16 sps:$4 sm:$0xff]  }
 0x25c   : > { %5332 = vmatprep.subr.bf16.mxu0 %v9058_v7  ;;  %5385 = vmatprep.subr.bf16.mxu1 %v9061_v49  ;;  %v9129_v7 = vld [vmem:[#allocation2 + $0xe0c] ss:$16 sps:$4 sm:$0xff]   ;;  %v9124_v49 = vld [vmem:[#allocation2 + $0xe00] ss:$16 sps:$4 sm:$0xff]  }
 0x25e   : > { %7794 = vmatmul.mubr.msk.bf16.gmra.mrb[4].mxu0 %vm367_vm2, %v4922_v52  ;;  %7797 = vmatmul.mubr.msk.bf16.gmra.mrb[4].mxu1 %vm367_vm2, %v4922_v52  ;;  %v9132_v52 = vld [vmem:[#allocation2 + $0xe24] ss:$16 sps:$4 sm:$0xff]  }
 0x25f   : > { %5333 = vmatpush1.bf16.msra.mxu0 %v9056_v50  ;;  %5386 = vmatpush1.bf16.msra.mxu1 %v9059_v51  ;;  %v9127_v50 = vld [vmem:[#allocation2 + $0xe08] ss:$16 sps:$4 sm:$0xff]   ;;  %v5476_v51 = vpop.permute.xlu1 %5475 }
 0x260   : > { %5334 = vmatprep.subr.bf16.mxu0 %v9064_v53  ;;  %5387 = vmatprep.subr.bf16.mxu1 %v9067_v54  ;;  %v9135_v53 = vld [vmem:[#allocation2 + $0xe2c] ss:$16 sps:$4 sm:$0xff]   ;;  %v9130_v54 = vld [vmem:[#allocation2 + $0xe20] ss:$16 sps:$4 sm:$0xff]  }
 0x261   : > { %5360 = vmatprep.mubr.bf16.mxu0 %v9358_v0  ;;  %5413 = vmatprep.mubr.bf16.mxu1 %v9358_v0 }
 0x263   : > { %5335 = vmatpush1.bf16.msra.mxu0 %v9062_v27  ;;  %5388 = vmatpush1.bf16.msra.mxu1 %v9065_v55  ;;  %v9133_v27 = vld [vmem:[#allocation2 + $0xe28] ss:$16 sps:$4 sm:$0xff]   ;;  %v9138_v55 = vld [vmem:[#allocation2 + $0xe44] ss:$16 sps:$4 sm:$0xff]  }
 0x264   : > { %5336 = vmatprep.subr.bf16.mxu0 %v9070_v56  ;;  %5389 = vmatprep.subr.bf16.mxu1 %v9073_v57  ;;  %v9141_v56 = vld [vmem:[#allocation2 + $0xe4c] ss:$16 sps:$4 sm:$0xff]   ;;  %v5748_v57 = vld [vmem:[#allocation2 + $0xe60] sm:$0x33] }
 0x267   : > { %5337 = vmatpush1.bf16.msra.mxu0 %v9068_v59  ;;  %5390 = vmatpush1.bf16.msra.mxu1 %v9071_v60  ;;  %v9139_v59 = vld [vmem:[#allocation2 + $0xe48] ss:$16 sps:$4 sm:$0xff]   ;;  %v7879_v60 = vcombine.high %v5748_v57, %v5748_v57 }
 0x268   : > { %7822 = vmatprep.subr.msk.bf16.mxu0 %vm374_vm0, %v7819_v61  ;;  %7825 = vmatprep.subr.msk.bf16.mxu1 %vm374_vm0, %v7821_v62  ;;  %v7881_v61 = vcombine.high %v5749_v44, %v5749_v44  ;;  %v7878_v62 = vcombine.low %v5748_v57, %v5748_v57 }
 0x26a   : > { %v5871_v63 = vsel %vm374_vm0, %v7878_v62, 0  ;;  %v9219_v62 = vld [vmem:[#allocation2 + $0xfdc] ss:$16 sps:$4 sm:$0xff]  }
 0x26b   : > { %5339 = vmatpush1.bf16.msra.mxu0 %v5317_v1  ;;  %5392 = vmatpush1.bf16.msra.mxu1 %v5323_v2  ;;  %v5877_v1 = vsel %vm374_vm0, %v7880_v48, 0  ;;  %v9148_v2 = vld [vmem:[#allocation2 + $0xe74] ss:$16 sps:$4 sm:$0xff]   ;;  %v6305_v48 = vpop.permute.xlu0 %6304 }
 0x26c   : > { %5605 = vmatprep.subr.bf16.mxu0 %v9080_v3  ;;  %5658 = vmatprep.subr.bf16.mxu1 %v9083_v5  ;;  %v9151_v3 = vld [vmem:[#allocation2 + $0xe7c] ss:$16 sps:$4 sm:$0xff]   ;;  %v9146_v5 = vld [vmem:[#allocation2 + $0xe70] ss:$16 sps:$4 sm:$0xff]  }
 0x26e   : > { %7823 = vmatmul.mubr.msk.bf16.vlgmr.msra.gmra.mrb[0].mxu0 %vm367_vm2, %v5197_v22  ;;  %7826 = vmatmul.mubr.msk.bf16.vlgmr.msra.gmra.mrb[0].mxu1 %vm367_vm2, %v5197_v22  ;;  %v9149_v22 = vld [vmem:[#allocation2 + $0xe78] ss:$16 sps:$4 sm:$0xff]  }
 0x26f   : > { %5606 = vmatpush1.bf16.msra.mxu0 %v9078_v6  ;;  %5659 = vmatpush1.bf16.msra.mxu1 %v9081_v8  ;;  %v9154_v6 = vld [vmem:[#allocation2 + $0xe94] ss:$16 sps:$4 sm:$0xff]   ;;  %v9157_v8 = vld [vmem:[#allocation2 + $0xe9c] ss:$16 sps:$4 sm:$0xff]  }
 0x270   : > { %5607 = vmatprep.subr.bf16.mxu0 %v9086_v9  ;;  %5660 = vmatprep.subr.bf16.mxu1 %v9089_v10  ;;  %v9152_v9 = vld [vmem:[#allocation2 + $0xe90] ss:$16 sps:$4 sm:$0xff]   ;;  %v9155_v10 = vld [vmem:[#allocation2 + $0xe98] ss:$16 sps:$4 sm:$0xff]  }
 0x271   : > { %5370 = vmatprep.mubr.bf16.mxu0 %v9358_v0  ;;  %5423 = vmatprep.mubr.bf16.mxu1 %v9358_v0 }
 0x273   : > { %5608 = vmatpush1.bf16.msra.mxu0 %v9084_v11  ;;  %5661 = vmatpush1.bf16.msra.mxu1 %v9087_v12  ;;  %v9160_v11 = vld [vmem:[#allocation2 + $0xeb4] ss:$16 sps:$4 sm:$0xff]   ;;  %v9163_v12 = vld [vmem:[#allocation2 + $0xebc] ss:$16 sps:$4 sm:$0xff]  }
 0x274   : > { %5609 = vmatprep.subr.bf16.mxu0 %v9092_v13  ;;  %5662 = vmatprep.subr.bf16.mxu1 %v9095_v14  ;;  %v9158_v13 = vld [vmem:[#allocation2 + $0xeb0] ss:$16 sps:$4 sm:$0xff]   ;;  %v9161_v14 = vld [vmem:[#allocation2 + $0xeb8] ss:$16 sps:$4 sm:$0xff]  }
 0x276   : > { %7824 = vmatmul.mubr.msk.bf16.gmra.mrb[4].mxu0 %vm367_vm2, %v5199_v17  ;;  %7827 = vmatmul.mubr.msk.bf16.gmra.mrb[4].mxu1 %vm367_vm2, %v5199_v17  ;;  %v9167_v17 = vld [vmem:[#allocation2 + $0xed8] ss:$16 sps:$4 sm:$0xff]  }
 0x277   : > { %5610 = vmatpush1.bf16.msra.mxu0 %v9090_v15  ;;  %5663 = vmatpush1.bf16.msra.mxu1 %v9093_v16  ;;  %v9166_v15 = vld [vmem:[#allocation2 + $0xed4] ss:$16 sps:$4 sm:$0xff]   ;;  %v9164_v16 = vld [vmem:[#allocation2 + $0xed0] ss:$16 sps:$4 sm:$0xff]  }
 0x278   : > { %5611 = vmatprep.subr.bf16.mxu0 %v9098_v18  ;;  %5664 = vmatprep.subr.bf16.mxu1 %v9101_v20  ;;  %v9172_v18 = vld [vmem:[#allocation2 + $0xef4] ss:$16 sps:$4 sm:$0xff]   ;;  %v9175_v20 = vld [vmem:[#allocation2 + $0xefc] ss:$16 sps:$4 sm:$0xff]  }
 0x279   : > { %5637 = vmatprep.mubr.bf16.mxu0 %v9358_v0  ;;  %5690 = vmatprep.mubr.bf16.mxu1 %v9358_v0 }
 0x27b   : > { %5612 = vmatpush1.bf16.msra.mxu0 %v9096_v23  ;;  %5665 = vmatpush1.bf16.msra.mxu1 %v9099_v21  ;;  %v6025_v23 = vld [vmem:[#allocation2 + $0xf10] sm:$0x33]  ;;  %v6026_v21 = vld [vmem:[#allocation2 + $0xf18] sm:$0x33] }
 0x27c   : > { %5613 = vmatprep.subr.bf16.mxu0 %v9104_v24  ;;  %5666 = vmatprep.subr.bf16.mxu1 %v9107_v25  ;;  %v9170_v24 = vld [vmem:[#allocation2 + $0xef0] ss:$16 sps:$4 sm:$0xff]   ;;  %v9173_v25 = vld [vmem:[#allocation2 + $0xef8] ss:$16 sps:$4 sm:$0xff]   ;;  %v7909_v26 = vcombine.high %v6025_v23, %v6025_v23  ;;  %v7908_v28 = vcombine.low %v6025_v23, %v6025_v23 }
 0x27d   : > { %v9241_v23 = vld [vmem:[#allocation2 + $0x1058] ss:$16 sps:$4 sm:$0xff]  }
 0x27f   : > { %5614 = vmatpush1.bf16.msra.mxu0 %v9102_v29  ;;  %5667 = vmatpush1.bf16.msra.mxu1 %v9105_v30  ;;  %v7910_v29 = vcombine.low %v6026_v21, %v6026_v21  ;;  %v6148_v30 = vsel %vm374_vm0, %v7908_v28, 0 }
 0x280   : > { %7852 = vmatprep.subr.msk.bf16.mxu0 %vm374_vm0, %v7849_v31  ;;  %7855 = vmatprep.subr.msk.bf16.mxu1 %vm374_vm0, %v7851_v32  ;;  %v9182_v32 = vld [vmem:[#allocation2 + $0xf24] ss:$16 sps:$4 sm:$0xff]  }
 0x281   : > { %v6154_v31 = vsel %vm374_vm0, %v7910_v29, 0  ;;  %v9250_v29 = vld [vmem:[#allocation2 + $0x1084] ss:$16 sps:$4 sm:$0xff]  }
 0x283   : > { %5616 = vmatpush1.bf16.msra.mxu0 %v5594_v34  ;;  %5669 = vmatpush1.bf16.msra.mxu1 %v5600_v35  ;;  %v9180_v34 = vld [vmem:[#allocation2 + $0xf20] ss:$16 sps:$4 sm:$0xff]   ;;  %v9183_v35 = vld [vmem:[#allocation2 + $0xf28] ss:$16 sps:$4 sm:$0xff]  }
 0x284   : > { %5882 = vmatprep.subr.bf16.mxu0 %v9114_v36  ;;  %5935 = vmatprep.subr.bf16.mxu1 %v9117_v37  ;;  %v9188_v36 = vld [vmem:[#allocation2 + $0xf44] ss:$16 sps:$4 sm:$0xff]   ;;  %v9191_v37 = vld [vmem:[#allocation2 + $0xf4c] ss:$16 sps:$4 sm:$0xff]  }
 0x286   : > { %7853 = vmatmul.mubr.msk.bf16.vlgmr.msra.gmra.mrb[0].mxu0 %vm367_vm2, %v5474_v38  ;;  %7856 = vmatmul.mubr.msk.bf16.vlgmr.msra.gmra.mrb[0].mxu1 %vm367_vm2, %v5474_v38  ;;  %v9186_v38 = vld [vmem:[#allocation2 + $0xf40] ss:$16 sps:$4 sm:$0xff]  }
 0x287   : > { %5883 = vmatpush1.bf16.msra.mxu0 %v9112_v40  ;;  %5936 = vmatpush1.bf16.msra.mxu1 %v9115_v42  ;;  %v9189_v40 = vld [vmem:[#allocation2 + $0xf48] ss:$16 sps:$4 sm:$0xff]   ;;  %v9194_v42 = vld [vmem:[#allocation2 + $0xf64] ss:$16 sps:$4 sm:$0xff]  }
 0x288   : > { %5884 = vmatprep.subr.bf16.mxu0 %v9120_v43  ;;  %5937 = vmatprep.subr.bf16.mxu1 %v9123_v45  ;;  %v9197_v43 = vld [vmem:[#allocation2 + $0xf6c] ss:$16 sps:$4 sm:$0xff]   ;;  %v9192_v45 = vld [vmem:[#allocation2 + $0xf60] ss:$16 sps:$4 sm:$0xff]  }
 0x289   : > { %5647 = vmatprep.mubr.bf16.mxu0 %v9358_v0  ;;  %5700 = vmatprep.mubr.bf16.mxu1 %v9358_v0 }
 0x28b   : > { %5885 = vmatpush1.bf16.msra.mxu0 %v9118_v46  ;;  %5938 = vmatpush1.bf16.msra.mxu1 %v9121_v47  ;;  %v9195_v46 = vld [vmem:[#allocation2 + $0xf68] ss:$16 sps:$4 sm:$0xff]   ;;  %v6030_v47 = vpop.permute.xlu1 %6029 }
 0x28c   : > { %5886 = vmatprep.subr.bf16.mxu0 %v9126_v4  ;;  %5939 = vmatprep.subr.bf16.mxu1 %v9129_v7  ;;  %v9200_v4 = vld [vmem:[#allocation2 + $0xf84] ss:$16 sps:$4 sm:$0xff]   ;;  %v9203_v7 = vld [vmem:[#allocation2 + $0xf8c] ss:$16 sps:$4 sm:$0xff]  }
 0x28e   : > { %7854 = vmatmul.mubr.msk.bf16.gmra.mrb[4].mxu0 %vm367_vm2, %v5476_v51  ;;  %7857 = vmatmul.mubr.msk.bf16.gmra.mrb[4].mxu1 %vm367_vm2, %v5476_v51  ;;  %v9206_v51 = vld [vmem:[#allocation2 + $0xfa4] ss:$16 sps:$4 sm:$0xff]  }
 0x28f   : > { %5887 = vmatpush1.bf16.msra.mxu0 %v9124_v49  ;;  %5940 = vmatpush1.bf16.msra.mxu1 %v9127_v50  ;;  %v9198_v49 = vld [vmem:[#allocation2 + $0xf80] ss:$16 sps:$4 sm:$0xff]   ;;  %v9201_v50 = vld [vmem:[#allocation2 + $0xf88] ss:$16 sps:$4 sm:$0xff]  }
 0x290   : > { %5888 = vmatprep.subr.bf16.mxu0 %v9132_v52  ;;  %5941 = vmatprep.subr.bf16.mxu1 %v9135_v53  ;;  %v9209_v52 = vld [vmem:[#allocation2 + $0xfac] ss:$16 sps:$4 sm:$0xff]   ;;  %v6302_v53 = vld [vmem:[#allocation2 + $0xfc0] sm:$0x33] }
 0x291   : > { %5914 = vmatprep.mubr.bf16.mxu0 %v9358_v0  ;;  %5967 = vmatprep.mubr.bf16.mxu1 %v9358_v0  ;;  %v7938_v44 = vcombine.low %v6302_v53, %v6302_v53 }
 0x293   : > { %5889 = vmatpush1.bf16.msra.mxu0 %v9130_v54  ;;  %5942 = vmatpush1.bf16.msra.mxu1 %v9133_v27  ;;  %v6303_v54 = vld [vmem:[#allocation2 + $0xfc8] sm:$0x33]  ;;  %v9204_v27 = vld [vmem:[#allocation2 + $0xfa0] ss:$16 sps:$4 sm:$0xff]  }
 0x294   : > { %5890 = vmatprep.subr.bf16.mxu0 %v9138_v55  ;;  %5943 = vmatprep.subr.bf16.mxu1 %v9141_v56  ;;  %v9207_v55 = vld [vmem:[#allocation2 + $0xfa8] ss:$16 sps:$4 sm:$0xff]   ;;  %v7939_v56 = vcombine.high %v6302_v53, %v6302_v53  ;;  %v7941_v57 = vcombine.high %v6303_v54, %v6303_v54 }
 0x295   : > { %v9275_v53 = vld [vmem:[#allocation2 + $0x1108] ss:$16 sps:$4 sm:$0xff]  }
 0x297   : > { %5891 = vmatpush1.bf16.msra.mxu0 %v9136_v58  ;;  %5944 = vmatpush1.bf16.msra.mxu1 %v9139_v59  ;;  %v7940_v58 = vcombine.low %v6303_v54, %v6303_v54  ;;  %v6425_v59 = vsel %vm374_vm0, %v7938_v44, 0 }
 0x298   : > { %7882 = vmatprep.subr.msk.bf16.mxu0 %vm374_vm0, %v7879_v60  ;;  %7885 = vmatprep.subr.msk.bf16.mxu1 %vm374_vm0, %v7881_v61  ;;  %v9216_v61 = vld [vmem:[#allocation2 + $0xfd4] ss:$16 sps:$4 sm:$0xff]  }
 0x299   : > { %v6431_v60 = vsel %vm374_vm0, %v7940_v58, 0 }
 0x29b   : > { %5893 = vmatpush1.bf16.msra.mxu0 %v5871_v63  ;;  %5946 = vmatpush1.bf16.msra.mxu1 %v5877_v1  ;;  %v9214_v63 = vld [vmem:[#allocation2 + $0xfd0] ss:$16 sps:$4 sm:$0xff]   ;;  %v9217_v1 = vld [vmem:[#allocation2 + $0xfd8] ss:$16 sps:$4 sm:$0xff]  }
 0x29c   : > { %6159 = vmatprep.subr.bf16.mxu0 %v9148_v2  ;;  %6212 = vmatprep.subr.bf16.mxu1 %v9151_v3  ;;  %v9222_v2 = vld [vmem:[#allocation2 + $0xff4] ss:$16 sps:$4 sm:$0xff]   ;;  %v9225_v3 = vld [vmem:[#allocation2 + $0xffc] ss:$16 sps:$4 sm:$0xff]  }
 0x29e   : > { %7883 = vmatmul.mubr.msk.bf16.vlgmr.msra.gmra.mrb[0].mxu0 %vm367_vm2, %v9724_v39  ;;  %7886 = vmatmul.mubr.msk.bf16.vlgmr.msra.gmra.mrb[0].mxu1 %vm367_vm2, %v9724_v39  ;;  %v9169_v39 = vld [vmem:[#allocation2 + $0xedc] ss:$16 sps:$4 sm:$0xff]  }
 0x29f   : > { %6160 = vmatpush1.bf16.msra.mxu0 %v9146_v5  ;;  %6213 = vmatpush1.bf16.msra.mxu1 %v9149_v22  ;;  %v9220_v5 = vld [vmem:[#allocation2 + $0xff0] ss:$16 sps:$4 sm:$0xff]   ;;  %v9223_v22 = vld [vmem:[#allocation2 + $0xff8] ss:$16 sps:$4 sm:$0xff]  }
 0x2a0   : > { %6161 = vmatprep.subr.bf16.mxu0 %v9154_v6  ;;  %6214 = vmatprep.subr.bf16.mxu1 %v9157_v8  ;;  %v9228_v6 = vld [vmem:[#allocation2 + $0x1014] ss:$16 sps:$4 sm:$0xff]   ;;  %v9231_v8 = vld [vmem:[#allocation2 + $0x101c] ss:$16 sps:$4 sm:$0xff]  }
 0x2a1   : > { %5924 = vmatprep.mubr.bf16.mxu0 %v9358_v0  ;;  %5977 = vmatprep.mubr.bf16.mxu1 %v9358_v0 }
 0x2a3   : > { %6162 = vmatpush1.bf16.msra.mxu0 %v9152_v9  ;;  %6215 = vmatpush1.bf16.msra.mxu1 %v9155_v10  ;;  %v9226_v9 = vld [vmem:[#allocation2 + $0x1010] ss:$16 sps:$4 sm:$0xff]   ;;  %v9229_v10 = vld [vmem:[#allocation2 + $0x1018] ss:$16 sps:$4 sm:$0xff]  }
 0x2a4   : > { %6163 = vmatprep.subr.bf16.mxu0 %v9160_v11  ;;  %6216 = vmatprep.subr.bf16.mxu1 %v9163_v12  ;;  %v6307_v11 = vpop.permute.xlu1 %6306  ;;  %v9234_v12 = vld [vmem:[#allocation2 + $0x1034] ss:$16 sps:$4 sm:$0xff]  }
 0x2a6   : > { %7884 = vmatmul.mubr.msk.bf16.gmra.mrb[4].mxu0 %vm367_vm2, %v9721_v41  ;;  %7887 = vmatmul.mubr.msk.bf16.gmra.mrb[4].mxu1 %vm367_vm2, %v9721_v41  ;;  %v7911_v41 = vcombine.high %v6026_v21, %v6026_v21 }
 0x2a7   : > { %6164 = vmatpush1.bf16.msra.mxu0 %v9158_v13  ;;  %6217 = vmatpush1.bf16.msra.mxu1 %v9161_v14  ;;  %v9237_v13 = vld [vmem:[#allocation2 + $0x103c] ss:$16 sps:$4 sm:$0xff]   ;;  %v9232_v14 = vld [vmem:[#allocation2 + $0x1030] ss:$16 sps:$4 sm:$0xff]  }
 0x2a8   : > { %6165 = vmatprep.subr.bf16.mxu0 %v9166_v15  ;;  %6218 = vmatprep.subr.bf16.mxu1 %v9169_v39  ;;  %v9235_v15 = vld [vmem:[#allocation2 + $0x1038] ss:$16 sps:$4 sm:$0xff]   ;;  %v9240_v39 = vld [vmem:[#allocation2 + $0x1054] ss:$16 sps:$4 sm:$0xff]  }
 0x2a9   : > { %6191 = vmatprep.mubr.bf16.mxu0 %v9358_v0  ;;  %6244 = vmatprep.mubr.bf16.mxu1 %v9358_v0 }
 0x2ab   : > { %6166 = vmatpush1.bf16.msra.mxu0 %v9164_v16  ;;  %6219 = vmatpush1.bf16.msra.mxu1 %v9167_v17  ;;  %v9243_v16 = vld [vmem:[#allocation2 + $0x105c] ss:$16 sps:$4 sm:$0xff]   ;;  %v6579_v17 = vld [vmem:[#allocation2 + $0x1070] sm:$0x33] }
 0x2ac   : > { %6167 = vmatprep.subr.bf16.mxu0 %v9172_v18  ;;  %6220 = vmatprep.subr.bf16.mxu1 %v9175_v20  ;;  %v6580_v18 = vld [vmem:[#allocation2 + $0x1078] sm:$0x33]  ;;  %v9238_v20 = vld [vmem:[#allocation2 + $0x1050] ss:$16 sps:$4 sm:$0xff]   ;;  %v7969_v21 = vcombine.high %v6579_v17, %v6579_v17 }
 0x2af   : > { %6168 = vmatpush1.bf16.msra.mxu0 %v9170_v24  ;;  %6221 = vmatpush1.bf16.msra.mxu1 %v9173_v25  ;;  %v7971_v24 = vcombine.high %v6580_v18, %v6580_v18  ;;  %v7968_v25 = vcombine.low %v6579_v17, %v6579_v17 }
 0x2b0   : > { %7912 = vmatprep.subr.msk.bf16.mxu0 %vm374_vm0, %v7909_v26  ;;  %7915 = vmatprep.subr.msk.bf16.mxu1 %vm374_vm0, %v7911_v41  ;;  %v7970_v26 = vcombine.low %v6580_v18, %v6580_v18 }
 0x2b1   : > { %v6702_v41 = vsel %vm374_vm0, %v7968_v25, 0 }
 0x2b2   : > { %v6708_v28 = vsel %vm374_vm0, %v7970_v26, 0 }
 0x2b3   : > { %6170 = vmatpush1.bf16.msra.mxu0 %v6148_v30  ;;  %6223 = vmatpush1.bf16.msra.mxu1 %v6154_v31  ;;  %v9253_v30 = vld [vmem:[#allocation2 + $0x108c] ss:$16 sps:$4 sm:$0xff]   ;;  %v6582_v31 = vpop.permute.xlu0 %6581 }
 0x2b4   : > { %6436 = vmatprep.subr.bf16.mxu0 %v9182_v32  ;;  %6489 = vmatprep.subr.bf16.mxu1 %v9185_v19  ;;  %v9248_v32 = vld [vmem:[#allocation2 + $0x1080] ss:$16 sps:$4 sm:$0xff]   ;;  %v9251_v19 = vld [vmem:[#allocation2 + $0x1088] ss:$16 sps:$4 sm:$0xff]  }
 0x2b6   : > { %7913 = vmatmul.mubr.msk.bf16.vlgmr.msra.gmra.mrb[0].mxu0 %vm367_vm2, %v6028_v33  ;;  %7916 = vmatmul.mubr.msk.bf16.vlgmr.msra.gmra.mrb[0].mxu1 %vm367_vm2, %v6028_v33  ;;  %v9256_v33 = vld [vmem:[#allocation2 + $0x10a4] ss:$16 sps:$4 sm:$0xff]  }
 0x2b7   : > { %6437 = vmatpush1.bf16.msra.mxu0 %v9180_v34  ;;  %6490 = vmatpush1.bf16.msra.mxu1 %v9183_v35  ;;  %v9259_v34 = vld [vmem:[#allocation2 + $0x10ac] ss:$16 sps:$4 sm:$0xff]   ;;  %v9254_v35 = vld [vmem:[#allocation2 + $0x10a0] ss:$16 sps:$4 sm:$0xff]   ;;  %v6859_v58 = vpop.permute.xlu0 %6858 }
 0x2b8   : > { %6438 = vmatprep.subr.bf16.mxu0 %v9188_v36  ;;  %6491 = vmatprep.subr.bf16.mxu1 %v9191_v37  ;;  %v9257_v36 = vld [vmem:[#allocation2 + $0x10a8] ss:$16 sps:$4 sm:$0xff]   ;;  %v9262_v37 = vld [vmem:[#allocation2 + $0x10c4] ss:$16 sps:$4 sm:$0xff]  }
 0x2b9   : > { %6201 = vmatprep.mubr.bf16.mxu0 %v9358_v0  ;;  %6254 = vmatprep.mubr.bf16.mxu1 %v9358_v0 }
 0x2bb   : > { %6439 = vmatpush1.bf16.msra.mxu0 %v9186_v38  ;;  %6492 = vmatpush1.bf16.msra.mxu1 %v9189_v40  ;;  %v9265_v38 = vld [vmem:[#allocation2 + $0x10cc] ss:$16 sps:$4 sm:$0xff]   ;;  %v9260_v40 = vld [vmem:[#allocation2 + $0x10c0] ss:$16 sps:$4 sm:$0xff]  }
 0x2bc   : > { %6440 = vmatprep.subr.bf16.mxu0 %v9194_v42  ;;  %6493 = vmatprep.subr.bf16.mxu1 %v9197_v43  ;;  %v9263_v42 = vld [vmem:[#allocation2 + $0x10c8] ss:$16 sps:$4 sm:$0xff]   ;;  %v6584_v43 = vpop.permute.xlu1 %6583 }
 0x2be   : > { %7914 = vmatmul.mubr.msk.bf16.gmra.mrb[4].mxu0 %vm367_vm2, %v6030_v47  ;;  %7917 = vmatmul.mubr.msk.bf16.gmra.mrb[4].mxu1 %vm367_vm2, %v6030_v47  ;;  %v9266_v47 = vld [vmem:[#allocation2 + $0x10e0] ss:$16 sps:$4 sm:$0xff]  }
 0x2bf   : > { %6441 = vmatpush1.bf16.msra.mxu0 %v9192_v45  ;;  %6494 = vmatpush1.bf16.msra.mxu1 %v9195_v46  ;;  %v9268_v45 = vld [vmem:[#allocation2 + $0x10e4] ss:$16 sps:$4 sm:$0xff]   ;;  %v9271_v46 = vld [vmem:[#allocation2 + $0x10ec] ss:$16 sps:$4 sm:$0xff]  }
 0x2c0   : > { %6442 = vmatprep.subr.bf16.mxu0 %v9200_v4  ;;  %6495 = vmatprep.subr.bf16.mxu1 %v9203_v7  ;;  %v9269_v4 = vld [vmem:[#allocation2 + $0x10e8] ss:$16 sps:$4 sm:$0xff]   ;;  %v9274_v7 = vld [vmem:[#allocation2 + $0x1104] ss:$16 sps:$4 sm:$0xff]  }
 0x2c1   : > { %6468 = vmatprep.mubr.bf16.mxu0 %v9358_v0  ;;  %6521 = vmatprep.mubr.bf16.mxu1 %v9358_v0 }
 0x2c3   : > { %6443 = vmatpush1.bf16.msra.mxu0 %v9198_v49  ;;  %6496 = vmatpush1.bf16.msra.mxu1 %v9201_v50  ;;  %v9277_v49 = vld [vmem:[#allocation2 + $0x110c] ss:$16 sps:$4 sm:$0xff]   ;;  %v6856_v50 = vld [vmem:[#allocation2 + $0x1120] sm:$0x33] }
 0x2c4   : > { %6444 = vmatprep.subr.bf16.mxu0 %v9206_v51  ;;  %6497 = vmatprep.subr.bf16.mxu1 %v9209_v52  ;;  %v6857_v51 = vld [vmem:[#allocation2 + $0x1128] sm:$0x33]  ;;  %v9272_v52 = vld [vmem:[#allocation2 + $0x1100] ss:$16 sps:$4 sm:$0xff]   ;;  %v7999_v54 = vcombine.high %v6856_v50, %v6856_v50 }
 0x2c7   : > { %6445 = vmatpush1.bf16.msra.mxu0 %v9204_v27  ;;  %6498 = vmatpush1.bf16.msra.mxu1 %v9207_v55  ;;  %v8001_v27 = vcombine.high %v6857_v51, %v6857_v51  ;;  %v7998_v55 = vcombine.low %v6856_v50, %v6856_v50 }
 0x2c8   : > { %7942 = vmatprep.subr.msk.bf16.mxu0 %vm374_vm0, %v7939_v56  ;;  %7945 = vmatprep.subr.msk.bf16.mxu1 %vm374_vm0, %v7941_v57  ;;  %v8000_v56 = vcombine.low %v6857_v51, %v6857_v51 }
 0x2c9   : > { %v6979_v57 = vsel %vm374_vm0, %v7998_v55, 0 }
 0x2ca   : > { %v6985_v44 = vsel %vm374_vm0, %v8000_v56, 0 }
 0x2cb   : > { %6447 = vmatpush1.bf16.msra.mxu0 %v6425_v59  ;;  %6500 = vmatpush1.bf16.msra.mxu1 %v6431_v60  ;;  %v6861_v59 = vpop.permute.xlu1 %6860  ;;  %v7114_v60 = vlaneseq }
 0x2cc   : > { %6713 = vmatprep.subr.bf16.mxu0 %v9216_v61  ;;  %6766 = vmatprep.subr.bf16.mxu1 %v9219_v62 }
 0x2cd   : > { %v7115_v61 = vshrl.u32 %v7114_v60, 7 }
 0x2ce   : > { %7943 = vmatmul.mubr.msk.bf16.vlgmr.msra.gmra.mrb[0].mxu0 %vm367_vm2, %v6305_v48  ;;  %7946 = vmatmul.mubr.msk.bf16.vlgmr.msra.gmra.mrb[0].mxu1 %vm367_vm2, %v6305_v48 }
 0x2cf   : > { %6714 = vmatpush1.bf16.msra.mxu0 %v9214_v63  ;;  %6767 = vmatpush1.bf16.msra.mxu1 %v9217_v1  ;;  %v7116_v62 = vsub.s32 0, %v7115_v61  ;;  %v7124_v48 = vsub.s32 2, %v7115_v61  ;;  %v7112_v63 = vld [vmem:[#allocation4] sm:$0xf]  ;;  %v7120_v1 = vsub.s32 1, %v7115_v61 }
 0x2d0   : > { %6715 = vmatprep.subr.bf16.mxu0 %v9222_v2  ;;  %6768 = vmatprep.subr.bf16.mxu1 %v9225_v3  ;;  %v7128_v2 = vsub.s32 3, %v7115_v61 }
 0x2d1   : > { %6478 = vmatprep.mubr.bf16.mxu0 %v9358_v0  ;;  %6531 = vmatprep.mubr.bf16.mxu1 %v9358_v0  ;;  %v7117_v3 = vrot.slane %v7112_v63, %v7116_v62 }
 0x2d3   : > { %6716 = vmatpush1.bf16.msra.mxu0 %v9220_v5  ;;  %6769 = vmatpush1.bf16.msra.mxu1 %v9223_v22  ;;  %v7125_v5 = vrot.slane %v7112_v63, %v7124_v48  ;;  %v7121_v22 = vrot.slane %v7112_v63, %v7120_v1 }
 0x2d4   : > { %6717 = vmatprep.subr.bf16.mxu0 %v9228_v6  ;;  %6770 = vmatprep.subr.bf16.mxu1 %v9231_v8  ;;  %v7129_v6 = vrot.slane %v7112_v63, %v7128_v2 }
 0x2d6   : > { %7944 = vmatmul.mubr.msk.bf16.gmra.mrb[4].mxu0 %vm367_vm2, %v6307_v11  ;;  %7947 = vmatmul.mubr.msk.bf16.gmra.mrb[4].mxu1 %vm367_vm2, %v6307_v11 }
 0x2d7   : > { %6718 = vmatpush1.bf16.msra.mxu0 %v9226_v9  ;;  %6771 = vmatpush1.bf16.msra.mxu1 %v9229_v10 }
 0x2d8   : > { %6719 = vmatprep.subr.bf16.mxu0 %v9234_v12  ;;  %6772 = vmatprep.subr.bf16.mxu1 %v9237_v13 }
 0x2d9   : > { %6745 = vmatprep.mubr.bf16.mxu0 %v9358_v0  ;;  %6798 = vmatprep.mubr.bf16.mxu1 %v9358_v0 }
 0x2db   : > { %6720 = vmatpush1.bf16.msra.mxu0 %v9232_v14  ;;  %6773 = vmatpush1.bf16.msra.mxu1 %v9235_v15 }
 0x2dc   : > { %6721 = vmatprep.subr.bf16.mxu0 %v9240_v39  ;;  %6774 = vmatprep.subr.bf16.mxu1 %v9243_v16 }
 0x2df   : > { %6722 = vmatpush1.bf16.msra.mxu0 %v9238_v20  ;;  %6775 = vmatpush1.bf16.msra.mxu1 %v9241_v23 }
 0x2e0   : > { %7972 = vmatprep.subr.msk.bf16.mxu0 %vm374_vm0, %v7969_v21  ;;  %7975 = vmatprep.subr.msk.bf16.mxu1 %vm374_vm0, %v7971_v24 }
 0x2e3   : > { %6724 = vmatpush1.bf16.msra.mxu0 %v6702_v41  ;;  %6777 = vmatpush1.bf16.msra.mxu1 %v6708_v28 }
 0x2e4   : > { %6990 = vmatprep.subr.bf16.mxu0 %v9250_v29  ;;  %7043 = vmatprep.subr.bf16.mxu1 %v9253_v30 }
 0x2e6   : > { %7973 = vmatmul.mubr.msk.bf16.vlgmr.msra.gmra.mrb[0].mxu0 %vm367_vm2, %v6582_v31  ;;  %7976 = vmatmul.mubr.msk.bf16.vlgmr.msra.gmra.mrb[0].mxu1 %vm367_vm2, %v6582_v31 }
 0x2e7   : > { %6991 = vmatpush1.bf16.msra.mxu0 %v9248_v32  ;;  %7044 = vmatpush1.bf16.msra.mxu1 %v9251_v19 }
 0x2e8   : > { %6992 = vmatprep.subr.bf16.mxu0 %v9256_v33  ;;  %7045 = vmatprep.subr.bf16.mxu1 %v9259_v34 }
 0x2e9   : > { %6755 = vmatprep.mubr.bf16.mxu0 %v9358_v0  ;;  %6808 = vmatprep.mubr.bf16.mxu1 %v9358_v0 }
 0x2eb   : > { %6993 = vmatpush1.bf16.msra.mxu0 %v9254_v35  ;;  %7046 = vmatpush1.bf16.msra.mxu1 %v9257_v36 }
 0x2ec   : > { %6994 = vmatprep.subr.bf16.mxu0 %v9262_v37  ;;  %7047 = vmatprep.subr.bf16.mxu1 %v9265_v38 }
 0x2ee   : > { %7974 = vmatmul.mubr.msk.bf16.gmra.mrb[4].mxu0 %vm367_vm2, %v6584_v43  ;;  %7977 = vmatmul.mubr.msk.bf16.gmra.mrb[4].mxu1 %vm367_vm2, %v6584_v43 }
 0x2ef   : > { %6995 = vmatpush1.bf16.msra.mxu0 %v9260_v40  ;;  %7048 = vmatpush1.bf16.msra.mxu1 %v9263_v42 }
 0x2f0   : > { %6996 = vmatprep.subr.bf16.mxu0 %v9268_v45  ;;  %7049 = vmatprep.subr.bf16.mxu1 %v9271_v46 }
 0x2f1   : > { %7022 = vmatprep.mubr.bf16.mxu0 %v9358_v0  ;;  %7075 = vmatprep.mubr.bf16.mxu1 %v9358_v0 }
 0x2f3   : > { %6997 = vmatpush1.bf16.msra.mxu0 %v9266_v47  ;;  %7050 = vmatpush1.bf16.msra.mxu1 %v9269_v4 }
 0x2f4   : > { %6998 = vmatprep.subr.bf16.mxu0 %v9274_v7  ;;  %7051 = vmatprep.subr.bf16.mxu1 %v9277_v49 }
 0x2f7   : > { %6999 = vmatpush1.bf16.msra.mxu0 %v9272_v52  ;;  %7052 = vmatpush1.bf16.msra.mxu1 %v9275_v53 }
 0x2f8   : > { %8002 = vmatprep.subr.msk.bf16.mxu0 %vm374_vm0, %v7999_v54  ;;  %8005 = vmatprep.subr.msk.bf16.mxu1 %vm374_vm0, %v8001_v27 }
 0x2fb   : > { %7001 = vmatpush1.bf16.msra.mxu0 %v6979_v57  ;;  %7054 = vmatpush1.bf16.msra.mxu1 %v6985_v44 }
 0x2fe   : > { %8003 = vmatmul.mubr.msk.bf16.vlgmr.msra.gmra.mrb[0].mxu0 %vm367_vm2, %v6859_v58  ;;  %8006 = vmatmul.mubr.msk.bf16.vlgmr.msra.gmra.mrb[0].mxu1 %vm367_vm2, %v6859_v58 }
 0x2ff   : > { %7032 = vmatprep.mubr.bf16.mxu0 %v9358_v0  ;;  %7085 = vmatprep.mubr.bf16.mxu1 %v9358_v0 }
 0x306   : > { %8004 = vmatmul.mubr.msk.bf16.gmra.mrb[4].mxu0 %vm367_vm2, %v6861_v59  ;;  %8007 = vmatmul.mubr.msk.bf16.gmra.mrb[4].mxu1 %vm367_vm2, %v6861_v59 }
 0x3d1   : > { %v7024_v0 = vpop.f32.mrb[0].mxu0  ;;  %v7077_v8 = vpop.f32.mrb[0].mxu1 }
 0x3d2   : > { %v7134_v9 = vadd.f32 %v7117_v3, %v7024_v0  ;;  %v7136_v10 = vadd.f32 %v7125_v5, %v7077_v8  ;;  %v7026_v11 = vpop.f32.mrb[1].mxu0  ;;  %v7079_v12 = vpop.f32.mrb[1].mxu1 }
 0x3d3   : > { %v7135_v13 = vadd.f32 %v7121_v22, %v7026_v11  ;;  %v7137_v14 = vadd.f32 %v7129_v6, %v7079_v12  ;;  %v7028_v15 = vpop.f32.mrb[2].mxu0  ;;  %v7081_v39 = vpop.f32.mrb[2].mxu1 }
 0x3d4   : > { %7150 = vst [vmem:[%s9916_s28] sm:$0xff] %v7134_v9  ;;  %7152 = vst [vmem:[%s9916_s28 + $0x10] sm:$0xff] %v7136_v10  ;;  %v7138_v16 = vadd.f32 %v7117_v3, %v7028_v15  ;;  %v7140_v17 = vadd.f32 %v7125_v5, %v7081_v39  ;;  %v7030_v18 = vpop.f32.mrb[3].mxu0  ;;  %v7083_v20 = vpop.f32.mrb[3].mxu1 }
 0x3d5   : > { %7151 = vst [vmem:[%s9916_s28 + $0x8] sm:$0xff] %v7135_v13  ;;  %7154 = vst.msk [vmem:[%s9916_s28 + $0x18] sm:$0xff] %vm7153_vm6, %v7137_v14  ;;  %v7139_v23 = vadd.f32 %v7121_v22, %v7030_v18  ;;  %v7141_v21 = vadd.f32 %v7129_v6, %v7083_v20 }
 0x3d6   : > { %7155 = vst [vmem:[%s9916_s28 + $0x20] sm:$0xff] %v7138_v16  ;;  %7157 = vst [vmem:[%s9916_s28 + $0x30] sm:$0xff] %v7140_v17 }
 0x3d7   : > { %7156 = vst [vmem:[%s9916_s28 + $0x28] sm:$0xff] %v7139_v23  ;;  %7158 = vst.msk [vmem:[%s9916_s28 + $0x38] sm:$0xff] %vm7153_vm6, %v7141_v21 }
 0x3d9   : > { %v7034_v24 = vpop.f32.mrb[4].mxu0  ;;  %v7087_v25 = vpop.f32.mrb[4].mxu1 }
 0x3da   : > { %v7142_v26 = vadd.f32 %v7117_v3, %v7034_v24  ;;  %v7144_v41 = vadd.f32 %v7125_v5, %v7087_v25  ;;  %v7036_v28 = vpop.f32.mrb[5].mxu0  ;;  %v7089_v29 = vpop.f32.mrb[5].mxu1 }
 0x3db   : > { %v7143_v30 = vadd.f32 %v7121_v22, %v7036_v28  ;;  %v7145_v31 = vadd.f32 %v7129_v6, %v7089_v29  ;;  %v7038_v32 = vpop.f32.mrb[6].mxu0  ;;  %v7091_v19 = vpop.f32.mrb[6].mxu1 }
 0x3dc   : > { %7159 = vst [vmem:[%s9916_s28 + $0x40] sm:$0xff] %v7142_v26  ;;  %7161 = vst [vmem:[%s9916_s28 + $0x50] sm:$0xff] %v7144_v41  ;;  %v7146_v33 = vadd.f32 %v7117_v3, %v7038_v32  ;;  %v7148_v34 = vadd.f32 %v7125_v5, %v7091_v19  ;;  %v7040_v35 = vpop.f32.mrb[7].mxu0  ;;  %v7093_v36 = vpop.f32.mrb[7].mxu1 }
 0x3dd   : > { %7160 = vst [vmem:[%s9916_s28 + $0x48] sm:$0xff] %v7143_v30  ;;  %7162 = vst.msk [vmem:[%s9916_s28 + $0x58] sm:$0xff] %vm7153_vm6, %v7145_v31  ;;  %v7147_v37 = vadd.f32 %v7121_v22, %v7040_v35  ;;  %v7149_v38 = vadd.f32 %v7129_v6, %v7093_v36 }
 0x3de   : > { %7163 = vst [vmem:[%s9916_s28 + $0x60] sm:$0xf] %v7146_v33  ;;  %7165 = vst [vmem:[%s9916_s28 + $0x70] sm:$0xf] %v7148_v34 }
 0x3df   : > { %7164 = vst [vmem:[%s9916_s28 + $0x68] sm:$0xf] %v7147_v37  ;;  %7167 = vst.msk [vmem:[%s9916_s28 + $0x78] sm:$0xf] %vm7166_vm7, %v7149_v38 }
 0x3e0 PF: > { %s15_s12 = sadd.s32 1, %s9352_s12  }
 0x3e1   : > { %p12_p5 = scmp.ge.s32.totalorder %s15_s12, 4  }
 0x3e3   :  { %14 = sbr.rel (!%p12_p5) target bundleno = 2 (0x2), region = 95 }
 0x3ea   :  { %7189 = vsyncpa [#allocation3], 1 }
 0x3eb   :  { %7191 = vsyncpa [#allocation3 + $0x1], 1 }
 0x3ec   :  { %7192 = vsyncpa [#allocation5], 1 }

</bundles_post_ra>
